<compile_context>
chip_gen: v5e
topology: v5e:2x2
jax: 0.10.0
libtpu: 0.0.40
codegen_flags: <defaults>
</compile_context>

<pallas_src>
import dataclasses
import functools

import jax
import jax.numpy as jnp
from jax.experimental import pallas as pl
from jax.experimental.pallas import tpu as pltpu

NEG = -1e9   # additive mask value (stand-in for torch.finfo(dtype).min)
EPS = 1e-6


@dataclasses.dataclass(frozen=True)
class Config:
    vocab: int = 256
    d_model: int = 128          # lane-dense width (multiple of 128)
    d_ff: int = 256
    n_heads: int = 4
    d_kv: int = 32              # n_heads * d_kv == d_model == 128
    n_enc_layers: int = 2
    n_dec_layers: int = 2
    rel_buckets: int = 32
    max_distance: int = 128
    num_layers_unfrozen: int = 1


# --------------------------------------------------------------------------
# In-kernel helpers (f32 norm/softmax math, bf16 MXU operands)
# --------------------------------------------------------------------------
def _rms(x, w, eps=EPS):
    """T5LayerNorm: no mean subtraction, no bias (f32 math)."""
    var = jnp.mean(x * x, axis=-1, keepdims=True)
    return x * jax.lax.rsqrt(var + eps) * w


def _softmax_rows(s):
    s = s - jnp.max(s, axis=-1, keepdims=True)
    p = jnp.exp(s)
    return p * pl.reciprocal(jnp.sum(p, axis=-1, keepdims=True), approx=True)


def _mha_one_batch(q_b, k_b, v_b, biases, H, dk):
    """Per-head softmax(q k^T + bias) v for one batch element.

    q_b: (Sq, inner) f32, k_b/v_b: (Sk, inner) f32, biases: list of H (Sq,Sk)
    additive f32 biases.  No 1/sqrt(dk) scaling (T5 convention).
    Returns (Sq, inner) f32 context (heads concatenated).
    """
    ctx_heads = []
    for h in range(H):
        lo, hi = h * dk, (h + 1) * dk
        s = jax.lax.dot_general(
            q_b[:, lo:hi].astype(jnp.bfloat16),
            k_b[:, lo:hi].astype(jnp.bfloat16),
            (((1,), (1,)), ((), ())),
            preferred_element_type=jnp.float32)                     # (Sq, Sk)
        p = _softmax_rows(s + biases[h])
        ctx_heads.append(jnp.dot(p.astype(jnp.bfloat16),
                                 v_b[:, lo:hi].astype(jnp.bfloat16),
                                 preferred_element_type=jnp.float32))
    return jnp.concatenate(ctx_heads, axis=-1)                      # (Sq, inner)


def _self_attn_block(x2, ln, wqkv_ref, wo_ref, bias_ref, B, S, H, dk):
    """rmsnorm + fused QKV + per-head attention + single output projection."""
    inner = H * dk
    normed = _rms(x2, ln)
    qkv = jnp.dot(normed.astype(jnp.bfloat16), wqkv_ref[0],
                  preferred_element_type=jnp.float32)               # (B*S, 3I)
    ctx_rows = []
    for b in range(B):
        rows = slice(b * S, (b + 1) * S)
        biases = [bias_ref[b * H + h] for h in range(H)]            # (S, S) each
        ctx_rows.append(_mha_one_batch(qkv[rows, :inner],
                                       qkv[rows, inner:2 * inner],
                                       qkv[rows, 2 * inner:],
                                       biases, H, dk))
    ctx = jnp.concatenate(ctx_rows, axis=0)                         # (B*S, inner)
    return x2 + jnp.dot(ctx.astype(jnp.bfloat16), wo_ref[0],
                        preferred_element_type=jnp.float32)


def _cross_attn_block(x2, enc2, ln, wq_ref, wkv_ref, wo_ref, xmask,
                      B, Sd, Se, H, dk):
    inner = H * dk
    normed = _rms(x2, ln)
    q = jnp.dot(normed.astype(jnp.bfloat16), wq_ref[0],
                preferred_element_type=jnp.float32)                 # (B*Sd, I)
    kv = jnp.dot(enc2.astype(jnp.bfloat16), wkv_ref[0],
                 preferred_element_type=jnp.float32)                # (B*Se, 2I)
    ctx_rows = []
    for b in range(B):
        qrows = slice(b * Sd, (b + 1) * Sd)
        krows = slice(b * Se, (b + 1) * Se)
        # broadcast hoisted out of the head loop (no per-head re-broadcast)
        mask_b = jnp.broadcast_to(xmask[b], (Sd, Se))
        biases = [mask_b] * H
        ctx_rows.append(_mha_one_batch(q[qrows], kv[krows, :inner],
                                       kv[krows, inner:], biases, H, dk))
    ctx = jnp.concatenate(ctx_rows, axis=0)
    return x2 + jnp.dot(ctx.astype(jnp.bfloat16), wo_ref[0],
                        preferred_element_type=jnp.float32)


def _ffn_block(x2, ln, wi_ref, wo_ref):
    normed = _rms(x2, ln)
    h = jnp.maximum(jnp.dot(normed.astype(jnp.bfloat16), wi_ref[0],
                            preferred_element_type=jnp.float32), 0.0)
    return x2 + jnp.dot(h.astype(jnp.bfloat16), wo_ref[0],
                        preferred_element_type=jnp.float32)


# --------------------------------------------------------------------------
# Fused stack kernels: grid=(L,), residual resident in VMEM scratch
# --------------------------------------------------------------------------
def _encoder_stack_kernel(B, S, H, dk, eps,
                          x0_ref, bias_ref,
                          ln1_ref, wqkv_ref, wo_sa_ref,
                          ln2_ref, wi_ref, wo_ff_ref, fln_ref,
                          pre_ref, final_ref, x_scr):
    l = pl.program_id(0)

    @pl.when(l == 0)
    def _():
        x_scr[...] = x0_ref[...]

    D = x_scr.shape[-1]
    x = x_scr[...]
    pre_ref[...] = x                       # hidden state entering block l
    x2 = x.reshape(B * S, D)

    x2 = _self_attn_block(x2, ln1_ref[0], wqkv_ref, wo_sa_ref, bias_ref,
                          B, S, H, dk)
    x2 = _ffn_block(x2, ln2_ref[0], wi_ref, wo_ff_ref)
    x_scr[...] = x2.reshape(B, S, D)

    @pl.when(l == pl.num_programs(0) - 1)
    def _():
        final_ref[...] = _rms(x2, fln_ref[...], eps).reshape(B, S, D)


def _decoder_stack_kernel(B, Sd, Se, H, dk, eps, with_value,
                          x0_ref, enc_ref, bias_ref, xmask_ref,
                          ln1_ref, wqkv_ref, wo_sa_ref,
                          ln2_ref, wq_ref, wkv_ref, wo_ca_ref,
                          ln3_ref, wi_ref, wo_ff_ref,
                          fln_ref, lm_ref, *rest):
    if with_value:
        (vw0_ref, vb0_ref, vw1_ref, vb1_ref,
         pre_ref, normed_ref, logits_ref, value_ref, x_scr) = rest
    else:
        pre_ref, logits_ref, x_scr = rest

    l = pl.program_id(0)

    @pl.when(l == 0)
    def _():
        x_scr[...] = x0_ref[...]

    D = x_scr.shape[-1]
    x = x_scr[...]
    pre_ref[...] = x                       # hidden state entering block l
    x2 = x.reshape(B * Sd, D)
    enc2 = enc_ref[...].reshape(B * Se, D)
    xmask = xmask_ref[...]                 # (B, 1, Se) additive key mask

    x2 = _self_attn_block(x2, ln1_ref[0], wqkv_ref, wo_sa_ref, bias_ref,
                          B, Sd, H, dk)
    x2 = _cross_attn_block(x2, enc2, ln2_ref[0], wq_ref, wkv_ref, wo_ca_ref,
                           xmask, B, Sd, Se, H, dk)
    x2 = _ffn_block(x2, ln3_ref[0], wi_ref, wo_ff_ref)
    x_scr[...] = x2.reshape(B, Sd, D)

    @pl.when(l == pl.num_programs(0) - 1)
    def _():
        normed = _rms(x2, fln_ref[...], eps)
        nb = normed.astype(jnp.bfloat16)
        V = lm_ref.shape[-1]
        # Untied lm_head (T5-v1.1 convention): no d_model**-0.5 rescale.
        logits_ref[...] = jnp.dot(nb, lm_ref[...],
                                  preferred_element_type=jnp.float32
                                  ).reshape(B, Sd, V)
        if with_value:
            normed_ref[...] = normed.reshape(B, Sd, D)
            # v_head = make_head(hidden, 1): Linear(D,2D) -> ReLU -> Linear(2D,1)
            h = jnp.dot(nb, vw0_ref[...],
                        preferred_element_type=jnp.float32) + vb0_ref[...]
            h = jnp.maximum(h, 0.0)
            val = jnp.dot(h.astype(jnp.bfloat16), vw1_ref[...],
                          preferred_element_type=jnp.float32) + vb1_ref[...]
            value_ref[...] = val.reshape(B, Sd, 128)


# --------------------------------------------------------------------------
# Wrappers (one pallas_call per stack)
# --------------------------------------------------------------------------
_ARB = pltpu.CompilerParams(dimension_semantics=("arbitrary",))


def encoder_stack(params, x0, bias, cfg):
    """Full encoder.  Returns (pre_block_hidden (L,B,S,D), final_ln_out)."""
    B, S, D = x0.shape
    H, dk = cfg.n_heads, cfg.d_kv
    I, FF = H * dk, cfg.d_ff
    e = params["enc"]
    L = e["ln1"].shape[0]
    pre, final = pl.pallas_call(
        functools.partial(_encoder_stack_kernel, B, S, H, dk, EPS),
        out_shape=(jax.ShapeDtypeStruct((L * B, S, D), jnp.float32),
                   jax.ShapeDtypeStruct((B, S, D), jnp.float32)),
        grid=(L,),
        in_specs=[
            pl.BlockSpec((B, S, D), lambda l: (0, 0, 0)),          # x0
            pl.BlockSpec((B * H, S, S), lambda l: (0, 0, 0)),      # self bias
            pl.BlockSpec((1, 1, D), lambda l: (l, 0, 0)),          # ln1
            pl.BlockSpec((1, D, 3 * I), lambda l: (l, 0, 0)),      # wqkv
            pl.BlockSpec((1, I, D), lambda l: (l, 0, 0)),          # wo (attn)
            pl.BlockSpec((1, 1, D), lambda l: (l, 0, 0)),          # ln2
            pl.BlockSpec((1, D, FF), lambda l: (l, 0, 0)),         # wi
            pl.BlockSpec((1, FF, D), lambda l: (l, 0, 0)),         # wo (ffn)
            pl.BlockSpec((1, D), lambda l: (0, 0)),                # final ln
        ],
        out_specs=(pl.BlockSpec((B, S, D), lambda l: (l, 0, 0)),
                   pl.BlockSpec((B, S, D), lambda l: (0, 0, 0))),
        scratch_shapes=[pltpu.VMEM((B, S, D), jnp.float32)],
        compiler_params=_ARB,
    )(x0, bias, e["ln1"], e["wqkv"], e["wo_sa"], e["ln2"], e["wi"], e["wo_ff"],
      params["enc_final_ln"])
    return pre.reshape(L, B, S, D), final


def decoder_stack(params, x0, enc_out, self_bias, cross_mask, cfg, *,
                  with_value, layer_slice=slice(None)):
    """Decoder (or hydra-branch tail) + final norm + lm_head (+ value head)."""
    B, Sd, D = x0.shape
    Se = enc_out.shape[1]
    H, dk = cfg.n_heads, cfg.d_kv
    I, FF = H * dk, cfg.d_ff
    V = params["lm_head"].shape[1]
    d = {k: v[layer_slice] for k, v in params["dec"].items()}
    L = d["ln1"].shape[0]

    in_specs = [
        pl.BlockSpec((B, Sd, D), lambda l: (0, 0, 0)),             # x0
        pl.BlockSpec((B, Se, D), lambda l: (0, 0, 0)),             # encoder out
        pl.BlockSpec((B * H, Sd, Sd), lambda l: (0, 0, 0)),        # self bias
        pl.BlockSpec((B, 1, Se), lambda l: (0, 0, 0)),             # cross key mask
        pl.BlockSpec((1, 1, D), lambda l: (l, 0, 0)),              # ln1
        pl.BlockSpec((1, D, 3 * I), lambda l: (l, 0, 0)),          # wqkv
        pl.BlockSpec((1, I, D), lambda l: (l, 0, 0)),              # wo (self)
        pl.BlockSpec((1, 1, D), lambda l: (l, 0, 0)),              # ln2
        pl.BlockSpec((1, D, I), lambda l: (l, 0, 0)),              # wq (cross)
        pl.BlockSpec((1, D, 2 * I), lambda l: (l, 0, 0)),          # wkv (cross)
        pl.BlockSpec((1, I, D), lambda l: (l, 0, 0)),              # wo (cross)
        pl.BlockSpec((1, 1, D), lambda l: (l, 0, 0)),              # ln3
        pl.BlockSpec((1, D, FF), lambda l: (l, 0, 0)),             # wi
        pl.BlockSpec((1, FF, D), lambda l: (l, 0, 0)),             # wo (ffn)
        pl.BlockSpec((1, D), lambda l: (0, 0)),                    # final ln
        pl.BlockSpec((D, V), lambda l: (0, 0)),                    # lm head
    ]
    args = [x0, enc_out, self_bias, cross_mask,
            d["ln1"], d["wqkv"], d["wo_sa"],
            d["ln2"], d["wq"], d["wkv"], d["wo_ca"],
            d["ln3"], d["wi"], d["wo_ff"],
            params["dec_final_ln"], params["lm_head"]]

    if with_value:
        H2 = params["v_w0"].shape[1]
        in_specs += [
            pl.BlockSpec((D, H2), lambda l: (0, 0)),
            pl.BlockSpec((1, H2), lambda l: (0, 0)),
            pl.BlockSpec((H2, 128), lambda l: (0, 0)),
            pl.BlockSpec((1, 128), lambda l: (0, 0)),
        ]
        args += [params["v_w0"], params["v_b0"],
                 params["v_w1_pad"], params["v_b1_pad"]]
        out_shape = (jax.ShapeDtypeStruct((L * B, Sd, D), jnp.float32),
                     jax.ShapeDtypeStruct((B, Sd, D), jnp.float32),
                     jax.ShapeDtypeStruct((B, Sd, V), jnp.float32),
                     jax.ShapeDtypeStruct((B, Sd, 128), jnp.float32))
        out_specs = (pl.BlockSpec((B, Sd, D), lambda l: (l, 0, 0)),
                     pl.BlockSpec((B, Sd, D), lambda l: (0, 0, 0)),
                     pl.BlockSpec((B, Sd, V), lambda l: (0, 0, 0)),
                     pl.BlockSpec((B, Sd, 128), lambda l: (0, 0, 0)))
    else:
        out_shape = (jax.ShapeDtypeStruct((L * B, Sd, D), jnp.float32),
                     jax.ShapeDtypeStruct((B, Sd, V), jnp.float32))
        out_specs = (pl.BlockSpec((B, Sd, D), lambda l: (l, 0, 0)),
                     pl.BlockSpec((B, Sd, V), lambda l: (0, 0, 0)))

    outs = pl.pallas_call(
        functools.partial(_decoder_stack_kernel, B, Sd, Se, H, dk, EPS,
                          with_value),
        out_shape=out_shape,
        grid=(L,),
        in_specs=in_specs,
        out_specs=out_specs,
        scratch_shapes=[pltpu.VMEM((B, Sd, D), jnp.float32)],
        compiler_params=_ARB,
    )(*args)

    if with_value:
        pre, normed, logits, value_pad = outs
        return pre.reshape(L, B, Sd, D), normed, logits, value_pad
    pre, logits = outs
    return pre.reshape(L, B, Sd, D), logits


# --------------------------------------------------------------------------
# Plain-JAX glue: embeddings, relative-position bias, masks (jitted together
# with the Pallas calls).
# --------------------------------------------------------------------------
def _relative_position_bucket(relative_position, bidirectional, num_buckets,
                              max_distance):
    relative_buckets = jnp.zeros_like(relative_position)
    if bidirectional:
        num_buckets //= 2
        relative_buckets += (relative_position > 0).astype(jnp.int32) * num_buckets
        relative_position = jnp.abs(relative_position)
    else:
        relative_position = -jnp.minimum(relative_position, 0)
    max_exact = num_buckets // 2
    is_small = relative_position < max_exact
    rp_f = jnp.maximum(relative_position, 1).astype(jnp.float32)
    rel_if_large = max_exact + (
        jnp.log(rp_f / max_exact) / jnp.log(max_distance / max_exact)
        * (num_buckets - max_exact)
    ).astype(jnp.int32)
    rel_if_large = jnp.minimum(rel_if_large, num_buckets - 1)
    relative_buckets += jnp.where(is_small, relative_position, rel_if_large)
    return relative_buckets


def compute_position_bias(q_len, k_len, rel_emb, bidirectional, cfg):
    ctx = jnp.arange(q_len, dtype=jnp.int32)[:, None]
    mem = jnp.arange(k_len, dtype=jnp.int32)[None, :]
    rel = mem - ctx
    buckets = _relative_position_bucket(rel, bidirectional, cfg.rel_buckets,
                                        cfg.max_distance)
    values = rel_emb[buckets]                        # (q, k, H)
    return jnp.transpose(values, (2, 0, 1))          # (H, q, k)


def _causal_add(Sd):
    return NEG * (jnp.arange(Sd)[None, :] > jnp.arange(Sd)[:, None]
                  ).astype(jnp.float32)


def _forward_core(params, input_ids, attention_mask, decoder_input_ids, cfg):
    """Seq2SeqLMHydraWithValueHead.forward (logits / hidden states / value)."""
    H = cfg.n_heads
    B, Se = input_ids.shape
    Sd = decoder_input_ids.shape[1]

    key_mask_add = (1.0 - attention_mask.astype(jnp.float32)) * NEG   # (B, Se)

    # ---- encoder ----
    enc_x0 = params["embed"][input_ids]
    enc_pos = compute_position_bias(Se, Se, params["enc_rel_bias"], True, cfg)
    enc_bias = (enc_pos[None] + key_mask_add[:, None, None, :]
                ).reshape(B * H, Se, Se)
    enc_pre, enc_last = encoder_stack(params, enc_x0, enc_bias, cfg)
    enc_hs = tuple(enc_pre[l] for l in range(cfg.n_enc_layers)) + (enc_last,)

    # ---- decoder + heads ----
    dec_x0 = params["embed"][decoder_input_ids]
    dec_pos = compute_position_bias(Sd, Sd, params["dec_rel_bias"], False, cfg)
    self_bias = jnp.broadcast_to((dec_pos + _causal_add(Sd)[None])[None],
                                 (B, H, Sd, Sd)).reshape(B * H, Sd, Sd)
    cross_mask = key_mask_add[:, None, :]                             # (B,1,Se)

    dec_pre, normed, logits, value_pad = decoder_stack(
        params, dec_x0, enc_last, self_bias, cross_mask, cfg, with_value=True)
    dec_hs = tuple(dec_pre[l] for l in range(cfg.n_dec_layers)) + (normed,)

    return {
        "logits": logits,
        "decoder_hidden_states": dec_hs,
        "encoder_hidden_states": enc_hs,
        "encoder_last_hidden_state": enc_last,
        # lane-dense padded value head: column 0 is the real output,
        # columns 1..127 are exactly zero by construction of v_w1_pad/v_b1_pad.
        "value": value_pad[:, :, 0],
    }


def _hydra_branch(params, x_in, enc_last, attention_mask, cfg):
    """Frozen T5Branch: last `num_layers_unfrozen` decoder blocks + ln + lm_head."""
    n = cfg.num_layers_unfrozen
    B, Sd, _ = x_in.shape
    H = cfg.n_heads
    # Branch block 0 has no relative-attention-bias table -> causal mask only.
    self_bias = jnp.broadcast_to(_causal_add(Sd)[None, None],
                                 (B, H, Sd, Sd)).reshape(B * H, Sd, Sd)
    cross_mask = ((1.0 - attention_mask.astype(jnp.float32)) * NEG)[:, None, :]
    _, logits = decoder_stack(params, x_in, enc_last, self_bias, cross_mask,
                              cfg, with_value=False,
                              layer_slice=slice(cfg.n_dec_layers - n, None))
    return logits


@functools.partial(jax.jit, static_argnames=("cfg",))
def forward(params, input_ids, attention_mask, decoder_input_ids, *, cfg):
    return _forward_core(params, input_ids, attention_mask, decoder_input_ids,
                         cfg)


@functools.partial(jax.jit, static_argnames=("cfg",))
def forward_with_hydra(params, input_ids, attention_mask, decoder_input_ids,
                       *, cfg):
    """Run forward ONCE and compute hydra logits from its outputs (no recompute)."""
    out = _forward_core(params, input_ids, attention_mask, decoder_input_ids,
                        cfg)
    n = cfg.num_layers_unfrozen
    x_in = out["decoder_hidden_states"][-(n + 1)]
    hydra_logits = _hydra_branch(params, x_in,
                                 out["encoder_last_hidden_state"],
                                 attention_mask, cfg)
    return out, hydra_logits


def forward_hydra(params, input_ids, attention_mask, decoder_input_ids, *, cfg):
    # Torch semantics: forward_hydra internally re-runs forward; we reuse the
    # combined jitted function so encoder/decoder run only once.
    return forward_with_hydra(params, input_ids, attention_mask,
                              decoder_input_ids, cfg=cfg)[1]


# --------------------------------------------------------------------------
# Deterministic synthetic parameter init (no checkpoint loading).
# Matmul weights stored in bf16 (MXU operands); norms/biases in f32.
# Per-layer weights are pre-stacked along a leading L axis for the
# grid-over-layers kernels.
# --------------------------------------------------------------------------
def init_params(key, cfg):
    keys = iter(jax.random.split(key, 256))

    def nrm(shape, scale=0.05):
        return scale * jax.random.normal(next(keys), shape, jnp.float32)

    D, FF, H, DK, V = cfg.d_model, cfg.d_ff, cfg.n_heads, cfg.d_kv, cfg.vocab
    I = H * DK
    Le, Ld = cfg.n_enc_layers, cfg.n_dec_layers

    def stack(fn, L):
        return jnp.stack([fn() for _ in range(L)], axis=0)

    enc = {
        "ln1": jnp.ones((Le, 1, D), jnp.float32),
        "wqkv": stack(lambda: nrm((D, 3 * I)), Le).astype(jnp.bfloat16),
        "wo_sa": stack(lambda: nrm((I, D)), Le).astype(jnp.bfloat16),
        "ln2": jnp.ones((Le, 1, D), jnp.float32),
        "wi": stack(lambda: nrm((D, FF)), Le).astype(jnp.bfloat16),
        "wo_ff": stack(lambda: nrm((FF, D)), Le).astype(jnp.bfloat16),
    }
    dec = {
        "ln1": jnp.ones((Ld, 1, D), jnp.float32),
        "wqkv": stack(lambda: nrm((D, 3 * I)), Ld).astype(jnp.bfloat16),
        "wo_sa": stack(lambda: nrm((I, D)), Ld).astype(jnp.bfloat16),
        "ln2": jnp.ones((Ld, 1, D), jnp.float32),
        "wq": stack(lambda: nrm((D, I)), Ld).astype(jnp.bfloat16),
        "wkv": stack(lambda: nrm((D, 2 * I)), Ld).astype(jnp.bfloat16),
        "wo_ca": stack(lambda: nrm((I, D)), Ld).astype(jnp.bfloat16),
        "ln3": jnp.ones((Ld, 1, D), jnp.float32),
        "wi": stack(lambda: nrm((D, FF)), Ld).astype(jnp.bfloat16),
        "wo_ff": stack(lambda: nrm((FF, D)), Ld).astype(jnp.bfloat16),
    }
    # value head: Linear(D, 2D) -> ReLU -> Linear(2D, 1); final projection is
    # zero-padded to a lane-dense 128-wide slab (column 0 is the real output).
    v_w1 = nrm((2 * D, 1))
    v_w1_pad = jnp.zeros((2 * D, 128), jnp.float32).at[:, :1].set(v_w1)

    return {
        "embed": nrm((V, D), 1.0),
        "enc_rel_bias": nrm((cfg.rel_buckets, H)),
        "enc": enc,
        "enc_final_ln": jnp.ones((1, D), jnp.float32),
        "dec_rel_bias": nrm((cfg.rel_buckets, H)),
        "dec": dec,
        "dec_final_ln": jnp.ones((1, D), jnp.float32),
        "lm_head": nrm((D, V)).astype(jnp.bfloat16),
        "v_w0": nrm((D, 2 * D)).astype(jnp.bfloat16),
        "v_b0": jnp.zeros((1, 2 * D), jnp.float32),
        "v_w1_pad": v_w1_pad.astype(jnp.bfloat16),
        "v_b1_pad": jnp.zeros((1, 128), jnp.float32),
    }


# --------------------------------------------------------------------------
# Pure-JAX reference (mirrors the kernel math: bf16 MXU operands, f32
# softmax/norms) for a tolerance check.
# --------------------------------------------------------------------------
def _ref_mm(a, w):
    return jnp.einsum("...d,df->...f", a.astype(jnp.bfloat16), w,
                      preferred_element_type=jnp.float32)


def _ref_attention(q, k, v, bias, H, dk):
    B, Sq, inner = q.shape
    Sk = k.shape[1]
    qh = q.reshape(B, Sq, H, dk).astype(jnp.bfloat16)
    kh = k.reshape(B, Sk, H, dk).astype(jnp.bfloat16)
    vh = v.reshape(B, Sk, H, dk).astype(jnp.bfloat16)
    s = jnp.einsum("bqhd,bkhd->bhqk", qh, kh,
                   preferred_element_type=jnp.float32) + bias
    p = jax.nn.softmax(s, axis=-1)
    ctx = jnp.einsum("bhqk,bkhd->bqhd", p.astype(jnp.bfloat16), vh,
                     preferred_element_type=jnp.float32)
    return ctx.reshape(B, Sq, inner)


def _ref_dec_block(x, enc_last, d, l, self_bias, cross_bias, H, dk):
    inner = H * dk
    n = _rms(x, d["ln1"][l])
    qkv = _ref_mm(n, d["wqkv"][l])
    ctx = _ref_attention(qkv[..., :inner], qkv[..., inner:2 * inner],
                         qkv[..., 2 * inner:], self_bias, H, dk)
    x = x + _ref_mm(ctx, d["wo_sa"][l])
    n = _rms(x, d["ln2"][l])
    q = _ref_mm(n, d["wq"][l])
    kv = _ref_mm(enc_last, d["wkv"][l])
    ctx = _ref_attention(q, kv[..., :inner], kv[..., inner:], cross_bias, H, dk)
    x = x + _ref_mm(ctx, d["wo_ca"][l])
    n = _rms(x, d["ln3"][l])
    x = x + _ref_mm(jnp.maximum(_ref_mm(n, d["wi"][l]), 0.0), d["wo_ff"][l])
    return x


@functools.partial(jax.jit, static_argnames=("cfg",))
def _ref_forward_and_hydra(params, input_ids, attention_mask,
                           decoder_input_ids, *, cfg):
    H, dk = cfg.n_heads, cfg.d_kv
    inner = H * dk
    B, Se = input_ids.shape
    Sd = decoder_input_ids.shape[1]
    key_mask = (1.0 - attention_mask.astype(jnp.float32)) * NEG

    # encoder
    x = params["embed"][input_ids]
    enc_pos = compute_position_bias(Se, Se, params["enc_rel_bias"], True, cfg)
    enc_bias = enc_pos[None] + key_mask[:, None, None, :]
    e = params["enc"]
    for l in range(cfg.n_enc_layers):
        n = _rms(x, e["ln1"][l])
        qkv = _ref_mm(n, e["wqkv"][l])
        ctx = _ref_attention(qkv[..., :inner], qkv[..., inner:2 * inner],
                             qkv[..., 2 * inner:], enc_bias, H, dk)
        x = x + _ref_mm(ctx, e["wo_sa"][l])
        n = _rms(x, e["ln2"][l])
        x = x + _ref_mm(jnp.maximum(_ref_mm(n, e["wi"][l]), 0.0), e["wo_ff"][l])
    enc_last = _rms(x, params["enc_final_ln"])

    # decoder
    x = params["embed"][decoder_input_ids]
    dec_pos = compute_position_bias(Sd, Sd, params["dec_rel_bias"], False, cfg)
    self_bias = (dec_pos + _causal_add(Sd)[None])[None]     # (1,H,Sd,Sd)
    cross_bias = key_mask[:, None, None, :]                 # (B,1,1,Se)
    d = params["dec"]
    dec_hs = ()
    for l in range(cfg.n_dec_layers):
        dec_hs += (x,)
        x = _ref_dec_block(x, enc_last, d, l, self_bias, cross_bias, H, dk)
    normed = _rms(x, params["dec_final_ln"])
    logits = _ref_mm(normed, params["lm_head"])
    h = jnp.maximum(_ref_mm(normed, params["v_w0"]) + params["v_b0"], 0.0)
    value = (_ref_mm(h, params["v_w1_pad"]) + params["v_b1_pad"])[:, :, 0]

    # hydra branch (causal-only self bias)
    nunf = cfg.num_layers_unfrozen
    dec_hs += (normed,)
    xb = dec_hs[-(nunf + 1)]
    branch_bias = _causal_add(Sd)[None, None]
    for l in range(cfg.n_dec_layers - nunf, cfg.n_dec_layers):
        xb = _ref_dec_block(xb, enc_last, d, l, branch_bias, cross_bias, H, dk)
    hydra_logits = _ref_mm(_rms(xb, params["dec_final_ln"]), params["lm_head"])

    return {"encoder_last_hidden_state": enc_last, "logits": logits,
            "value": value, "hydra_logits": hydra_logits}


# TODO(synk): `generate()` (autoregressive sampling loop) and HF config /
# pretrained-weight plumbing have no Pallas equivalent and are out of scope.

if __name__ == "__main__":
    cfg = Config()
    B, Se, Sd = 2, 16, 8

    key = jax.random.PRNGKey(0)
    k_params, k_in, k_dec = jax.random.split(key, 3)
    params = init_params(k_params, cfg)

    input_ids = jax.random.randint(k_in, (B, Se), 0, cfg.vocab, dtype=jnp.int32)
    decoder_input_ids = jax.random.randint(k_dec, (B, Sd), 0, cfg.vocab,
                                           dtype=jnp.int32)
    attention_mask = jnp.ones((B, Se), jnp.float32)

    out, hydra_logits = forward_with_hydra(params, input_ids, attention_mask,
                                           decoder_input_ids, cfg=cfg)
    jax.block_until_ready((out["logits"], out["value"], hydra_logits))

    # shape / structure checks
    assert out["logits"].shape == (B, Sd, cfg.vocab)
    assert out["value"].shape == (B, Sd)                      # .squeeze(-1)
    assert len(out["decoder_hidden_states"]) == cfg.n_dec_layers + 1
    assert len(out["encoder_hidden_states"]) == cfg.n_enc_layers + 1
    assert out["encoder_last_hidden_state"].shape == (B, Se, cfg.d_model)
    assert hydra_logits.shape == (B, Sd, cfg.vocab)
    assert bool(jnp.all(jnp.isfinite(out["logits"])))
    assert bool(jnp.all(jnp.isfinite(out["value"])))
    assert bool(jnp.all(jnp.isfinite(hydra_logits)))

    # numerical check vs. pure-JAX reference (loose tolerance: bf16 matmuls +
    # approximate-reciprocal softmax in the kernel)
    ref = _ref_forward_and_hydra(params, input_ids, attention_mask,
                                 decoder_input_ids, cfg=cfg)

    def close(a, b, tol=5e-2):
        return bool(jnp.max(jnp.abs(a - b)) < tol)

    assert close(out["encoder_last_hidden_state"],
                 ref["encoder_last_hidden_state"])
    assert close(out["logits"], ref["logits"])
    assert close(out["value"], ref["value"])
    assert close(hydra_logits, ref["hydra_logits"])

    print("KERNEL_OK")
</pallas_src>

<mosaic_0001>
module attributes {stable_mosaic.version = 11 : i64} {
  func.func @_encoder_stack_kernel(%arg0: i32, %arg1: memref<2x16x128xf32, #tpu.memory_space<vmem>>, %arg2: memref<8x16x16xf32, #tpu.memory_space<vmem>>, %arg3: memref<1x1x128xf32, #tpu.memory_space<vmem>>, %arg4: memref<1x128x384xbf16, #tpu.memory_space<vmem>>, %arg5: memref<1x128x128xbf16, #tpu.memory_space<vmem>>, %arg6: memref<1x1x128xf32, #tpu.memory_space<vmem>>, %arg7: memref<1x128x256xbf16, #tpu.memory_space<vmem>>, %arg8: memref<1x256x128xbf16, #tpu.memory_space<vmem>>, %arg9: memref<1x128xf32, #tpu.memory_space<vmem>>, %arg10: memref<2x16x128xf32, #tpu.memory_space<vmem>>, %arg11: memref<2x16x128xf32, #tpu.memory_space<vmem>>, %arg12: memref<2x16x128xf32, #tpu.memory_space<vmem>>) attributes {dimension_semantics = [#tpu.dimension_semantics<arbitrary>], iteration_bounds = array<i64: 2>, scalar_prefetch = 0 : i64, scratch_operands = 1 : i64, tpu.core_type = #tpu.core_type<tc>, window_params = [{pipeline_mode = #tpu.pipeline_mode<synchronous>, transform_indices = @transform_0, window_bounds = array<i64: 2, 16, 128>}, {pipeline_mode = #tpu.pipeline_mode<synchronous>, transform_indices = @transform_1, window_bounds = array<i64: 8, 16, 16>}, {transform_indices = @transform_2, window_bounds = array<i64: 1, 1, 128>}, {transform_indices = @transform_3, window_bounds = array<i64: 1, 128, 384>}, {transform_indices = @transform_4, window_bounds = array<i64: 1, 128, 128>}, {transform_indices = @transform_5, window_bounds = array<i64: 1, 1, 128>}, {transform_indices = @transform_6, window_bounds = array<i64: 1, 128, 256>}, {transform_indices = @transform_7, window_bounds = array<i64: 1, 256, 128>}, {pipeline_mode = #tpu.pipeline_mode<synchronous>, transform_indices = @transform_8, window_bounds = array<i64: 1, 128>}, {transform_indices = @transform_9, window_bounds = array<i64: 2, 16, 128>}, {pipeline_mode = #tpu.pipeline_mode<synchronous>, transform_indices = @transform_10, window_bounds = array<i64: 2, 16, 128>}]} {
    %c0_i32 = arith.constant 0 : i32
    %0 = arith.cmpi eq, %arg0, %c0_i32 : i32
    %1 = arith.extui %0 : i1 to i32
    %c0_i32_0 = arith.constant 0 : i32
    %2 = arith.cmpi ne, %1, %c0_i32_0 : i32
    scf.if %2 {
      %c0_87 = arith.constant 0 : index
      %c0_88 = arith.constant 0 : index
      %c0_89 = arith.constant 0 : index
      %244 = vector.load %arg1[%c0_87, %c0_88, %c0_89] : memref<2x16x128xf32, #tpu.memory_space<vmem>>, vector<2x16x128xf32>
      %c0_90 = arith.constant 0 : index
      %c0_91 = arith.constant 0 : index
      %c0_92 = arith.constant 0 : index
      %245 = vector.load %arg12[%c0_90, %c0_91, %c0_92] : memref<2x16x128xf32, #tpu.memory_space<vmem>>, vector<2x16x128xf32>
      tpu.vector_store %arg12[%c0_90, %c0_91, %c0_92], %244 {strides = array<i32>} : memref<2x16x128xf32, #tpu.memory_space<vmem>>, vector<2x16x128xf32>,
    } else {
    }
    %c0 = arith.constant 0 : index
    %c0_1 = arith.constant 0 : index
    %c0_2 = arith.constant 0 : index
    %3 = vector.load %arg12[%c0, %c0_1, %c0_2] : memref<2x16x128xf32, #tpu.memory_space<vmem>>, vector<2x16x128xf32>
    %c0_3 = arith.constant 0 : index
    %c0_4 = arith.constant 0 : index
    %c0_5 = arith.constant 0 : index
    %4 = vector.load %arg10[%c0_3, %c0_4, %c0_5] : memref<2x16x128xf32, #tpu.memory_space<vmem>>, vector<2x16x128xf32>
    tpu.vector_store %arg10[%c0_3, %c0_4, %c0_5], %3 {strides = array<i32>} : memref<2x16x128xf32, #tpu.memory_space<vmem>>, vector<2x16x128xf32>,
    %5 = vector.shape_cast %3 : vector<2x16x128xf32> to vector<32x128xf32>
    %c0_6 = arith.constant 0 : index
    %c0_7 = arith.constant 0 : index
    %c0_8 = arith.constant 0 : index
    %6 = vector.load %arg3[%c0_6, %c0_7, %c0_8] : memref<1x1x128xf32, #tpu.memory_space<vmem>>, vector<1x1x128xf32>
    %7 = vector.shape_cast %6 : vector<1x1x128xf32> to vector<1x128xf32>
    %8 = arith.mulf %5, %5 : vector<32x128xf32>
    %cst = arith.constant dense<0.000000e+00> : vector<32xf32>
    %9 = vector.multi_reduction <add>, %8, %cst [1] : vector<32x128xf32> to vector<32xf32>
    %10 = vector.shape_cast %9 : vector<32xf32> to vector<32x1xf32>
    %cst_9 = arith.constant 1.280000e+02 : f32
    %11 = vector.broadcast %cst_9 : f32 to vector<32x1xf32>
    %12 = arith.divf %10, %11 : vector<32x1xf32>
    %cst_10 = arith.constant 9.99999997E-7 : f32
    %13 = vector.broadcast %cst_10 : f32 to vector<32x1xf32>
    %14 = arith.addf %12, %13 : vector<32x1xf32>
    %15 = math.rsqrt %14 : vector<32x1xf32>
    %16 = vector.broadcast %15 : vector<32x1xf32> to vector<32x128xf32>
    %17 = arith.mulf %5, %16 : vector<32x128xf32>
    %18 = vector.broadcast %7 : vector<1x128xf32> to vector<32x128xf32>
    %19 = arith.mulf %17, %18 : vector<32x128xf32>
    %20 = arith.truncf %19 : vector<32x128xf32> to vector<32x128xbf16>
    %c0_11 = arith.constant 0 : index
    %c0_12 = arith.constant 0 : index
    %c0_13 = arith.constant 0 : index
    %21 = vector.load %arg4[%c0_11, %c0_12, %c0_13] : memref<1x128x384xbf16, #tpu.memory_space<vmem>>, vector<1x128x384xbf16>
    %22 = vector.shape_cast %21 : vector<1x128x384xbf16> to vector<128x384xbf16>
    %cst_14 = arith.constant dense<0.000000e+00> : vector<32x384xf32>
    %23 = tpu.matmul %20, %22, %cst_14 {dimension_numbers = #tpu.dot_dimension_numbers<[1], [0], [0], [1], [0, 0, 1, 1], [], []>} : vector<32x128xbf16>, vector<128x384xbf16>, vector<32x384xf32> -> vector<32x384xf32>
    %c0_15 = arith.constant 0 : index
    %c0_16 = arith.constant 0 : index
    %c0_17 = arith.constant 0 : index
    %24 = vector.load %arg2[%c0_15, %c0_16, %c0_17] : memref<8x16x16xf32, #tpu.memory_space<vmem>>, vector<1x16x16xf32>
    %25 = vector.shape_cast %24 : vector<1x16x16xf32> to vector<16x16xf32>
    %c1 = arith.constant 1 : index
    %c0_18 = arith.constant 0 : index
    %c0_19 = arith.constant 0 : index
    %26 = vector.load %arg2[%c1, %c0_18, %c0_19] : memref<8x16x16xf32, #tpu.memory_space<vmem>>, vector<1x16x16xf32>
    %27 = vector.shape_cast %26 : vector<1x16x16xf32> to vector<16x16xf32>
    %c2 = arith.constant 2 : index
    %c0_20 = arith.constant 0 : index
    %c0_21 = arith.constant 0 : index
    %28 = vector.load %arg2[%c2, %c0_20, %c0_21] : memref<8x16x16xf32, #tpu.memory_space<vmem>>, vector<1x16x16xf32>
    %29 = vector.shape_cast %28 : vector<1x16x16xf32> to vector<16x16xf32>
    %c3 = arith.constant 3 : index
    %c0_22 = arith.constant 0 : index
    %c0_23 = arith.constant 0 : index
    %30 = vector.load %arg2[%c3, %c0_22, %c0_23] : memref<8x16x16xf32, #tpu.memory_space<vmem>>, vector<1x16x16xf32>
    %31 = vector.shape_cast %30 : vector<1x16x16xf32> to vector<16x16xf32>
    %32 = vector.extract_strided_slice %23 {offsets = [0, 0], sizes = [16, 128], strides = [1, 1]} : vector<32x384xf32> to vector<16x128xf32>
    %33 = vector.extract_strided_slice %23 {offsets = [0, 128], sizes = [16, 128], strides = [1, 1]} : vector<32x384xf32> to vector<16x128xf32>
    %34 = vector.extract_strided_slice %23 {offsets = [0, 256], sizes = [16, 128], strides = [1, 1]} : vector<32x384xf32> to vector<16x128xf32>
    %35 = vector.extract_strided_slice %32 {offsets = [0, 0], sizes = [16, 32], strides = [1, 1]} : vector<16x128xf32> to vector<16x32xf32>
    %36 = arith.truncf %35 : vector<16x32xf32> to vector<16x32xbf16>
    %37 = vector.extract_strided_slice %33 {offsets = [0, 0], sizes = [16, 32], strides = [1, 1]} : vector<16x128xf32> to vector<16x32xf32>
    %38 = arith.truncf %37 : vector<16x32xf32> to vector<16x32xbf16>
    %cst_24 = arith.constant dense<0.000000e+00> : vector<16x16xf32>
    %39 = tpu.matmul %36, %38, %cst_24 {dimension_numbers = #tpu.dot_dimension_numbers<[1], [1], [0], [0], [0, 0, 1, 0], [], []>} : vector<16x32xbf16>, vector<16x32xbf16>, vector<16x16xf32> -> vector<16x16xf32>
    %40 = arith.addf %39, %25 : vector<16x16xf32>
    %cst_25 = arith.constant dense<0xFF800000> : vector<16xf32>
    %41 = vector.multi_reduction <maximumf>, %40, %cst_25 [1] : vector<16x16xf32> to vector<16xf32>
    %42 = vector.shape_cast %41 : vector<16xf32> to vector<16x1xf32>
    %43 = vector.broadcast %42 : vector<16x1xf32> to vector<16x16xf32>
    %44 = arith.subf %40, %43 : vector<16x16xf32>
    %45 = math.exp %44 : vector<16x16xf32>
    %cst_26 = arith.constant dense<0.000000e+00> : vector<16xf32>
    %46 = vector.multi_reduction <add>, %45, %cst_26 [1] : vector<16x16xf32> to vector<16xf32>
    %47 = vector.shape_cast %46 : vector<16xf32> to vector<16x1xf32>
    %48 = tpu.reciprocal %47 {approx = true} : vector<16x1xf32> -> vector<16x1xf32>
    %49 = vector.broadcast %48 : vector<16x1xf32> to vector<16x16xf32>
    %50 = arith.mulf %45, %49 : vector<16x16xf32>
    %51 = arith.truncf %50 : vector<16x16xf32> to vector<16x16xbf16>
    %52 = vector.extract_strided_slice %34 {offsets = [0, 0], sizes = [16, 32], strides = [1, 1]} : vector<16x128xf32> to vector<16x32xf32>
    %53 = arith.truncf %52 : vector<16x32xf32> to vector<16x32xbf16>
    %cst_27 = arith.constant dense<0.000000e+00> : vector<16x32xf32>
    %54 = tpu.matmul %51, %53, %cst_27 {dimension_numbers = #tpu.dot_dimension_numbers<[1], [0], [0], [1], [0, 0, 1, 1], [], []>} : vector<16x16xbf16>, vector<16x32xbf16>, vector<16x32xf32> -> vector<16x32xf32>
    %55 = vector.extract_strided_slice %32 {offsets = [0, 32], sizes = [16, 32], strides = [1, 1]} : vector<16x128xf32> to vector<16x32xf32>
    %56 = arith.truncf %55 : vector<16x32xf32> to vector<16x32xbf16>
    %57 = vector.extract_strided_slice %33 {offsets = [0, 32], sizes = [16, 32], strides = [1, 1]} : vector<16x128xf32> to vector<16x32xf32>
    %58 = arith.truncf %57 : vector<16x32xf32> to vector<16x32xbf16>
    %cst_28 = arith.constant dense<0.000000e+00> : vector<16x16xf32>
    %59 = tpu.matmul %56, %58, %cst_28 {dimension_numbers = #tpu.dot_dimension_numbers<[1], [1], [0], [0], [0, 0, 1, 0], [], []>} : vector<16x32xbf16>, vector<16x32xbf16>, vector<16x16xf32> -> vector<16x16xf32>
    %60 = arith.addf %59, %27 : vector<16x16xf32>
    %cst_29 = arith.constant dense<0xFF800000> : vector<16xf32>
    %61 = vector.multi_reduction <maximumf>, %60, %cst_29 [1] : vector<16x16xf32> to vector<16xf32>
    %62 = vector.shape_cast %61 : vector<16xf32> to vector<16x1xf32>
    %63 = vector.broadcast %62 : vector<16x1xf32> to vector<16x16xf32>
    %64 = arith.subf %60, %63 : vector<16x16xf32>
    %65 = math.exp %64 : vector<16x16xf32>
    %cst_30 = arith.constant dense<0.000000e+00> : vector<16xf32>
    %66 = vector.multi_reduction <add>, %65, %cst_30 [1] : vector<16x16xf32> to vector<16xf32>
    %67 = vector.shape_cast %66 : vector<16xf32> to vector<16x1xf32>
    %68 = tpu.reciprocal %67 {approx = true} : vector<16x1xf32> -> vector<16x1xf32>
    %69 = vector.broadcast %68 : vector<16x1xf32> to vector<16x16xf32>
    %70 = arith.mulf %65, %69 : vector<16x16xf32>
    %71 = arith.truncf %70 : vector<16x16xf32> to vector<16x16xbf16>
    %72 = vector.extract_strided_slice %34 {offsets = [0, 32], sizes = [16, 32], strides = [1, 1]} : vector<16x128xf32> to vector<16x32xf32>
    %73 = arith.truncf %72 : vector<16x32xf32> to vector<16x32xbf16>
    %cst_31 = arith.constant dense<0.000000e+00> : vector<16x32xf32>
    %74 = tpu.matmul %71, %73, %cst_31 {dimension_numbers = #tpu.dot_dimension_numbers<[1], [0], [0], [1], [0, 0, 1, 1], [], []>} : vector<16x16xbf16>, vector<16x32xbf16>, vector<16x32xf32> -> vector<16x32xf32>
    %75 = vector.extract_strided_slice %32 {offsets = [0, 64], sizes = [16, 32], strides = [1, 1]} : vector<16x128xf32> to vector<16x32xf32>
    %76 = arith.truncf %75 : vector<16x32xf32> to vector<16x32xbf16>
    %77 = vector.extract_strided_slice %33 {offsets = [0, 64], sizes = [16, 32], strides = [1, 1]} : vector<16x128xf32> to vector<16x32xf32>
    %78 = arith.truncf %77 : vector<16x32xf32> to vector<16x32xbf16>
    %cst_32 = arith.constant dense<0.000000e+00> : vector<16x16xf32>
    %79 = tpu.matmul %76, %78, %cst_32 {dimension_numbers = #tpu.dot_dimension_numbers<[1], [1], [0], [0], [0, 0, 1, 0], [], []>} : vector<16x32xbf16>, vector<16x32xbf16>, vector<16x16xf32> -> vector<16x16xf32>
    %80 = arith.addf %79, %29 : vector<16x16xf32>
    %cst_33 = arith.constant dense<0xFF800000> : vector<16xf32>
    %81 = vector.multi_reduction <maximumf>, %80, %cst_33 [1] : vector<16x16xf32> to vector<16xf32>
    %82 = vector.shape_cast %81 : vector<16xf32> to vector<16x1xf32>
    %83 = vector.broadcast %82 : vector<16x1xf32> to vector<16x16xf32>
    %84 = arith.subf %80, %83 : vector<16x16xf32>
    %85 = math.exp %84 : vector<16x16xf32>
    %cst_34 = arith.constant dense<0.000000e+00> : vector<16xf32>
    %86 = vector.multi_reduction <add>, %85, %cst_34 [1] : vector<16x16xf32> to vector<16xf32>
    %87 = vector.shape_cast %86 : vector<16xf32> to vector<16x1xf32>
    %88 = tpu.reciprocal %87 {approx = true} : vector<16x1xf32> -> vector<16x1xf32>
    %89 = vector.broadcast %88 : vector<16x1xf32> to vector<16x16xf32>
    %90 = arith.mulf %85, %89 : vector<16x16xf32>
    %91 = arith.truncf %90 : vector<16x16xf32> to vector<16x16xbf16>
    %92 = vector.extract_strided_slice %34 {offsets = [0, 64], sizes = [16, 32], strides = [1, 1]} : vector<16x128xf32> to vector<16x32xf32>
    %93 = arith.truncf %92 : vector<16x32xf32> to vector<16x32xbf16>
    %cst_35 = arith.constant dense<0.000000e+00> : vector<16x32xf32>
    %94 = tpu.matmul %91, %93, %cst_35 {dimension_numbers = #tpu.dot_dimension_numbers<[1], [0], [0], [1], [0, 0, 1, 1], [], []>} : vector<16x16xbf16>, vector<16x32xbf16>, vector<16x32xf32> -> vector<16x32xf32>
    %95 = vector.extract_strided_slice %32 {offsets = [0, 96], sizes = [16, 32], strides = [1, 1]} : vector<16x128xf32> to vector<16x32xf32>
    %96 = arith.truncf %95 : vector<16x32xf32> to vector<16x32xbf16>
    %97 = vector.extract_strided_slice %33 {offsets = [0, 96], sizes = [16, 32], strides = [1, 1]} : vector<16x128xf32> to vector<16x32xf32>
    %98 = arith.truncf %97 : vector<16x32xf32> to vector<16x32xbf16>
    %cst_36 = arith.constant dense<0.000000e+00> : vector<16x16xf32>
    %99 = tpu.matmul %96, %98, %cst_36 {dimension_numbers = #tpu.dot_dimension_numbers<[1], [1], [0], [0], [0, 0, 1, 0], [], []>} : vector<16x32xbf16>, vector<16x32xbf16>, vector<16x16xf32> -> vector<16x16xf32>
    %100 = arith.addf %99, %31 : vector<16x16xf32>
    %cst_37 = arith.constant dense<0xFF800000> : vector<16xf32>
    %101 = vector.multi_reduction <maximumf>, %100, %cst_37 [1] : vector<16x16xf32> to vector<16xf32>
    %102 = vector.shape_cast %101 : vector<16xf32> to vector<16x1xf32>
    %103 = vector.broadcast %102 : vector<16x1xf32> to vector<16x16xf32>
    %104 = arith.subf %100, %103 : vector<16x16xf32>
    %105 = math.exp %104 : vector<16x16xf32>
    %cst_38 = arith.constant dense<0.000000e+00> : vector<16xf32>
    %106 = vector.multi_reduction <add>, %105, %cst_38 [1] : vector<16x16xf32> to vector<16xf32>
    %107 = vector.shape_cast %106 : vector<16xf32> to vector<16x1xf32>
    %108 = tpu.reciprocal %107 {approx = true} : vector<16x1xf32> -> vector<16x1xf32>
    %109 = vector.broadcast %108 : vector<16x1xf32> to vector<16x16xf32>
    %110 = arith.mulf %105, %109 : vector<16x16xf32>
    %111 = arith.truncf %110 : vector<16x16xf32> to vector<16x16xbf16>
    %112 = vector.extract_strided_slice %34 {offsets = [0, 96], sizes = [16, 32], strides = [1, 1]} : vector<16x128xf32> to vector<16x32xf32>
    %113 = arith.truncf %112 : vector<16x32xf32> to vector<16x32xbf16>
    %cst_39 = arith.constant dense<0.000000e+00> : vector<16x32xf32>
    %114 = tpu.matmul %111, %113, %cst_39 {dimension_numbers = #tpu.dot_dimension_numbers<[1], [0], [0], [1], [0, 0, 1, 1], [], []>} : vector<16x16xbf16>, vector<16x32xbf16>, vector<16x32xf32> -> vector<16x32xf32>
    %115 = tpu.concatenate %54, %74, %94, %114 in 1 : vector<16x32xf32>, vector<16x32xf32>, vector<16x32xf32>, vector<16x32xf32> -> vector<16x128xf32>
    %c4 = arith.constant 4 : index
    %c0_40 = arith.constant 0 : index
    %c0_41 = arith.constant 0 : index
    %116 = vector.load %arg2[%c4, %c0_40, %c0_41] : memref<8x16x16xf32, #tpu.memory_space<vmem>>, vector<1x16x16xf32>
    %117 = vector.shape_cast %116 : vector<1x16x16xf32> to vector<16x16xf32>
    %c5 = arith.constant 5 : index
    %c0_42 = arith.constant 0 : index
    %c0_43 = arith.constant 0 : index
    %118 = vector.load %arg2[%c5, %c0_42, %c0_43] : memref<8x16x16xf32, #tpu.memory_space<vmem>>, vector<1x16x16xf32>
    %119 = vector.shape_cast %118 : vector<1x16x16xf32> to vector<16x16xf32>
    %c6 = arith.constant 6 : index
    %c0_44 = arith.constant 0 : index
    %c0_45 = arith.constant 0 : index
    %120 = vector.load %arg2[%c6, %c0_44, %c0_45] : memref<8x16x16xf32, #tpu.memory_space<vmem>>, vector<1x16x16xf32>
    %121 = vector.shape_cast %120 : vector<1x16x16xf32> to vector<16x16xf32>
    %c7 = arith.constant 7 : index
    %c0_46 = arith.constant 0 : index
    %c0_47 = arith.constant 0 : index
    %122 = vector.load %arg2[%c7, %c0_46, %c0_47] : memref<8x16x16xf32, #tpu.memory_space<vmem>>, vector<1x16x16xf32>
    %123 = vector.shape_cast %122 : vector<1x16x16xf32> to vector<16x16xf32>
    %124 = vector.extract_strided_slice %23 {offsets = [16, 0], sizes = [16, 128], strides = [1, 1]} : vector<32x384xf32> to vector<16x128xf32>
    %125 = vector.extract_strided_slice %23 {offsets = [16, 128], sizes = [16, 128], strides = [1, 1]} : vector<32x384xf32> to vector<16x128xf32>
    %126 = vector.extract_strided_slice %23 {offsets = [16, 256], sizes = [16, 128], strides = [1, 1]} : vector<32x384xf32> to vector<16x128xf32>
    %127 = vector.extract_strided_slice %124 {offsets = [0, 0], sizes = [16, 32], strides = [1, 1]} : vector<16x128xf32> to vector<16x32xf32>
    %128 = arith.truncf %127 : vector<16x32xf32> to vector<16x32xbf16>
    %129 = vector.extract_strided_slice %125 {offsets = [0, 0], sizes = [16, 32], strides = [1, 1]} : vector<16x128xf32> to vector<16x32xf32>
    %130 = arith.truncf %129 : vector<16x32xf32> to vector<16x32xbf16>
    %cst_48 = arith.constant dense<0.000000e+00> : vector<16x16xf32>
    %131 = tpu.matmul %128, %130, %cst_48 {dimension_numbers = #tpu.dot_dimension_numbers<[1], [1], [0], [0], [0, 0, 1, 0], [], []>} : vector<16x32xbf16>, vector<16x32xbf16>, vector<16x16xf32> -> vector<16x16xf32>
    %132 = arith.addf %131, %117 : vector<16x16xf32>
    %cst_49 = arith.constant dense<0xFF800000> : vector<16xf32>
    %133 = vector.multi_reduction <maximumf>, %132, %cst_49 [1] : vector<16x16xf32> to vector<16xf32>
    %134 = vector.shape_cast %133 : vector<16xf32> to vector<16x1xf32>
    %135 = vector.broadcast %134 : vector<16x1xf32> to vector<16x16xf32>
    %136 = arith.subf %132, %135 : vector<16x16xf32>
    %137 = math.exp %136 : vector<16x16xf32>
    %cst_50 = arith.constant dense<0.000000e+00> : vector<16xf32>
    %138 = vector.multi_reduction <add>, %137, %cst_50 [1] : vector<16x16xf32> to vector<16xf32>
    %139 = vector.shape_cast %138 : vector<16xf32> to vector<16x1xf32>
    %140 = tpu.reciprocal %139 {approx = true} : vector<16x1xf32> -> vector<16x1xf32>
    %141 = vector.broadcast %140 : vector<16x1xf32> to vector<16x16xf32>
    %142 = arith.mulf %137, %141 : vector<16x16xf32>
    %143 = arith.truncf %142 : vector<16x16xf32> to vector<16x16xbf16>
    %144 = vector.extract_strided_slice %126 {offsets = [0, 0], sizes = [16, 32], strides = [1, 1]} : vector<16x128xf32> to vector<16x32xf32>
    %145 = arith.truncf %144 : vector<16x32xf32> to vector<16x32xbf16>
    %cst_51 = arith.constant dense<0.000000e+00> : vector<16x32xf32>
    %146 = tpu.matmul %143, %145, %cst_51 {dimension_numbers = #tpu.dot_dimension_numbers<[1], [0], [0], [1], [0, 0, 1, 1], [], []>} : vector<16x16xbf16>, vector<16x32xbf16>, vector<16x32xf32> -> vector<16x32xf32>
    %147 = vector.extract_strided_slice %124 {offsets = [0, 32], sizes = [16, 32], strides = [1, 1]} : vector<16x128xf32> to vector<16x32xf32>
    %148 = arith.truncf %147 : vector<16x32xf32> to vector<16x32xbf16>
    %149 = vector.extract_strided_slice %125 {offsets = [0, 32], sizes = [16, 32], strides = [1, 1]} : vector<16x128xf32> to vector<16x32xf32>
    %150 = arith.truncf %149 : vector<16x32xf32> to vector<16x32xbf16>
    %cst_52 = arith.constant dense<0.000000e+00> : vector<16x16xf32>
    %151 = tpu.matmul %148, %150, %cst_52 {dimension_numbers = #tpu.dot_dimension_numbers<[1], [1], [0], [0], [0, 0, 1, 0], [], []>} : vector<16x32xbf16>, vector<16x32xbf16>, vector<16x16xf32> -> vector<16x16xf32>
    %152 = arith.addf %151, %119 : vector<16x16xf32>
    %cst_53 = arith.constant dense<0xFF800000> : vector<16xf32>
    %153 = vector.multi_reduction <maximumf>, %152, %cst_53 [1] : vector<16x16xf32> to vector<16xf32>
    %154 = vector.shape_cast %153 : vector<16xf32> to vector<16x1xf32>
    %155 = vector.broadcast %154 : vector<16x1xf32> to vector<16x16xf32>
    %156 = arith.subf %152, %155 : vector<16x16xf32>
    %157 = math.exp %156 : vector<16x16xf32>
    %cst_54 = arith.constant dense<0.000000e+00> : vector<16xf32>
    %158 = vector.multi_reduction <add>, %157, %cst_54 [1] : vector<16x16xf32> to vector<16xf32>
    %159 = vector.shape_cast %158 : vector<16xf32> to vector<16x1xf32>
    %160 = tpu.reciprocal %159 {approx = true} : vector<16x1xf32> -> vector<16x1xf32>
    %161 = vector.broadcast %160 : vector<16x1xf32> to vector<16x16xf32>
    %162 = arith.mulf %157, %161 : vector<16x16xf32>
    %163 = arith.truncf %162 : vector<16x16xf32> to vector<16x16xbf16>
    %164 = vector.extract_strided_slice %126 {offsets = [0, 32], sizes = [16, 32], strides = [1, 1]} : vector<16x128xf32> to vector<16x32xf32>
    %165 = arith.truncf %164 : vector<16x32xf32> to vector<16x32xbf16>
    %cst_55 = arith.constant dense<0.000000e+00> : vector<16x32xf32>
    %166 = tpu.matmul %163, %165, %cst_55 {dimension_numbers = #tpu.dot_dimension_numbers<[1], [0], [0], [1], [0, 0, 1, 1], [], []>} : vector<16x16xbf16>, vector<16x32xbf16>, vector<16x32xf32> -> vector<16x32xf32>
    %167 = vector.extract_strided_slice %124 {offsets = [0, 64], sizes = [16, 32], strides = [1, 1]} : vector<16x128xf32> to vector<16x32xf32>
    %168 = arith.truncf %167 : vector<16x32xf32> to vector<16x32xbf16>
    %169 = vector.extract_strided_slice %125 {offsets = [0, 64], sizes = [16, 32], strides = [1, 1]} : vector<16x128xf32> to vector<16x32xf32>
    %170 = arith.truncf %169 : vector<16x32xf32> to vector<16x32xbf16>
    %cst_56 = arith.constant dense<0.000000e+00> : vector<16x16xf32>
    %171 = tpu.matmul %168, %170, %cst_56 {dimension_numbers = #tpu.dot_dimension_numbers<[1], [1], [0], [0], [0, 0, 1, 0], [], []>} : vector<16x32xbf16>, vector<16x32xbf16>, vector<16x16xf32> -> vector<16x16xf32>
    %172 = arith.addf %171, %121 : vector<16x16xf32>
    %cst_57 = arith.constant dense<0xFF800000> : vector<16xf32>
    %173 = vector.multi_reduction <maximumf>, %172, %cst_57 [1] : vector<16x16xf32> to vector<16xf32>
    %174 = vector.shape_cast %173 : vector<16xf32> to vector<16x1xf32>
    %175 = vector.broadcast %174 : vector<16x1xf32> to vector<16x16xf32>
    %176 = arith.subf %172, %175 : vector<16x16xf32>
    %177 = math.exp %176 : vector<16x16xf32>
    %cst_58 = arith.constant dense<0.000000e+00> : vector<16xf32>
    %178 = vector.multi_reduction <add>, %177, %cst_58 [1] : vector<16x16xf32> to vector<16xf32>
    %179 = vector.shape_cast %178 : vector<16xf32> to vector<16x1xf32>
    %180 = tpu.reciprocal %179 {approx = true} : vector<16x1xf32> -> vector<16x1xf32>
    %181 = vector.broadcast %180 : vector<16x1xf32> to vector<16x16xf32>
    %182 = arith.mulf %177, %181 : vector<16x16xf32>
    %183 = arith.truncf %182 : vector<16x16xf32> to vector<16x16xbf16>
    %184 = vector.extract_strided_slice %126 {offsets = [0, 64], sizes = [16, 32], strides = [1, 1]} : vector<16x128xf32> to vector<16x32xf32>
    %185 = arith.truncf %184 : vector<16x32xf32> to vector<16x32xbf16>
    %cst_59 = arith.constant dense<0.000000e+00> : vector<16x32xf32>
    %186 = tpu.matmul %183, %185, %cst_59 {dimension_numbers = #tpu.dot_dimension_numbers<[1], [0], [0], [1], [0, 0, 1, 1], [], []>} : vector<16x16xbf16>, vector<16x32xbf16>, vector<16x32xf32> -> vector<16x32xf32>
    %187 = vector.extract_strided_slice %124 {offsets = [0, 96], sizes = [16, 32], strides = [1, 1]} : vector<16x128xf32> to vector<16x32xf32>
    %188 = arith.truncf %187 : vector<16x32xf32> to vector<16x32xbf16>
    %189 = vector.extract_strided_slice %125 {offsets = [0, 96], sizes = [16, 32], strides = [1, 1]} : vector<16x128xf32> to vector<16x32xf32>
    %190 = arith.truncf %189 : vector<16x32xf32> to vector<16x32xbf16>
    %cst_60 = arith.constant dense<0.000000e+00> : vector<16x16xf32>
    %191 = tpu.matmul %188, %190, %cst_60 {dimension_numbers = #tpu.dot_dimension_numbers<[1], [1], [0], [0], [0, 0, 1, 0], [], []>} : vector<16x32xbf16>, vector<16x32xbf16>, vector<16x16xf32> -> vector<16x16xf32>
    %192 = arith.addf %191, %123 : vector<16x16xf32>
    %cst_61 = arith.constant dense<0xFF800000> : vector<16xf32>
    %193 = vector.multi_reduction <maximumf>, %192, %cst_61 [1] : vector<16x16xf32> to vector<16xf32>
    %194 = vector.shape_cast %193 : vector<16xf32> to vector<16x1xf32>
    %195 = vector.broadcast %194 : vector<16x1xf32> to vector<16x16xf32>
    %196 = arith.subf %192, %195 : vector<16x16xf32>
    %197 = math.exp %196 : vector<16x16xf32>
    %cst_62 = arith.constant dense<0.000000e+00> : vector<16xf32>
    %198 = vector.multi_reduction <add>, %197, %cst_62 [1] : vector<16x16xf32> to vector<16xf32>
    %199 = vector.shape_cast %198 : vector<16xf32> to vector<16x1xf32>
    %200 = tpu.reciprocal %199 {approx = true} : vector<16x1xf32> -> vector<16x1xf32>
    %201 = vector.broadcast %200 : vector<16x1xf32> to vector<16x16xf32>
    %202 = arith.mulf %197, %201 : vector<16x16xf32>
    %203 = arith.truncf %202 : vector<16x16xf32> to vector<16x16xbf16>
    %204 = vector.extract_strided_slice %126 {offsets = [0, 96], sizes = [16, 32], strides = [1, 1]} : vector<16x128xf32> to vector<16x32xf32>
    %205 = arith.truncf %204 : vector<16x32xf32> to vector<16x32xbf16>
    %cst_63 = arith.constant dense<0.000000e+00> : vector<16x32xf32>
    %206 = tpu.matmul %203, %205, %cst_63 {dimension_numbers = #tpu.dot_dimension_numbers<[1], [0], [0], [1], [0, 0, 1, 1], [], []>} : vector<16x16xbf16>, vector<16x32xbf16>, vector<16x32xf32> -> vector<16x32xf32>
    %207 = tpu.concatenate %146, %166, %186, %206 in 1 : vector<16x32xf32>, vector<16x32xf32>, vector<16x32xf32>, vector<16x32xf32> -> vector<16x128xf32>
    %208 = tpu.concatenate %115, %207 in 0 : vector<16x128xf32>, vector<16x128xf32> -> vector<32x128xf32>
    %209 = arith.truncf %208 : vector<32x128xf32> to vector<32x128xbf16>
    %c0_64 = arith.constant 0 : index
    %c0_65 = arith.constant 0 : index
    %c0_66 = arith.constant 0 : index
    %210 = vector.load %arg5[%c0_64, %c0_65, %c0_66] : memref<1x128x128xbf16, #tpu.memory_space<vmem>>, vector<1x128x128xbf16>
    %211 = vector.shape_cast %210 : vector<1x128x128xbf16> to vector<128x128xbf16>
    %cst_67 = arith.constant dense<0.000000e+00> : vector<32x128xf32>
    %212 = tpu.matmul %209, %211, %cst_67 {dimension_numbers = #tpu.dot_dimension_numbers<[1], [0], [0], [1], [0, 0, 1, 1], [], []>} : vector<32x128xbf16>, vector<128x128xbf16>, vector<32x128xf32> -> vector<32x128xf32>
    %213 = arith.addf %5, %212 : vector<32x128xf32>
    %c0_68 = arith.constant 0 : index
    %c0_69 = arith.constant 0 : index
    %c0_70 = arith.constant 0 : index
    %214 = vector.load %arg6[%c0_68, %c0_69, %c0_70] : memref<1x1x128xf32, #tpu.memory_space<vmem>>, vector<1x1x128xf32>
    %215 = vector.shape_cast %214 : vector<1x1x128xf32> to vector<1x128xf32>
    %216 = arith.mulf %213, %213 : vector<32x128xf32>
    %cst_71 = arith.constant dense<0.000000e+00> : vector<32xf32>
    %217 = vector.multi_reduction <add>, %216, %cst_71 [1] : vector<32x128xf32> to vector<32xf32>
    %218 = vector.shape_cast %217 : vector<32xf32> to vector<32x1xf32>
    %cst_72 = arith.constant 1.280000e+02 : f32
    %219 = vector.broadcast %cst_72 : f32 to vector<32x1xf32>
    %220 = arith.divf %218, %219 : vector<32x1xf32>
    %cst_73 = arith.constant 9.99999997E-7 : f32
    %221 = vector.broadcast %cst_73 : f32 to vector<32x1xf32>
    %222 = arith.addf %220, %221 : vector<32x1xf32>
    %223 = math.rsqrt %222 : vector<32x1xf32>
    %224 = vector.broadcast %223 : vector<32x1xf32> to vector<32x128xf32>
    %225 = arith.mulf %213, %224 : vector<32x128xf32>
    %226 = vector.broadcast %215 : vector<1x128xf32> to vector<32x128xf32>
    %227 = arith.mulf %225, %226 : vector<32x128xf32>
    %228 = arith.truncf %227 : vector<32x128xf32> to vector<32x128xbf16>
    %c0_74 = arith.constant 0 : index
    %c0_75 = arith.constant 0 : index
    %c0_76 = arith.constant 0 : index
    %229 = vector.load %arg7[%c0_74, %c0_75, %c0_76] : memref<1x128x256xbf16, #tpu.memory_space<vmem>>, vector<1x128x256xbf16>
    %230 = vector.shape_cast %229 : vector<1x128x256xbf16> to vector<128x256xbf16>
    %cst_77 = arith.constant dense<0.000000e+00> : vector<32x256xf32>
    %231 = tpu.matmul %228, %230, %cst_77 {dimension_numbers = #tpu.dot_dimension_numbers<[1], [0], [0], [1], [0, 0, 1, 1], [], []>} : vector<32x128xbf16>, vector<128x256xbf16>, vector<32x256xf32> -> vector<32x256xf32>
    %cst_78 = arith.constant 0.000000e+00 : f32
    %232 = vector.broadcast %cst_78 : f32 to vector<32x256xf32>
    %233 = arith.maximumf %231, %232 : vector<32x256xf32>
    %234 = arith.truncf %233 : vector<32x256xf32> to vector<32x256xbf16>
    %c0_79 = arith.constant 0 : index
    %c0_80 = arith.constant 0 : index
    %c0_81 = arith.constant 0 : index
    %235 = vector.load %arg8[%c0_79, %c0_80, %c0_81] : memref<1x256x128xbf16, #tpu.memory_space<vmem>>, vector<1x256x128xbf16>
    %236 = vector.shape_cast %235 : vector<1x256x128xbf16> to vector<256x128xbf16>
    %cst_82 = arith.constant dense<0.000000e+00> : vector<32x128xf32>
    %237 = tpu.matmul %234, %236, %cst_82 {dimension_numbers = #tpu.dot_dimension_numbers<[1], [0], [0], [1], [0, 0, 1, 1], [], []>} : vector<32x256xbf16>, vector<256x128xbf16>, vector<32x128xf32> -> vector<32x128xf32>
    %238 = arith.addf %213, %237 : vector<32x128xf32>
    %239 = vector.shape_cast %238 : vector<32x128xf32> to vector<2x16x128xf32>
    %c0_83 = arith.constant 0 : index
    %c0_84 = arith.constant 0 : index
    %c0_85 = arith.constant 0 : index
    %240 = vector.load %arg12[%c0_83, %c0_84, %c0_85] : memref<2x16x128xf32, #tpu.memory_space<vmem>>, vector<2x16x128xf32>
    tpu.vector_store %arg12[%c0_83, %c0_84, %c0_85], %239 {strides = array<i32>} : memref<2x16x128xf32, #tpu.memory_space<vmem>>, vector<2x16x128xf32>,
    %c1_i32 = arith.constant 1 : i32
    %241 = arith.cmpi eq, %arg0, %c1_i32 : i32
    %242 = arith.extui %241 : i1 to i32
    %c0_i32_86 = arith.constant 0 : i32
    %243 = arith.cmpi ne, %242, %c0_i32_86 : i32
    scf.if %243 {
      %c0_87 = arith.constant 0 : index
      %c0_88 = arith.constant 0 : index
      %244 = vector.load %arg9[%c0_87, %c0_88] : memref<1x128xf32, #tpu.memory_space<vmem>>, vector<1x128xf32>
      %245 = arith.mulf %238, %238 : vector<32x128xf32>
      %cst_89 = arith.constant dense<0.000000e+00> : vector<32xf32>
      %246 = vector.multi_reduction <add>, %245, %cst_89 [1] : vector<32x128xf32> to vector<32xf32>
      %247 = vector.shape_cast %246 : vector<32xf32> to vector<32x1xf32>
      %cst_90 = arith.constant 1.280000e+02 : f32
      %248 = vector.broadcast %cst_90 : f32 to vector<32x1xf32>
      %249 = arith.divf %247, %248 : vector<32x1xf32>
      %cst_91 = arith.constant 9.99999997E-7 : f32
      %250 = vector.broadcast %cst_91 : f32 to vector<32x1xf32>
      %251 = arith.addf %249, %250 : vector<32x1xf32>
      %252 = math.rsqrt %251 : vector<32x1xf32>
      %253 = vector.broadcast %252 : vector<32x1xf32> to vector<32x128xf32>
      %254 = arith.mulf %238, %253 : vector<32x128xf32>
      %255 = vector.broadcast %244 : vector<1x128xf32> to vector<32x128xf32>
      %256 = arith.mulf %254, %255 : vector<32x128xf32>
      %257 = vector.shape_cast %256 : vector<32x128xf32> to vector<2x16x128xf32>
      %c0_92 = arith.constant 0 : index
      %c0_93 = arith.constant 0 : index
      %c0_94 = arith.constant 0 : index
      %258 = vector.load %arg11[%c0_92, %c0_93, %c0_94] : memref<2x16x128xf32, #tpu.memory_space<vmem>>, vector<2x16x128xf32>
      tpu.vector_store %arg11[%c0_92, %c0_93, %c0_94], %257 {strides = array<i32>} : memref<2x16x128xf32, #tpu.memory_space<vmem>>, vector<2x16x128xf32>,
    } else {
    }
    return
  }
  func.func @transform_0(%arg0: i32) -> (i32, i32, i32) {
    %c0_i32 = arith.constant 0 : i32
    %c0_i32_0 = arith.constant 0 : i32
    %c0_i32_1 = arith.constant 0 : i32
    %c0_i32_2 = arith.constant 0 : i32
    return %c0_i32, %c0_i32_0, %c0_i32_1 : i32, i32, i32
  }
  func.func @transform_1(%arg0: i32) -> (i32, i32, i32) {
    %c0_i32 = arith.constant 0 : i32
    %c0_i32_0 = arith.constant 0 : i32
    %c0_i32_1 = arith.constant 0 : i32
    %c0_i32_2 = arith.constant 0 : i32
    return %c0_i32, %c0_i32_0, %c0_i32_1 : i32, i32, i32
  }
  func.func @transform_2(%arg0: i32) -> (i32, i32, i32) {
    %c0_i32 = arith.constant 0 : i32
    %c0_i32_0 = arith.constant 0 : i32
    %c0_i32_1 = arith.constant 0 : i32
    return %arg0, %c0_i32, %c0_i32_0 : i32, i32, i32
  }
  func.func @transform_3(%arg0: i32) -> (i32, i32, i32) {
    %c0_i32 = arith.constant 0 : i32
    %c0_i32_0 = arith.constant 0 : i32
    %c0_i32_1 = arith.constant 0 : i32
    return %arg0, %c0_i32, %c0_i32_0 : i32, i32, i32
  }
  func.func @transform_4(%arg0: i32) -> (i32, i32, i32) {
    %c0_i32 = arith.constant 0 : i32
    %c0_i32_0 = arith.constant 0 : i32
    %c0_i32_1 = arith.constant 0 : i32
    return %arg0, %c0_i32, %c0_i32_0 : i32, i32, i32
  }
  func.func @transform_5(%arg0: i32) -> (i32, i32, i32) {
    %c0_i32 = arith.constant 0 : i32
    %c0_i32_0 = arith.constant 0 : i32
    %c0_i32_1 = arith.constant 0 : i32
    return %arg0, %c0_i32, %c0_i32_0 : i32, i32, i32
  }
  func.func @transform_6(%arg0: i32) -> (i32, i32, i32) {
    %c0_i32 = arith.constant 0 : i32
    %c0_i32_0 = arith.constant 0 : i32
    %c0_i32_1 = arith.constant 0 : i32
    return %arg0, %c0_i32, %c0_i32_0 : i32, i32, i32
  }
  func.func @transform_7(%arg0: i32) -> (i32, i32, i32) {
    %c0_i32 = arith.constant 0 : i32
    %c0_i32_0 = arith.constant 0 : i32
    %c0_i32_1 = arith.constant 0 : i32
    return %arg0, %c0_i32, %c0_i32_0 : i32, i32, i32
  }
  func.func @transform_8(%arg0: i32) -> (i32, i32) {
    %c0_i32 = arith.constant 0 : i32
    %c0_i32_0 = arith.constant 0 : i32
    %c0_i32_1 = arith.constant 0 : i32
    return %c0_i32, %c0_i32_0 : i32, i32
  }
  func.func @transform_9(%arg0: i32) -> (i32, i32, i32) {
    %c0_i32 = arith.constant 0 : i32
    %c0_i32_0 = arith.constant 0 : i32
    %c0_i32_1 = arith.constant 0 : i32
    return %arg0, %c0_i32, %c0_i32_0 : i32, i32, i32
  }
  func.func @transform_10(%arg0: i32) -> (i32, i32, i32) {
    %c0_i32 = arith.constant 0 : i32
    %c0_i32_0 = arith.constant 0 : i32
    %c0_i32_1 = arith.constant 0 : i32
    %c0_i32_2 = arith.constant 0 : i32
    return %c0_i32, %c0_i32_0, %c0_i32_1 : i32, i32, i32
  }
}

module attributes {stable_mosaic.version = 11 : i64} {
  func.func @_decoder_stack_kernel(%arg0: i32, %arg1: memref<2x8x128xf32, #tpu.memory_space<vmem>>, %arg2: memref<2x16x128xf32, #tpu.memory_space<vmem>>, %arg3: memref<8x8x8xf32, #tpu.memory_space<vmem>>, %arg4: memref<2x1x16xf32, #tpu.memory_space<vmem>>, %arg5: memref<1x1x128xf32, #tpu.memory_space<vmem>>, %arg6: memref<1x128x384xbf16, #tpu.memory_space<vmem>>, %arg7: memref<1x128x128xbf16, #tpu.memory_space<vmem>>, %arg8: memref<1x1x128xf32, #tpu.memory_space<vmem>>, %arg9: memref<1x128x128xbf16, #tpu.memory_space<vmem>>, %arg10: memref<1x128x256xbf16, #tpu.memory_space<vmem>>, %arg11: memref<1x128x128xbf16, #tpu.memory_space<vmem>>, %arg12: memref<1x1x128xf32, #tpu.memory_space<vmem>>, %arg13: memref<1x128x256xbf16, #tpu.memory_space<vmem>>, %arg14: memref<1x256x128xbf16, #tpu.memory_space<vmem>>, %arg15: memref<1x128xf32, #tpu.memory_space<vmem>>, %arg16: memref<128x256xbf16, #tpu.memory_space<vmem>>, %arg17: memref<2x8x128xf32, #tpu.memory_space<vmem>>, %arg18: memref<2x8x256xf32, #tpu.memory_space<vmem>>, %arg19: memref<2x8x128xf32, #tpu.memory_space<vmem>>) attributes {dimension_semantics = [#tpu.dimension_semantics<arbitrary>], iteration_bounds = array<i64: 1>, scalar_prefetch = 0 : i64, scratch_operands = 1 : i64, tpu.core_type = #tpu.core_type<tc>, window_params = [{pipeline_mode = #tpu.pipeline_mode<synchronous>, transform_indices = @transform_0, window_bounds = array<i64: 2, 8, 128>}, {pipeline_mode = #tpu.pipeline_mode<synchronous>, transform_indices = @transform_1, window_bounds = array<i64: 2, 16, 128>}, {pipeline_mode = #tpu.pipeline_mode<synchronous>, transform_indices = @transform_2, window_bounds = array<i64: 8, 8, 8>}, {pipeline_mode = #tpu.pipeline_mode<synchronous>, transform_indices = @transform_3, window_bounds = array<i64: 2, 1, 16>}, {transform_indices = @transform_4, window_bounds = array<i64: 1, 1, 128>}, {transform_indices = @transform_5, window_bounds = array<i64: 1, 128, 384>}, {transform_indices = @transform_6, window_bounds = array<i64: 1, 128, 128>}, {transform_indices = @transform_7, window_bounds = array<i64: 1, 1, 128>}, {transform_indices = @transform_8, window_bounds = array<i64: 1, 128, 128>}, {transform_indices = @transform_9, window_bounds = array<i64: 1, 128, 256>}, {transform_indices = @transform_10, window_bounds = array<i64: 1, 128, 128>}, {transform_indices = @transform_11, window_bounds = array<i64: 1, 1, 128>}, {transform_indices = @transform_12, window_bounds = array<i64: 1, 128, 256>}, {transform_indices = @transform_13, window_bounds = array<i64: 1, 256, 128>}, {pipeline_mode = #tpu.pipeline_mode<synchronous>, transform_indices = @transform_14, window_bounds = array<i64: 1, 128>}, {pipeline_mode = #tpu.pipeline_mode<synchronous>, transform_indices = @transform_15, window_bounds = array<i64: 128, 256>}, {transform_indices = @transform_16, window_bounds = array<i64: 2, 8, 128>}, {pipeline_mode = #tpu.pipeline_mode<synchronous>, transform_indices = @transform_17, window_bounds = array<i64: 2, 8, 256>}]} {
    %c0_i32 = arith.constant 0 : i32
    %0 = arith.cmpi eq, %arg0, %c0_i32 : i32
    %1 = arith.extui %0 : i1 to i32
    %c0_i32_0 = arith.constant 0 : i32
    %2 = arith.cmpi ne, %1, %c0_i32_0 : i32
    scf.if %2 {
      %c0_144 = arith.constant 0 : index
      %c0_145 = arith.constant 0 : index
      %c0_146 = arith.constant 0 : index
      %451 = vector.load %arg1[%c0_144, %c0_145, %c0_146] : memref<2x8x128xf32, #tpu.memory_space<vmem>>, vector<2x8x128xf32>
      %c0_147 = arith.constant 0 : index
      %c0_148 = arith.constant 0 : index
      %c0_149 = arith.constant 0 : index
      %452 = vector.load %arg19[%c0_147, %c0_148, %c0_149] : memref<2x8x128xf32, #tpu.memory_space<vmem>>, vector<2x8x128xf32>
      tpu.vector_store %arg19[%c0_147, %c0_148, %c0_149], %451 {strides = array<i32>} : memref<2x8x128xf32, #tpu.memory_space<vmem>>, vector<2x8x128xf32>,
    } else {
    }
    %c0 = arith.constant 0 : index
    %c0_1 = arith.constant 0 : index
    %c0_2 = arith.constant 0 : index
    %3 = vector.load %arg19[%c0, %c0_1, %c0_2] : memref<2x8x128xf32, #tpu.memory_space<vmem>>, vector<2x8x128xf32>
    %c0_3 = arith.constant 0 : index
    %c0_4 = arith.constant 0 : index
    %c0_5 = arith.constant 0 : index
    %4 = vector.load %arg17[%c0_3, %c0_4, %c0_5] : memref<2x8x128xf32, #tpu.memory_space<vmem>>, vector<2x8x128xf32>
    tpu.vector_store %arg17[%c0_3, %c0_4, %c0_5], %3 {strides = array<i32>} : memref<2x8x128xf32, #tpu.memory_space<vmem>>, vector<2x8x128xf32>,
    %5 = vector.shape_cast %3 : vector<2x8x128xf32> to vector<16x128xf32>
    %c0_6 = arith.constant 0 : index
    %c0_7 = arith.constant 0 : index
    %c0_8 = arith.constant 0 : index
    %6 = vector.load %arg2[%c0_6, %c0_7, %c0_8] : memref<2x16x128xf32, #tpu.memory_space<vmem>>, vector<2x16x128xf32>
    %7 = vector.shape_cast %6 : vector<2x16x128xf32> to vector<32x128xf32>
    %c0_9 = arith.constant 0 : index
    %c0_10 = arith.constant 0 : index
    %c0_11 = arith.constant 0 : index
    %8 = vector.load %arg4[%c0_9, %c0_10, %c0_11] : memref<2x1x16xf32, #tpu.memory_space<vmem>>, vector<2x1x16xf32>
    %c0_12 = arith.constant 0 : index
    %c0_13 = arith.constant 0 : index
    %c0_14 = arith.constant 0 : index
    %9 = vector.load %arg5[%c0_12, %c0_13, %c0_14] : memref<1x1x128xf32, #tpu.memory_space<vmem>>, vector<1x1x128xf32>
    %10 = vector.shape_cast %9 : vector<1x1x128xf32> to vector<1x128xf32>
    %11 = arith.mulf %5, %5 : vector<16x128xf32>
    %cst = arith.constant dense<0.000000e+00> : vector<16xf32>
    %12 = vector.multi_reduction <add>, %11, %cst [1] : vector<16x128xf32> to vector<16xf32>
    %13 = vector.shape_cast %12 : vector<16xf32> to vector<16x1xf32>
    %cst_15 = arith.constant 1.280000e+02 : f32
    %14 = vector.broadcast %cst_15 : f32 to vector<16x1xf32>
    %15 = arith.divf %13, %14 : vector<16x1xf32>
    %cst_16 = arith.constant 9.99999997E-7 : f32
    %16 = vector.broadcast %cst_16 : f32 to vector<16x1xf32>
    %17 = arith.addf %15, %16 : vector<16x1xf32>
    %18 = math.rsqrt %17 : vector<16x1xf32>
    %19 = vector.broadcast %18 : vector<16x1xf32> to vector<16x128xf32>
    %20 = arith.mulf %5, %19 : vector<16x128xf32>
    %21 = vector.broadcast %10 : vector<1x128xf32> to vector<16x128xf32>
    %22 = arith.mulf %20, %21 : vector<16x128xf32>
    %23 = arith.truncf %22 : vector<16x128xf32> to vector<16x128xbf16>
    %c0_17 = arith.constant 0 : index
    %c0_18 = arith.constant 0 : index
    %c0_19 = arith.constant 0 : index
    %24 = vector.load %arg6[%c0_17, %c0_18, %c0_19] : memref<1x128x384xbf16, #tpu.memory_space<vmem>>, vector<1x128x384xbf16>
    %25 = vector.shape_cast %24 : vector<1x128x384xbf16> to vector<128x384xbf16>
    %cst_20 = arith.constant dense<0.000000e+00> : vector<16x384xf32>
    %26 = tpu.matmul %23, %25, %cst_20 {dimension_numbers = #tpu.dot_dimension_numbers<[1], [0], [0], [1], [0, 0, 1, 1], [], []>} : vector<16x128xbf16>, vector<128x384xbf16>, vector<16x384xf32> -> vector<16x384xf32>
    %c0_21 = arith.constant 0 : index
    %c0_22 = arith.constant 0 : index
    %c0_23 = arith.constant 0 : index
    %27 = vector.load %arg3[%c0_21, %c0_22, %c0_23] : memref<8x8x8xf32, #tpu.memory_space<vmem>>, vector<1x8x8xf32>
    %28 = vector.shape_cast %27 : vector<1x8x8xf32> to vector<8x8xf32>
    %c1 = arith.constant 1 : index
    %c0_24 = arith.constant 0 : index
    %c0_25 = arith.constant 0 : index
    %29 = vector.load %arg3[%c1, %c0_24, %c0_25] : memref<8x8x8xf32, #tpu.memory_space<vmem>>, vector<1x8x8xf32>
    %30 = vector.shape_cast %29 : vector<1x8x8xf32> to vector<8x8xf32>
    %c2 = arith.constant 2 : index
    %c0_26 = arith.constant 0 : index
    %c0_27 = arith.constant 0 : index
    %31 = vector.load %arg3[%c2, %c0_26, %c0_27] : memref<8x8x8xf32, #tpu.memory_space<vmem>>, vector<1x8x8xf32>
    %32 = vector.shape_cast %31 : vector<1x8x8xf32> to vector<8x8xf32>
    %c3 = arith.constant 3 : index
    %c0_28 = arith.constant 0 : index
    %c0_29 = arith.constant 0 : index
    %33 = vector.load %arg3[%c3, %c0_28, %c0_29] : memref<8x8x8xf32, #tpu.memory_space<vmem>>, vector<1x8x8xf32>
    %34 = vector.shape_cast %33 : vector<1x8x8xf32> to vector<8x8xf32>
    %35 = vector.extract_strided_slice %26 {offsets = [0, 0], sizes = [8, 128], strides = [1, 1]} : vector<16x384xf32> to vector<8x128xf32>
    %36 = vector.extract_strided_slice %26 {offsets = [0, 128], sizes = [8, 128], strides = [1, 1]} : vector<16x384xf32> to vector<8x128xf32>
    %37 = vector.extract_strided_slice %26 {offsets = [0, 256], sizes = [8, 128], strides = [1, 1]} : vector<16x384xf32> to vector<8x128xf32>
    %38 = vector.extract_strided_slice %35 {offsets = [0, 0], sizes = [8, 32], strides = [1, 1]} : vector<8x128xf32> to vector<8x32xf32>
    %39 = arith.truncf %38 : vector<8x32xf32> to vector<8x32xbf16>
    %40 = vector.extract_strided_slice %36 {offsets = [0, 0], sizes = [8, 32], strides = [1, 1]} : vector<8x128xf32> to vector<8x32xf32>
    %41 = arith.truncf %40 : vector<8x32xf32> to vector<8x32xbf16>
    %cst_30 = arith.constant dense<0.000000e+00> : vector<8x8xf32>
    %42 = tpu.matmul %39, %41, %cst_30 {dimension_numbers = #tpu.dot_dimension_numbers<[1], [1], [0], [0], [0, 0, 1, 0], [], []>} : vector<8x32xbf16>, vector<8x32xbf16>, vector<8x8xf32> -> vector<8x8xf32>
    %43 = arith.addf %42, %28 : vector<8x8xf32>
    %cst_31 = arith.constant dense<0xFF800000> : vector<8xf32>
    %44 = vector.multi_reduction <maximumf>, %43, %cst_31 [1] : vector<8x8xf32> to vector<8xf32>
    %45 = vector.shape_cast %44 : vector<8xf32> to vector<8x1xf32>
    %46 = vector.broadcast %45 : vector<8x1xf32> to vector<8x8xf32>
    %47 = arith.subf %43, %46 : vector<8x8xf32>
    %48 = math.exp %47 : vector<8x8xf32>
    %cst_32 = arith.constant dense<0.000000e+00> : vector<8xf32>
    %49 = vector.multi_reduction <add>, %48, %cst_32 [1] : vector<8x8xf32> to vector<8xf32>
    %50 = vector.shape_cast %49 : vector<8xf32> to vector<8x1xf32>
    %51 = tpu.reciprocal %50 {approx = true} : vector<8x1xf32> -> vector<8x1xf32>
    %52 = vector.broadcast %51 : vector<8x1xf32> to vector<8x8xf32>
    %53 = arith.mulf %48, %52 : vector<8x8xf32>
    %54 = arith.truncf %53 : vector<8x8xf32> to vector<8x8xbf16>
    %55 = vector.extract_strided_slice %37 {offsets = [0, 0], sizes = [8, 32], strides = [1, 1]} : vector<8x128xf32> to vector<8x32xf32>
    %56 = arith.truncf %55 : vector<8x32xf32> to vector<8x32xbf16>
    %cst_33 = arith.constant dense<0.000000e+00> : vector<8x32xf32>
    %57 = tpu.matmul %54, %56, %cst_33 {dimension_numbers = #tpu.dot_dimension_numbers<[1], [0], [0], [1], [0, 0, 1, 1], [], []>} : vector<8x8xbf16>, vector<8x32xbf16>, vector<8x32xf32> -> vector<8x32xf32>
    %58 = vector.extract_strided_slice %35 {offsets = [0, 32], sizes = [8, 32], strides = [1, 1]} : vector<8x128xf32> to vector<8x32xf32>
    %59 = arith.truncf %58 : vector<8x32xf32> to vector<8x32xbf16>
    %60 = vector.extract_strided_slice %36 {offsets = [0, 32], sizes = [8, 32], strides = [1, 1]} : vector<8x128xf32> to vector<8x32xf32>
    %61 = arith.truncf %60 : vector<8x32xf32> to vector<8x32xbf16>
    %cst_34 = arith.constant dense<0.000000e+00> : vector<8x8xf32>
    %62 = tpu.matmul %59, %61, %cst_34 {dimension_numbers = #tpu.dot_dimension_numbers<[1], [1], [0], [0], [0, 0, 1, 0], [], []>} : vector<8x32xbf16>, vector<8x32xbf16>, vector<8x8xf32> -> vector<8x8xf32>
    %63 = arith.addf %62, %30 : vector<8x8xf32>
    %cst_35 = arith.constant dense<0xFF800000> : vector<8xf32>
    %64 = vector.multi_reduction <maximumf>, %63, %cst_35 [1] : vector<8x8xf32> to vector<8xf32>
    %65 = vector.shape_cast %64 : vector<8xf32> to vector<8x1xf32>
    %66 = vector.broadcast %65 : vector<8x1xf32> to vector<8x8xf32>
    %67 = arith.subf %63, %66 : vector<8x8xf32>
    %68 = math.exp %67 : vector<8x8xf32>
    %cst_36 = arith.constant dense<0.000000e+00> : vector<8xf32>
    %69 = vector.multi_reduction <add>, %68, %cst_36 [1] : vector<8x8xf32> to vector<8xf32>
    %70 = vector.shape_cast %69 : vector<8xf32> to vector<8x1xf32>
    %71 = tpu.reciprocal %70 {approx = true} : vector<8x1xf32> -> vector<8x1xf32>
    %72 = vector.broadcast %71 : vector<8x1xf32> to vector<8x8xf32>
    %73 = arith.mulf %68, %72 : vector<8x8xf32>
    %74 = arith.truncf %73 : vector<8x8xf32> to vector<8x8xbf16>
    %75 = vector.extract_strided_slice %37 {offsets = [0, 32], sizes = [8, 32], strides = [1, 1]} : vector<8x128xf32> to vector<8x32xf32>
    %76 = arith.truncf %75 : vector<8x32xf32> to vector<8x32xbf16>
    %cst_37 = arith.constant dense<0.000000e+00> : vector<8x32xf32>
    %77 = tpu.matmul %74, %76, %cst_37 {dimension_numbers = #tpu.dot_dimension_numbers<[1], [0], [0], [1], [0, 0, 1, 1], [], []>} : vector<8x8xbf16>, vector<8x32xbf16>, vector<8x32xf32> -> vector<8x32xf32>
    %78 = vector.extract_strided_slice %35 {offsets = [0, 64], sizes = [8, 32], strides = [1, 1]} : vector<8x128xf32> to vector<8x32xf32>
    %79 = arith.truncf %78 : vector<8x32xf32> to vector<8x32xbf16>
    %80 = vector.extract_strided_slice %36 {offsets = [0, 64], sizes = [8, 32], strides = [1, 1]} : vector<8x128xf32> to vector<8x32xf32>
    %81 = arith.truncf %80 : vector<8x32xf32> to vector<8x32xbf16>
    %cst_38 = arith.constant dense<0.000000e+00> : vector<8x8xf32>
    %82 = tpu.matmul %79, %81, %cst_38 {dimension_numbers = #tpu.dot_dimension_numbers<[1], [1], [0], [0], [0, 0, 1, 0], [], []>} : vector<8x32xbf16>, vector<8x32xbf16>, vector<8x8xf32> -> vector<8x8xf32>
    %83 = arith.addf %82, %32 : vector<8x8xf32>
    %cst_39 = arith.constant dense<0xFF800000> : vector<8xf32>
    %84 = vector.multi_reduction <maximumf>, %83, %cst_39 [1] : vector<8x8xf32> to vector<8xf32>
    %85 = vector.shape_cast %84 : vector<8xf32> to vector<8x1xf32>
    %86 = vector.broadcast %85 : vector<8x1xf32> to vector<8x8xf32>
    %87 = arith.subf %83, %86 : vector<8x8xf32>
    %88 = math.exp %87 : vector<8x8xf32>
    %cst_40 = arith.constant dense<0.000000e+00> : vector<8xf32>
    %89 = vector.multi_reduction <add>, %88, %cst_40 [1] : vector<8x8xf32> to vector<8xf32>
    %90 = vector.shape_cast %89 : vector<8xf32> to vector<8x1xf32>
    %91 = tpu.reciprocal %90 {approx = true} : vector<8x1xf32> -> vector<8x1xf32>
    %92 = vector.broadcast %91 : vector<8x1xf32> to vector<8x8xf32>
    %93 = arith.mulf %88, %92 : vector<8x8xf32>
    %94 = arith.truncf %93 : vector<8x8xf32> to vector<8x8xbf16>
    %95 = vector.extract_strided_slice %37 {offsets = [0, 64], sizes = [8, 32], strides = [1, 1]} : vector<8x128xf32> to vector<8x32xf32>
    %96 = arith.truncf %95 : vector<8x32xf32> to vector<8x32xbf16>
    %cst_41 = arith.constant dense<0.000000e+00> : vector<8x32xf32>
    %97 = tpu.matmul %94, %96, %cst_41 {dimension_numbers = #tpu.dot_dimension_numbers<[1], [0], [0], [1], [0, 0, 1, 1], [], []>} : vector<8x8xbf16>, vector<8x32xbf16>, vector<8x32xf32> -> vector<8x32xf32>
    %98 = vector.extract_strided_slice %35 {offsets = [0, 96], sizes = [8, 32], strides = [1, 1]} : vector<8x128xf32> to vector<8x32xf32>
    %99 = arith.truncf %98 : vector<8x32xf32> to vector<8x32xbf16>
    %100 = vector.extract_strided_slice %36 {offsets = [0, 96], sizes = [8, 32], strides = [1, 1]} : vector<8x128xf32> to vector<8x32xf32>
    %101 = arith.truncf %100 : vector<8x32xf32> to vector<8x32xbf16>
    %cst_42 = arith.constant dense<0.000000e+00> : vector<8x8xf32>
    %102 = tpu.matmul %99, %101, %cst_42 {dimension_numbers = #tpu.dot_dimension_numbers<[1], [1], [0], [0], [0, 0, 1, 0], [], []>} : vector<8x32xbf16>, vector<8x32xbf16>, vector<8x8xf32> -> vector<8x8xf32>
    %103 = arith.addf %102, %34 : vector<8x8xf32>
    %cst_43 = arith.constant dense<0xFF800000> : vector<8xf32>
    %104 = vector.multi_reduction <maximumf>, %103, %cst_43 [1] : vector<8x8xf32> to vector<8xf32>
    %105 = vector.shape_cast %104 : vector<8xf32> to vector<8x1xf32>
    %106 = vector.broadcast %105 : vector<8x1xf32> to vector<8x8xf32>
    %107 = arith.subf %103, %106 : vector<8x8xf32>
    %108 = math.exp %107 : vector<8x8xf32>
    %cst_44 = arith.constant dense<0.000000e+00> : vector<8xf32>
    %109 = vector.multi_reduction <add>, %108, %cst_44 [1] : vector<8x8xf32> to vector<8xf32>
    %110 = vector.shape_cast %109 : vector<8xf32> to vector<8x1xf32>
    %111 = tpu.reciprocal %110 {approx = true} : vector<8x1xf32> -> vector<8x1xf32>
    %112 = vector.broadcast %111 : vector<8x1xf32> to vector<8x8xf32>
    %113 = arith.mulf %108, %112 : vector<8x8xf32>
    %114 = arith.truncf %113 : vector<8x8xf32> to vector<8x8xbf16>
    %115 = vector.extract_strided_slice %37 {offsets = [0, 96], sizes = [8, 32], strides = [1, 1]} : vector<8x128xf32> to vector<8x32xf32>
    %116 = arith.truncf %115 : vector<8x32xf32> to vector<8x32xbf16>
    %cst_45 = arith.constant dense<0.000000e+00> : vector<8x32xf32>
    %117 = tpu.matmul %114, %116, %cst_45 {dimension_numbers = #tpu.dot_dimension_numbers<[1], [0], [0], [1], [0, 0, 1, 1], [], []>} : vector<8x8xbf16>, vector<8x32xbf16>, vector<8x32xf32> -> vector<8x32xf32>
    %118 = tpu.concatenate %57, %77, %97, %117 in 1 : vector<8x32xf32>, vector<8x32xf32>, vector<8x32xf32>, vector<8x32xf32> -> vector<8x128xf32>
    %c4 = arith.constant 4 : index
    %c0_46 = arith.constant 0 : index
    %c0_47 = arith.constant 0 : index
    %119 = vector.load %arg3[%c4, %c0_46, %c0_47] : memref<8x8x8xf32, #tpu.memory_space<vmem>>, vector<1x8x8xf32>
    %120 = vector.shape_cast %119 : vector<1x8x8xf32> to vector<8x8xf32>
    %c5 = arith.constant 5 : index
    %c0_48 = arith.constant 0 : index
    %c0_49 = arith.constant 0 : index
    %121 = vector.load %arg3[%c5, %c0_48, %c0_49] : memref<8x8x8xf32, #tpu.memory_space<vmem>>, vector<1x8x8xf32>
    %122 = vector.shape_cast %121 : vector<1x8x8xf32> to vector<8x8xf32>
    %c6 = arith.constant 6 : index
    %c0_50 = arith.constant 0 : index
    %c0_51 = arith.constant 0 : index
    %123 = vector.load %arg3[%c6, %c0_50, %c0_51] : memref<8x8x8xf32, #tpu.memory_space<vmem>>, vector<1x8x8xf32>
    %124 = vector.shape_cast %123 : vector<1x8x8xf32> to vector<8x8xf32>
    %c7 = arith.constant 7 : index
    %c0_52 = arith.constant 0 : index
    %c0_53 = arith.constant 0 : index
    %125 = vector.load %arg3[%c7, %c0_52, %c0_53] : memref<8x8x8xf32, #tpu.memory_space<vmem>>, vector<1x8x8xf32>
    %126 = vector.shape_cast %125 : vector<1x8x8xf32> to vector<8x8xf32>
    %127 = vector.extract_strided_slice %26 {offsets = [8, 0], sizes = [8, 128], strides = [1, 1]} : vector<16x384xf32> to vector<8x128xf32>
    %128 = vector.extract_strided_slice %26 {offsets = [8, 128], sizes = [8, 128], strides = [1, 1]} : vector<16x384xf32> to vector<8x128xf32>
    %129 = vector.extract_strided_slice %26 {offsets = [8, 256], sizes = [8, 128], strides = [1, 1]} : vector<16x384xf32> to vector<8x128xf32>
    %130 = vector.extract_strided_slice %127 {offsets = [0, 0], sizes = [8, 32], strides = [1, 1]} : vector<8x128xf32> to vector<8x32xf32>
    %131 = arith.truncf %130 : vector<8x32xf32> to vector<8x32xbf16>
    %132 = vector.extract_strided_slice %128 {offsets = [0, 0], sizes = [8, 32], strides = [1, 1]} : vector<8x128xf32> to vector<8x32xf32>
    %133 = arith.truncf %132 : vector<8x32xf32> to vector<8x32xbf16>
    %cst_54 = arith.constant dense<0.000000e+00> : vector<8x8xf32>
    %134 = tpu.matmul %131, %133, %cst_54 {dimension_numbers = #tpu.dot_dimension_numbers<[1], [1], [0], [0], [0, 0, 1, 0], [], []>} : vector<8x32xbf16>, vector<8x32xbf16>, vector<8x8xf32> -> vector<8x8xf32>
    %135 = arith.addf %134, %120 : vector<8x8xf32>
    %cst_55 = arith.constant dense<0xFF800000> : vector<8xf32>
    %136 = vector.multi_reduction <maximumf>, %135, %cst_55 [1] : vector<8x8xf32> to vector<8xf32>
    %137 = vector.shape_cast %136 : vector<8xf32> to vector<8x1xf32>
    %138 = vector.broadcast %137 : vector<8x1xf32> to vector<8x8xf32>
    %139 = arith.subf %135, %138 : vector<8x8xf32>
    %140 = math.exp %139 : vector<8x8xf32>
    %cst_56 = arith.constant dense<0.000000e+00> : vector<8xf32>
    %141 = vector.multi_reduction <add>, %140, %cst_56 [1] : vector<8x8xf32> to vector<8xf32>
    %142 = vector.shape_cast %141 : vector<8xf32> to vector<8x1xf32>
    %143 = tpu.reciprocal %142 {approx = true} : vector<8x1xf32> -> vector<8x1xf32>
    %144 = vector.broadcast %143 : vector<8x1xf32> to vector<8x8xf32>
    %145 = arith.mulf %140, %144 : vector<8x8xf32>
    %146 = arith.truncf %145 : vector<8x8xf32> to vector<8x8xbf16>
    %147 = vector.extract_strided_slice %129 {offsets = [0, 0], sizes = [8, 32], strides = [1, 1]} : vector<8x128xf32> to vector<8x32xf32>
    %148 = arith.truncf %147 : vector<8x32xf32> to vector<8x32xbf16>
    %cst_57 = arith.constant dense<0.000000e+00> : vector<8x32xf32>
    %149 = tpu.matmul %146, %148, %cst_57 {dimension_numbers = #tpu.dot_dimension_numbers<[1], [0], [0], [1], [0, 0, 1, 1], [], []>} : vector<8x8xbf16>, vector<8x32xbf16>, vector<8x32xf32> -> vector<8x32xf32>
    %150 = vector.extract_strided_slice %127 {offsets = [0, 32], sizes = [8, 32], strides = [1, 1]} : vector<8x128xf32> to vector<8x32xf32>
    %151 = arith.truncf %150 : vector<8x32xf32> to vector<8x32xbf16>
    %152 = vector.extract_strided_slice %128 {offsets = [0, 32], sizes = [8, 32], strides = [1, 1]} : vector<8x128xf32> to vector<8x32xf32>
    %153 = arith.truncf %152 : vector<8x32xf32> to vector<8x32xbf16>
    %cst_58 = arith.constant dense<0.000000e+00> : vector<8x8xf32>
    %154 = tpu.matmul %151, %153, %cst_58 {dimension_numbers = #tpu.dot_dimension_numbers<[1], [1], [0], [0], [0, 0, 1, 0], [], []>} : vector<8x32xbf16>, vector<8x32xbf16>, vector<8x8xf32> -> vector<8x8xf32>
    %155 = arith.addf %154, %122 : vector<8x8xf32>
    %cst_59 = arith.constant dense<0xFF800000> : vector<8xf32>
    %156 = vector.multi_reduction <maximumf>, %155, %cst_59 [1] : vector<8x8xf32> to vector<8xf32>
    %157 = vector.shape_cast %156 : vector<8xf32> to vector<8x1xf32>
    %158 = vector.broadcast %157 : vector<8x1xf32> to vector<8x8xf32>
    %159 = arith.subf %155, %158 : vector<8x8xf32>
    %160 = math.exp %159 : vector<8x8xf32>
    %cst_60 = arith.constant dense<0.000000e+00> : vector<8xf32>
    %161 = vector.multi_reduction <add>, %160, %cst_60 [1] : vector<8x8xf32> to vector<8xf32>
    %162 = vector.shape_cast %161 : vector<8xf32> to vector<8x1xf32>
    %163 = tpu.reciprocal %162 {approx = true} : vector<8x1xf32> -> vector<8x1xf32>
    %164 = vector.broadcast %163 : vector<8x1xf32> to vector<8x8xf32>
    %165 = arith.mulf %160, %164 : vector<8x8xf32>
    %166 = arith.truncf %165 : vector<8x8xf32> to vector<8x8xbf16>
    %167 = vector.extract_strided_slice %129 {offsets = [0, 32], sizes = [8, 32], strides = [1, 1]} : vector<8x128xf32> to vector<8x32xf32>
    %168 = arith.truncf %167 : vector<8x32xf32> to vector<8x32xbf16>
    %cst_61 = arith.constant dense<0.000000e+00> : vector<8x32xf32>
    %169 = tpu.matmul %166, %168, %cst_61 {dimension_numbers = #tpu.dot_dimension_numbers<[1], [0], [0], [1], [0, 0, 1, 1], [], []>} : vector<8x8xbf16>, vector<8x32xbf16>, vector<8x32xf32> -> vector<8x32xf32>
    %170 = vector.extract_strided_slice %127 {offsets = [0, 64], sizes = [8, 32], strides = [1, 1]} : vector<8x128xf32> to vector<8x32xf32>
    %171 = arith.truncf %170 : vector<8x32xf32> to vector<8x32xbf16>
    %172 = vector.extract_strided_slice %128 {offsets = [0, 64], sizes = [8, 32], strides = [1, 1]} : vector<8x128xf32> to vector<8x32xf32>
    %173 = arith.truncf %172 : vector<8x32xf32> to vector<8x32xbf16>
    %cst_62 = arith.constant dense<0.000000e+00> : vector<8x8xf32>
    %174 = tpu.matmul %171, %173, %cst_62 {dimension_numbers = #tpu.dot_dimension_numbers<[1], [1], [0], [0], [0, 0, 1, 0], [], []>} : vector<8x32xbf16>, vector<8x32xbf16>, vector<8x8xf32> -> vector<8x8xf32>
    %175 = arith.addf %174, %124 : vector<8x8xf32>
    %cst_63 = arith.constant dense<0xFF800000> : vector<8xf32>
    %176 = vector.multi_reduction <maximumf>, %175, %cst_63 [1] : vector<8x8xf32> to vector<8xf32>
    %177 = vector.shape_cast %176 : vector<8xf32> to vector<8x1xf32>
    %178 = vector.broadcast %177 : vector<8x1xf32> to vector<8x8xf32>
    %179 = arith.subf %175, %178 : vector<8x8xf32>
    %180 = math.exp %179 : vector<8x8xf32>
    %cst_64 = arith.constant dense<0.000000e+00> : vector<8xf32>
    %181 = vector.multi_reduction <add>, %180, %cst_64 [1] : vector<8x8xf32> to vector<8xf32>
    %182 = vector.shape_cast %181 : vector<8xf32> to vector<8x1xf32>
    %183 = tpu.reciprocal %182 {approx = true} : vector<8x1xf32> -> vector<8x1xf32>
    %184 = vector.broadcast %183 : vector<8x1xf32> to vector<8x8xf32>
    %185 = arith.mulf %180, %184 : vector<8x8xf32>
    %186 = arith.truncf %185 : vector<8x8xf32> to vector<8x8xbf16>
    %187 = vector.extract_strided_slice %129 {offsets = [0, 64], sizes = [8, 32], strides = [1, 1]} : vector<8x128xf32> to vector<8x32xf32>
    %188 = arith.truncf %187 : vector<8x32xf32> to vector<8x32xbf16>
    %cst_65 = arith.constant dense<0.000000e+00> : vector<8x32xf32>
    %189 = tpu.matmul %186, %188, %cst_65 {dimension_numbers = #tpu.dot_dimension_numbers<[1], [0], [0], [1], [0, 0, 1, 1], [], []>} : vector<8x8xbf16>, vector<8x32xbf16>, vector<8x32xf32> -> vector<8x32xf32>
    %190 = vector.extract_strided_slice %127 {offsets = [0, 96], sizes = [8, 32], strides = [1, 1]} : vector<8x128xf32> to vector<8x32xf32>
    %191 = arith.truncf %190 : vector<8x32xf32> to vector<8x32xbf16>
    %192 = vector.extract_strided_slice %128 {offsets = [0, 96], sizes = [8, 32], strides = [1, 1]} : vector<8x128xf32> to vector<8x32xf32>
    %193 = arith.truncf %192 : vector<8x32xf32> to vector<8x32xbf16>
    %cst_66 = arith.constant dense<0.000000e+00> : vector<8x8xf32>
    %194 = tpu.matmul %191, %193, %cst_66 {dimension_numbers = #tpu.dot_dimension_numbers<[1], [1], [0], [0], [0, 0, 1, 0], [], []>} : vector<8x32xbf16>, vector<8x32xbf16>, vector<8x8xf32> -> vector<8x8xf32>
    %195 = arith.addf %194, %126 : vector<8x8xf32>
    %cst_67 = arith.constant dense<0xFF800000> : vector<8xf32>
    %196 = vector.multi_reduction <maximumf>, %195, %cst_67 [1] : vector<8x8xf32> to vector<8xf32>
    %197 = vector.shape_cast %196 : vector<8xf32> to vector<8x1xf32>
    %198 = vector.broadcast %197 : vector<8x1xf32> to vector<8x8xf32>
    %199 = arith.subf %195, %198 : vector<8x8xf32>
    %200 = math.exp %199 : vector<8x8xf32>
    %cst_68 = arith.constant dense<0.000000e+00> : vector<8xf32>
    %201 = vector.multi_reduction <add>, %200, %cst_68 [1] : vector<8x8xf32> to vector<8xf32>
    %202 = vector.shape_cast %201 : vector<8xf32> to vector<8x1xf32>
    %203 = tpu.reciprocal %202 {approx = true} : vector<8x1xf32> -> vector<8x1xf32>
    %204 = vector.broadcast %203 : vector<8x1xf32> to vector<8x8xf32>
    %205 = arith.mulf %200, %204 : vector<8x8xf32>
    %206 = arith.truncf %205 : vector<8x8xf32> to vector<8x8xbf16>
    %207 = vector.extract_strided_slice %129 {offsets = [0, 96], sizes = [8, 32], strides = [1, 1]} : vector<8x128xf32> to vector<8x32xf32>
    %208 = arith.truncf %207 : vector<8x32xf32> to vector<8x32xbf16>
    %cst_69 = arith.constant dense<0.000000e+00> : vector<8x32xf32>
    %209 = tpu.matmul %206, %208, %cst_69 {dimension_numbers = #tpu.dot_dimension_numbers<[1], [0], [0], [1], [0, 0, 1, 1], [], []>} : vector<8x8xbf16>, vector<8x32xbf16>, vector<8x32xf32> -> vector<8x32xf32>
    %210 = tpu.concatenate %149, %169, %189, %209 in 1 : vector<8x32xf32>, vector<8x32xf32>, vector<8x32xf32>, vector<8x32xf32> -> vector<8x128xf32>
    %211 = tpu.concatenate %118, %210 in 0 : vector<8x128xf32>, vector<8x128xf32> -> vector<16x128xf32>
    %212 = arith.truncf %211 : vector<16x128xf32> to vector<16x128xbf16>
    %c0_70 = arith.constant 0 : index
    %c0_71 = arith.constant 0 : index
    %c0_72 = arith.constant 0 : index
    %213 = vector.load %arg7[%c0_70, %c0_71, %c0_72] : memref<1x128x128xbf16, #tpu.memory_space<vmem>>, vector<1x128x128xbf16>
    %214 = vector.shape_cast %213 : vector<1x128x128xbf16> to vector<128x128xbf16>
    %cst_73 = arith.constant dense<0.000000e+00> : vector<16x128xf32>
    %215 = tpu.matmul %212, %214, %cst_73 {dimension_numbers = #tpu.dot_dimension_numbers<[1], [0], [0], [1], [0, 0, 1, 1], [], []>} : vector<16x128xbf16>, vector<128x128xbf16>, vector<16x128xf32> -> vector<16x128xf32>
    %216 = arith.addf %5, %215 : vector<16x128xf32>
    %c0_74 = arith.constant 0 : index
    %c0_75 = arith.constant 0 : index
    %c0_76 = arith.constant 0 : index
    %217 = vector.load %arg8[%c0_74, %c0_75, %c0_76] : memref<1x1x128xf32, #tpu.memory_space<vmem>>, vector<1x1x128xf32>
    %218 = vector.shape_cast %217 : vector<1x1x128xf32> to vector<1x128xf32>
    %219 = arith.mulf %216, %216 : vector<16x128xf32>
    %cst_77 = arith.constant dense<0.000000e+00> : vector<16xf32>
    %220 = vector.multi_reduction <add>, %219, %cst_77 [1] : vector<16x128xf32> to vector<16xf32>
    %221 = vector.shape_cast %220 : vector<16xf32> to vector<16x1xf32>
    %cst_78 = arith.constant 1.280000e+02 : f32
    %222 = vector.broadcast %cst_78 : f32 to vector<16x1xf32>
    %223 = arith.divf %221, %222 : vector<16x1xf32>
    %cst_79 = arith.constant 9.99999997E-7 : f32
    %224 = vector.broadcast %cst_79 : f32 to vector<16x1xf32>
    %225 = arith.addf %223, %224 : vector<16x1xf32>
    %226 = math.rsqrt %225 : vector<16x1xf32>
    %227 = vector.broadcast %226 : vector<16x1xf32> to vector<16x128xf32>
    %228 = arith.mulf %216, %227 : vector<16x128xf32>
    %229 = vector.broadcast %218 : vector<1x128xf32> to vector<16x128xf32>
    %230 = arith.mulf %228, %229 : vector<16x128xf32>
    %231 = arith.truncf %230 : vector<16x128xf32> to vector<16x128xbf16>
    %c0_80 = arith.constant 0 : index
    %c0_81 = arith.constant 0 : index
    %c0_82 = arith.constant 0 : index
    %232 = vector.load %arg9[%c0_80, %c0_81, %c0_82] : memref<1x128x128xbf16, #tpu.memory_space<vmem>>, vector<1x128x128xbf16>
    %233 = vector.shape_cast %232 : vector<1x128x128xbf16> to vector<128x128xbf16>
    %cst_83 = arith.constant dense<0.000000e+00> : vector<16x128xf32>
    %234 = tpu.matmul %231, %233, %cst_83 {dimension_numbers = #tpu.dot_dimension_numbers<[1], [0], [0], [1], [0, 0, 1, 1], [], []>} : vector<16x128xbf16>, vector<128x128xbf16>, vector<16x128xf32> -> vector<16x128xf32>
    %235 = arith.truncf %7 : vector<32x128xf32> to vector<32x128xbf16>
    %c0_84 = arith.constant 0 : index
    %c0_85 = arith.constant 0 : index
    %c0_86 = arith.constant 0 : index
    %236 = vector.load %arg10[%c0_84, %c0_85, %c0_86] : memref<1x128x256xbf16, #tpu.memory_space<vmem>>, vector<1x128x256xbf16>
    %237 = vector.shape_cast %236 : vector<1x128x256xbf16> to vector<128x256xbf16>
    %cst_87 = arith.constant dense<0.000000e+00> : vector<32x256xf32>
    %238 = tpu.matmul %235, %237, %cst_87 {dimension_numbers = #tpu.dot_dimension_numbers<[1], [0], [0], [1], [0, 0, 1, 1], [], []>} : vector<32x128xbf16>, vector<128x256xbf16>, vector<32x256xf32> -> vector<32x256xf32>
    %239 = vector.extract_strided_slice %8 {offsets = [0, 0, 0], sizes = [1, 1, 16], strides = [1, 1, 1]} : vector<2x1x16xf32> to vector<1x1x16xf32>
    %240 = vector.shape_cast %239 : vector<1x1x16xf32> to vector<1x16xf32>
    %241 = vector.shape_cast %240 : vector<1x16xf32> to vector<1x16xf32>
    %242 = vector.broadcast %241 : vector<1x16xf32> to vector<8x16xf32>
    %243 = vector.extract_strided_slice %234 {offsets = [0, 0], sizes = [8, 128], strides = [1, 1]} : vector<16x128xf32> to vector<8x128xf32>
    %244 = vector.extract_strided_slice %238 {offsets = [0, 0], sizes = [16, 128], strides = [1, 1]} : vector<32x256xf32> to vector<16x128xf32>
    %245 = vector.extract_strided_slice %238 {offsets = [0, 128], sizes = [16, 128], strides = [1, 1]} : vector<32x256xf32> to vector<16x128xf32>
    %246 = vector.extract_strided_slice %243 {offsets = [0, 0], sizes = [8, 32], strides = [1, 1]} : vector<8x128xf32> to vector<8x32xf32>
    %247 = arith.truncf %246 : vector<8x32xf32> to vector<8x32xbf16>
    %248 = vector.extract_strided_slice %244 {offsets = [0, 0], sizes = [16, 32], strides = [1, 1]} : vector<16x128xf32> to vector<16x32xf32>
    %249 = arith.truncf %248 : vector<16x32xf32> to vector<16x32xbf16>
    %cst_88 = arith.constant dense<0.000000e+00> : vector<8x16xf32>
    %250 = tpu.matmul %247, %249, %cst_88 {dimension_numbers = #tpu.dot_dimension_numbers<[1], [1], [0], [0], [0, 0, 1, 0], [], []>} : vector<8x32xbf16>, vector<16x32xbf16>, vector<8x16xf32> -> vector<8x16xf32>
    %251 = arith.addf %250, %242 : vector<8x16xf32>
    %cst_89 = arith.constant dense<0xFF800000> : vector<8xf32>
    %252 = vector.multi_reduction <maximumf>, %251, %cst_89 [1] : vector<8x16xf32> to vector<8xf32>
    %253 = vector.shape_cast %252 : vector<8xf32> to vector<8x1xf32>
    %254 = vector.broadcast %253 : vector<8x1xf32> to vector<8x16xf32>
    %255 = arith.subf %251, %254 : vector<8x16xf32>
    %256 = math.exp %255 : vector<8x16xf32>
    %cst_90 = arith.constant dense<0.000000e+00> : vector<8xf32>
    %257 = vector.multi_reduction <add>, %256, %cst_90 [1] : vector<8x16xf32> to vector<8xf32>
    %258 = vector.shape_cast %257 : vector<8xf32> to vector<8x1xf32>
    %259 = tpu.reciprocal %258 {approx = true} : vector<8x1xf32> -> vector<8x1xf32>
    %260 = vector.broadcast %259 : vector<8x1xf32> to vector<8x16xf32>
    %261 = arith.mulf %256, %260 : vector<8x16xf32>
    %262 = arith.truncf %261 : vector<8x16xf32> to vector<8x16xbf16>
    %263 = vector.extract_strided_slice %245 {offsets = [0, 0], sizes = [16, 32], strides = [1, 1]} : vector<16x128xf32> to vector<16x32xf32>
    %264 = arith.truncf %263 : vector<16x32xf32> to vector<16x32xbf16>
    %cst_91 = arith.constant dense<0.000000e+00> : vector<8x32xf32>
    %265 = tpu.matmul %262, %264, %cst_91 {dimension_numbers = #tpu.dot_dimension_numbers<[1], [0], [0], [1], [0, 0, 1, 1], [], []>} : vector<8x16xbf16>, vector<16x32xbf16>, vector<8x32xf32> -> vector<8x32xf32>
    %266 = vector.extract_strided_slice %243 {offsets = [0, 32], sizes = [8, 32], strides = [1, 1]} : vector<8x128xf32> to vector<8x32xf32>
    %267 = arith.truncf %266 : vector<8x32xf32> to vector<8x32xbf16>
    %268 = vector.extract_strided_slice %244 {offsets = [0, 32], sizes = [16, 32], strides = [1, 1]} : vector<16x128xf32> to vector<16x32xf32>
    %269 = arith.truncf %268 : vector<16x32xf32> to vector<16x32xbf16>
    %cst_92 = arith.constant dense<0.000000e+00> : vector<8x16xf32>
    %270 = tpu.matmul %267, %269, %cst_92 {dimension_numbers = #tpu.dot_dimension_numbers<[1], [1], [0], [0], [0, 0, 1, 0], [], []>} : vector<8x32xbf16>, vector<16x32xbf16>, vector<8x16xf32> -> vector<8x16xf32>
    %271 = arith.addf %270, %242 : vector<8x16xf32>
    %cst_93 = arith.constant dense<0xFF800000> : vector<8xf32>
    %272 = vector.multi_reduction <maximumf>, %271, %cst_93 [1] : vector<8x16xf32> to vector<8xf32>
    %273 = vector.shape_cast %272 : vector<8xf32> to vector<8x1xf32>
    %274 = vector.broadcast %273 : vector<8x1xf32> to vector<8x16xf32>
    %275 = arith.subf %271, %274 : vector<8x16xf32>
    %276 = math.exp %275 : vector<8x16xf32>
    %cst_94 = arith.constant dense<0.000000e+00> : vector<8xf32>
    %277 = vector.multi_reduction <add>, %276, %cst_94 [1] : vector<8x16xf32> to vector<8xf32>
    %278 = vector.shape_cast %277 : vector<8xf32> to vector<8x1xf32>
    %279 = tpu.reciprocal %278 {approx = true} : vector<8x1xf32> -> vector<8x1xf32>
    %280 = vector.broadcast %279 : vector<8x1xf32> to vector<8x16xf32>
    %281 = arith.mulf %276, %280 : vector<8x16xf32>
    %282 = arith.truncf %281 : vector<8x16xf32> to vector<8x16xbf16>
    %283 = vector.extract_strided_slice %245 {offsets = [0, 32], sizes = [16, 32], strides = [1, 1]} : vector<16x128xf32> to vector<16x32xf32>
    %284 = arith.truncf %283 : vector<16x32xf32> to vector<16x32xbf16>
    %cst_95 = arith.constant dense<0.000000e+00> : vector<8x32xf32>
    %285 = tpu.matmul %282, %284, %cst_95 {dimension_numbers = #tpu.dot_dimension_numbers<[1], [0], [0], [1], [0, 0, 1, 1], [], []>} : vector<8x16xbf16>, vector<16x32xbf16>, vector<8x32xf32> -> vector<8x32xf32>
    %286 = vector.extract_strided_slice %243 {offsets = [0, 64], sizes = [8, 32], strides = [1, 1]} : vector<8x128xf32> to vector<8x32xf32>
    %287 = arith.truncf %286 : vector<8x32xf32> to vector<8x32xbf16>
    %288 = vector.extract_strided_slice %244 {offsets = [0, 64], sizes = [16, 32], strides = [1, 1]} : vector<16x128xf32> to vector<16x32xf32>
    %289 = arith.truncf %288 : vector<16x32xf32> to vector<16x32xbf16>
    %cst_96 = arith.constant dense<0.000000e+00> : vector<8x16xf32>
    %290 = tpu.matmul %287, %289, %cst_96 {dimension_numbers = #tpu.dot_dimension_numbers<[1], [1], [0], [0], [0, 0, 1, 0], [], []>} : vector<8x32xbf16>, vector<16x32xbf16>, vector<8x16xf32> -> vector<8x16xf32>
    %291 = arith.addf %290, %242 : vector<8x16xf32>
    %cst_97 = arith.constant dense<0xFF800000> : vector<8xf32>
    %292 = vector.multi_reduction <maximumf>, %291, %cst_97 [1] : vector<8x16xf32> to vector<8xf32>
    %293 = vector.shape_cast %292 : vector<8xf32> to vector<8x1xf32>
    %294 = vector.broadcast %293 : vector<8x1xf32> to vector<8x16xf32>
    %295 = arith.subf %291, %294 : vector<8x16xf32>
    %296 = math.exp %295 : vector<8x16xf32>
    %cst_98 = arith.constant dense<0.000000e+00> : vector<8xf32>
    %297 = vector.multi_reduction <add>, %296, %cst_98 [1] : vector<8x16xf32> to vector<8xf32>
    %298 = vector.shape_cast %297 : vector<8xf32> to vector<8x1xf32>
    %299 = tpu.reciprocal %298 {approx = true} : vector<8x1xf32> -> vector<8x1xf32>
    %300 = vector.broadcast %299 : vector<8x1xf32> to vector<8x16xf32>
    %301 = arith.mulf %296, %300 : vector<8x16xf32>
    %302 = arith.truncf %301 : vector<8x16xf32> to vector<8x16xbf16>
    %303 = vector.extract_strided_slice %245 {offsets = [0, 64], sizes = [16, 32], strides = [1, 1]} : vector<16x128xf32> to vector<16x32xf32>
    %304 = arith.truncf %303 : vector<16x32xf32> to vector<16x32xbf16>
    %cst_99 = arith.constant dense<0.000000e+00> : vector<8x32xf32>
    %305 = tpu.matmul %302, %304, %cst_99 {dimension_numbers = #tpu.dot_dimension_numbers<[1], [0], [0], [1], [0, 0, 1, 1], [], []>} : vector<8x16xbf16>, vector<16x32xbf16>, vector<8x32xf32> -> vector<8x32xf32>
    %306 = vector.extract_strided_slice %243 {offsets = [0, 96], sizes = [8, 32], strides = [1, 1]} : vector<8x128xf32> to vector<8x32xf32>
    %307 = arith.truncf %306 : vector<8x32xf32> to vector<8x32xbf16>
    %308 = vector.extract_strided_slice %244 {offsets = [0, 96], sizes = [16, 32], strides = [1, 1]} : vector<16x128xf32> to vector<16x32xf32>
    %309 = arith.truncf %308 : vector<16x32xf32> to vector<16x32xbf16>
    %cst_100 = arith.constant dense<0.000000e+00> : vector<8x16xf32>
    %310 = tpu.matmul %307, %309, %cst_100 {dimension_numbers = #tpu.dot_dimension_numbers<[1], [1], [0], [0], [0, 0, 1, 0], [], []>} : vector<8x32xbf16>, vector<16x32xbf16>, vector<8x16xf32> -> vector<8x16xf32>
    %311 = arith.addf %310, %242 : vector<8x16xf32>
    %cst_101 = arith.constant dense<0xFF800000> : vector<8xf32>
    %312 = vector.multi_reduction <maximumf>, %311, %cst_101 [1] : vector<8x16xf32> to vector<8xf32>
    %313 = vector.shape_cast %312 : vector<8xf32> to vector<8x1xf32>
    %314 = vector.broadcast %313 : vector<8x1xf32> to vector<8x16xf32>
    %315 = arith.subf %311, %314 : vector<8x16xf32>
    %316 = math.exp %315 : vector<8x16xf32>
    %cst_102 = arith.constant dense<0.000000e+00> : vector<8xf32>
    %317 = vector.multi_reduction <add>, %316, %cst_102 [1] : vector<8x16xf32> to vector<8xf32>
    %318 = vector.shape_cast %317 : vector<8xf32> to vector<8x1xf32>
    %319 = tpu.reciprocal %318 {approx = true} : vector<8x1xf32> -> vector<8x1xf32>
    %320 = vector.broadcast %319 : vector<8x1xf32> to vector<8x16xf32>
    %321 = arith.mulf %316, %320 : vector<8x16xf32>
    %322 = arith.truncf %321 : vector<8x16xf32> to vector<8x16xbf16>
    %323 = vector.extract_strided_slice %245 {offsets = [0, 96], sizes = [16, 32], strides = [1, 1]} : vector<16x128xf32> to vector<16x32xf32>
    %324 = arith.truncf %323 : vector<16x32xf32> to vector<16x32xbf16>
    %cst_103 = arith.constant dense<0.000000e+00> : vector<8x32xf32>
    %325 = tpu.matmul %322, %324, %cst_103 {dimension_numbers = #tpu.dot_dimension_numbers<[1], [0], [0], [1], [0, 0, 1, 1], [], []>} : vector<8x16xbf16>, vector<16x32xbf16>, vector<8x32xf32> -> vector<8x32xf32>
    %326 = tpu.concatenate %265, %285, %305, %325 in 1 : vector<8x32xf32>, vector<8x32xf32>, vector<8x32xf32>, vector<8x32xf32> -> vector<8x128xf32>
    %327 = vector.extract_strided_slice %8 {offsets = [1, 0, 0], sizes = [1, 1, 16], strides = [1, 1, 1]} : vector<2x1x16xf32> to vector<1x1x16xf32>
    %328 = vector.shape_cast %327 : vector<1x1x16xf32> to vector<1x16xf32>
    %329 = vector.shape_cast %328 : vector<1x16xf32> to vector<1x16xf32>
    %330 = vector.broadcast %329 : vector<1x16xf32> to vector<8x16xf32>
    %331 = vector.extract_strided_slice %234 {offsets = [8, 0], sizes = [8, 128], strides = [1, 1]} : vector<16x128xf32> to vector<8x128xf32>
    %332 = vector.extract_strided_slice %238 {offsets = [16, 0], sizes = [16, 128], strides = [1, 1]} : vector<32x256xf32> to vector<16x128xf32>
    %333 = vector.extract_strided_slice %238 {offsets = [16, 128], sizes = [16, 128], strides = [1, 1]} : vector<32x256xf32> to vector<16x128xf32>
    %334 = vector.extract_strided_slice %331 {offsets = [0, 0], sizes = [8, 32], strides = [1, 1]} : vector<8x128xf32> to vector<8x32xf32>
    %335 = arith.truncf %334 : vector<8x32xf32> to vector<8x32xbf16>
    %336 = vector.extract_strided_slice %332 {offsets = [0, 0], sizes = [16, 32], strides = [1, 1]} : vector<16x128xf32> to vector<16x32xf32>
    %337 = arith.truncf %336 : vector<16x32xf32> to vector<16x32xbf16>
    %cst_104 = arith.constant dense<0.000000e+00> : vector<8x16xf32>
    %338 = tpu.matmul %335, %337, %cst_104 {dimension_numbers = #tpu.dot_dimension_numbers<[1], [1], [0], [0], [0, 0, 1, 0], [], []>} : vector<8x32xbf16>, vector<16x32xbf16>, vector<8x16xf32> -> vector<8x16xf32>
    %339 = arith.addf %338, %330 : vector<8x16xf32>
    %cst_105 = arith.constant dense<0xFF800000> : vector<8xf32>
    %340 = vector.multi_reduction <maximumf>, %339, %cst_105 [1] : vector<8x16xf32> to vector<8xf32>
    %341 = vector.shape_cast %340 : vector<8xf32> to vector<8x1xf32>
    %342 = vector.broadcast %341 : vector<8x1xf32> to vector<8x16xf32>
    %343 = arith.subf %339, %342 : vector<8x16xf32>
    %344 = math.exp %343 : vector<8x16xf32>
    %cst_106 = arith.constant dense<0.000000e+00> : vector<8xf32>
    %345 = vector.multi_reduction <add>, %344, %cst_106 [1] : vector<8x16xf32> to vector<8xf32>
    %346 = vector.shape_cast %345 : vector<8xf32> to vector<8x1xf32>
    %347 = tpu.reciprocal %346 {approx = true} : vector<8x1xf32> -> vector<8x1xf32>
    %348 = vector.broadcast %347 : vector<8x1xf32> to vector<8x16xf32>
    %349 = arith.mulf %344, %348 : vector<8x16xf32>
    %350 = arith.truncf %349 : vector<8x16xf32> to vector<8x16xbf16>
    %351 = vector.extract_strided_slice %333 {offsets = [0, 0], sizes = [16, 32], strides = [1, 1]} : vector<16x128xf32> to vector<16x32xf32>
    %352 = arith.truncf %351 : vector<16x32xf32> to vector<16x32xbf16>
    %cst_107 = arith.constant dense<0.000000e+00> : vector<8x32xf32>
    %353 = tpu.matmul %350, %352, %cst_107 {dimension_numbers = #tpu.dot_dimension_numbers<[1], [0], [0], [1], [0, 0, 1, 1], [], []>} : vector<8x16xbf16>, vector<16x32xbf16>, vector<8x32xf32> -> vector<8x32xf32>
    %354 = vector.extract_strided_slice %331 {offsets = [0, 32], sizes = [8, 32], strides = [1, 1]} : vector<8x128xf32> to vector<8x32xf32>
    %355 = arith.truncf %354 : vector<8x32xf32> to vector<8x32xbf16>
    %356 = vector.extract_strided_slice %332 {offsets = [0, 32], sizes = [16, 32], strides = [1, 1]} : vector<16x128xf32> to vector<16x32xf32>
    %357 = arith.truncf %356 : vector<16x32xf32> to vector<16x32xbf16>
    %cst_108 = arith.constant dense<0.000000e+00> : vector<8x16xf32>
    %358 = tpu.matmul %355, %357, %cst_108 {dimension_numbers = #tpu.dot_dimension_numbers<[1], [1], [0], [0], [0, 0, 1, 0], [], []>} : vector<8x32xbf16>, vector<16x32xbf16>, vector<8x16xf32> -> vector<8x16xf32>
    %359 = arith.addf %358, %330 : vector<8x16xf32>
    %cst_109 = arith.constant dense<0xFF800000> : vector<8xf32>
    %360 = vector.multi_reduction <maximumf>, %359, %cst_109 [1] : vector<8x16xf32> to vector<8xf32>
    %361 = vector.shape_cast %360 : vector<8xf32> to vector<8x1xf32>
    %362 = vector.broadcast %361 : vector<8x1xf32> to vector<8x16xf32>
    %363 = arith.subf %359, %362 : vector<8x16xf32>
    %364 = math.exp %363 : vector<8x16xf32>
    %cst_110 = arith.constant dense<0.000000e+00> : vector<8xf32>
    %365 = vector.multi_reduction <add>, %364, %cst_110 [1] : vector<8x16xf32> to vector<8xf32>
    %366 = vector.shape_cast %365 : vector<8xf32> to vector<8x1xf32>
    %367 = tpu.reciprocal %366 {approx = true} : vector<8x1xf32> -> vector<8x1xf32>
    %368 = vector.broadcast %367 : vector<8x1xf32> to vector<8x16xf32>
    %369 = arith.mulf %364, %368 : vector<8x16xf32>
    %370 = arith.truncf %369 : vector<8x16xf32> to vector<8x16xbf16>
    %371 = vector.extract_strided_slice %333 {offsets = [0, 32], sizes = [16, 32], strides = [1, 1]} : vector<16x128xf32> to vector<16x32xf32>
    %372 = arith.truncf %371 : vector<16x32xf32> to vector<16x32xbf16>
    %cst_111 = arith.constant dense<0.000000e+00> : vector<8x32xf32>
    %373 = tpu.matmul %370, %372, %cst_111 {dimension_numbers = #tpu.dot_dimension_numbers<[1], [0], [0], [1], [0, 0, 1, 1], [], []>} : vector<8x16xbf16>, vector<16x32xbf16>, vector<8x32xf32> -> vector<8x32xf32>
    %374 = vector.extract_strided_slice %331 {offsets = [0, 64], sizes = [8, 32], strides = [1, 1]} : vector<8x128xf32> to vector<8x32xf32>
    %375 = arith.truncf %374 : vector<8x32xf32> to vector<8x32xbf16>
    %376 = vector.extract_strided_slice %332 {offsets = [0, 64], sizes = [16, 32], strides = [1, 1]} : vector<16x128xf32> to vector<16x32xf32>
    %377 = arith.truncf %376 : vector<16x32xf32> to vector<16x32xbf16>
    %cst_112 = arith.constant dense<0.000000e+00> : vector<8x16xf32>
    %378 = tpu.matmul %375, %377, %cst_112 {dimension_numbers = #tpu.dot_dimension_numbers<[1], [1], [0], [0], [0, 0, 1, 0], [], []>} : vector<8x32xbf16>, vector<16x32xbf16>, vector<8x16xf32> -> vector<8x16xf32>
    %379 = arith.addf %378, %330 : vector<8x16xf32>
    %cst_113 = arith.constant dense<0xFF800000> : vector<8xf32>
    %380 = vector.multi_reduction <maximumf>, %379, %cst_113 [1] : vector<8x16xf32> to vector<8xf32>
    %381 = vector.shape_cast %380 : vector<8xf32> to vector<8x1xf32>
    %382 = vector.broadcast %381 : vector<8x1xf32> to vector<8x16xf32>
    %383 = arith.subf %379, %382 : vector<8x16xf32>
    %384 = math.exp %383 : vector<8x16xf32>
    %cst_114 = arith.constant dense<0.000000e+00> : vector<8xf32>
    %385 = vector.multi_reduction <add>, %384, %cst_114 [1] : vector<8x16xf32> to vector<8xf32>
    %386 = vector.shape_cast %385 : vector<8xf32> to vector<8x1xf32>
    %387 = tpu.reciprocal %386 {approx = true} : vector<8x1xf32> -> vector<8x1xf32>
    %388 = vector.broadcast %387 : vector<8x1xf32> to vector<8x16xf32>
    %389 = arith.mulf %384, %388 : vector<8x16xf32>
    %390 = arith.truncf %389 : vector<8x16xf32> to vector<8x16xbf16>
    %391 = vector.extract_strided_slice %333 {offsets = [0, 64], sizes = [16, 32], strides = [1, 1]} : vector<16x128xf32> to vector<16x32xf32>
    %392 = arith.truncf %391 : vector<16x32xf32> to vector<16x32xbf16>
    %cst_115 = arith.constant dense<0.000000e+00> : vector<8x32xf32>
    %393 = tpu.matmul %390, %392, %cst_115 {dimension_numbers = #tpu.dot_dimension_numbers<[1], [0], [0], [1], [0, 0, 1, 1], [], []>} : vector<8x16xbf16>, vector<16x32xbf16>, vector<8x32xf32> -> vector<8x32xf32>
    %394 = vector.extract_strided_slice %331 {offsets = [0, 96], sizes = [8, 32], strides = [1, 1]} : vector<8x128xf32> to vector<8x32xf32>
    %395 = arith.truncf %394 : vector<8x32xf32> to vector<8x32xbf16>
    %396 = vector.extract_strided_slice %332 {offsets = [0, 96], sizes = [16, 32], strides = [1, 1]} : vector<16x128xf32> to vector<16x32xf32>
    %397 = arith.truncf %396 : vector<16x32xf32> to vector<16x32xbf16>
    %cst_116 = arith.constant dense<0.000000e+00> : vector<8x16xf32>
    %398 = tpu.matmul %395, %397, %cst_116 {dimension_numbers = #tpu.dot_dimension_numbers<[1], [1], [0], [0], [0, 0, 1, 0], [], []>} : vector<8x32xbf16>, vector<16x32xbf16>, vector<8x16xf32> -> vector<8x16xf32>
    %399 = arith.addf %398, %330 : vector<8x16xf32>
    %cst_117 = arith.constant dense<0xFF800000> : vector<8xf32>
    %400 = vector.multi_reduction <maximumf>, %399, %cst_117 [1] : vector<8x16xf32> to vector<8xf32>
    %401 = vector.shape_cast %400 : vector<8xf32> to vector<8x1xf32>
    %402 = vector.broadcast %401 : vector<8x1xf32> to vector<8x16xf32>
    %403 = arith.subf %399, %402 : vector<8x16xf32>
    %404 = math.exp %403 : vector<8x16xf32>
    %cst_118 = arith.constant dense<0.000000e+00> : vector<8xf32>
    %405 = vector.multi_reduction <add>, %404, %cst_118 [1] : vector<8x16xf32> to vector<8xf32>
    %406 = vector.shape_cast %405 : vector<8xf32> to vector<8x1xf32>
    %407 = tpu.reciprocal %406 {approx = true} : vector<8x1xf32> -> vector<8x1xf32>
    %408 = vector.broadcast %407 : vector<8x1xf32> to vector<8x16xf32>
    %409 = arith.mulf %404, %408 : vector<8x16xf32>
    %410 = arith.truncf %409 : vector<8x16xf32> to vector<8x16xbf16>
    %411 = vector.extract_strided_slice %333 {offsets = [0, 96], sizes = [16, 32], strides = [1, 1]} : vector<16x128xf32> to vector<16x32xf32>
    %412 = arith.truncf %411 : vector<16x32xf32> to vector<16x32xbf16>
    %cst_119 = arith.constant dense<0.000000e+00> : vector<8x32xf32>
    %413 = tpu.matmul %410, %412, %cst_119 {dimension_numbers = #tpu.dot_dimension_numbers<[1], [0], [0], [1], [0, 0, 1, 1], [], []>} : vector<8x16xbf16>, vector<16x32xbf16>, vector<8x32xf32> -> vector<8x32xf32>
    %414 = tpu.concatenate %353, %373, %393, %413 in 1 : vector<8x32xf32>, vector<8x32xf32>, vector<8x32xf32>, vector<8x32xf32> -> vector<8x128xf32>
    %415 = tpu.concatenate %326, %414 in 0 : vector<8x128xf32>, vector<8x128xf32> -> vector<16x128xf32>
    %416 = arith.truncf %415 : vector<16x128xf32> to vector<16x128xbf16>
    %c0_120 = arith.constant 0 : index
    %c0_121 = arith.constant 0 : index
    %c0_122 = arith.constant 0 : index
    %417 = vector.load %arg11[%c0_120, %c0_121, %c0_122] : memref<1x128x128xbf16, #tpu.memory_space<vmem>>, vector<1x128x128xbf16>
    %418 = vector.shape_cast %417 : vector<1x128x128xbf16> to vector<128x128xbf16>
    %cst_123 = arith.constant dense<0.000000e+00> : vector<16x128xf32>
    %419 = tpu.matmul %416, %418, %cst_123 {dimension_numbers = #tpu.dot_dimension_numbers<[1], [0], [0], [1], [0, 0, 1, 1], [], []>} : vector<16x128xbf16>, vector<128x128xbf16>, vector<16x128xf32> -> vector<16x128xf32>
    %420 = arith.addf %216, %419 : vector<16x128xf32>
    %c0_124 = arith.constant 0 : index
    %c0_125 = arith.constant 0 : index
    %c0_126 = arith.constant 0 : index
    %421 = vector.load %arg12[%c0_124, %c0_125, %c0_126] : memref<1x1x128xf32, #tpu.memory_space<vmem>>, vector<1x1x128xf32>
    %422 = vector.shape_cast %421 : vector<1x1x128xf32> to vector<1x128xf32>
    %423 = arith.mulf %420, %420 : vector<16x128xf32>
    %cst_127 = arith.constant dense<0.000000e+00> : vector<16xf32>
    %424 = vector.multi_reduction <add>, %423, %cst_127 [1] : vector<16x128xf32> to vector<16xf32>
    %425 = vector.shape_cast %424 : vector<16xf32> to vector<16x1xf32>
    %cst_128 = arith.constant 1.280000e+02 : f32
    %426 = vector.broadcast %cst_128 : f32 to vector<16x1xf32>
    %427 = arith.divf %425, %426 : vector<16x1xf32>
    %cst_129 = arith.constant 9.99999997E-7 : f32
    %428 = vector.broadcast %cst_129 : f32 to vector<16x1xf32>
    %429 = arith.addf %427, %428 : vector<16x1xf32>
    %430 = math.rsqrt %429 : vector<16x1xf32>
    %431 = vector.broadcast %430 : vector<16x1xf32> to vector<16x128xf32>
    %432 = arith.mulf %420, %431 : vector<16x128xf32>
    %433 = vector.broadcast %422 : vector<1x128xf32> to vector<16x128xf32>
    %434 = arith.mulf %432, %433 : vector<16x128xf32>
    %435 = arith.truncf %434 : vector<16x128xf32> to vector<16x128xbf16>
    %c0_130 = arith.constant 0 : index
    %c0_131 = arith.constant 0 : index
    %c0_132 = arith.constant 0 : index
    %436 = vector.load %arg13[%c0_130, %c0_131, %c0_132] : memref<1x128x256xbf16, #tpu.memory_space<vmem>>, vector<1x128x256xbf16>
    %437 = vector.shape_cast %436 : vector<1x128x256xbf16> to vector<128x256xbf16>
    %cst_133 = arith.constant dense<0.000000e+00> : vector<16x256xf32>
    %438 = tpu.matmul %435, %437, %cst_133 {dimension_numbers = #tpu.dot_dimension_numbers<[1], [0], [0], [1], [0, 0, 1, 1], [], []>} : vector<16x128xbf16>, vector<128x256xbf16>, vector<16x256xf32> -> vector<16x256xf32>
    %cst_134 = arith.constant 0.000000e+00 : f32
    %439 = vector.broadcast %cst_134 : f32 to vector<16x256xf32>
    %440 = arith.maximumf %438, %439 : vector<16x256xf32>
    %441 = arith.truncf %440 : vector<16x256xf32> to vector<16x256xbf16>
    %c0_135 = arith.constant 0 : index
    %c0_136 = arith.constant 0 : index
    %c0_137 = arith.constant 0 : index
    %442 = vector.load %arg14[%c0_135, %c0_136, %c0_137] : memref<1x256x128xbf16, #tpu.memory_space<vmem>>, vector<1x256x128xbf16>
    %443 = vector.shape_cast %442 : vector<1x256x128xbf16> to vector<256x128xbf16>
    %cst_138 = arith.constant dense<0.000000e+00> : vector<16x128xf32>
    %444 = tpu.matmul %441, %443, %cst_138 {dimension_numbers = #tpu.dot_dimension_numbers<[1], [0], [0], [1], [0, 0, 1, 1], [], []>} : vector<16x256xbf16>, vector<256x128xbf16>, vector<16x128xf32> -> vector<16x128xf32>
    %445 = arith.addf %420, %444 : vector<16x128xf32>
    %446 = vector.shape_cast %445 : vector<16x128xf32> to vector<2x8x128xf32>
    %c0_139 = arith.constant 0 : index
    %c0_140 = arith.constant 0 : index
    %c0_141 = arith.constant 0 : index
    %447 = vector.load %arg19[%c0_139, %c0_140, %c0_141] : memref<2x8x128xf32, #tpu.memory_space<vmem>>, vector<2x8x128xf32>
    tpu.vector_store %arg19[%c0_139, %c0_140, %c0_141], %446 {strides = array<i32>} : memref<2x8x128xf32, #tpu.memory_space<vmem>>, vector<2x8x128xf32>,
    %c0_i32_142 = arith.constant 0 : i32
    %448 = arith.cmpi eq, %arg0, %c0_i32_142 : i32
    %449 = arith.extui %448 : i1 to i32
    %c0_i32_143 = arith.constant 0 : i32
    %450 = arith.cmpi ne, %449, %c0_i32_143 : i32
    scf.if %450 {
      %c0_144 = arith.constant 0 : index
      %c0_145 = arith.constant 0 : index
      %451 = vector.load %arg15[%c0_144, %c0_145] : memref<1x128xf32, #tpu.memory_space<vmem>>, vector<1x128xf32>
      %452 = arith.mulf %445, %445 : vector<16x128xf32>
      %cst_146 = arith.constant dense<0.000000e+00> : vector<16xf32>
      %453 = vector.multi_reduction <add>, %452, %cst_146 [1] : vector<16x128xf32> to vector<16xf32>
      %454 = vector.shape_cast %453 : vector<16xf32> to vector<16x1xf32>
      %cst_147 = arith.constant 1.280000e+02 : f32
      %455 = vector.broadcast %cst_147 : f32 to vector<16x1xf32>
      %456 = arith.divf %454, %455 : vector<16x1xf32>
      %cst_148 = arith.constant 9.99999997E-7 : f32
      %457 = vector.broadcast %cst_148 : f32 to vector<16x1xf32>
      %458 = arith.addf %456, %457 : vector<16x1xf32>
      %459 = math.rsqrt %458 : vector<16x1xf32>
      %460 = vector.broadcast %459 : vector<16x1xf32> to vector<16x128xf32>
      %461 = arith.mulf %445, %460 : vector<16x128xf32>
      %462 = vector.broadcast %451 : vector<1x128xf32> to vector<16x128xf32>
      %463 = arith.mulf %461, %462 : vector<16x128xf32>
      %464 = arith.truncf %463 : vector<16x128xf32> to vector<16x128xbf16>
      %c0_149 = arith.constant 0 : index
      %c0_150 = arith.constant 0 : index
      %465 = vector.load %arg16[%c0_149, %c0_150] : memref<128x256xbf16, #tpu.memory_space<vmem>>, vector<128x256xbf16>
      %cst_151 = arith.constant dense<0.000000e+00> : vector<16x256xf32>
      %466 = tpu.matmul %464, %465, %cst_151 {dimension_numbers = #tpu.dot_dimension_numbers<[1], [0], [0], [1], [0, 0, 1, 1], [], []>} : vector<16x128xbf16>, vector<128x256xbf16>, vector<16x256xf32> -> vector<16x256xf32>
      %467 = vector.shape_cast %466 : vector<16x256xf32> to vector<2x8x256xf32>
      %c0_152 = arith.constant 0 : index
      %c0_153 = arith.constant 0 : index
      %c0_154 = arith.constant 0 : index
      %468 = vector.load %arg18[%c0_152, %c0_153, %c0_154] : memref<2x8x256xf32, #tpu.memory_space<vmem>>, vector<2x8x256xf32>
      tpu.vector_store %arg18[%c0_152, %c0_153, %c0_154], %467 {strides = array<i32>} : memref<2x8x256xf32, #tpu.memory_space<vmem>>, vector<2x8x256xf32>,
    } else {
    }
    return
  }
  func.func @transform_0(%arg0: i32) -> (i32, i32, i32) {
    %c0_i32 = arith.constant 0 : i32
    %c0_i32_0 = arith.constant 0 : i32
    %c0_i32_1 = arith.constant 0 : i32
    %c0_i32_2 = arith.constant 0 : i32
    return %c0_i32, %c0_i32_0, %c0_i32_1 : i32, i32, i32
  }
  func.func @transform_1(%arg0: i32) -> (i32, i32, i32) {
    %c0_i32 = arith.constant 0 : i32
    %c0_i32_0 = arith.constant 0 : i32
    %c0_i32_1 = arith.constant 0 : i32
    %c0_i32_2 = arith.constant 0 : i32
    return %c0_i32, %c0_i32_0, %c0_i32_1 : i32, i32, i32
  }
  func.func @transform_2(%arg0: i32) -> (i32, i32, i32) {
    %c0_i32 = arith.constant 0 : i32
    %c0_i32_0 = arith.constant 0 : i32
    %c0_i32_1 = arith.constant 0 : i32
    %c0_i32_2 = arith.constant 0 : i32
    return %c0_i32, %c0_i32_0, %c0_i32_1 : i32, i32, i32
  }
  func.func @transform_3(%arg0: i32) -> (i32, i32, i32) {
    %c0_i32 = arith.constant 0 : i32
    %c0_i32_0 = arith.constant 0 : i32
    %c0_i32_1 = arith.constant 0 : i32
    %c0_i32_2 = arith.constant 0 : i32
    return %c0_i32, %c0_i32_0, %c0_i32_1 : i32, i32, i32
  }
  func.func @transform_4(%arg0: i32) -> (i32, i32, i32) {
    %c0_i32 = arith.constant 0 : i32
    %c0_i32_0 = arith.constant 0 : i32
    %c0_i32_1 = arith.constant 0 : i32
    return %arg0, %c0_i32, %c0_i32_0 : i32, i32, i32
  }
  func.func @transform_5(%arg0: i32) -> (i32, i32, i32) {
    %c0_i32 = arith.constant 0 : i32
    %c0_i32_0 = arith.constant 0 : i32
    %c0_i32_1 = arith.constant 0 : i32
    return %arg0, %c0_i32, %c0_i32_0 : i32, i32, i32
  }
  func.func @transform_6(%arg0: i32) -> (i32, i32, i32) {
    %c0_i32 = arith.constant 0 : i32
    %c0_i32_0 = arith.constant 0 : i32
    %c0_i32_1 = arith.constant 0 : i32
    return %arg0, %c0_i32, %c0_i32_0 : i32, i32, i32
  }
  func.func @transform_7(%arg0: i32) -> (i32, i32, i32) {
    %c0_i32 = arith.constant 0 : i32
    %c0_i32_0 = arith.constant 0 : i32
    %c0_i32_1 = arith.constant 0 : i32
    return %arg0, %c0_i32, %c0_i32_0 : i32, i32, i32
  }
  func.func @transform_8(%arg0: i32) -> (i32, i32, i32) {
    %c0_i32 = arith.constant 0 : i32
    %c0_i32_0 = arith.constant 0 : i32
    %c0_i32_1 = arith.constant 0 : i32
    return %arg0, %c0_i32, %c0_i32_0 : i32, i32, i32
  }
  func.func @transform_9(%arg0: i32) -> (i32, i32, i32) {
    %c0_i32 = arith.constant 0 : i32
    %c0_i32_0 = arith.constant 0 : i32
    %c0_i32_1 = arith.constant 0 : i32
    return %arg0, %c0_i32, %c0_i32_0 : i32, i32, i32
  }
  func.func @transform_10(%arg0: i32) -> (i32, i32, i32) {
    %c0_i32 = arith.constant 0 : i32
    %c0_i32_0 = arith.constant 0 : i32
    %c0_i32_1 = arith.constant 0 : i32
    return %arg0, %c0_i32, %c0_i32_0 : i32, i32, i32
  }
  func.func @transform_11(%arg0: i32) -> (i32, i32, i32) {
    %c0_i32 = arith.constant 0 : i32
    %c0_i32_0 = arith.constant 0 : i32
    %c0_i32_1 = arith.constant 0 : i32
    return %arg0, %c0_i32, %c0_i32_0 : i32, i32, i32
  }
  func.func @transform_12(%arg0: i32) -> (i32, i32, i32) {
    %c0_i32 = arith.constant 0 : i32
    %c0_i32_0 = arith.constant 0 : i32
    %c0_i32_1 = arith.constant 0 : i32
    return %arg0, %c0_i32, %c0_i32_0 : i32, i32, i32
  }
  func.func @transform_13(%arg0: i32) -> (i32, i32, i32) {
    %c0_i32 = arith.constant 0 : i32
    %c0_i32_0 = arith.constant 0 : i32
    %c0_i32_1 = arith.constant 0 : i32
    return %arg0, %c0_i32, %c0_i32_0 : i32, i32, i32
  }
  func.func @transform_14(%arg0: i32) -> (i32, i32) {
    %c0_i32 = arith.constant 0 : i32
    %c0_i32_0 = arith.constant 0 : i32
    %c0_i32_1 = arith.constant 0 : i32
    return %c0_i32, %c0_i32_0 : i32, i32
  }
  func.func @transform_15(%arg0: i32) -> (i32, i32) {
    %c0_i32 = arith.constant 0 : i32
    %c0_i32_0 = arith.constant 0 : i32
    %c0_i32_1 = arith.constant 0 : i32
    return %c0_i32, %c0_i32_0 : i32, i32
  }
  func.func @transform_16(%arg0: i32) -> (i32, i32, i32) {
    %c0_i32 = arith.constant 0 : i32
    %c0_i32_0 = arith.constant 0 : i32
    %c0_i32_1 = arith.constant 0 : i32
    return %arg0, %c0_i32, %c0_i32_0 : i32, i32, i32
  }
  func.func @transform_17(%arg0: i32) -> (i32, i32, i32) {
    %c0_i32 = arith.constant 0 : i32
    %c0_i32_0 = arith.constant 0 : i32
    %c0_i32_1 = arith.constant 0 : i32
    %c0_i32_2 = arith.constant 0 : i32
    return %c0_i32, %c0_i32_0, %c0_i32_1 : i32, i32, i32
  }
}

module attributes {stable_mosaic.version = 11 : i64} {
  func.func @_decoder_stack_kernel(%arg0: i32, %arg1: memref<2x8x128xf32, #tpu.memory_space<vmem>>, %arg2: memref<2x16x128xf32, #tpu.memory_space<vmem>>, %arg3: memref<8x8x8xf32, #tpu.memory_space<vmem>>, %arg4: memref<2x1x16xf32, #tpu.memory_space<vmem>>, %arg5: memref<1x1x128xf32, #tpu.memory_space<vmem>>, %arg6: memref<1x128x384xbf16, #tpu.memory_space<vmem>>, %arg7: memref<1x128x128xbf16, #tpu.memory_space<vmem>>, %arg8: memref<1x1x128xf32, #tpu.memory_space<vmem>>, %arg9: memref<1x128x128xbf16, #tpu.memory_space<vmem>>, %arg10: memref<1x128x256xbf16, #tpu.memory_space<vmem>>, %arg11: memref<1x128x128xbf16, #tpu.memory_space<vmem>>, %arg12: memref<1x1x128xf32, #tpu.memory_space<vmem>>, %arg13: memref<1x128x256xbf16, #tpu.memory_space<vmem>>, %arg14: memref<1x256x128xbf16, #tpu.memory_space<vmem>>, %arg15: memref<1x128xf32, #tpu.memory_space<vmem>>, %arg16: memref<128x256xbf16, #tpu.memory_space<vmem>>, %arg17: memref<128x256xbf16, #tpu.memory_space<vmem>>, %arg18: memref<1x256xf32, #tpu.memory_space<vmem>>, %arg19: memref<256x128xbf16, #tpu.memory_space<vmem>>, %arg20: memref<1x128xf32, #tpu.memory_space<vmem>>, %arg21: memref<2x8x128xf32, #tpu.memory_space<vmem>>, %arg22: memref<2x8x128xf32, #tpu.memory_space<vmem>>, %arg23: memref<2x8x256xf32, #tpu.memory_space<vmem>>, %arg24: memref<2x8x128xf32, #tpu.memory_space<vmem>>, %arg25: memref<2x8x128xf32, #tpu.memory_space<vmem>>) attributes {dimension_semantics = [#tpu.dimension_semantics<arbitrary>], iteration_bounds = array<i64: 2>, scalar_prefetch = 0 : i64, scratch_operands = 1 : i64, tpu.core_type = #tpu.core_type<tc>, window_params = [{pipeline_mode = #tpu.pipeline_mode<synchronous>, transform_indices = @transform_0, window_bounds = array<i64: 2, 8, 128>}, {pipeline_mode = #tpu.pipeline_mode<synchronous>, transform_indices = @transform_1, window_bounds = array<i64: 2, 16, 128>}, {pipeline_mode = #tpu.pipeline_mode<synchronous>, transform_indices = @transform_2, window_bounds = array<i64: 8, 8, 8>}, {pipeline_mode = #tpu.pipeline_mode<synchronous>, transform_indices = @transform_3, window_bounds = array<i64: 2, 1, 16>}, {transform_indices = @transform_4, window_bounds = array<i64: 1, 1, 128>}, {transform_indices = @transform_5, window_bounds = array<i64: 1, 128, 384>}, {transform_indices = @transform_6, window_bounds = array<i64: 1, 128, 128>}, {transform_indices = @transform_7, window_bounds = array<i64: 1, 1, 128>}, {transform_indices = @transform_8, window_bounds = array<i64: 1, 128, 128>}, {transform_indices = @transform_9, window_bounds = array<i64: 1, 128, 256>}, {transform_indices = @transform_10, window_bounds = array<i64: 1, 128, 128>}, {transform_indices = @transform_11, window_bounds = array<i64: 1, 1, 128>}, {transform_indices = @transform_12, window_bounds = array<i64: 1, 128, 256>}, {transform_indices = @transform_13, window_bounds = array<i64: 1, 256, 128>}, {pipeline_mode = #tpu.pipeline_mode<synchronous>, transform_indices = @transform_14, window_bounds = array<i64: 1, 128>}, {pipeline_mode = #tpu.pipeline_mode<synchronous>, transform_indices = @transform_15, window_bounds = array<i64: 128, 256>}, {pipeline_mode = #tpu.pipeline_mode<synchronous>, transform_indices = @transform_16, window_bounds = array<i64: 128, 256>}, {pipeline_mode = #tpu.pipeline_mode<synchronous>, transform_indices = @transform_17, window_bounds = array<i64: 1, 256>}, {pipeline_mode = #tpu.pipeline_mode<synchronous>, transform_indices = @transform_18, window_bounds = array<i64: 256, 128>}, {pipeline_mode = #tpu.pipeline_mode<synchronous>, transform_indices = @transform_19, window_bounds = array<i64: 1, 128>}, {transform_indices = @transform_20, window_bounds = array<i64: 2, 8, 128>}, {pipeline_mode = #tpu.pipeline_mode<synchronous>, transform_indices = @transform_21, window_bounds = array<i64: 2, 8, 128>}, {pipeline_mode = #tpu.pipeline_mode<synchronous>, transform_indices = @transform_22, window_bounds = array<i64: 2, 8, 256>}, {pipeline_mode = #tpu.pipeline_mode<synchronous>, transform_indices = @transform_23, window_bounds = array<i64: 2, 8, 128>}]} {
    %c0_i32 = arith.constant 0 : i32
    %0 = arith.cmpi eq, %arg0, %c0_i32 : i32
    %1 = arith.extui %0 : i1 to i32
    %c0_i32_0 = arith.constant 0 : i32
    %2 = arith.cmpi ne, %1, %c0_i32_0 : i32
    scf.if %2 {
      %c0_143 = arith.constant 0 : index
      %c0_144 = arith.constant 0 : index
      %c0_145 = arith.constant 0 : index
      %451 = vector.load %arg1[%c0_143, %c0_144, %c0_145] : memref<2x8x128xf32, #tpu.memory_space<vmem>>, vector<2x8x128xf32>
      %c0_146 = arith.constant 0 : index
      %c0_147 = arith.constant 0 : index
      %c0_148 = arith.constant 0 : index
      %452 = vector.load %arg25[%c0_146, %c0_147, %c0_148] : memref<2x8x128xf32, #tpu.memory_space<vmem>>, vector<2x8x128xf32>
      tpu.vector_store %arg25[%c0_146, %c0_147, %c0_148], %451 {strides = array<i32>} : memref<2x8x128xf32, #tpu.memory_space<vmem>>, vector<2x8x128xf32>,
    } else {
    }
    %c0 = arith.constant 0 : index
    %c0_1 = arith.constant 0 : index
    %c0_2 = arith.constant 0 : index
    %3 = vector.load %arg25[%c0, %c0_1, %c0_2] : memref<2x8x128xf32, #tpu.memory_space<vmem>>, vector<2x8x128xf32>
    %c0_3 = arith.constant 0 : index
    %c0_4 = arith.constant 0 : index
    %c0_5 = arith.constant 0 : index
    %4 = vector.load %arg21[%c0_3, %c0_4, %c0_5] : memref<2x8x128xf32, #tpu.memory_space<vmem>>, vector<2x8x128xf32>
    tpu.vector_store %arg21[%c0_3, %c0_4, %c0_5], %3 {strides = array<i32>} : memref<2x8x128xf32, #tpu.memory_space<vmem>>, vector<2x8x128xf32>,
    %5 = vector.shape_cast %3 : vector<2x8x128xf32> to vector<16x128xf32>
    %c0_6 = arith.constant 0 : index
    %c0_7 = arith.constant 0 : index
    %c0_8 = arith.constant 0 : index
    %6 = vector.load %arg2[%c0_6, %c0_7, %c0_8] : memref<2x16x128xf32, #tpu.memory_space<vmem>>, vector<2x16x128xf32>
    %7 = vector.shape_cast %6 : vector<2x16x128xf32> to vector<32x128xf32>
    %c0_9 = arith.constant 0 : index
    %c0_10 = arith.constant 0 : index
    %c0_11 = arith.constant 0 : index
    %8 = vector.load %arg4[%c0_9, %c0_10, %c0_11] : memref<2x1x16xf32, #tpu.memory_space<vmem>>, vector<2x1x16xf32>
    %c0_12 = arith.constant 0 : index
    %c0_13 = arith.constant 0 : index
    %c0_14 = arith.constant 0 : index
    %9 = vector.load %arg5[%c0_12, %c0_13, %c0_14] : memref<1x1x128xf32, #tpu.memory_space<vmem>>, vector<1x1x128xf32>
    %10 = vector.shape_cast %9 : vector<1x1x128xf32> to vector<1x128xf32>
    %11 = arith.mulf %5, %5 : vector<16x128xf32>
    %cst = arith.constant dense<0.000000e+00> : vector<16xf32>
    %12 = vector.multi_reduction <add>, %11, %cst [1] : vector<16x128xf32> to vector<16xf32>
    %13 = vector.shape_cast %12 : vector<16xf32> to vector<16x1xf32>
    %cst_15 = arith.constant 1.280000e+02 : f32
    %14 = vector.broadcast %cst_15 : f32 to vector<16x1xf32>
    %15 = arith.divf %13, %14 : vector<16x1xf32>
    %cst_16 = arith.constant 9.99999997E-7 : f32
    %16 = vector.broadcast %cst_16 : f32 to vector<16x1xf32>
    %17 = arith.addf %15, %16 : vector<16x1xf32>
    %18 = math.rsqrt %17 : vector<16x1xf32>
    %19 = vector.broadcast %18 : vector<16x1xf32> to vector<16x128xf32>
    %20 = arith.mulf %5, %19 : vector<16x128xf32>
    %21 = vector.broadcast %10 : vector<1x128xf32> to vector<16x128xf32>
    %22 = arith.mulf %20, %21 : vector<16x128xf32>
    %23 = arith.truncf %22 : vector<16x128xf32> to vector<16x128xbf16>
    %c0_17 = arith.constant 0 : index
    %c0_18 = arith.constant 0 : index
    %c0_19 = arith.constant 0 : index
    %24 = vector.load %arg6[%c0_17, %c0_18, %c0_19] : memref<1x128x384xbf16, #tpu.memory_space<vmem>>, vector<1x128x384xbf16>
    %25 = vector.shape_cast %24 : vector<1x128x384xbf16> to vector<128x384xbf16>
    %cst_20 = arith.constant dense<0.000000e+00> : vector<16x384xf32>
    %26 = tpu.matmul %23, %25, %cst_20 {dimension_numbers = #tpu.dot_dimension_numbers<[1], [0], [0], [1], [0, 0, 1, 1], [], []>} : vector<16x128xbf16>, vector<128x384xbf16>, vector<16x384xf32> -> vector<16x384xf32>
    %c0_21 = arith.constant 0 : index
    %c0_22 = arith.constant 0 : index
    %c0_23 = arith.constant 0 : index
    %27 = vector.load %arg3[%c0_21, %c0_22, %c0_23] : memref<8x8x8xf32, #tpu.memory_space<vmem>>, vector<1x8x8xf32>
    %28 = vector.shape_cast %27 : vector<1x8x8xf32> to vector<8x8xf32>
    %c1 = arith.constant 1 : index
    %c0_24 = arith.constant 0 : index
    %c0_25 = arith.constant 0 : index
    %29 = vector.load %arg3[%c1, %c0_24, %c0_25] : memref<8x8x8xf32, #tpu.memory_space<vmem>>, vector<1x8x8xf32>
    %30 = vector.shape_cast %29 : vector<1x8x8xf32> to vector<8x8xf32>
    %c2 = arith.constant 2 : index
    %c0_26 = arith.constant 0 : index
    %c0_27 = arith.constant 0 : index
    %31 = vector.load %arg3[%c2, %c0_26, %c0_27] : memref<8x8x8xf32, #tpu.memory_space<vmem>>, vector<1x8x8xf32>
    %32 = vector.shape_cast %31 : vector<1x8x8xf32> to vector<8x8xf32>
    %c3 = arith.constant 3 : index
    %c0_28 = arith.constant 0 : index
    %c0_29 = arith.constant 0 : index
    %33 = vector.load %arg3[%c3, %c0_28, %c0_29] : memref<8x8x8xf32, #tpu.memory_space<vmem>>, vector<1x8x8xf32>
    %34 = vector.shape_cast %33 : vector<1x8x8xf32> to vector<8x8xf32>
    %35 = vector.extract_strided_slice %26 {offsets = [0, 0], sizes = [8, 128], strides = [1, 1]} : vector<16x384xf32> to vector<8x128xf32>
    %36 = vector.extract_strided_slice %26 {offsets = [0, 128], sizes = [8, 128], strides = [1, 1]} : vector<16x384xf32> to vector<8x128xf32>
    %37 = vector.extract_strided_slice %26 {offsets = [0, 256], sizes = [8, 128], strides = [1, 1]} : vector<16x384xf32> to vector<8x128xf32>
    %38 = vector.extract_strided_slice %35 {offsets = [0, 0], sizes = [8, 32], strides = [1, 1]} : vector<8x128xf32> to vector<8x32xf32>
    %39 = arith.truncf %38 : vector<8x32xf32> to vector<8x32xbf16>
    %40 = vector.extract_strided_slice %36 {offsets = [0, 0], sizes = [8, 32], strides = [1, 1]} : vector<8x128xf32> to vector<8x32xf32>
    %41 = arith.truncf %40 : vector<8x32xf32> to vector<8x32xbf16>
    %cst_30 = arith.constant dense<0.000000e+00> : vector<8x8xf32>
    %42 = tpu.matmul %39, %41, %cst_30 {dimension_numbers = #tpu.dot_dimension_numbers<[1], [1], [0], [0], [0, 0, 1, 0], [], []>} : vector<8x32xbf16>, vector<8x32xbf16>, vector<8x8xf32> -> vector<8x8xf32>
    %43 = arith.addf %42, %28 : vector<8x8xf32>
    %cst_31 = arith.constant dense<0xFF800000> : vector<8xf32>
    %44 = vector.multi_reduction <maximumf>, %43, %cst_31 [1] : vector<8x8xf32> to vector<8xf32>
    %45 = vector.shape_cast %44 : vector<8xf32> to vector<8x1xf32>
    %46 = vector.broadcast %45 : vector<8x1xf32> to vector<8x8xf32>
    %47 = arith.subf %43, %46 : vector<8x8xf32>
    %48 = math.exp %47 : vector<8x8xf32>
    %cst_32 = arith.constant dense<0.000000e+00> : vector<8xf32>
    %49 = vector.multi_reduction <add>, %48, %cst_32 [1] : vector<8x8xf32> to vector<8xf32>
    %50 = vector.shape_cast %49 : vector<8xf32> to vector<8x1xf32>
    %51 = tpu.reciprocal %50 {approx = true} : vector<8x1xf32> -> vector<8x1xf32>
    %52 = vector.broadcast %51 : vector<8x1xf32> to vector<8x8xf32>
    %53 = arith.mulf %48, %52 : vector<8x8xf32>
    %54 = arith.truncf %53 : vector<8x8xf32> to vector<8x8xbf16>
    %55 = vector.extract_strided_slice %37 {offsets = [0, 0], sizes = [8, 32], strides = [1, 1]} : vector<8x128xf32> to vector<8x32xf32>
    %56 = arith.truncf %55 : vector<8x32xf32> to vector<8x32xbf16>
    %cst_33 = arith.constant dense<0.000000e+00> : vector<8x32xf32>
    %57 = tpu.matmul %54, %56, %cst_33 {dimension_numbers = #tpu.dot_dimension_numbers<[1], [0], [0], [1], [0, 0, 1, 1], [], []>} : vector<8x8xbf16>, vector<8x32xbf16>, vector<8x32xf32> -> vector<8x32xf32>
    %58 = vector.extract_strided_slice %35 {offsets = [0, 32], sizes = [8, 32], strides = [1, 1]} : vector<8x128xf32> to vector<8x32xf32>
    %59 = arith.truncf %58 : vector<8x32xf32> to vector<8x32xbf16>
    %60 = vector.extract_strided_slice %36 {offsets = [0, 32], sizes = [8, 32], strides = [1, 1]} : vector<8x128xf32> to vector<8x32xf32>
    %61 = arith.truncf %60 : vector<8x32xf32> to vector<8x32xbf16>
    %cst_34 = arith.constant dense<0.000000e+00> : vector<8x8xf32>
    %62 = tpu.matmul %59, %61, %cst_34 {dimension_numbers = #tpu.dot_dimension_numbers<[1], [1], [0], [0], [0, 0, 1, 0], [], []>} : vector<8x32xbf16>, vector<8x32xbf16>, vector<8x8xf32> -> vector<8x8xf32>
    %63 = arith.addf %62, %30 : vector<8x8xf32>
    %cst_35 = arith.constant dense<0xFF800000> : vector<8xf32>
    %64 = vector.multi_reduction <maximumf>, %63, %cst_35 [1] : vector<8x8xf32> to vector<8xf32>
    %65 = vector.shape_cast %64 : vector<8xf32> to vector<8x1xf32>
    %66 = vector.broadcast %65 : vector<8x1xf32> to vector<8x8xf32>
    %67 = arith.subf %63, %66 : vector<8x8xf32>
    %68 = math.exp %67 : vector<8x8xf32>
    %cst_36 = arith.constant dense<0.000000e+00> : vector<8xf32>
    %69 = vector.multi_reduction <add>, %68, %cst_36 [1] : vector<8x8xf32> to vector<8xf32>
    %70 = vector.shape_cast %69 : vector<8xf32> to vector<8x1xf32>
    %71 = tpu.reciprocal %70 {approx = true} : vector<8x1xf32> -> vector<8x1xf32>
    %72 = vector.broadcast %71 : vector<8x1xf32> to vector<8x8xf32>
    %73 = arith.mulf %68, %72 : vector<8x8xf32>
    %74 = arith.truncf %73 : vector<8x8xf32> to vector<8x8xbf16>
    %75 = vector.extract_strided_slice %37 {offsets = [0, 32], sizes = [8, 32], strides = [1, 1]} : vector<8x128xf32> to vector<8x32xf32>
    %76 = arith.truncf %75 : vector<8x32xf32> to vector<8x32xbf16>
    %cst_37 = arith.constant dense<0.000000e+00> : vector<8x32xf32>
    %77 = tpu.matmul %74, %76, %cst_37 {dimension_numbers = #tpu.dot_dimension_numbers<[1], [0], [0], [1], [0, 0, 1, 1], [], []>} : vector<8x8xbf16>, vector<8x32xbf16>, vector<8x32xf32> -> vector<8x32xf32>
    %78 = vector.extract_strided_slice %35 {offsets = [0, 64], sizes = [8, 32], strides = [1, 1]} : vector<8x128xf32> to vector<8x32xf32>
    %79 = arith.truncf %78 : vector<8x32xf32> to vector<8x32xbf16>
    %80 = vector.extract_strided_slice %36 {offsets = [0, 64], sizes = [8, 32], strides = [1, 1]} : vector<8x128xf32> to vector<8x32xf32>
    %81 = arith.truncf %80 : vector<8x32xf32> to vector<8x32xbf16>
    %cst_38 = arith.constant dense<0.000000e+00> : vector<8x8xf32>
    %82 = tpu.matmul %79, %81, %cst_38 {dimension_numbers = #tpu.dot_dimension_numbers<[1], [1], [0], [0], [0, 0, 1, 0], [], []>} : vector<8x32xbf16>, vector<8x32xbf16>, vector<8x8xf32> -> vector<8x8xf32>
    %83 = arith.addf %82, %32 : vector<8x8xf32>
    %cst_39 = arith.constant dense<0xFF800000> : vector<8xf32>
    %84 = vector.multi_reduction <maximumf>, %83, %cst_39 [1] : vector<8x8xf32> to vector<8xf32>
    %85 = vector.shape_cast %84 : vector<8xf32> to vector<8x1xf32>
    %86 = vector.broadcast %85 : vector<8x1xf32> to vector<8x8xf32>
    %87 = arith.subf %83, %86 : vector<8x8xf32>
    %88 = math.exp %87 : vector<8x8xf32>
    %cst_40 = arith.constant dense<0.000000e+00> : vector<8xf32>
    %89 = vector.multi_reduction <add>, %88, %cst_40 [1] : vector<8x8xf32> to vector<8xf32>
    %90 = vector.shape_cast %89 : vector<8xf32> to vector<8x1xf32>
    %91 = tpu.reciprocal %90 {approx = true} : vector<8x1xf32> -> vector<8x1xf32>
    %92 = vector.broadcast %91 : vector<8x1xf32> to vector<8x8xf32>
    %93 = arith.mulf %88, %92 : vector<8x8xf32>
    %94 = arith.truncf %93 : vector<8x8xf32> to vector<8x8xbf16>
    %95 = vector.extract_strided_slice %37 {offsets = [0, 64], sizes = [8, 32], strides = [1, 1]} : vector<8x128xf32> to vector<8x32xf32>
    %96 = arith.truncf %95 : vector<8x32xf32> to vector<8x32xbf16>
    %cst_41 = arith.constant dense<0.000000e+00> : vector<8x32xf32>
    %97 = tpu.matmul %94, %96, %cst_41 {dimension_numbers = #tpu.dot_dimension_numbers<[1], [0], [0], [1], [0, 0, 1, 1], [], []>} : vector<8x8xbf16>, vector<8x32xbf16>, vector<8x32xf32> -> vector<8x32xf32>
    %98 = vector.extract_strided_slice %35 {offsets = [0, 96], sizes = [8, 32], strides = [1, 1]} : vector<8x128xf32> to vector<8x32xf32>
    %99 = arith.truncf %98 : vector<8x32xf32> to vector<8x32xbf16>
    %100 = vector.extract_strided_slice %36 {offsets = [0, 96], sizes = [8, 32], strides = [1, 1]} : vector<8x128xf32> to vector<8x32xf32>
    %101 = arith.truncf %100 : vector<8x32xf32> to vector<8x32xbf16>
    %cst_42 = arith.constant dense<0.000000e+00> : vector<8x8xf32>
    %102 = tpu.matmul %99, %101, %cst_42 {dimension_numbers = #tpu.dot_dimension_numbers<[1], [1], [0], [0], [0, 0, 1, 0], [], []>} : vector<8x32xbf16>, vector<8x32xbf16>, vector<8x8xf32> -> vector<8x8xf32>
    %103 = arith.addf %102, %34 : vector<8x8xf32>
    %cst_43 = arith.constant dense<0xFF800000> : vector<8xf32>
    %104 = vector.multi_reduction <maximumf>, %103, %cst_43 [1] : vector<8x8xf32> to vector<8xf32>
    %105 = vector.shape_cast %104 : vector<8xf32> to vector<8x1xf32>
    %106 = vector.broadcast %105 : vector<8x1xf32> to vector<8x8xf32>
    %107 = arith.subf %103, %106 : vector<8x8xf32>
    %108 = math.exp %107 : vector<8x8xf32>
    %cst_44 = arith.constant dense<0.000000e+00> : vector<8xf32>
    %109 = vector.multi_reduction <add>, %108, %cst_44 [1] : vector<8x8xf32> to vector<8xf32>
    %110 = vector.shape_cast %109 : vector<8xf32> to vector<8x1xf32>
    %111 = tpu.reciprocal %110 {approx = true} : vector<8x1xf32> -> vector<8x1xf32>
    %112 = vector.broadcast %111 : vector<8x1xf32> to vector<8x8xf32>
    %113 = arith.mulf %108, %112 : vector<8x8xf32>
    %114 = arith.truncf %113 : vector<8x8xf32> to vector<8x8xbf16>
    %115 = vector.extract_strided_slice %37 {offsets = [0, 96], sizes = [8, 32], strides = [1, 1]} : vector<8x128xf32> to vector<8x32xf32>
    %116 = arith.truncf %115 : vector<8x32xf32> to vector<8x32xbf16>
    %cst_45 = arith.constant dense<0.000000e+00> : vector<8x32xf32>
    %117 = tpu.matmul %114, %116, %cst_45 {dimension_numbers = #tpu.dot_dimension_numbers<[1], [0], [0], [1], [0, 0, 1, 1], [], []>} : vector<8x8xbf16>, vector<8x32xbf16>, vector<8x32xf32> -> vector<8x32xf32>
    %118 = tpu.concatenate %57, %77, %97, %117 in 1 : vector<8x32xf32>, vector<8x32xf32>, vector<8x32xf32>, vector<8x32xf32> -> vector<8x128xf32>
    %c4 = arith.constant 4 : index
    %c0_46 = arith.constant 0 : index
    %c0_47 = arith.constant 0 : index
    %119 = vector.load %arg3[%c4, %c0_46, %c0_47] : memref<8x8x8xf32, #tpu.memory_space<vmem>>, vector<1x8x8xf32>
    %120 = vector.shape_cast %119 : vector<1x8x8xf32> to vector<8x8xf32>
    %c5 = arith.constant 5 : index
    %c0_48 = arith.constant 0 : index
    %c0_49 = arith.constant 0 : index
    %121 = vector.load %arg3[%c5, %c0_48, %c0_49] : memref<8x8x8xf32, #tpu.memory_space<vmem>>, vector<1x8x8xf32>
    %122 = vector.shape_cast %121 : vector<1x8x8xf32> to vector<8x8xf32>
    %c6 = arith.constant 6 : index
    %c0_50 = arith.constant 0 : index
    %c0_51 = arith.constant 0 : index
    %123 = vector.load %arg3[%c6, %c0_50, %c0_51] : memref<8x8x8xf32, #tpu.memory_space<vmem>>, vector<1x8x8xf32>
    %124 = vector.shape_cast %123 : vector<1x8x8xf32> to vector<8x8xf32>
    %c7 = arith.constant 7 : index
    %c0_52 = arith.constant 0 : index
    %c0_53 = arith.constant 0 : index
    %125 = vector.load %arg3[%c7, %c0_52, %c0_53] : memref<8x8x8xf32, #tpu.memory_space<vmem>>, vector<1x8x8xf32>
    %126 = vector.shape_cast %125 : vector<1x8x8xf32> to vector<8x8xf32>
    %127 = vector.extract_strided_slice %26 {offsets = [8, 0], sizes = [8, 128], strides = [1, 1]} : vector<16x384xf32> to vector<8x128xf32>
    %128 = vector.extract_strided_slice %26 {offsets = [8, 128], sizes = [8, 128], strides = [1, 1]} : vector<16x384xf32> to vector<8x128xf32>
    %129 = vector.extract_strided_slice %26 {offsets = [8, 256], sizes = [8, 128], strides = [1, 1]} : vector<16x384xf32> to vector<8x128xf32>
    %130 = vector.extract_strided_slice %127 {offsets = [0, 0], sizes = [8, 32], strides = [1, 1]} : vector<8x128xf32> to vector<8x32xf32>
    %131 = arith.truncf %130 : vector<8x32xf32> to vector<8x32xbf16>
    %132 = vector.extract_strided_slice %128 {offsets = [0, 0], sizes = [8, 32], strides = [1, 1]} : vector<8x128xf32> to vector<8x32xf32>
    %133 = arith.truncf %132 : vector<8x32xf32> to vector<8x32xbf16>
    %cst_54 = arith.constant dense<0.000000e+00> : vector<8x8xf32>
    %134 = tpu.matmul %131, %133, %cst_54 {dimension_numbers = #tpu.dot_dimension_numbers<[1], [1], [0], [0], [0, 0, 1, 0], [], []>} : vector<8x32xbf16>, vector<8x32xbf16>, vector<8x8xf32> -> vector<8x8xf32>
    %135 = arith.addf %134, %120 : vector<8x8xf32>
    %cst_55 = arith.constant dense<0xFF800000> : vector<8xf32>
    %136 = vector.multi_reduction <maximumf>, %135, %cst_55 [1] : vector<8x8xf32> to vector<8xf32>
    %137 = vector.shape_cast %136 : vector<8xf32> to vector<8x1xf32>
    %138 = vector.broadcast %137 : vector<8x1xf32> to vector<8x8xf32>
    %139 = arith.subf %135, %138 : vector<8x8xf32>
    %140 = math.exp %139 : vector<8x8xf32>
    %cst_56 = arith.constant dense<0.000000e+00> : vector<8xf32>
    %141 = vector.multi_reduction <add>, %140, %cst_56 [1] : vector<8x8xf32> to vector<8xf32>
    %142 = vector.shape_cast %141 : vector<8xf32> to vector<8x1xf32>
    %143 = tpu.reciprocal %142 {approx = true} : vector<8x1xf32> -> vector<8x1xf32>
    %144 = vector.broadcast %143 : vector<8x1xf32> to vector<8x8xf32>
    %145 = arith.mulf %140, %144 : vector<8x8xf32>
    %146 = arith.truncf %145 : vector<8x8xf32> to vector<8x8xbf16>
    %147 = vector.extract_strided_slice %129 {offsets = [0, 0], sizes = [8, 32], strides = [1, 1]} : vector<8x128xf32> to vector<8x32xf32>
    %148 = arith.truncf %147 : vector<8x32xf32> to vector<8x32xbf16>
    %cst_57 = arith.constant dense<0.000000e+00> : vector<8x32xf32>
    %149 = tpu.matmul %146, %148, %cst_57 {dimension_numbers = #tpu.dot_dimension_numbers<[1], [0], [0], [1], [0, 0, 1, 1], [], []>} : vector<8x8xbf16>, vector<8x32xbf16>, vector<8x32xf32> -> vector<8x32xf32>
    %150 = vector.extract_strided_slice %127 {offsets = [0, 32], sizes = [8, 32], strides = [1, 1]} : vector<8x128xf32> to vector<8x32xf32>
    %151 = arith.truncf %150 : vector<8x32xf32> to vector<8x32xbf16>
    %152 = vector.extract_strided_slice %128 {offsets = [0, 32], sizes = [8, 32], strides = [1, 1]} : vector<8x128xf32> to vector<8x32xf32>
    %153 = arith.truncf %152 : vector<8x32xf32> to vector<8x32xbf16>
    %cst_58 = arith.constant dense<0.000000e+00> : vector<8x8xf32>
    %154 = tpu.matmul %151, %153, %cst_58 {dimension_numbers = #tpu.dot_dimension_numbers<[1], [1], [0], [0], [0, 0, 1, 0], [], []>} : vector<8x32xbf16>, vector<8x32xbf16>, vector<8x8xf32> -> vector<8x8xf32>
    %155 = arith.addf %154, %122 : vector<8x8xf32>
    %cst_59 = arith.constant dense<0xFF800000> : vector<8xf32>
    %156 = vector.multi_reduction <maximumf>, %155, %cst_59 [1] : vector<8x8xf32> to vector<8xf32>
    %157 = vector.shape_cast %156 : vector<8xf32> to vector<8x1xf32>
    %158 = vector.broadcast %157 : vector<8x1xf32> to vector<8x8xf32>
    %159 = arith.subf %155, %158 : vector<8x8xf32>
    %160 = math.exp %159 : vector<8x8xf32>
    %cst_60 = arith.constant dense<0.000000e+00> : vector<8xf32>
    %161 = vector.multi_reduction <add>, %160, %cst_60 [1] : vector<8x8xf32> to vector<8xf32>
    %162 = vector.shape_cast %161 : vector<8xf32> to vector<8x1xf32>
    %163 = tpu.reciprocal %162 {approx = true} : vector<8x1xf32> -> vector<8x1xf32>
    %164 = vector.broadcast %163 : vector<8x1xf32> to vector<8x8xf32>
    %165 = arith.mulf %160, %164 : vector<8x8xf32>
    %166 = arith.truncf %165 : vector<8x8xf32> to vector<8x8xbf16>
    %167 = vector.extract_strided_slice %129 {offsets = [0, 32], sizes = [8, 32], strides = [1, 1]} : vector<8x128xf32> to vector<8x32xf32>
    %168 = arith.truncf %167 : vector<8x32xf32> to vector<8x32xbf16>
    %cst_61 = arith.constant dense<0.000000e+00> : vector<8x32xf32>
    %169 = tpu.matmul %166, %168, %cst_61 {dimension_numbers = #tpu.dot_dimension_numbers<[1], [0], [0], [1], [0, 0, 1, 1], [], []>} : vector<8x8xbf16>, vector<8x32xbf16>, vector<8x32xf32> -> vector<8x32xf32>
    %170 = vector.extract_strided_slice %127 {offsets = [0, 64], sizes = [8, 32], strides = [1, 1]} : vector<8x128xf32> to vector<8x32xf32>
    %171 = arith.truncf %170 : vector<8x32xf32> to vector<8x32xbf16>
    %172 = vector.extract_strided_slice %128 {offsets = [0, 64], sizes = [8, 32], strides = [1, 1]} : vector<8x128xf32> to vector<8x32xf32>
    %173 = arith.truncf %172 : vector<8x32xf32> to vector<8x32xbf16>
    %cst_62 = arith.constant dense<0.000000e+00> : vector<8x8xf32>
    %174 = tpu.matmul %171, %173, %cst_62 {dimension_numbers = #tpu.dot_dimension_numbers<[1], [1], [0], [0], [0, 0, 1, 0], [], []>} : vector<8x32xbf16>, vector<8x32xbf16>, vector<8x8xf32> -> vector<8x8xf32>
    %175 = arith.addf %174, %124 : vector<8x8xf32>
    %cst_63 = arith.constant dense<0xFF800000> : vector<8xf32>
    %176 = vector.multi_reduction <maximumf>, %175, %cst_63 [1] : vector<8x8xf32> to vector<8xf32>
    %177 = vector.shape_cast %176 : vector<8xf32> to vector<8x1xf32>
    %178 = vector.broadcast %177 : vector<8x1xf32> to vector<8x8xf32>
    %179 = arith.subf %175, %178 : vector<8x8xf32>
    %180 = math.exp %179 : vector<8x8xf32>
    %cst_64 = arith.constant dense<0.000000e+00> : vector<8xf32>
    %181 = vector.multi_reduction <add>, %180, %cst_64 [1] : vector<8x8xf32> to vector<8xf32>
    %182 = vector.shape_cast %181 : vector<8xf32> to vector<8x1xf32>
    %183 = tpu.reciprocal %182 {approx = true} : vector<8x1xf32> -> vector<8x1xf32>
    %184 = vector.broadcast %183 : vector<8x1xf32> to vector<8x8xf32>
    %185 = arith.mulf %180, %184 : vector<8x8xf32>
    %186 = arith.truncf %185 : vector<8x8xf32> to vector<8x8xbf16>
    %187 = vector.extract_strided_slice %129 {offsets = [0, 64], sizes = [8, 32], strides = [1, 1]} : vector<8x128xf32> to vector<8x32xf32>
    %188 = arith.truncf %187 : vector<8x32xf32> to vector<8x32xbf16>
    %cst_65 = arith.constant dense<0.000000e+00> : vector<8x32xf32>
    %189 = tpu.matmul %186, %188, %cst_65 {dimension_numbers = #tpu.dot_dimension_numbers<[1], [0], [0], [1], [0, 0, 1, 1], [], []>} : vector<8x8xbf16>, vector<8x32xbf16>, vector<8x32xf32> -> vector<8x32xf32>
    %190 = vector.extract_strided_slice %127 {offsets = [0, 96], sizes = [8, 32], strides = [1, 1]} : vector<8x128xf32> to vector<8x32xf32>
    %191 = arith.truncf %190 : vector<8x32xf32> to vector<8x32xbf16>
    %192 = vector.extract_strided_slice %128 {offsets = [0, 96], sizes = [8, 32], strides = [1, 1]} : vector<8x128xf32> to vector<8x32xf32>
    %193 = arith.truncf %192 : vector<8x32xf32> to vector<8x32xbf16>
    %cst_66 = arith.constant dense<0.000000e+00> : vector<8x8xf32>
    %194 = tpu.matmul %191, %193, %cst_66 {dimension_numbers = #tpu.dot_dimension_numbers<[1], [1], [0], [0], [0, 0, 1, 0], [], []>} : vector<8x32xbf16>, vector<8x32xbf16>, vector<8x8xf32> -> vector<8x8xf32>
    %195 = arith.addf %194, %126 : vector<8x8xf32>
    %cst_67 = arith.constant dense<0xFF800000> : vector<8xf32>
    %196 = vector.multi_reduction <maximumf>, %195, %cst_67 [1] : vector<8x8xf32> to vector<8xf32>
    %197 = vector.shape_cast %196 : vector<8xf32> to vector<8x1xf32>
    %198 = vector.broadcast %197 : vector<8x1xf32> to vector<8x8xf32>
    %199 = arith.subf %195, %198 : vector<8x8xf32>
    %200 = math.exp %199 : vector<8x8xf32>
    %cst_68 = arith.constant dense<0.000000e+00> : vector<8xf32>
    %201 = vector.multi_reduction <add>, %200, %cst_68 [1] : vector<8x8xf32> to vector<8xf32>
    %202 = vector.shape_cast %201 : vector<8xf32> to vector<8x1xf32>
    %203 = tpu.reciprocal %202 {approx = true} : vector<8x1xf32> -> vector<8x1xf32>
    %204 = vector.broadcast %203 : vector<8x1xf32> to vector<8x8xf32>
    %205 = arith.mulf %200, %204 : vector<8x8xf32>
    %206 = arith.truncf %205 : vector<8x8xf32> to vector<8x8xbf16>
    %207 = vector.extract_strided_slice %129 {offsets = [0, 96], sizes = [8, 32], strides = [1, 1]} : vector<8x128xf32> to vector<8x32xf32>
    %208 = arith.truncf %207 : vector<8x32xf32> to vector<8x32xbf16>
    %cst_69 = arith.constant dense<0.000000e+00> : vector<8x32xf32>
    %209 = tpu.matmul %206, %208, %cst_69 {dimension_numbers = #tpu.dot_dimension_numbers<[1], [0], [0], [1], [0, 0, 1, 1], [], []>} : vector<8x8xbf16>, vector<8x32xbf16>, vector<8x32xf32> -> vector<8x32xf32>
    %210 = tpu.concatenate %149, %169, %189, %209 in 1 : vector<8x32xf32>, vector<8x32xf32>, vector<8x32xf32>, vector<8x32xf32> -> vector<8x128xf32>
    %211 = tpu.concatenate %118, %210 in 0 : vector<8x128xf32>, vector<8x128xf32> -> vector<16x128xf32>
    %212 = arith.truncf %211 : vector<16x128xf32> to vector<16x128xbf16>
    %c0_70 = arith.constant 0 : index
    %c0_71 = arith.constant 0 : index
    %c0_72 = arith.constant 0 : index
    %213 = vector.load %arg7[%c0_70, %c0_71, %c0_72] : memref<1x128x128xbf16, #tpu.memory_space<vmem>>, vector<1x128x128xbf16>
    %214 = vector.shape_cast %213 : vector<1x128x128xbf16> to vector<128x128xbf16>
    %cst_73 = arith.constant dense<0.000000e+00> : vector<16x128xf32>
    %215 = tpu.matmul %212, %214, %cst_73 {dimension_numbers = #tpu.dot_dimension_numbers<[1], [0], [0], [1], [0, 0, 1, 1], [], []>} : vector<16x128xbf16>, vector<128x128xbf16>, vector<16x128xf32> -> vector<16x128xf32>
    %216 = arith.addf %5, %215 : vector<16x128xf32>
    %c0_74 = arith.constant 0 : index
    %c0_75 = arith.constant 0 : index
    %c0_76 = arith.constant 0 : index
    %217 = vector.load %arg8[%c0_74, %c0_75, %c0_76] : memref<1x1x128xf32, #tpu.memory_space<vmem>>, vector<1x1x128xf32>
    %218 = vector.shape_cast %217 : vector<1x1x128xf32> to vector<1x128xf32>
    %219 = arith.mulf %216, %216 : vector<16x128xf32>
    %cst_77 = arith.constant dense<0.000000e+00> : vector<16xf32>
    %220 = vector.multi_reduction <add>, %219, %cst_77 [1] : vector<16x128xf32> to vector<16xf32>
    %221 = vector.shape_cast %220 : vector<16xf32> to vector<16x1xf32>
    %cst_78 = arith.constant 1.280000e+02 : f32
    %222 = vector.broadcast %cst_78 : f32 to vector<16x1xf32>
    %223 = arith.divf %221, %222 : vector<16x1xf32>
    %cst_79 = arith.constant 9.99999997E-7 : f32
    %224 = vector.broadcast %cst_79 : f32 to vector<16x1xf32>
    %225 = arith.addf %223, %224 : vector<16x1xf32>
    %226 = math.rsqrt %225 : vector<16x1xf32>
    %227 = vector.broadcast %226 : vector<16x1xf32> to vector<16x128xf32>
    %228 = arith.mulf %216, %227 : vector<16x128xf32>
    %229 = vector.broadcast %218 : vector<1x128xf32> to vector<16x128xf32>
    %230 = arith.mulf %228, %229 : vector<16x128xf32>
    %231 = arith.truncf %230 : vector<16x128xf32> to vector<16x128xbf16>
    %c0_80 = arith.constant 0 : index
    %c0_81 = arith.constant 0 : index
    %c0_82 = arith.constant 0 : index
    %232 = vector.load %arg9[%c0_80, %c0_81, %c0_82] : memref<1x128x128xbf16, #tpu.memory_space<vmem>>, vector<1x128x128xbf16>
    %233 = vector.shape_cast %232 : vector<1x128x128xbf16> to vector<128x128xbf16>
    %cst_83 = arith.constant dense<0.000000e+00> : vector<16x128xf32>
    %234 = tpu.matmul %231, %233, %cst_83 {dimension_numbers = #tpu.dot_dimension_numbers<[1], [0], [0], [1], [0, 0, 1, 1], [], []>} : vector<16x128xbf16>, vector<128x128xbf16>, vector<16x128xf32> -> vector<16x128xf32>
    %235 = arith.truncf %7 : vector<32x128xf32> to vector<32x128xbf16>
    %c0_84 = arith.constant 0 : index
    %c0_85 = arith.constant 0 : index
    %c0_86 = arith.constant 0 : index
    %236 = vector.load %arg10[%c0_84, %c0_85, %c0_86] : memref<1x128x256xbf16, #tpu.memory_space<vmem>>, vector<1x128x256xbf16>
    %237 = vector.shape_cast %236 : vector<1x128x256xbf16> to vector<128x256xbf16>
    %cst_87 = arith.constant dense<0.000000e+00> : vector<32x256xf32>
    %238 = tpu.matmul %235, %237, %cst_87 {dimension_numbers = #tpu.dot_dimension_numbers<[1], [0], [0], [1], [0, 0, 1, 1], [], []>} : vector<32x128xbf16>, vector<128x256xbf16>, vector<32x256xf32> -> vector<32x256xf32>
    %239 = vector.extract_strided_slice %8 {offsets = [0, 0, 0], sizes = [1, 1, 16], strides = [1, 1, 1]} : vector<2x1x16xf32> to vector<1x1x16xf32>
    %240 = vector.shape_cast %239 : vector<1x1x16xf32> to vector<1x16xf32>
    %241 = vector.shape_cast %240 : vector<1x16xf32> to vector<1x16xf32>
    %242 = vector.broadcast %241 : vector<1x16xf32> to vector<8x16xf32>
    %243 = vector.extract_strided_slice %234 {offsets = [0, 0], sizes = [8, 128], strides = [1, 1]} : vector<16x128xf32> to vector<8x128xf32>
    %244 = vector.extract_strided_slice %238 {offsets = [0, 0], sizes = [16, 128], strides = [1, 1]} : vector<32x256xf32> to vector<16x128xf32>
    %245 = vector.extract_strided_slice %238 {offsets = [0, 128], sizes = [16, 128], strides = [1, 1]} : vector<32x256xf32> to vector<16x128xf32>
    %246 = vector.extract_strided_slice %243 {offsets = [0, 0], sizes = [8, 32], strides = [1, 1]} : vector<8x128xf32> to vector<8x32xf32>
    %247 = arith.truncf %246 : vector<8x32xf32> to vector<8x32xbf16>
    %248 = vector.extract_strided_slice %244 {offsets = [0, 0], sizes = [16, 32], strides = [1, 1]} : vector<16x128xf32> to vector<16x32xf32>
    %249 = arith.truncf %248 : vector<16x32xf32> to vector<16x32xbf16>
    %cst_88 = arith.constant dense<0.000000e+00> : vector<8x16xf32>
    %250 = tpu.matmul %247, %249, %cst_88 {dimension_numbers = #tpu.dot_dimension_numbers<[1], [1], [0], [0], [0, 0, 1, 0], [], []>} : vector<8x32xbf16>, vector<16x32xbf16>, vector<8x16xf32> -> vector<8x16xf32>
    %251 = arith.addf %250, %242 : vector<8x16xf32>
    %cst_89 = arith.constant dense<0xFF800000> : vector<8xf32>
    %252 = vector.multi_reduction <maximumf>, %251, %cst_89 [1] : vector<8x16xf32> to vector<8xf32>
    %253 = vector.shape_cast %252 : vector<8xf32> to vector<8x1xf32>
    %254 = vector.broadcast %253 : vector<8x1xf32> to vector<8x16xf32>
    %255 = arith.subf %251, %254 : vector<8x16xf32>
    %256 = math.exp %255 : vector<8x16xf32>
    %cst_90 = arith.constant dense<0.000000e+00> : vector<8xf32>
    %257 = vector.multi_reduction <add>, %256, %cst_90 [1] : vector<8x16xf32> to vector<8xf32>
    %258 = vector.shape_cast %257 : vector<8xf32> to vector<8x1xf32>
    %259 = tpu.reciprocal %258 {approx = true} : vector<8x1xf32> -> vector<8x1xf32>
    %260 = vector.broadcast %259 : vector<8x1xf32> to vector<8x16xf32>
    %261 = arith.mulf %256, %260 : vector<8x16xf32>
    %262 = arith.truncf %261 : vector<8x16xf32> to vector<8x16xbf16>
    %263 = vector.extract_strided_slice %245 {offsets = [0, 0], sizes = [16, 32], strides = [1, 1]} : vector<16x128xf32> to vector<16x32xf32>
    %264 = arith.truncf %263 : vector<16x32xf32> to vector<16x32xbf16>
    %cst_91 = arith.constant dense<0.000000e+00> : vector<8x32xf32>
    %265 = tpu.matmul %262, %264, %cst_91 {dimension_numbers = #tpu.dot_dimension_numbers<[1], [0], [0], [1], [0, 0, 1, 1], [], []>} : vector<8x16xbf16>, vector<16x32xbf16>, vector<8x32xf32> -> vector<8x32xf32>
    %266 = vector.extract_strided_slice %243 {offsets = [0, 32], sizes = [8, 32], strides = [1, 1]} : vector<8x128xf32> to vector<8x32xf32>
    %267 = arith.truncf %266 : vector<8x32xf32> to vector<8x32xbf16>
    %268 = vector.extract_strided_slice %244 {offsets = [0, 32], sizes = [16, 32], strides = [1, 1]} : vector<16x128xf32> to vector<16x32xf32>
    %269 = arith.truncf %268 : vector<16x32xf32> to vector<16x32xbf16>
    %cst_92 = arith.constant dense<0.000000e+00> : vector<8x16xf32>
    %270 = tpu.matmul %267, %269, %cst_92 {dimension_numbers = #tpu.dot_dimension_numbers<[1], [1], [0], [0], [0, 0, 1, 0], [], []>} : vector<8x32xbf16>, vector<16x32xbf16>, vector<8x16xf32> -> vector<8x16xf32>
    %271 = arith.addf %270, %242 : vector<8x16xf32>
    %cst_93 = arith.constant dense<0xFF800000> : vector<8xf32>
    %272 = vector.multi_reduction <maximumf>, %271, %cst_93 [1] : vector<8x16xf32> to vector<8xf32>
    %273 = vector.shape_cast %272 : vector<8xf32> to vector<8x1xf32>
    %274 = vector.broadcast %273 : vector<8x1xf32> to vector<8x16xf32>
    %275 = arith.subf %271, %274 : vector<8x16xf32>
    %276 = math.exp %275 : vector<8x16xf32>
    %cst_94 = arith.constant dense<0.000000e+00> : vector<8xf32>
    %277 = vector.multi_reduction <add>, %276, %cst_94 [1] : vector<8x16xf32> to vector<8xf32>
    %278 = vector.shape_cast %277 : vector<8xf32> to vector<8x1xf32>
    %279 = tpu.reciprocal %278 {approx = true} : vector<8x1xf32> -> vector<8x1xf32>
    %280 = vector.broadcast %279 : vector<8x1xf32> to vector<8x16xf32>
    %281 = arith.mulf %276, %280 : vector<8x16xf32>
    %282 = arith.truncf %281 : vector<8x16xf32> to vector<8x16xbf16>
    %283 = vector.extract_strided_slice %245 {offsets = [0, 32], sizes = [16, 32], strides = [1, 1]} : vector<16x128xf32> to vector<16x32xf32>
    %284 = arith.truncf %283 : vector<16x32xf32> to vector<16x32xbf16>
    %cst_95 = arith.constant dense<0.000000e+00> : vector<8x32xf32>
    %285 = tpu.matmul %282, %284, %cst_95 {dimension_numbers = #tpu.dot_dimension_numbers<[1], [0], [0], [1], [0, 0, 1, 1], [], []>} : vector<8x16xbf16>, vector<16x32xbf16>, vector<8x32xf32> -> vector<8x32xf32>
    %286 = vector.extract_strided_slice %243 {offsets = [0, 64], sizes = [8, 32], strides = [1, 1]} : vector<8x128xf32> to vector<8x32xf32>
    %287 = arith.truncf %286 : vector<8x32xf32> to vector<8x32xbf16>
    %288 = vector.extract_strided_slice %244 {offsets = [0, 64], sizes = [16, 32], strides = [1, 1]} : vector<16x128xf32> to vector<16x32xf32>
    %289 = arith.truncf %288 : vector<16x32xf32> to vector<16x32xbf16>
    %cst_96 = arith.constant dense<0.000000e+00> : vector<8x16xf32>
    %290 = tpu.matmul %287, %289, %cst_96 {dimension_numbers = #tpu.dot_dimension_numbers<[1], [1], [0], [0], [0, 0, 1, 0], [], []>} : vector<8x32xbf16>, vector<16x32xbf16>, vector<8x16xf32> -> vector<8x16xf32>
    %291 = arith.addf %290, %242 : vector<8x16xf32>
    %cst_97 = arith.constant dense<0xFF800000> : vector<8xf32>
    %292 = vector.multi_reduction <maximumf>, %291, %cst_97 [1] : vector<8x16xf32> to vector<8xf32>
    %293 = vector.shape_cast %292 : vector<8xf32> to vector<8x1xf32>
    %294 = vector.broadcast %293 : vector<8x1xf32> to vector<8x16xf32>
    %295 = arith.subf %291, %294 : vector<8x16xf32>
    %296 = math.exp %295 : vector<8x16xf32>
    %cst_98 = arith.constant dense<0.000000e+00> : vector<8xf32>
    %297 = vector.multi_reduction <add>, %296, %cst_98 [1] : vector<8x16xf32> to vector<8xf32>
    %298 = vector.shape_cast %297 : vector<8xf32> to vector<8x1xf32>
    %299 = tpu.reciprocal %298 {approx = true} : vector<8x1xf32> -> vector<8x1xf32>
    %300 = vector.broadcast %299 : vector<8x1xf32> to vector<8x16xf32>
    %301 = arith.mulf %296, %300 : vector<8x16xf32>
    %302 = arith.truncf %301 : vector<8x16xf32> to vector<8x16xbf16>
    %303 = vector.extract_strided_slice %245 {offsets = [0, 64], sizes = [16, 32], strides = [1, 1]} : vector<16x128xf32> to vector<16x32xf32>
    %304 = arith.truncf %303 : vector<16x32xf32> to vector<16x32xbf16>
    %cst_99 = arith.constant dense<0.000000e+00> : vector<8x32xf32>
    %305 = tpu.matmul %302, %304, %cst_99 {dimension_numbers = #tpu.dot_dimension_numbers<[1], [0], [0], [1], [0, 0, 1, 1], [], []>} : vector<8x16xbf16>, vector<16x32xbf16>, vector<8x32xf32> -> vector<8x32xf32>
    %306 = vector.extract_strided_slice %243 {offsets = [0, 96], sizes = [8, 32], strides = [1, 1]} : vector<8x128xf32> to vector<8x32xf32>
    %307 = arith.truncf %306 : vector<8x32xf32> to vector<8x32xbf16>
    %308 = vector.extract_strided_slice %244 {offsets = [0, 96], sizes = [16, 32], strides = [1, 1]} : vector<16x128xf32> to vector<16x32xf32>
    %309 = arith.truncf %308 : vector<16x32xf32> to vector<16x32xbf16>
    %cst_100 = arith.constant dense<0.000000e+00> : vector<8x16xf32>
    %310 = tpu.matmul %307, %309, %cst_100 {dimension_numbers = #tpu.dot_dimension_numbers<[1], [1], [0], [0], [0, 0, 1, 0], [], []>} : vector<8x32xbf16>, vector<16x32xbf16>, vector<8x16xf32> -> vector<8x16xf32>
    %311 = arith.addf %310, %242 : vector<8x16xf32>
    %cst_101 = arith.constant dense<0xFF800000> : vector<8xf32>
    %312 = vector.multi_reduction <maximumf>, %311, %cst_101 [1] : vector<8x16xf32> to vector<8xf32>
    %313 = vector.shape_cast %312 : vector<8xf32> to vector<8x1xf32>
    %314 = vector.broadcast %313 : vector<8x1xf32> to vector<8x16xf32>
    %315 = arith.subf %311, %314 : vector<8x16xf32>
    %316 = math.exp %315 : vector<8x16xf32>
    %cst_102 = arith.constant dense<0.000000e+00> : vector<8xf32>
    %317 = vector.multi_reduction <add>, %316, %cst_102 [1] : vector<8x16xf32> to vector<8xf32>
    %318 = vector.shape_cast %317 : vector<8xf32> to vector<8x1xf32>
    %319 = tpu.reciprocal %318 {approx = true} : vector<8x1xf32> -> vector<8x1xf32>
    %320 = vector.broadcast %319 : vector<8x1xf32> to vector<8x16xf32>
    %321 = arith.mulf %316, %320 : vector<8x16xf32>
    %322 = arith.truncf %321 : vector<8x16xf32> to vector<8x16xbf16>
    %323 = vector.extract_strided_slice %245 {offsets = [0, 96], sizes = [16, 32], strides = [1, 1]} : vector<16x128xf32> to vector<16x32xf32>
    %324 = arith.truncf %323 : vector<16x32xf32> to vector<16x32xbf16>
    %cst_103 = arith.constant dense<0.000000e+00> : vector<8x32xf32>
    %325 = tpu.matmul %322, %324, %cst_103 {dimension_numbers = #tpu.dot_dimension_numbers<[1], [0], [0], [1], [0, 0, 1, 1], [], []>} : vector<8x16xbf16>, vector<16x32xbf16>, vector<8x32xf32> -> vector<8x32xf32>
    %326 = tpu.concatenate %265, %285, %305, %325 in 1 : vector<8x32xf32>, vector<8x32xf32>, vector<8x32xf32>, vector<8x32xf32> -> vector<8x128xf32>
    %327 = vector.extract_strided_slice %8 {offsets = [1, 0, 0], sizes = [1, 1, 16], strides = [1, 1, 1]} : vector<2x1x16xf32> to vector<1x1x16xf32>
    %328 = vector.shape_cast %327 : vector<1x1x16xf32> to vector<1x16xf32>
    %329 = vector.shape_cast %328 : vector<1x16xf32> to vector<1x16xf32>
    %330 = vector.broadcast %329 : vector<1x16xf32> to vector<8x16xf32>
    %331 = vector.extract_strided_slice %234 {offsets = [8, 0], sizes = [8, 128], strides = [1, 1]} : vector<16x128xf32> to vector<8x128xf32>
    %332 = vector.extract_strided_slice %238 {offsets = [16, 0], sizes = [16, 128], strides = [1, 1]} : vector<32x256xf32> to vector<16x128xf32>
    %333 = vector.extract_strided_slice %238 {offsets = [16, 128], sizes = [16, 128], strides = [1, 1]} : vector<32x256xf32> to vector<16x128xf32>
    %334 = vector.extract_strided_slice %331 {offsets = [0, 0], sizes = [8, 32], strides = [1, 1]} : vector<8x128xf32> to vector<8x32xf32>
    %335 = arith.truncf %334 : vector<8x32xf32> to vector<8x32xbf16>
    %336 = vector.extract_strided_slice %332 {offsets = [0, 0], sizes = [16, 32], strides = [1, 1]} : vector<16x128xf32> to vector<16x32xf32>
    %337 = arith.truncf %336 : vector<16x32xf32> to vector<16x32xbf16>
    %cst_104 = arith.constant dense<0.000000e+00> : vector<8x16xf32>
    %338 = tpu.matmul %335, %337, %cst_104 {dimension_numbers = #tpu.dot_dimension_numbers<[1], [1], [0], [0], [0, 0, 1, 0], [], []>} : vector<8x32xbf16>, vector<16x32xbf16>, vector<8x16xf32> -> vector<8x16xf32>
    %339 = arith.addf %338, %330 : vector<8x16xf32>
    %cst_105 = arith.constant dense<0xFF800000> : vector<8xf32>
    %340 = vector.multi_reduction <maximumf>, %339, %cst_105 [1] : vector<8x16xf32> to vector<8xf32>
    %341 = vector.shape_cast %340 : vector<8xf32> to vector<8x1xf32>
    %342 = vector.broadcast %341 : vector<8x1xf32> to vector<8x16xf32>
    %343 = arith.subf %339, %342 : vector<8x16xf32>
    %344 = math.exp %343 : vector<8x16xf32>
    %cst_106 = arith.constant dense<0.000000e+00> : vector<8xf32>
    %345 = vector.multi_reduction <add>, %344, %cst_106 [1] : vector<8x16xf32> to vector<8xf32>
    %346 = vector.shape_cast %345 : vector<8xf32> to vector<8x1xf32>
    %347 = tpu.reciprocal %346 {approx = true} : vector<8x1xf32> -> vector<8x1xf32>
    %348 = vector.broadcast %347 : vector<8x1xf32> to vector<8x16xf32>
    %349 = arith.mulf %344, %348 : vector<8x16xf32>
    %350 = arith.truncf %349 : vector<8x16xf32> to vector<8x16xbf16>
    %351 = vector.extract_strided_slice %333 {offsets = [0, 0], sizes = [16, 32], strides = [1, 1]} : vector<16x128xf32> to vector<16x32xf32>
    %352 = arith.truncf %351 : vector<16x32xf32> to vector<16x32xbf16>
    %cst_107 = arith.constant dense<0.000000e+00> : vector<8x32xf32>
    %353 = tpu.matmul %350, %352, %cst_107 {dimension_numbers = #tpu.dot_dimension_numbers<[1], [0], [0], [1], [0, 0, 1, 1], [], []>} : vector<8x16xbf16>, vector<16x32xbf16>, vector<8x32xf32> -> vector<8x32xf32>
    %354 = vector.extract_strided_slice %331 {offsets = [0, 32], sizes = [8, 32], strides = [1, 1]} : vector<8x128xf32> to vector<8x32xf32>
    %355 = arith.truncf %354 : vector<8x32xf32> to vector<8x32xbf16>
    %356 = vector.extract_strided_slice %332 {offsets = [0, 32], sizes = [16, 32], strides = [1, 1]} : vector<16x128xf32> to vector<16x32xf32>
    %357 = arith.truncf %356 : vector<16x32xf32> to vector<16x32xbf16>
    %cst_108 = arith.constant dense<0.000000e+00> : vector<8x16xf32>
    %358 = tpu.matmul %355, %357, %cst_108 {dimension_numbers = #tpu.dot_dimension_numbers<[1], [1], [0], [0], [0, 0, 1, 0], [], []>} : vector<8x32xbf16>, vector<16x32xbf16>, vector<8x16xf32> -> vector<8x16xf32>
    %359 = arith.addf %358, %330 : vector<8x16xf32>
    %cst_109 = arith.constant dense<0xFF800000> : vector<8xf32>
    %360 = vector.multi_reduction <maximumf>, %359, %cst_109 [1] : vector<8x16xf32> to vector<8xf32>
    %361 = vector.shape_cast %360 : vector<8xf32> to vector<8x1xf32>
    %362 = vector.broadcast %361 : vector<8x1xf32> to vector<8x16xf32>
    %363 = arith.subf %359, %362 : vector<8x16xf32>
    %364 = math.exp %363 : vector<8x16xf32>
    %cst_110 = arith.constant dense<0.000000e+00> : vector<8xf32>
    %365 = vector.multi_reduction <add>, %364, %cst_110 [1] : vector<8x16xf32> to vector<8xf32>
    %366 = vector.shape_cast %365 : vector<8xf32> to vector<8x1xf32>
    %367 = tpu.reciprocal %366 {approx = true} : vector<8x1xf32> -> vector<8x1xf32>
    %368 = vector.broadcast %367 : vector<8x1xf32> to vector<8x16xf32>
    %369 = arith.mulf %364, %368 : vector<8x16xf32>
    %370 = arith.truncf %369 : vector<8x16xf32> to vector<8x16xbf16>
    %371 = vector.extract_strided_slice %333 {offsets = [0, 32], sizes = [16, 32], strides = [1, 1]} : vector<16x128xf32> to vector<16x32xf32>
    %372 = arith.truncf %371 : vector<16x32xf32> to vector<16x32xbf16>
    %cst_111 = arith.constant dense<0.000000e+00> : vector<8x32xf32>
    %373 = tpu.matmul %370, %372, %cst_111 {dimension_numbers = #tpu.dot_dimension_numbers<[1], [0], [0], [1], [0, 0, 1, 1], [], []>} : vector<8x16xbf16>, vector<16x32xbf16>, vector<8x32xf32> -> vector<8x32xf32>
    %374 = vector.extract_strided_slice %331 {offsets = [0, 64], sizes = [8, 32], strides = [1, 1]} : vector<8x128xf32> to vector<8x32xf32>
    %375 = arith.truncf %374 : vector<8x32xf32> to vector<8x32xbf16>
    %376 = vector.extract_strided_slice %332 {offsets = [0, 64], sizes = [16, 32], strides = [1, 1]} : vector<16x128xf32> to vector<16x32xf32>
    %377 = arith.truncf %376 : vector<16x32xf32> to vector<16x32xbf16>
    %cst_112 = arith.constant dense<0.000000e+00> : vector<8x16xf32>
    %378 = tpu.matmul %375, %377, %cst_112 {dimension_numbers = #tpu.dot_dimension_numbers<[1], [1], [0], [0], [0, 0, 1, 0], [], []>} : vector<8x32xbf16>, vector<16x32xbf16>, vector<8x16xf32> -> vector<8x16xf32>
    %379 = arith.addf %378, %330 : vector<8x16xf32>
    %cst_113 = arith.constant dense<0xFF800000> : vector<8xf32>
    %380 = vector.multi_reduction <maximumf>, %379, %cst_113 [1] : vector<8x16xf32> to vector<8xf32>
    %381 = vector.shape_cast %380 : vector<8xf32> to vector<8x1xf32>
    %382 = vector.broadcast %381 : vector<8x1xf32> to vector<8x16xf32>
    %383 = arith.subf %379, %382 : vector<8x16xf32>
    %384 = math.exp %383 : vector<8x16xf32>
    %cst_114 = arith.constant dense<0.000000e+00> : vector<8xf32>
    %385 = vector.multi_reduction <add>, %384, %cst_114 [1] : vector<8x16xf32> to vector<8xf32>
    %386 = vector.shape_cast %385 : vector<8xf32> to vector<8x1xf32>
    %387 = tpu.reciprocal %386 {approx = true} : vector<8x1xf32> -> vector<8x1xf32>
    %388 = vector.broadcast %387 : vector<8x1xf32> to vector<8x16xf32>
    %389 = arith.mulf %384, %388 : vector<8x16xf32>
    %390 = arith.truncf %389 : vector<8x16xf32> to vector<8x16xbf16>
    %391 = vector.extract_strided_slice %333 {offsets = [0, 64], sizes = [16, 32], strides = [1, 1]} : vector<16x128xf32> to vector<16x32xf32>
    %392 = arith.truncf %391 : vector<16x32xf32> to vector<16x32xbf16>
    %cst_115 = arith.constant dense<0.000000e+00> : vector<8x32xf32>
    %393 = tpu.matmul %390, %392, %cst_115 {dimension_numbers = #tpu.dot_dimension_numbers<[1], [0], [0], [1], [0, 0, 1, 1], [], []>} : vector<8x16xbf16>, vector<16x32xbf16>, vector<8x32xf32> -> vector<8x32xf32>
    %394 = vector.extract_strided_slice %331 {offsets = [0, 96], sizes = [8, 32], strides = [1, 1]} : vector<8x128xf32> to vector<8x32xf32>
    %395 = arith.truncf %394 : vector<8x32xf32> to vector<8x32xbf16>
    %396 = vector.extract_strided_slice %332 {offsets = [0, 96], sizes = [16, 32], strides = [1, 1]} : vector<16x128xf32> to vector<16x32xf32>
    %397 = arith.truncf %396 : vector<16x32xf32> to vector<16x32xbf16>
    %cst_116 = arith.constant dense<0.000000e+00> : vector<8x16xf32>
    %398 = tpu.matmul %395, %397, %cst_116 {dimension_numbers = #tpu.dot_dimension_numbers<[1], [1], [0], [0], [0, 0, 1, 0], [], []>} : vector<8x32xbf16>, vector<16x32xbf16>, vector<8x16xf32> -> vector<8x16xf32>
    %399 = arith.addf %398, %330 : vector<8x16xf32>
    %cst_117 = arith.constant dense<0xFF800000> : vector<8xf32>
    %400 = vector.multi_reduction <maximumf>, %399, %cst_117 [1] : vector<8x16xf32> to vector<8xf32>
    %401 = vector.shape_cast %400 : vector<8xf32> to vector<8x1xf32>
    %402 = vector.broadcast %401 : vector<8x1xf32> to vector<8x16xf32>
    %403 = arith.subf %399, %402 : vector<8x16xf32>
    %404 = math.exp %403 : vector<8x16xf32>
    %cst_118 = arith.constant dense<0.000000e+00> : vector<8xf32>
    %405 = vector.multi_reduction <add>, %404, %cst_118 [1] : vector<8x16xf32> to vector<8xf32>
    %406 = vector.shape_cast %405 : vector<8xf32> to vector<8x1xf32>
    %407 = tpu.reciprocal %406 {approx = true} : vector<8x1xf32> -> vector<8x1xf32>
    %408 = vector.broadcast %407 : vector<8x1xf32> to vector<8x16xf32>
    %409 = arith.mulf %404, %408 : vector<8x16xf32>
    %410 = arith.truncf %409 : vector<8x16xf32> to vector<8x16xbf16>
    %411 = vector.extract_strided_slice %333 {offsets = [0, 96], sizes = [16, 32], strides = [1, 1]} : vector<16x128xf32> to vector<16x32xf32>
    %412 = arith.truncf %411 : vector<16x32xf32> to vector<16x32xbf16>
    %cst_119 = arith.constant dense<0.000000e+00> : vector<8x32xf32>
    %413 = tpu.matmul %410, %412, %cst_119 {dimension_numbers = #tpu.dot_dimension_numbers<[1], [0], [0], [1], [0, 0, 1, 1], [], []>} : vector<8x16xbf16>, vector<16x32xbf16>, vector<8x32xf32> -> vector<8x32xf32>
    %414 = tpu.concatenate %353, %373, %393, %413 in 1 : vector<8x32xf32>, vector<8x32xf32>, vector<8x32xf32>, vector<8x32xf32> -> vector<8x128xf32>
    %415 = tpu.concatenate %326, %414 in 0 : vector<8x128xf32>, vector<8x128xf32> -> vector<16x128xf32>
    %416 = arith.truncf %415 : vector<16x128xf32> to vector<16x128xbf16>
    %c0_120 = arith.constant 0 : index
    %c0_121 = arith.constant 0 : index
    %c0_122 = arith.constant 0 : index
    %417 = vector.load %arg11[%c0_120, %c0_121, %c0_122] : memref<1x128x128xbf16, #tpu.memory_space<vmem>>, vector<1x128x128xbf16>
    %418 = vector.shape_cast %417 : vector<1x128x128xbf16> to vector<128x128xbf16>
    %cst_123 = arith.constant dense<0.000000e+00> : vector<16x128xf32>
    %419 = tpu.matmul %416, %418, %cst_123 {dimension_numbers = #tpu.dot_dimension_numbers<[1], [0], [0], [1], [0, 0, 1, 1], [], []>} : vector<16x128xbf16>, vector<128x128xbf16>, vector<16x128xf32> -> vector<16x128xf32>
    %420 = arith.addf %216, %419 : vector<16x128xf32>
    %c0_124 = arith.constant 0 : index
    %c0_125 = arith.constant 0 : index
    %c0_126 = arith.constant 0 : index
    %421 = vector.load %arg12[%c0_124, %c0_125, %c0_126] : memref<1x1x128xf32, #tpu.memory_space<vmem>>, vector<1x1x128xf32>
    %422 = vector.shape_cast %421 : vector<1x1x128xf32> to vector<1x128xf32>
    %423 = arith.mulf %420, %420 : vector<16x128xf32>
    %cst_127 = arith.constant dense<0.000000e+00> : vector<16xf32>
    %424 = vector.multi_reduction <add>, %423, %cst_127 [1] : vector<16x128xf32> to vector<16xf32>
    %425 = vector.shape_cast %424 : vector<16xf32> to vector<16x1xf32>
    %cst_128 = arith.constant 1.280000e+02 : f32
    %426 = vector.broadcast %cst_128 : f32 to vector<16x1xf32>
    %427 = arith.divf %425, %426 : vector<16x1xf32>
    %cst_129 = arith.constant 9.99999997E-7 : f32
    %428 = vector.broadcast %cst_129 : f32 to vector<16x1xf32>
    %429 = arith.addf %427, %428 : vector<16x1xf32>
    %430 = math.rsqrt %429 : vector<16x1xf32>
    %431 = vector.broadcast %430 : vector<16x1xf32> to vector<16x128xf32>
    %432 = arith.mulf %420, %431 : vector<16x128xf32>
    %433 = vector.broadcast %422 : vector<1x128xf32> to vector<16x128xf32>
    %434 = arith.mulf %432, %433 : vector<16x128xf32>
    %435 = arith.truncf %434 : vector<16x128xf32> to vector<16x128xbf16>
    %c0_130 = arith.constant 0 : index
    %c0_131 = arith.constant 0 : index
    %c0_132 = arith.constant 0 : index
    %436 = vector.load %arg13[%c0_130, %c0_131, %c0_132] : memref<1x128x256xbf16, #tpu.memory_space<vmem>>, vector<1x128x256xbf16>
    %437 = vector.shape_cast %436 : vector<1x128x256xbf16> to vector<128x256xbf16>
    %cst_133 = arith.constant dense<0.000000e+00> : vector<16x256xf32>
    %438 = tpu.matmul %435, %437, %cst_133 {dimension_numbers = #tpu.dot_dimension_numbers<[1], [0], [0], [1], [0, 0, 1, 1], [], []>} : vector<16x128xbf16>, vector<128x256xbf16>, vector<16x256xf32> -> vector<16x256xf32>
    %cst_134 = arith.constant 0.000000e+00 : f32
    %439 = vector.broadcast %cst_134 : f32 to vector<16x256xf32>
    %440 = arith.maximumf %438, %439 : vector<16x256xf32>
    %441 = arith.truncf %440 : vector<16x256xf32> to vector<16x256xbf16>
    %c0_135 = arith.constant 0 : index
    %c0_136 = arith.constant 0 : index
    %c0_137 = arith.constant 0 : index
    %442 = vector.load %arg14[%c0_135, %c0_136, %c0_137] : memref<1x256x128xbf16, #tpu.memory_space<vmem>>, vector<1x256x128xbf16>
    %443 = vector.shape_cast %442 : vector<1x256x128xbf16> to vector<256x128xbf16>
    %cst_138 = arith.constant dense<0.000000e+00> : vector<16x128xf32>
    %444 = tpu.matmul %441, %443, %cst_138 {dimension_numbers = #tpu.dot_dimension_numbers<[1], [0], [0], [1], [0, 0, 1, 1], [], []>} : vector<16x256xbf16>, vector<256x128xbf16>, vector<16x128xf32> -> vector<16x128xf32>
    %445 = arith.addf %420, %444 : vector<16x128xf32>
    %446 = vector.shape_cast %445 : vector<16x128xf32> to vector<2x8x128xf32>
    %c0_139 = arith.constant 0 : index
    %c0_140 = arith.constant 0 : index
    %c0_141 = arith.constant 0 : index
    %447 = vector.load %arg25[%c0_139, %c0_140, %c0_141] : memref<2x8x128xf32, #tpu.memory_space<vmem>>, vector<2x8x128xf32>
    tpu.vector_store %arg25[%c0_139, %c0_140, %c0_141], %446 {strides = array<i32>} : memref<2x8x128xf32, #tpu.memory_space<vmem>>, vector<2x8x128xf32>,
    %c1_i32 = arith.constant 1 : i32
    %448 = arith.cmpi eq, %arg0, %c1_i32 : i32
    %449 = arith.extui %448 : i1 to i32
    %c0_i32_142 = arith.constant 0 : i32
    %450 = arith.cmpi ne, %449, %c0_i32_142 : i32
    scf.if %450 {
      %c0_143 = arith.constant 0 : index
      %c0_144 = arith.constant 0 : index
      %451 = vector.load %arg15[%c0_143, %c0_144] : memref<1x128xf32, #tpu.memory_space<vmem>>, vector<1x128xf32>
      %452 = arith.mulf %445, %445 : vector<16x128xf32>
      %cst_145 = arith.constant dense<0.000000e+00> : vector<16xf32>
      %453 = vector.multi_reduction <add>, %452, %cst_145 [1] : vector<16x128xf32> to vector<16xf32>
      %454 = vector.shape_cast %453 : vector<16xf32> to vector<16x1xf32>
      %cst_146 = arith.constant 1.280000e+02 : f32
      %455 = vector.broadcast %cst_146 : f32 to vector<16x1xf32>
      %456 = arith.divf %454, %455 : vector<16x1xf32>
      %cst_147 = arith.constant 9.99999997E-7 : f32
      %457 = vector.broadcast %cst_147 : f32 to vector<16x1xf32>
      %458 = arith.addf %456, %457 : vector<16x1xf32>
      %459 = math.rsqrt %458 : vector<16x1xf32>
      %460 = vector.broadcast %459 : vector<16x1xf32> to vector<16x128xf32>
      %461 = arith.mulf %445, %460 : vector<16x128xf32>
      %462 = vector.broadcast %451 : vector<1x128xf32> to vector<16x128xf32>
      %463 = arith.mulf %461, %462 : vector<16x128xf32>
      %464 = arith.truncf %463 : vector<16x128xf32> to vector<16x128xbf16>
      %c0_148 = arith.constant 0 : index
      %c0_149 = arith.constant 0 : index
      %465 = vector.load %arg16[%c0_148, %c0_149] : memref<128x256xbf16, #tpu.memory_space<vmem>>, vector<128x256xbf16>
      %cst_150 = arith.constant dense<0.000000e+00> : vector<16x256xf32>
      %466 = tpu.matmul %464, %465, %cst_150 {dimension_numbers = #tpu.dot_dimension_numbers<[1], [0], [0], [1], [0, 0, 1, 1], [], []>} : vector<16x128xbf16>, vector<128x256xbf16>, vector<16x256xf32> -> vector<16x256xf32>
      %467 = vector.shape_cast %466 : vector<16x256xf32> to vector<2x8x256xf32>
      %c0_151 = arith.constant 0 : index
      %c0_152 = arith.constant 0 : index
      %c0_153 = arith.constant 0 : index
      %468 = vector.load %arg23[%c0_151, %c0_152, %c0_153] : memref<2x8x256xf32, #tpu.memory_space<vmem>>, vector<2x8x256xf32>
      tpu.vector_store %arg23[%c0_151, %c0_152, %c0_153], %467 {strides = array<i32>} : memref<2x8x256xf32, #tpu.memory_space<vmem>>, vector<2x8x256xf32>,
      %469 = vector.shape_cast %463 : vector<16x128xf32> to vector<2x8x128xf32>
      %c0_154 = arith.constant 0 : index
      %c0_155 = arith.constant 0 : index
      %c0_156 = arith.constant 0 : index
      %470 = vector.load %arg22[%c0_154, %c0_155, %c0_156] : memref<2x8x128xf32, #tpu.memory_space<vmem>>, vector<2x8x128xf32>
      tpu.vector_store %arg22[%c0_154, %c0_155, %c0_156], %469 {strides = array<i32>} : memref<2x8x128xf32, #tpu.memory_space<vmem>>, vector<2x8x128xf32>,
      %c0_157 = arith.constant 0 : index
      %c0_158 = arith.constant 0 : index
      %471 = vector.load %arg17[%c0_157, %c0_158] : memref<128x256xbf16, #tpu.memory_space<vmem>>, vector<128x256xbf16>
      %cst_159 = arith.constant dense<0.000000e+00> : vector<16x256xf32>
      %472 = tpu.matmul %464, %471, %cst_159 {dimension_numbers = #tpu.dot_dimension_numbers<[1], [0], [0], [1], [0, 0, 1, 1], [], []>} : vector<16x128xbf16>, vector<128x256xbf16>, vector<16x256xf32> -> vector<16x256xf32>
      %c0_160 = arith.constant 0 : index
      %c0_161 = arith.constant 0 : index
      %473 = vector.load %arg18[%c0_160, %c0_161] : memref<1x256xf32, #tpu.memory_space<vmem>>, vector<1x256xf32>
      %474 = vector.broadcast %473 : vector<1x256xf32> to vector<16x256xf32>
      %475 = arith.addf %472, %474 : vector<16x256xf32>
      %cst_162 = arith.constant 0.000000e+00 : f32
      %476 = vector.broadcast %cst_162 : f32 to vector<16x256xf32>
      %477 = arith.maximumf %475, %476 : vector<16x256xf32>
      %478 = arith.truncf %477 : vector<16x256xf32> to vector<16x256xbf16>
      %c0_163 = arith.constant 0 : index
      %c0_164 = arith.constant 0 : index
      %479 = vector.load %arg19[%c0_163, %c0_164] : memref<256x128xbf16, #tpu.memory_space<vmem>>, vector<256x128xbf16>
      %cst_165 = arith.constant dense<0.000000e+00> : vector<16x128xf32>
      %480 = tpu.matmul %478, %479, %cst_165 {dimension_numbers = #tpu.dot_dimension_numbers<[1], [0], [0], [1], [0, 0, 1, 1], [], []>} : vector<16x256xbf16>, vector<256x128xbf16>, vector<16x128xf32> -> vector<16x128xf32>
      %c0_166 = arith.constant 0 : index
      %c0_167 = arith.constant 0 : index
      %481 = vector.load %arg20[%c0_166, %c0_167] : memref<1x128xf32, #tpu.memory_space<vmem>>, vector<1x128xf32>
      %482 = vector.broadcast %481 : vector<1x128xf32> to vector<16x128xf32>
      %483 = arith.addf %480, %482 : vector<16x128xf32>
      %484 = vector.shape_cast %483 : vector<16x128xf32> to vector<2x8x128xf32>
      %c0_168 = arith.constant 0 : index
      %c0_169 = arith.constant 0 : index
      %c0_170 = arith.constant 0 : index
      %485 = vector.load %arg24[%c0_168, %c0_169, %c0_170] : memref<2x8x128xf32, #tpu.memory_space<vmem>>, vector<2x8x128xf32>
      tpu.vector_store %arg24[%c0_168, %c0_169, %c0_170], %484 {strides = array<i32>} : memref<2x8x128xf32, #tpu.memory_space<vmem>>, vector<2x8x128xf32>,
    } else {
    }
    return
  }
  func.func @transform_0(%arg0: i32) -> (i32, i32, i32) {
    %c0_i32 = arith.constant 0 : i32
    %c0_i32_0 = arith.constant 0 : i32
    %c0_i32_1 = arith.constant 0 : i32
    %c0_i32_2 = arith.constant 0 : i32
    return %c0_i32, %c0_i32_0, %c0_i32_1 : i32, i32, i32
  }
  func.func @transform_1(%arg0: i32) -> (i32, i32, i32) {
    %c0_i32 = arith.constant 0 : i32
    %c0_i32_0 = arith.constant 0 : i32
    %c0_i32_1 = arith.constant 0 : i32
    %c0_i32_2 = arith.constant 0 : i32
    return %c0_i32, %c0_i32_0, %c0_i32_1 : i32, i32, i32
  }
  func.func @transform_2(%arg0: i32) -> (i32, i32, i32) {
    %c0_i32 = arith.constant 0 : i32
    %c0_i32_0 = arith.constant 0 : i32
    %c0_i32_1 = arith.constant 0 : i32
    %c0_i32_2 = arith.constant 0 : i32
    return %c0_i32, %c0_i32_0, %c0_i32_1 : i32, i32, i32
  }
  func.func @transform_3(%arg0: i32) -> (i32, i32, i32) {
    %c0_i32 = arith.constant 0 : i32
    %c0_i32_0 = arith.constant 0 : i32
    %c0_i32_1 = arith.constant 0 : i32
    %c0_i32_2 = arith.constant 0 : i32
    return %c0_i32, %c0_i32_0, %c0_i32_1 : i32, i32, i32
  }
  func.func @transform_4(%arg0: i32) -> (i32, i32, i32) {
    %c0_i32 = arith.constant 0 : i32
    %c0_i32_0 = arith.constant 0 : i32
    %c0_i32_1 = arith.constant 0 : i32
    return %arg0, %c0_i32, %c0_i32_0 : i32, i32, i32
  }
  func.func @transform_5(%arg0: i32) -> (i32, i32, i32) {
    %c0_i32 = arith.constant 0 : i32
    %c0_i32_0 = arith.constant 0 : i32
    %c0_i32_1 = arith.constant 0 : i32
    return %arg0, %c0_i32, %c0_i32_0 : i32, i32, i32
  }
  func.func @transform_6(%arg0: i32) -> (i32, i32, i32) {
    %c0_i32 = arith.constant 0 : i32
    %c0_i32_0 = arith.constant 0 : i32
    %c0_i32_1 = arith.constant 0 : i32
    return %arg0, %c0_i32, %c0_i32_0 : i32, i32, i32
  }
  func.func @transform_7(%arg0: i32) -> (i32, i32, i32) {
    %c0_i32 = arith.constant 0 : i32
    %c0_i32_0 = arith.constant 0 : i32
    %c0_i32_1 = arith.constant 0 : i32
    return %arg0, %c0_i32, %c0_i32_0 : i32, i32, i32
  }
  func.func @transform_8(%arg0: i32) -> (i32, i32, i32) {
    %c0_i32 = arith.constant 0 : i32
    %c0_i32_0 = arith.constant 0 : i32
    %c0_i32_1 = arith.constant 0 : i32
    return %arg0, %c0_i32, %c0_i32_0 : i32, i32, i32
  }
  func.func @transform_9(%arg0: i32) -> (i32, i32, i32) {
    %c0_i32 = arith.constant 0 : i32
    %c0_i32_0 = arith.constant 0 : i32
    %c0_i32_1 = arith.constant 0 : i32
    return %arg0, %c0_i32, %c0_i32_0 : i32, i32, i32
  }
  func.func @transform_10(%arg0: i32) -> (i32, i32, i32) {
    %c0_i32 = arith.constant 0 : i32
    %c0_i32_0 = arith.constant 0 : i32
    %c0_i32_1 = arith.constant 0 : i32
    return %arg0, %c0_i32, %c0_i32_0 : i32, i32, i32
  }
  func.func @transform_11(%arg0: i32) -> (i32, i32, i32) {
    %c0_i32 = arith.constant 0 : i32
    %c0_i32_0 = arith.constant 0 : i32
    %c0_i32_1 = arith.constant 0 : i32
    return %arg0, %c0_i32, %c0_i32_0 : i32, i32, i32
  }
  func.func @transform_12(%arg0: i32) -> (i32, i32, i32) {
    %c0_i32 = arith.constant 0 : i32
    %c0_i32_0 = arith.constant 0 : i32
    %c0_i32_1 = arith.constant 0 : i32
    return %arg0, %c0_i32, %c0_i32_0 : i32, i32, i32
  }
  func.func @transform_13(%arg0: i32) -> (i32, i32, i32) {
    %c0_i32 = arith.constant 0 : i32
    %c0_i32_0 = arith.constant 0 : i32
    %c0_i32_1 = arith.constant 0 : i32
    return %arg0, %c0_i32, %c0_i32_0 : i32, i32, i32
  }
  func.func @transform_14(%arg0: i32) -> (i32, i32) {
    %c0_i32 = arith.constant 0 : i32
    %c0_i32_0 = arith.constant 0 : i32
    %c0_i32_1 = arith.constant 0 : i32
    return %c0_i32, %c0_i32_0 : i32, i32
  }
  func.func @transform_15(%arg0: i32) -> (i32, i32) {
    %c0_i32 = arith.constant 0 : i32
    %c0_i32_0 = arith.constant 0 : i32
    %c0_i32_1 = arith.constant 0 : i32
    return %c0_i32, %c0_i32_0 : i32, i32
  }
  func.func @transform_16(%arg0: i32) -> (i32, i32) {
    %c0_i32 = arith.constant 0 : i32
    %c0_i32_0 = arith.constant 0 : i32
    %c0_i32_1 = arith.constant 0 : i32
    return %c0_i32, %c0_i32_0 : i32, i32
  }
  func.func @transform_17(%arg0: i32) -> (i32, i32) {
    %c0_i32 = arith.constant 0 : i32
    %c0_i32_0 = arith.constant 0 : i32
    %c0_i32_1 = arith.constant 0 : i32
    return %c0_i32, %c0_i32_0 : i32, i32
  }
  func.func @transform_18(%arg0: i32) -> (i32, i32) {
    %c0_i32 = arith.constant 0 : i32
    %c0_i32_0 = arith.constant 0 : i32
    %c0_i32_1 = arith.constant 0 : i32
    return %c0_i32, %c0_i32_0 : i32, i32
  }
  func.func @transform_19(%arg0: i32) -> (i32, i32) {
    %c0_i32 = arith.constant 0 : i32
    %c0_i32_0 = arith.constant 0 : i32
    %c0_i32_1 = arith.constant 0 : i32
    return %c0_i32, %c0_i32_0 : i32, i32
  }
  func.func @transform_20(%arg0: i32) -> (i32, i32, i32) {
    %c0_i32 = arith.constant 0 : i32
    %c0_i32_0 = arith.constant 0 : i32
    %c0_i32_1 = arith.constant 0 : i32
    return %arg0, %c0_i32, %c0_i32_0 : i32, i32, i32
  }
  func.func @transform_21(%arg0: i32) -> (i32, i32, i32) {
    %c0_i32 = arith.constant 0 : i32
    %c0_i32_0 = arith.constant 0 : i32
    %c0_i32_1 = arith.constant 0 : i32
    %c0_i32_2 = arith.constant 0 : i32
    return %c0_i32, %c0_i32_0, %c0_i32_1 : i32, i32, i32
  }
  func.func @transform_22(%arg0: i32) -> (i32, i32, i32) {
    %c0_i32 = arith.constant 0 : i32
    %c0_i32_0 = arith.constant 0 : i32
    %c0_i32_1 = arith.constant 0 : i32
    %c0_i32_2 = arith.constant 0 : i32
    return %c0_i32, %c0_i32_0, %c0_i32_1 : i32, i32, i32
  }
  func.func @transform_23(%arg0: i32) -> (i32, i32, i32) {
    %c0_i32 = arith.constant 0 : i32
    %c0_i32_0 = arith.constant 0 : i32
    %c0_i32_1 = arith.constant 0 : i32
    %c0_i32_2 = arith.constant 0 : i32
    return %c0_i32, %c0_i32_0, %c0_i32_1 : i32, i32, i32
  }
}

</mosaic_0001>

<bundles_post_ra>
// kernel: forward_with_hydra.3
= control target key start
LH: loop header
LB: loop body
LE: loop exit
PB: predicated region body
PF: predicated region fallthrough
CT: control target
= control target key end

     0   :  { %s2646_s13 = smov 0   ;;  %s3221_s0 = inlined_call_operand.vmem [shape: f32[2,16,128], index: 0, kind: input, shape index: {}]   ;;  %s3222_s1 = inlined_call_operand.vmem [shape: f32[8,16,16], index: 1, kind: input, shape index: {}]   ;;  %s3223_s2 = inlined_call_operand.vmem [shape: f32[2,1,128], index: 2, kind: input, shape index: {}]   ;;  %s3224_s3 = inlined_call_operand.vmem [shape: bf16[2,128,384], index: 3, kind: input, shape index: {}]   ;;  %s3225_s4 = inlined_call_operand.vmem [shape: bf16[2,128,128], index: 4, kind: input, shape index: {}]   ;;  %s3226_s5 = inlined_call_operand.vmem [shape: f32[2,1,128], index: 5, kind: input, shape index: {}]   ;;  %s3227_s6 = inlined_call_operand.vmem [shape: bf16[2,128,256], index: 6, kind: input, shape index: {}]   ;;  %s3228_s7 = inlined_call_operand.vmem [shape: bf16[2,256,128], index: 7, kind: input, shape index: {}]   ;;  %s3229_s8 = inlined_call_operand.vmem [shape: f32[1,128], index: 8, kind: input, shape index: {}]   ;;  %s3230_s9 = inlined_call_operand.vmem [shape: f32[4,16,128], index: 9, kind: output, shape index: {0}]   ;;  %s3231_s10 = inlined_call_operand.vmem [shape: f32[2,16,128], index: 10, kind: output, shape index: {1}]  }
   0x1 LB: > { %3233 = sst [smem:[#allocation3_spill]] %s2585_s13  ;;  %s2652_s14 = sadd.s32 4294967295, %s2585_s13   ;;  %s2585_s13 = sphi %s2646_s13, %s21_s13  }
   0x2   : > { %p2074_p0 = scmp.ge.s32.totalorder %s2585_s13, 1  ;;  %p356_p1 = scmp.lt.s32.totalorder %s2585_s13, 3 }
   0x4   : > { %p357_p2 = pnand %p2074_p0, %p356_p1 }
   0x5   : > { %p416_p3 = scmp.lt.s32.totalorder (!%p357_p2), %s2652_s14, 1  ;;  %s2082_s15 = sshll.u32 (!%p357_p2), %s2652_s14, 1 }
   0x6   : > { %360 = sbr.rel (%p357_p2) target bundleno = 2239 (0x8bf), region = 56  ;;  %p443_p4 = scmp.lt.s32.totalorder (!%p357_p2), %s2082_s15, 3 }
   0x7   : > { %p2085_p5 = scmp.ne.s32.totalorder (!%p357_p2), %s2652_s14, 0 }
   0xb   : > { %s2659_s16 = scalar_select %p416_p3, %s2652_s14, 1 }
   0xc   : > { %s3237_s15 = smov (!%p443_p4, %s2082_s15), 3 }
   0xd   : > { %s2443_s20 = smul.u32 192, %s2659_s16  ;;  %s2375_s21 = sshll.u32 %s2659_s16, 6 }
   0xe   : > { %s431_s24 = scalar_lea.vmem %s3226_s5, %s2659_s16  ;;  %s2679_s30 = scalar_lea.vmem %s3225_s4, %s2375_s21 }
   0xf   : > { %s2674_s27 = scalar_lea.vmem %s3224_s3, %s2443_s20  ;;  %s2376_s11 = sshll.u32 %s2659_s16, 7 }
  0x10   : > { %s2378_s12 = sshll.u32 %s3237_s15, 4  ;;  %s2685_s19 = scalar_lea.vmem %s3227_s6, %s2376_s11 }
  0x11   : > { %s2690_s23 = scalar_lea.vmem %s3228_s7, %s2376_s11  ;;  %s2695_s26 = scalar_lea.vmem %s3230_s9, %s2378_s12 }
  0x12   : > { %453 = sbr.rel (%p2085_p5) target bundleno = 28 (0x1c), region = 60 }
  0x17   : > { %v454_v0 = vld [vmem:[%s3221_s0] sm:$0xff]  ;;  %v455_v1 = vld [vmem:[%s3221_s0 + $0x8] sm:$0xff]  ;;  %v456_v2 = vld [vmem:[%s3221_s0 + $0x10] sm:$0xff] }
  0x18   : > { %458 = vst [vmem:[#allocation2 + $0x10] sm:$0xff] %v454_v0  ;;  %v457_v3 = vld [vmem:[%s3221_s0 + $0x18] sm:$0xff] }
  0x19   : > { %459 = vst [vmem:[#allocation2] sm:$0xff] %v455_v1 }
  0x1a   : > { %460 = vst [vmem:[#allocation2 + $0x18] sm:$0xff] %v456_v2 }
  0x1b   : > { %461 = vst [vmem:[#allocation2 + $0x8] sm:$0xff] %v457_v3 }
  0x1c PF: > { %v2172_v8 = vld [vmem:[%s2674_s27 + $0xa8] sm:$0xf]  ;;  %v2401_v9 = vld [vmem:[%s2674_s27 + $0xb0] sm:$0xf0]  ;;  %v2400_v10 = vld [vmem:[%s2674_s27 + $0xac] sm:$0xf]  ;;  %s3234_s22 = scalar_lea.vmem %s3223_s2, %s2659_s16 }
  0x1d   : > { %v2173_v11 = vor.u32 %v2401_v9, %v2172_v8  ;;  %v2174_v12 = vld [vmem:[%s2674_s27 + $0xb4] sm:$0xf0]  ;;  %v2180_v13 = vld [vmem:[%s2674_s27 + $0xb0] sm:$0xf]  ;;  %v2402_v14 = vld [vmem:[%s2674_s27 + $0xb8] sm:$0xf0] }
  0x1e   : > { %v2587_v15 = vmov 128.0   ;;  %v2177_v16 = vor.u32 %v2400_v10, %v2174_v12  ;;  %v2181_v17 = vor.u32 %v2402_v14, %v2180_v13  ;;  %v2160_v18 = vld [vmem:[%s2674_s27 + $0x90] sm:$0xf]  ;;  %v2398_v19 = vld [vmem:[%s2674_s27 + $0x98] sm:$0xf0]  ;;  %vm781_vm7 = vcmask 261120  }
  0x1f   : > { %v2710_v4 = vld [vmem:[#allocation2 + $0x10] sm:$0xff]  ;;  %2488 = vrcp.f32 %v2587_v15  ;;  %711 = vmatpush.bf16.msra.mxu0 %v2173_v11  ;;  %v2161_v21 = vor.u32 %v2398_v19, %v2160_v18  ;;  %v2162_v22 = vld [vmem:[%s2674_s27 + $0x9c] sm:$0xf0]  ;;  %v2168_v23 = vld [vmem:[%s2674_s27 + $0x98] sm:$0xf]  ;;  %vm802_vm14 = vcmask 130048  }
  0x20   : > { %v471_v5 = vmul.f32 %v2710_v4, %v2710_v4  ;;  %466 = vst [vmem:[%s2695_s26] sm:$0xff] %v2710_v4  ;;  %v2716_v6 = vld [vmem:[#allocation2] sm:$0xff]  ;;  %730 = vmatpush.bf16.msra.mxu1 %v2177_v16  ;;  %749 = vmatpush.bf16.msra.mxu2 %v2181_v17  ;;  %v2397_v20 = vld [vmem:[%s2674_s27 + $0x94] sm:$0xf]  ;;  %v2148_v28 = vld [vmem:[%s2674_s27 + $0x78] sm:$0xf]  ;;  %s2588_s15 = smov 96  }
  0x21   : > { %467 = vst [vmem:[%s2695_s26 + $0x8] sm:$0xff] %v2716_v6  ;;  %v472_v7 = vmul.f32 %v2716_v6, %v2716_v6  ;;  %v2399_v24 = vld [vmem:[%s2674_s27 + $0xa0] sm:$0xf0]  ;;  %v2165_v25 = vor.u32 %v2397_v20, %v2162_v22  ;;  %v2394_v30 = vld [vmem:[%s2674_s27 + $0x7c] sm:$0xf]  ;;  %s2589_s28 = smov 32  }
  0x22   : > { %475 = vadd.xlane.f32.xlu0 %v471_v5  ;;  %v2169_v26 = vor.u32 %v2399_v24, %v2168_v23  ;;  %v2395_v29 = vld [vmem:[%s2674_s27 + $0x80] sm:$0xf0]  ;;  %v2150_v32 = vld [vmem:[%s2674_s27 + $0x84] sm:$0xf0]  ;;  %v2156_v33 = vld [vmem:[%s2674_s27 + $0x80] sm:$0xf] }
  0x23   : > { %712 = vmatpush.bf16.msra.mxu0 %v2161_v21  ;;  %v2149_v31 = vor.u32 %v2395_v29, %v2148_v28  ;;  %v2396_v34 = vld [vmem:[%s2674_s27 + $0x88] sm:$0xf0]  ;;  %v2153_v35 = vor.u32 %v2394_v30, %v2150_v32  ;;  %v2136_v38 = vld [vmem:[%s2674_s27 + $0x60] sm:$0xf]  ;;  %v2391_v40 = vld [vmem:[%s2674_s27 + $0x64] sm:$0xf] }
  0x24   : > { %731 = vmatpush.bf16.msra.mxu1 %v2165_v25  ;;  %750 = vmatpush.bf16.msra.mxu2 %v2169_v26  ;;  %v2157_v36 = vor.u32 %v2396_v34, %v2156_v33  ;;  %v2392_v39 = vld [vmem:[%s2674_s27 + $0x68] sm:$0xf0]  ;;  %v2138_v42 = vld [vmem:[%s2674_s27 + $0x6c] sm:$0xf0]  ;;  %v2144_v43 = vld [vmem:[%s2674_s27 + $0x68] sm:$0xf] }
  0x25   : > { %v2734_v27 = vpop.eup %2488  ;;  %v2137_v41 = vor.u32 %v2392_v39, %v2136_v38  ;;  %v2393_v44 = vld [vmem:[%s2674_s27 + $0x70] sm:$0xf0]  ;;  %v2141_v45 = vor.u32 %v2391_v40, %v2138_v42  ;;  %v2124_v48 = vld [vmem:[%s2674_s27 + $0x48] sm:$0xf]  ;;  %v2388_v50 = vld [vmem:[%s2674_s27 + $0x4c] sm:$0xf] }
  0x26   : > { %v484_v37 = vmul.f32 128.0, %v2734_v27  ;;  %v2145_v46 = vor.u32 %v2393_v44, %v2144_v43  ;;  %v2389_v49 = vld [vmem:[%s2674_s27 + $0x50] sm:$0xf0]  ;;  %v2126_v52 = vld [vmem:[%s2674_s27 + $0x54] sm:$0xf0]  ;;  %vm488_vm0 = vweird.f32 %v2734_v27  ;;  %s2590_s29 = smov 64  }
  0x27   : > { %713 = vmatpush.bf16.msra.mxu0 %v2149_v31  ;;  %v2125_v51 = vor.u32 %v2389_v49, %v2124_v48  ;;  %v2132_v53 = vld [vmem:[%s2674_s27 + $0x50] sm:$0xf]  ;;  %v2390_v54 = vld [vmem:[%s2674_s27 + $0x58] sm:$0xf0]  ;;  %v2129_v55 = vor.u32 %v2388_v50, %v2126_v52  ;;  %v2385_v60 = vld [vmem:[%s2674_s27 + $0x34] sm:$0xf] }
  0x28   : > { %732 = vmatpush.bf16.msra.mxu1 %v2153_v35  ;;  %751 = vmatpush.bf16.msra.mxu2 %v2157_v36  ;;  %v485_v47 = vsub.f32 1.0, %v484_v37  ;;  %v2133_v56 = vor.u32 %v2390_v54, %v2132_v53  ;;  %v2112_v58 = vld [vmem:[%s2674_s27 + $0x30] sm:$0xf]  ;;  %v2386_v59 = vld [vmem:[%s2674_s27 + $0x38] sm:$0xf0]  ;;  %v2794_v53 = vld [vmem:[#allocation2 + $0x8] sm:$0xff] }
  0x29   : > { %v2113_v61 = vor.u32 %v2386_v59, %v2112_v58  ;;  %v2114_v62 = vld [vmem:[%s2674_s27 + $0x3c] sm:$0xf0]  ;;  %v2120_v63 = vld [vmem:[%s2674_s27 + $0x38] sm:$0xf]  ;;  %v2387_v0 = vld [vmem:[%s2674_s27 + $0x40] sm:$0xf0]  ;;  %v474_v54 = vmul.f32 %v2794_v53, %v2794_v53 }
  0x2a   : > { %477 = vadd.xlane.f32.xlu0 %v472_v7  ;;  %v486_v57 = vmul.f32 %v2734_v27, %v485_v47  ;;  %v2117_v1 = vor.u32 %v2385_v60, %v2114_v62  ;;  %v2121_v2 = vor.u32 %v2387_v0, %v2120_v63  ;;  %v2100_v5 = vld [vmem:[%s2674_s27 + $0x18] sm:$0xf]  ;;  %v2383_v7 = vld [vmem:[%s2674_s27 + $0x20] sm:$0xf0]  ;;  %v2382_v8 = vld [vmem:[%s2674_s27 + $0x1c] sm:$0xf] }
  0x2b   : > { %714 = vmatpush.bf16.msra.mxu0 %v2137_v41  ;;  %v2101_v9 = vor.u32 %v2383_v7, %v2100_v5  ;;  %v2102_v10 = vld [vmem:[%s2674_s27 + $0x24] sm:$0xf0]  ;;  %v2108_v11 = vld [vmem:[%s2674_s27 + $0x20] sm:$0xf]  ;;  %v2384_v12 = vld [vmem:[%s2674_s27 + $0x28] sm:$0xf0] }
  0x2c   : > { %733 = vmatpush.bf16.msra.mxu1 %v2141_v45  ;;  %752 = vmatpush.bf16.msra.mxu2 %v2145_v46  ;;  %v487_v3 = vadd.f32 %v2734_v27, %v486_v57  ;;  %v2105_v13 = vor.u32 %v2382_v8, %v2102_v10  ;;  %v2109_v14 = vor.u32 %v2384_v12, %v2108_v11  ;;  %v2088_v16 = vld [vmem:[%s2674_s27] sm:$0xf]  ;;  %v2380_v17 = vld [vmem:[%s2674_s27 + $0x8] sm:$0xf0]  ;;  %v2379_v18 = vld [vmem:[%s2674_s27 + $0x4] sm:$0xf] }
  0x2d   : > { %v2089_v19 = vor.u32 %v2380_v17, %v2088_v16  ;;  %v2090_v20 = vld [vmem:[%s2674_s27 + $0xc] sm:$0xf0]  ;;  %v2096_v21 = vld [vmem:[%s2674_s27 + $0x8] sm:$0xf]  ;;  %v2381_v22 = vld [vmem:[%s2674_s27 + $0x10] sm:$0xf0] }
  0x2e   : > { %v2771_v15 = vsel %vm488_vm0, %v2734_v27, %v487_v3  ;;  %v2093_v24 = vor.u32 %v2379_v18, %v2090_v20  ;;  %v2097_v25 = vor.u32 %v2381_v22, %v2096_v21  ;;  %v2486_v45 = vld [vmem:[%s3234_s22] ss:$0 sm:$0xff]  ;;  %469 = vst [vmem:[%s2695_s26 + $0x18] sm:$0xff] %v2794_v53  ;;  %vm1074_vm15 = vcmask 523264   ;;  %p2372_p6 = scmp.ne.s32.totalorder %s2652_s14, 1 }
  0x2f   : > { %715 = vmatpush.bf16.msra.mxu0 %v2125_v51  ;;  %v2788_v51 = vld [vmem:[#allocation2 + $0x18] sm:$0xff]  ;;  %vm1077_vm0 = vcmask 785408  }
  0x30   : > { %734 = vmatpush.bf16.msra.mxu1 %v2129_v55  ;;  %753 = vmatpush.bf16.msra.mxu2 %v2133_v56  ;;  %v473_v52 = vmul.f32 %v2788_v51, %v2788_v51  ;;  %468 = vst [vmem:[%s2695_s26 + $0x10] sm:$0xff] %v2788_v51 }
  0x32   : > { %479 = vadd.xlane.f32.xlu1 %v473_v52 }
  0x33   : > { %716 = vmatpush.bf16.msra.mxu0 %v2113_v61 }
  0x34   : > { %735 = vmatpush.bf16.msra.mxu1 %v2117_v1  ;;  %754 = vmatpush.bf16.msra.mxu2 %v2121_v2 }
  0x37   : > { %717 = vmatpush.bf16.msra.mxu0 %v2101_v9 }
  0x38   : > { %736 = vmatpush.bf16.msra.mxu1 %v2105_v13  ;;  %755 = vmatpush.bf16.msra.mxu2 %v2109_v14 }
  0x3a   : > { %481 = vadd.xlane.f32.xlu1 %v474_v54 }
  0x3b   : > { %718 = vmatpush.bf16.msra.mxu0 %v2089_v19 }
  0x3c   : > { %737 = vmatpush.bf16.msra.mxu1 %v2093_v24  ;;  %756 = vmatpush.bf16.msra.mxu2 %v2097_v25 }
  0x95   : > { %v476_v23 = vpop.xlane.xlu0 %475 }
  0x96   : > { %v490_v26 = vmul.f32 %v2771_v15, %v476_v23 }
  0x98   : > { %v494_v28 = vadd.f32 1e-06, %v490_v26 }
  0x9a   : > { %2490 = vrsqrt.f32 %v494_v28  ;;  %vm504_vm2 = vweird.f32 %v494_v28 }
  0x9d   : > { %v478_v27 = vpop.xlane.xlu0 %477 }
  0x9e   : > { %v491_v29 = vmul.f32 %v2771_v15, %v478_v27 }
  0xa0   : > { %v2491_v30 = vpop.eup %2490  ;;  %v495_v31 = vadd.f32 1e-06, %v491_v29  ;;  %v768_v29 = vld [vmem:[%s3222_s1] sm:$0xff] }
  0xa1   : > { %v499_v32 = vmul.f32 %v2491_v30, %v494_v28  ;;  %vm505_vm1 = vweird.f32 %v2491_v30 }
  0xa2   : > { %2492 = vrsqrt.f32 %v495_v31  ;;  %vm506_vm3 = vmor %vm504_vm2, %vm505_vm1  ;;  %vm514_vm5 = vweird.f32 %v495_v31 }
  0xa3   : > { %v500_v33 = vmul.f32 %v2491_v30, %v499_v32 }
  0xa5   : > { %v501_v34 = vmul.f32 0.5, %v500_v33  ;;  %v480_v1 = vpop.xlane.xlu1 %479  ;;  %v769_v33 = vld [vmem:[%s3222_s1 + $0x8] sm:$0xff] }
  0xa6   : > { %v492_v2 = vmul.f32 %v2771_v15, %v480_v1 }
  0xa7   : > { %v502_v35 = vsub.f32 1.5, %v501_v34 }
  0xa8   : > { %v2493_v36 = vpop.eup %2492  ;;  %v496_v3 = vadd.f32 1e-06, %v492_v2 }
  0xa9   : > { %v509_v37 = vmul.f32 %v2493_v36, %v495_v31  ;;  %v503_v38 = vmul.f32 %v2491_v30, %v502_v35  ;;  %vm515_vm4 = vweird.f32 %v2493_v36 }
  0xaa   : > { %vm516_vm6 = vmor %vm514_vm5, %vm515_vm4  ;;  %2494 = vrsqrt.f32 %v496_v3  ;;  %vm524_vm8 = vweird.f32 %v496_v3 }
  0xab   : > { %v510_v39 = vmul.f32 %v2493_v36, %v509_v37  ;;  %v507_v41 = vsel %vm506_vm3, %v2491_v30, %v503_v38 }
  0xac   : > { %v538_v44 = vmul.f32 %v507_v41, %v2710_v4 }
  0xad   : > { %v511_v40 = vmul.f32 0.5, %v510_v39  ;;  %v482_v5 = vpop.xlane.xlu1 %481 }
  0xae   : > { %v545_v48 = vmul.f32 %v2486_v45, %v538_v44  ;;  %v493_v7 = vmul.f32 %v2771_v15, %v482_v5 }
  0xaf   : > { %v512_v42 = vsub.f32 1.5, %v511_v40 }
  0xb0   : > { %v2495_v8 = vpop.eup %2494  ;;  %v497_v9 = vadd.f32 1e-06, %v493_v7 }
  0xb1   : > { %v513_v43 = vmul.f32 %v2493_v36, %v512_v42  ;;  %v519_v10 = vmul.f32 %v2495_v8, %v496_v3  ;;  %vm525_vm9 = vweird.f32 %v2495_v8 }
  0xb2   : > { %2496 = vrsqrt.f32 %v497_v9  ;;  %vm534_vm10 = vweird.f32 %v497_v9  ;;  %vm526_vm12 = vmor %vm524_vm8, %vm525_vm9 }
  0xb3   : > { %v517_v46 = vsel %vm516_vm6, %v2493_v36, %v513_v43  ;;  %v520_v11 = vmul.f32 %v2495_v8, %v519_v10 }
  0xb4   : > { %v539_v47 = vmul.f32 %v517_v46, %v2716_v6 }
  0xb5   : > { %v521_v12 = vmul.f32 0.5, %v520_v11 }
  0xb6   : > { %v546_v49 = vmul.f32 %v2486_v45, %v539_v47 }
  0xb7   : > { %v522_v14 = vsub.f32 1.5, %v521_v12 }
  0xb8   : > { %v549_v50 = vpack.c.bf16 %v546_v49, %v545_v48  ;;  %v2497_v13 = vpop.eup %2496 }
  0xb9   : > { %v529_v16 = vmul.f32 %v2497_v13, %v497_v9  ;;  %v523_v18 = vmul.f32 %v2495_v8, %v522_v14  ;;  %vm535_vm11 = vweird.f32 %v2497_v13 }
  0xba   : > { %719 = vmatmul.bf16.vlgmr.msra.gmra.mxu0 %v549_v50  ;;  %738 = vmatmul.bf16.vlgmr.msra.gmra.mxu1 %v549_v50  ;;  %vm536_vm13 = vmor %vm534_vm10, %vm535_vm11 }
  0xbb   : > { %757 = vmatmul.bf16.vlgmr.msra.gmra.mxu2 %v549_v50  ;;  %v530_v17 = vmul.f32 %v2497_v13, %v529_v16  ;;  %v527_v21 = vsel %vm526_vm12, %v2495_v8, %v523_v18 }
  0xbc   : > { %v540_v24 = vmul.f32 %v527_v21, %v2788_v51 }
  0xbd   : > { %v531_v19 = vmul.f32 0.5, %v530_v17 }
  0xbe   : > { %v547_v26 = vmul.f32 %v2486_v45, %v540_v24 }
  0xbf   : > { %v532_v20 = vsub.f32 1.5, %v531_v19 }
  0xc1   : > { %v533_v22 = vmul.f32 %v2497_v13, %v532_v20 }
  0xc3   : > { %v537_v23 = vsel %vm536_vm13, %v2497_v13, %v533_v22 }
  0xc4   : > { %v541_v25 = vmul.f32 %v537_v23, %v2794_v53  ;;  %v2184_v23 = vld [vmem:[%s3222_s1 + $0x20] sm:$0xff] }
  0xc6   : > { %v548_v28 = vmul.f32 %v2486_v45, %v541_v25 }
  0xc8   : > { %v550_v27 = vpack.c.bf16 %v548_v28, %v547_v26  ;;  %v2186_v28 = vld [vmem:[%s3222_s1 + $0x30] sm:$0xff] }
  0xca   : > { %743 = vmatmul.bf16.gmra.mxu1 %v550_v27  ;;  %724 = vmatmul.bf16.gmra.mxu0 %v550_v27 }
  0xcb   : > { %762 = vmatmul.bf16.gmra.mxu2 %v550_v27 }
 0x137   : > { %v739_v55 = vpop.f32.mrf.mxu1  ;;  %v720_v56 = vpop.f32.mrf.mxu0 }
 0x13e   : > { %v758_v57 = vpop.f32.mrf.mxu2 }
 0x13f   : > { %v741_v58 = vpop.f32.mrf.mxu1  ;;  %v722_v61 = vpop.f32.mrf.mxu0 }
 0x140   : > { %v2800_v59 = vpack.c.bf16 %v741_v58, %v739_v55  ;;  %v2806_v0 = vpack.c.bf16 %v722_v61, %v720_v56 }
 0x142   : > { %v786_v60 = vsel %vm781_vm7, %v2800_v59, 0 }
 0x143   : > { %795 = vmatpush.bf16.xpose.msra.mxu3 %v786_v60 }
 0x146   : > { %v760_v62 = vpop.f32.mrf.mxu2 }
 0x147   : > { %v2804_v63 = vpack.c.bf16 %v760_v62, %v758_v57  ;;  %v744_v37 = vpop.f32.mrf.mxu1  ;;  %v725_v38 = vpop.f32.mrf.mxu0 }
 0x14a   : > { %2188 = vmatmul.msk.bf16.vlgmr.msra.gmra.mxu3 %vm781_vm7, %v2806_v0 }
 0x14b   : > { %837 = vmatpush.bf16.msrb.mxu3 %v2804_v63 }
 0x14e   : > { %v2858_v21 = vpop.f32.mrf.mxu2 }
 0x14f   : > { %v746_v39 = vpop.f32.mrf.mxu1  ;;  %v727_v42 = vpop.f32.mrf.mxu0 }
 0x150   : > { %v1093_v40 = vpack.c.bf16 %v746_v39, %v744_v37  ;;  %v1092_v43 = vpack.c.bf16 %v727_v42, %v725_v38  ;;  %v2196_v42 = vld [vmem:[%s3222_s1 + $0x40] sm:$0xff] }
 0x152   : > { %v1098_v41 = vsel %vm781_vm7, %v1093_v40, 0 }
 0x153   : > { %1107 = vmatpush.bf16.xpose.msrb.mxu0 %v1098_v41 }
 0x156   : > { %v2860_v22 = vpop.f32.mrf.mxu2 }
 0x15a   : > { %2204 = vmatmul.msk.bf16.vlgmr.msrb.gmra.mxu0 %vm781_vm7, %v1092_v43 }
 0x1cd   : > { %v797_v30 = vpop.f32.mrf.mxu3 }
 0x1ce   : > { %v798_v31 = vadd.f32 %v797_v30, %v768_v29 }
 0x1d0   : > { %v803_v32 = vsel %vm802_vm14, %v798_v31, -inf }
 0x1d1   : > { %804 = vmax.xlane.f32.xlu2 %v803_v32  ;;  %v2185_v32 = vld [vmem:[%s3222_s1 + $0x28] sm:$0xff] }
 0x1d5   : > { %v799_v34 = vpop.f32.mrf.mxu3 }
 0x1d6   : > { %v800_v35 = vadd.f32 %v799_v34, %v769_v33 }
 0x1d7   : > { %v1109_v27 = vpop.f32.mrf.mxu0 }
 0x1d8   : > { %v806_v36 = vsel %vm802_vm14, %v800_v35, -inf }
 0x1d9   : > { %807 = vmax.xlane.f32.xlu2 %v806_v36 }
 0x1df   : > { %v1111_v39 = vpop.f32.mrf.mxu0 }
 0x1f1   : > { %848 = vrot.lane.b32.xlu2 %v2800_v59, %s2588_s15 }
 0x1f9   : > { %981 = vrot.lane.b32.xlu2 %v2806_v0, %s2589_s28 }
 0x201   : > { %1159 = vrot.lane.b32.xlu2 %v1093_v40, %s2588_s15 }
 0x209   : > { %1294 = vrot.lane.b32.xlu2 %v1093_v40, %s2589_s28 }
 0x211   : > { %1225 = vrot.lane.b32.xlu2 %v1092_v43, %s2590_s29 }
 0x244   : > { %v805_v44 = vpop.xlane.xlu2 %804 }
 0x245   : > { %v809_v45 = vsub.f32 %v798_v31, %v805_v44  ;;  %v2898_v44 = vadd.f32 %v2196_v42, %v1109_v27 }
 0x247   : > { %v811_v46 = vmul.f32 1.442695, %v809_v45 }
 0x249   : > { %2498 = vpow2.f32 %v811_v46 }
 0x24c   : > { %v808_v47 = vpop.xlane.xlu2 %807 }
 0x24d   : > { %v810_v48 = vsub.f32 %v800_v35, %v808_v47  ;;  %v2187_v35 = vld [vmem:[%s3222_s1 + $0x38] sm:$0xff] }
 0x24f   : > { %v2499_v49 = vpop.eup %2498  ;;  %v813_v50 = vmul.f32 1.442695, %v810_v48 }
 0x250   : > { %v815_v52 = vsel %vm802_vm14, %v2499_v49, 0.0 }
 0x251   : > { %2500 = vpow2.f32 %v813_v50  ;;  %816 = vadd.xlane.f32.xlu0 %v815_v52  ;;  %v1114_v50 = vsel %vm802_vm14, %v2898_v44, -inf  ;;  %v2197_v52 = vld [vmem:[%s3222_s1 + $0x48] sm:$0xff] }
 0x254   : > { %v849_v54 = vpop.permute.xlu2 %848 }
 0x255   : > { %v854_v55 = vsel %vm781_vm7, %v849_v54, 0  ;;  %v2200_v54 = vld [vmem:[%s3222_s1 + $0x60] sm:$0xff] }
 0x256   : > { %863 = vmatpush.bf16.xpose.msra.mxu3 %v854_v55  ;;  %v2199_v55 = vld [vmem:[%s3222_s1 + $0x58] sm:$0xff] }
 0x257   : > { %v2501_v56 = vpop.eup %2500 }
 0x258   : > { %v818_v57 = vsel %vm802_vm14, %v2501_v56, 0.0 }
 0x259   : > { %819 = vadd.xlane.f32.xlu1 %v818_v57 }
 0x265   : > { %845 = vrot.lane.b32.xlu0 %v2806_v0, %s2588_s15 }
 0x26d   : > { %916 = vrot.lane.b32.xlu0 %v2800_v59, %s2590_s29 }
 0x272   : > { %983 = vrot.lane.b32.xlu1 %v2800_v59, %s2589_s28  ;;  %v982_v59 = vpop.permute.xlu2 %981 }
 0x275   : > { %1156 = vrot.lane.b32.xlu0 %v1092_v43, %s2588_s15 }
 0x27a   : > { %914 = vrot.lane.b32.xlu1 %v2806_v0, %s2590_s29  ;;  %v1160_v8 = vpop.permute.xlu2 %1159 }
 0x27b   : > { %v1165_v11 = vsel %vm781_vm7, %v1160_v8, 0 }
 0x27d   : > { %1227 = vrot.lane.b32.xlu0 %v1093_v40, %s2590_s29 }
 0x282   : > { %1292 = vrot.lane.b32.xlu1 %v1092_v43, %s2589_s28  ;;  %v1295_v13 = vpop.permute.xlu2 %1294  ;;  %v2198_v43 = vld [vmem:[%s3222_s1 + $0x50] sm:$0xff] }
 0x283   : > { %v1300_v16 = vsel %vm781_vm7, %v1295_v13, 0 }
 0x28a   : > { %v1226_v19 = vpop.permute.xlu2 %1225 }
 0x2c4   : > { %v817_v58 = vpop.xlane.xlu0 %816 }
 0x2c5   : > { %2502 = vrcp.f32 %v817_v58 }
 0x2cb   : > { %v2503_v61 = vpop.eup %2502 }
 0x2cc   : > { %v820_v60 = vpop.xlane.xlu1 %819  ;;  %v823_v1 = vmul.f32 %v2503_v61, %v2499_v49 }
 0x2cd   : > { %2504 = vrcp.f32 %v820_v60 }
 0x2d3   : > { %v2505_v62 = vpop.eup %2504 }
 0x2d4   : > { %v824_v2 = vmul.f32 %v2505_v62, %v2501_v56  ;;  %v2917_v56 = vadd.f32 %v2197_v52, %v1111_v39 }
 0x2d6   : > { %v825_v3 = vpack.c.bf16 %v824_v2, %v823_v1  ;;  %v1117_v1 = vsel %vm802_vm14, %v2917_v56, -inf  ;;  %v2201_v2 = vld [vmem:[%s3222_s1 + $0x68] sm:$0xff] }
 0x2d7   : > { %v846_v5 = vpop.permute.xlu0 %845 }
 0x2d8   : > { %2189 = vmatmul.msk.bf16.vlgmr.msrb.gmra.mxu3 %vm802_vm14, %v825_v3 }
 0x2df   : > { %v917_v7 = vpop.permute.xlu0 %916 }
 0x2e0   : > { %v922_v0 = vsel %vm781_vm7, %v917_v7, 0 }
 0x2e1   : > { %931 = vmatpush.bf16.xpose.msrb.mxu1 %v922_v0 }
 0x2e4   : > { %v984_v9 = vpop.permute.xlu1 %983 }
 0x2e5   : > { %v989_v10 = vsel %vm781_vm7, %v984_v9, 0 }
 0x2e6   : > { %998 = vmatpush.bf16.xpose.msrb.mxu2 %v989_v10 }
 0x2e7   : > { %v1157_v12 = vpop.permute.xlu0 %1156 }
 0x2e8   : > { %2190 = vmatmul.msk.bf16.vlgmr.msra.gmra.mxu3 %vm781_vm7, %v846_v5 }
 0x2ec   : > { %v915_v14 = vpop.permute.xlu1 %914 }
 0x2ed   : > { %2192 = vmatmul.msk.bf16.vlgmr.msrb.gmra.mxu1 %vm781_vm7, %v915_v14  ;;  %2194 = vmatmul.msk.bf16.vlgmr.msrb.gmra.mxu2 %vm781_vm7, %v982_v59  ;;  %v2202_v59 = vld [vmem:[%s3222_s1 + $0x70] sm:$0xff]  ;;  %v2203_v14 = vld [vmem:[%s3222_s1 + $0x78] sm:$0xff] }
 0x2ee   : > { %1174 = vmatpush.bf16.xpose.msra.mxu2 %v1165_v11  ;;  %v2182_v11 = vld [vmem:[%s3222_s1 + $0x10] sm:$0xff] }
 0x2ef   : > { %v1228_v17 = vpop.permute.xlu0 %1227 }
 0x2f0   : > { %v1233_v18 = vsel %vm781_vm7, %v1228_v17, 0 }
 0x2f1   : > { %1242 = vmatpush.bf16.xpose.msra.mxu0 %v1233_v18 }
 0x2f4   : > { %v1293_v20 = vpop.permute.xlu1 %1292 }
 0x2f6   : > { %1309 = vmatpush.bf16.xpose.msrb.mxu2 %v1300_v16 }
 0x2f8   : > { %2208 = vmatmul.msk.bf16.vlgmr.msra.gmra.mxu0 %vm781_vm7, %v1226_v19 }
 0x2fd   : > { %2206 = vmatmul.msk.bf16.vlgmr.msra.gmra.mxu2 %vm781_vm7, %v1157_v12  ;;  %v2183_v12 = vld [vmem:[%s3222_s1 + $0x18] sm:$0xff] }
 0x30d   : > { %2210 = vmatmul.msk.bf16.vlgmr.msrb.gmra.mxu2 %vm781_vm7, %v1293_v20 }
 0x35b   : > { %v2879_v34 = vpop.f32.mrf.mxu3 }
 0x363   : > { %v2900_v45 = vpop.f32.mrf.mxu3 }
 0x36a   : > { %v933_v24 = vpop.f32.mrf.mxu1 }
 0x36b   : > { %v2865_v25 = vadd.f32 %v2184_v23, %v933_v24  ;;  %v865_v61 = vpop.f32.mrf.mxu3 }
 0x36c   : > { %v866_v16 = vadd.f32 %v2182_v11, %v865_v61 }
 0x36d   : > { %v938_v26 = vsel %vm802_vm14, %v2865_v25, -inf }
 0x36e   : > { %939 = vmax.xlane.f32.xlu0 %v938_v26  ;;  %v870_v23 = vsel %vm802_vm14, %v866_v16, -inf }
 0x370   : > { %v1000_v29 = vpop.f32.mrf.mxu2 }
 0x371   : > { %v2872_v30 = vadd.f32 %v2186_v28, %v1000_v29 }
 0x372   : > { %v935_v33 = vpop.f32.mrf.mxu1 }
 0x373   : > { %v1005_v31 = vsel %vm802_vm14, %v2872_v30, -inf  ;;  %v2884_v36 = vadd.f32 %v2185_v32, %v935_v33  ;;  %v867_v13 = vpop.f32.mrf.mxu3 }
 0x374   : > { %1006 = vmax.xlane.f32.xlu2 %v1005_v31  ;;  %v868_v17 = vadd.f32 %v2183_v12, %v867_v13 }
 0x375   : > { %v941_v40 = vsel %vm802_vm14, %v2884_v36, -inf  ;;  %v1244_v48 = vpop.f32.mrf.mxu0 }
 0x376   : > { %v2919_v57 = vadd.f32 %v2200_v54, %v1244_v48  ;;  %v873_v20 = vsel %vm802_vm14, %v868_v17, -inf }
 0x378   : > { %v1002_v37 = vpop.f32.mrf.mxu2  ;;  %v1249_v5 = vsel %vm802_vm14, %v2919_v57, -inf }
 0x379   : > { %v2886_v38 = vadd.f32 %v2187_v35, %v1002_v37 }
 0x37b   : > { %v1008_v41 = vsel %vm802_vm14, %v2886_v38, -inf }
 0x37c   : > { %942 = vmax.xlane.f32.xlu2 %v941_v40  ;;  %1009 = vmax.xlane.f32.xlu1 %v1008_v41 }
 0x37d   : > { %v1246_v3 = vpop.f32.mrf.mxu0 }
 0x37e   : > { %v2935_v7 = vadd.f32 %v2201_v2, %v1246_v3 }
 0x380   : > { %v1176_v46 = vpop.f32.mrf.mxu2  ;;  %v1252_v10 = vsel %vm802_vm14, %v2935_v7, -inf }
 0x381   : > { %v2902_v47 = vadd.f32 %v2198_v43, %v1176_v46 }
 0x383   : > { %v1181_v49 = vsel %vm802_vm14, %v2902_v47, -inf }
 0x384   : > { %1182 = vmax.xlane.f32.xlu1 %v1181_v49  ;;  %1115 = vmax.xlane.f32.xlu2 %v1114_v50 }
 0x388   : > { %v1178_v58 = vpop.f32.mrf.mxu2 }
 0x389   : > { %v2921_v60 = vadd.f32 %v2199_v55, %v1178_v58 }
 0x38b   : > { %v1184_v62 = vsel %vm802_vm14, %v2921_v60, -inf }
 0x38c   : > { %1185 = vmax.xlane.f32.xlu0 %v1184_v62  ;;  %1118 = vmax.xlane.f32.xlu1 %v1117_v1 }
 0x38d   : > { %1250 = vmax.xlane.f32.xlu2 %v1249_v5 }
 0x390   : > { %v1311_v0 = vpop.f32.mrf.mxu2 }
 0x391   : > { %v2937_v8 = vadd.f32 %v2202_v59, %v1311_v0 }
 0x393   : > { %v1316_v9 = vsel %vm802_vm14, %v2937_v8, -inf }
 0x394   : > { %1317 = vmax.xlane.f32.xlu0 %v1316_v9  ;;  %1253 = vmax.xlane.f32.xlu1 %v1252_v10  ;;  %v2989_v10 = vpack.c.bf16 %v2860_v22, %v2858_v21 }
 0x398   : > { %v1313_v18 = vpop.f32.mrf.mxu2 }
 0x399   : > { %v2952_v19 = vadd.f32 %v2203_v14, %v1313_v18 }
 0x39b   : > { %v1319_v24 = vsel %vm802_vm14, %v2952_v19, -inf }
 0x39c   : > { %874 = vmax.xlane.f32.xlu0 %v873_v20  ;;  %871 = vmax.xlane.f32.xlu1 %v870_v23 }
 0x39d   : > { %1320 = vmax.xlane.f32.xlu2 %v1319_v24 }
 0x3b0   : > { %894 = vrot.lane.b32.xlu0 %v2804_v63, %s2588_s15 }
 0x3e1   : > { %v940_v26 = vpop.xlane.xlu0 %939 }
 0x3e2   : > { %v944_v29 = vsub.f32 %v2865_v25, %v940_v26 }
 0x3e4   : > { %v946_v32 = vmul.f32 1.442695, %v944_v29 }
 0x3e7   : > { %v1007_v28 = vpop.xlane.xlu2 %1006 }
 0x3e8   : > { %v1011_v27 = vsub.f32 %v2872_v30, %v1007_v28 }
 0x3ea   : > { %v1013_v31 = vmul.f32 1.442695, %v1011_v27 }
 0x3ec   : > { %2506 = vpow2.f32 %v1013_v31 }
 0x3ed   : > { %2508 = vpow2.f32 %v946_v32 }
 0x3ef   : > { %v1010_v33 = vpop.xlane.xlu1 %1009  ;;  %v943_v35 = vpop.xlane.xlu2 %942 }
 0x3f0   : > { %v1012_v37 = vsub.f32 %v2886_v38, %v1010_v33  ;;  %v945_v41 = vsub.f32 %v2884_v36, %v943_v35 }
 0x3f2   : > { %v2963_v39 = vpop.eup %2506  ;;  %v1015_v40 = vmul.f32 1.442695, %v1012_v37  ;;  %v948_v30 = vmul.f32 1.442695, %v945_v41 }
 0x3f3   : > { %v1017_v42 = vsel %vm802_vm14, %v2963_v39, 0.0  ;;  %v2968_v43 = vpop.eup %2508 }
 0x3f4   : > { %1018 = vadd.xlane.f32.xlu2 %v1017_v42  ;;  %2510 = vpow2.f32 %v1015_v40  ;;  %v950_v38 = vsel %vm802_vm14, %v2968_v43, 0.0 }
 0x3f5   : > { %2512 = vpow2.f32 %v948_v30 }
 0x3f7   : > { %v1183_v25 = vpop.xlane.xlu1 %1182  ;;  %v1116_v0 = vpop.xlane.xlu2 %1115 }
 0x3f8   : > { %v1187_v5 = vsub.f32 %v2902_v47, %v1183_v25  ;;  %v1120_v12 = vsub.f32 %v2898_v44, %v1116_v0 }
 0x3fa   : > { %v2970_v46 = vpop.eup %2510  ;;  %v1189_v59 = vmul.f32 1.442695, %v1187_v5  ;;  %v1122_v14 = vmul.f32 1.442695, %v1120_v12 }
 0x3fb   : > { %v1020_v48 = vsel %vm802_vm14, %v2970_v46, 0.0  ;;  %v2978_v50 = vpop.eup %2512 }
 0x3fc   : > { %951 = vadd.xlane.f32.xlu2 %v950_v38  ;;  %1021 = vadd.xlane.f32.xlu1 %v1020_v48  ;;  %v953_v52 = vsel %vm802_vm14, %v2978_v50, 0.0 }
 0x3ff   : > { %v2976_v36 = vpop.xlane.xlu0 %1185  ;;  %v1119_v49 = vpop.xlane.xlu1 %1118 }
 0x400   : > { %v1121_v22 = vsub.f32 %v2917_v56, %v1119_v49  ;;  %v1251_v18 = vpop.xlane.xlu2 %1250 }
 0x401   : > { %v1255_v27 = vsub.f32 %v2919_v57, %v1251_v18 }
 0x404   : > { %954 = vadd.xlane.f32.xlu1 %v953_v52 }
 0x407   : > { %v1318_v54 = vpop.xlane.xlu0 %1317  ;;  %v1254_v55 = vpop.xlane.xlu1 %1253 }
 0x408   : > { %v1322_v23 = vsub.f32 %v2937_v8, %v1318_v54  ;;  %v1257_v8 = vmul.f32 1.442695, %v1255_v27  ;;  %v1256_v35 = vsub.f32 %v2935_v7, %v1254_v55  ;;  %v1188_v7 = vsub.f32 %v2921_v60, %v2976_v36 }
 0x40a   : > { %v1324_v26 = vmul.f32 1.442695, %v1322_v23  ;;  %v1259_v57 = vmul.f32 1.442695, %v1256_v35  ;;  %v1191_v30 = vmul.f32 1.442695, %v1188_v7 }
 0x40f   : > { %v875_v58 = vpop.xlane.xlu0 %874  ;;  %v872_v61 = vpop.xlane.xlu1 %871 }
 0x410   : > { %v877_v62 = vsub.f32 %v868_v17, %v875_v58  ;;  %v876_v1 = vsub.f32 %v866_v16, %v872_v61  ;;  %v1124_v17 = vmul.f32 1.442695, %v1121_v22  ;;  %v1321_v28 = vpop.xlane.xlu2 %1320 }
 0x411   : > { %v1323_v29 = vsub.f32 %v2952_v19, %v1321_v28 }
 0x412   : > { %v880_v2 = vmul.f32 1.442695, %v877_v62  ;;  %v878_v3 = vmul.f32 1.442695, %v876_v1 }
 0x413   : > { %v1326_v32 = vmul.f32 1.442695, %v1323_v29 }
 0x414   : > { %2514 = vpow2.f32 %v880_v2  ;;  %1028 = vrot.lane.b32.xlu2 %v2804_v63, %s2589_s28 }
 0x415   : > { %2516 = vpow2.f32 %v878_v3 }
 0x416   : > { %2518 = vpow2.f32 %v1189_v59 }
 0x417   : > { %2520 = vpow2.f32 %v1122_v14 }
 0x418   : > { %2522 = vpow2.f32 %v1124_v17 }
 0x419   : > { %2524 = vpow2.f32 %v1324_v26 }
 0x41a   : > { %v2985_v9 = vpop.eup %2514  ;;  %2526 = vpow2.f32 %v1257_v8 }
 0x41b   : > { %v2991_v11 = vpop.eup %2516  ;;  %v885_v47 = vsel %vm802_vm14, %v2985_v9, 0.0  ;;  %2528 = vpow2.f32 %v1326_v32 }
 0x41c   : > { %886 = vadd.xlane.f32.xlu0 %v885_v47  ;;  %v882_v13 = vsel %vm802_vm14, %v2991_v11, 0.0  ;;  %1205 = vrot.lane.b32.xlu2 %v2989_v10, %s2588_s15  ;;  %v3000_v16 = vpop.eup %2518  ;;  %2530 = vpow2.f32 %v1259_v57 }
 0x41d   : > { %883 = vadd.xlane.f32.xlu1 %v882_v13  ;;  %v1193_v44 = vsel %vm802_vm14, %v3000_v16, 0.0  ;;  %v3005_v20 = vpop.eup %2520  ;;  %2532 = vpow2.f32 %v1191_v30 }
 0x41e   : > { %v1126_v24 = vsel %vm802_vm14, %v3005_v20, 0.0  ;;  %v3012_v56 = vpop.eup %2522 }
 0x41f   : > { %v1129_v31 = vsel %vm802_vm14, %v3012_v56, 0.0  ;;  %v3018_v33 = vpop.eup %2524 }
 0x420   : > { %v3023_v37 = vpop.eup %2526 }
 0x421   : > { %v3025_v19 = vpop.eup %2528  ;;  %v1261_v40 = vsel %vm802_vm14, %v3023_v37, 0.0 }
 0x422   : > { %v895_v21 = vpop.permute.xlu0 %894  ;;  %v1331_v41 = vsel %vm802_vm14, %v3025_v19, 0.0  ;;  %v3033_v42 = vpop.eup %2530 }
 0x423   : > { %907 = vmatpush.bf16.msrb.mxu3 %v895_v21  ;;  %v1264_v25 = vsel %vm802_vm14, %v3033_v42, 0.0  ;;  %v3037_v38 = vpop.eup %2532 }
 0x424   : > { %v1196_v48 = vsel %vm802_vm14, %v3037_v38, 0.0 }
 0x425   : > { %1194 = vadd.xlane.f32.xlu1 %v1193_v44 }
 0x42d   : > { %1127 = vadd.xlane.f32.xlu1 %v1126_v24 }
 0x430   : > { %961 = vrot.lane.b32.xlu0 %v2804_v63, %s2590_s29  ;;  %v1328_v63 = vsel %vm802_vm14, %v3018_v33, 0.0 }
 0x435   : > { %1130 = vadd.xlane.f32.xlu1 %v1129_v31 }
 0x43d   : > { %1329 = vadd.xlane.f32.xlu1 %v1328_v63 }
 0x445   : > { %1262 = vadd.xlane.f32.xlu1 %v1261_v40  ;;  %1332 = vadd.xlane.f32.xlu2 %v1331_v41 }
 0x44d   : > { %1265 = vadd.xlane.f32.xlu1 %v1264_v25 }
 0x45a   : > { %1197 = vadd.xlane.f32.xlu0 %v1196_v48 }
 0x466   : > { %1339 = vrot.lane.b32.xlu1 %v2989_v10, %s2589_s28 }
 0x467   : > { %v1019_v49 = vpop.xlane.xlu2 %1018 }
 0x46e   : > { %1272 = vrot.lane.b32.xlu0 %v2989_v10, %s2590_s29 }
 0x46f   : > { %v952_v60 = vpop.xlane.xlu2 %951  ;;  %v1022_v52 = vpop.xlane.xlu1 %1021 }
 0x477   : > { %v1029_v36 = vpop.permute.xlu2 %1028  ;;  %v955_v54 = vpop.xlane.xlu1 %954 }
 0x478   : > { %1041 = vmatpush.bf16.msra.mxu3 %v1029_v36 }
 0x47f   : > { %v1206_v59 = vpop.permute.xlu2 %1205 }
 0x48f   : > { %v887_v55 = vpop.xlane.xlu0 %886 }
 0x490   : > { %2534 = vrcp.f32 %v887_v55  ;;  %v884_v58 = vpop.xlane.xlu1 %883 }
 0x491   : > { %2536 = vrcp.f32 %v884_v58 }
 0x492   : > { %2538 = vrcp.f32 %v955_v54 }
 0x493   : > { %2540 = vrcp.f32 %v952_v60 }
 0x494   : > { %2542 = vrcp.f32 %v1022_v52 }
 0x495   : > { %2544 = vrcp.f32 %v1019_v49 }
 0x496   : > { %v2535_v61 = vpop.eup %2534 }
 0x497   : > { %v2537_v62 = vpop.eup %2536  ;;  %v891_v1 = vmul.f32 %v2535_v61, %v2985_v9 }
 0x498   : > { %v890_v2 = vmul.f32 %v2537_v62, %v2991_v11  ;;  %v1195_v3 = vpop.xlane.xlu1 %1194  ;;  %v2539_v0 = vpop.eup %2538 }
 0x499   : > { %v2541_v12 = vpop.eup %2540  ;;  %v959_v47 = vmul.f32 %v2539_v0, %v2978_v50 }
 0x49a   : > { %v892_v5 = vpack.c.bf16 %v891_v1, %v890_v2  ;;  %v958_v14 = vmul.f32 %v2541_v12, %v2968_v43  ;;  %v2543_v9 = vpop.eup %2542  ;;  %v2409_v12 = vld [vmem:[%s2679_s30 + $0x30] sm:$0xff] }
 0x49b   : > { %v2545_v22 = vpop.eup %2544  ;;  %v1026_v44 = vmul.f32 %v2543_v9, %v2970_v46  ;;  %v2407_v9 = vld [vmem:[%s2679_s30 + $0x20] sm:$0xff] }
 0x49c   : > { %2191 = vmatmul.msk.bf16.vlgmr.msrb.gmra.mxu3 %vm802_vm14, %v892_v5  ;;  %v960_v11 = vpack.c.bf16 %v959_v47, %v958_v14  ;;  %v1025_v17 = vmul.f32 %v2545_v22, %v2963_v39  ;;  %v2405_v22 = vld [vmem:[%s2679_s30 + $0x10] sm:$0xff] }
 0x49d   : > { %1218 = vmatpush.bf16.msrb.mxu3 %v1206_v59  ;;  %v2410_v59 = vld [vmem:[%s2679_s30 + $0x38] sm:$0xff] }
 0x49e   : > { %v1027_v50 = vpack.c.bf16 %v1026_v44, %v1025_v17  ;;  %1455 = vmatpush.bf16.msrb.mxu0 %v2410_v59  ;;  %v2404_v44 = vld [vmem:[%s2679_s30 + $0x8] sm:$0xff]  ;;  %v2403_v17 = vld [vmem:[%s2679_s30] sm:$0xff] }
 0x49f   : > { %v2294_v59 = vld [vmem:[%s2685_s19 + $0x60] sm:$0xf] }
 0x4a0   : > { %v1128_v13 = vpop.xlane.xlu1 %1127 }
 0x4a1   : > { %2546 = vrcp.f32 %v1128_v13  ;;  %v2408_v13 = vld [vmem:[%s2679_s30 + $0x28] sm:$0xff] }
 0x4a2   : > { %v962_v21 = vpop.permute.xlu0 %961  ;;  %1456 = vmatpush.bf16.msrb.mxu0 %v2409_v12 }
 0x4a3   : > { %974 = vmatpush.bf16.msra.mxu1 %v962_v21 }
 0x4a6   : > { %2193 = vmatmul.msk.bf16.vlgmr.msra.gmra.mxu1 %vm802_vm14, %v960_v11  ;;  %1457 = vmatpush.bf16.msrb.mxu0 %v2408_v13  ;;  %v2406_v11 = vld [vmem:[%s2679_s30 + $0x18] sm:$0xff] }
 0x4a7   : > { %1148 = vmatpush.bf16.msrb.mxu1 %v2989_v10  ;;  %v2547_v43 = vpop.eup %2546 }
 0x4a8   : > { %v1131_v18 = vpop.xlane.xlu1 %1130  ;;  %v1134_v26 = vmul.f32 %v2547_v43, %v3005_v20 }
 0x4a9   : > { %2548 = vrcp.f32 %v1131_v18 }
 0x4aa   : > { %2550 = vrcp.f32 %v1195_v3  ;;  %1458 = vmatpush.bf16.msrb.mxu0 %v2407_v9  ;;  %v2421_v9 = vld [vmem:[%s2685_s19 + $0x54] sm:$0xf] }
 0x4ac   : > { %2195 = vmatmul.msk.bf16.vlgmr.msra.gmra.mxu3 %vm802_vm14, %v1027_v50 }
 0x4ae   : > { %1459 = vmatpush.bf16.msrb.mxu0 %v2406_v11 }
 0x4af   : > { %v2549_v23 = vpop.eup %2548 }
 0x4b0   : > { %v1135_v24 = vmul.f32 %v2549_v23, %v3012_v56  ;;  %v1330_v46 = vpop.xlane.xlu1 %1329  ;;  %v2551_v29 = vpop.eup %2550 }
 0x4b1   : > { %v1201_v8 = vmul.f32 %v2551_v29, %v3000_v16 }
 0x4b2   : > { %v1136_v10 = vpack.c.bf16 %v1135_v24, %v1134_v26  ;;  %1460 = vmatpush.bf16.msrb.mxu0 %v2405_v22  ;;  %v2288_v22 = vld [vmem:[%s2685_s19 + $0x58] sm:$0xf0] }
 0x4b6   : > { %2205 = vmatmul.msk.bf16.vlgmr.msrb.gmra.mxu1 %vm802_vm14, %v1136_v10  ;;  %1461 = vmatpush.bf16.msrb.mxu0 %v2404_v44  ;;  %v2291_v44 = vor.u32 %v2421_v9, %v2288_v22 }
 0x4b8   : > { %v1263_v28 = vpop.xlane.xlu1 %1262  ;;  %v1333_v35 = vpop.xlane.xlu2 %1332 }
 0x4ba   : > { %1462 = vmatpush.bf16.msrb.mxu0 %v2403_v17  ;;  %v2278_v17 = vld [vmem:[%s2685_s19 + $0x40] sm:$0xf] }
 0x4c0   : > { %v1266_v39 = vpop.xlane.xlu1 %1265 }
 0x4cd   : > { %v1198_v27 = vpop.xlane.xlu0 %1197 }
 0x4ce   : > { %2552 = vrcp.f32 %v1198_v27 }
 0x4cf   : > { %2554 = vrcp.f32 %v1266_v39 }
 0x4d0   : > { %2556 = vrcp.f32 %v1263_v28 }
 0x4d1   : > { %2558 = vrcp.f32 %v1333_v35 }
 0x4d2   : > { %2560 = vrcp.f32 %v1330_v46 }
 0x4d4   : > { %v2553_v31 = vpop.eup %2552 }
 0x4d5   : > { %v1202_v32 = vmul.f32 %v2553_v31, %v3037_v38  ;;  %v2555_v63 = vpop.eup %2554 }
 0x4d6   : > { %v2557_v57 = vpop.eup %2556  ;;  %v1270_v40 = vmul.f32 %v2555_v63, %v3033_v42 }
 0x4d7   : > { %v1203_v56 = vpack.c.bf16 %v1202_v32, %v1201_v8  ;;  %v1269_v41 = vmul.f32 %v2557_v57, %v3023_v37  ;;  %v2559_v16 = vpop.eup %2558 }
 0x4d8   : > { %v1340_v20 = vpop.permute.xlu1 %1339  ;;  %v2561_v25 = vpop.eup %2560  ;;  %v1337_v38 = vmul.f32 %v2559_v16, %v3025_v19 }
 0x4d9   : > { %1352 = vmatpush.bf16.msra.mxu3 %v1340_v20  ;;  %v1271_v30 = vpack.c.bf16 %v1270_v40, %v1269_v41  ;;  %v1336_v48 = vmul.f32 %v2561_v25, %v3018_v33 }
 0x4da   : > { %2207 = vmatmul.msk.bf16.vlgmr.msrb.gmra.mxu3 %vm802_vm14, %v1203_v56 }
 0x4db   : > { %v1338_v49 = vpack.c.bf16 %v1337_v38, %v1336_v48 }
 0x4e0   : > { %v1273_v7 = vpop.permute.xlu0 %1272 }
 0x4e1   : > { %1285 = vmatpush.bf16.msra.mxu1 %v1273_v7 }
 0x4e4   : > { %2209 = vmatmul.msk.bf16.vlgmr.msra.gmra.mxu1 %vm802_vm14, %v1271_v30 }
 0x4ea   : > { %2211 = vmatmul.msk.bf16.vlgmr.msra.gmra.mxu3 %vm802_vm14, %v1338_v49 }
 0x51f   : > { %v909_v60 = vpop.f32.mrf.mxu3 }
 0x523   : > { %v976_v36 = vpop.f32.mrf.mxu1 }
 0x527   : > { %v911_v52 = vpop.f32.mrf.mxu3 }
 0x528   : > { %v2456_v42 = vpack.i.bf16 %v911_v52, %v909_v60 }
 0x52a   : > { %2457 = vrot.lane.b32.xlu0 %v2456_v42, %s2589_s28 }
 0x52b   : > { %v978_v37 = vpop.f32.mrf.mxu1 }
 0x52c   : > { %v2461_v54 = vpack.i.bf16 %v978_v37, %v976_v36 }
 0x52e   : > { %2462 = vrot.lane.b32.xlu2 %v2461_v54, %s2590_s29 }
 0x52f   : > { %v1043_v19 = vpop.f32.mrf.mxu3 }
 0x533   : > { %v1150_v33 = vpop.f32.mrf.mxu1 }
 0x537   : > { %v1045_v55 = vpop.f32.mrf.mxu3 }
 0x538   : > { %v2466_v58 = vpack.i.bf16 %v1045_v55, %v1043_v19 }
 0x53a   : > { %2467 = vrot.lane.b32.xlu1 %v2466_v58, %s2588_s15 }
 0x53b   : > { %v1152_v61 = vpop.f32.mrf.mxu1 }
 0x55d   : > { %v1220_v62 = vpop.f32.mrf.mxu3 }
 0x561   : > { %v1287_v1 = vpop.f32.mrf.mxu1 }
 0x565   : > { %v1222_v2 = vpop.f32.mrf.mxu3 }
 0x566   : > { %v2476_v3 = vpack.i.bf16 %v1222_v2, %v1220_v62  ;;  %v2302_v62 = vld [vmem:[%s2685_s19 + $0x70] sm:$0xf] }
 0x568   : > { %2477 = vrot.lane.b32.xlu0 %v2476_v3, %s2589_s28  ;;  %v2304_v3 = vld [vmem:[%s2685_s19 + $0x78] sm:$0xf0] }
 0x569   : > { %v1289_v5 = vpop.f32.mrf.mxu1 }
 0x56a   : > { %v2471_v0 = vpack.i.bf16 %v1289_v5, %v1287_v1  ;;  %v2426_v1 = vld [vmem:[%s2685_s19 + $0x74] sm:$0xf0] }
 0x56b   : > { %v2303_v2 = vor.u32 %v2426_v1, %v2302_v62 }
 0x56c   : > { %2472 = vrot.lane.b32.xlu1 %v2471_v0, %s2590_s29  ;;  %v2423_v0 = vld [vmem:[%s2685_s19 + $0x64] sm:$0xf] }
 0x56d   : > { %v1354_v47 = vpop.f32.mrf.mxu3  ;;  %1648 = vmatpush.bf16.msrb.mxu1 %v2303_v2 }
 0x575   : > { %v1356_v14 = vpop.f32.mrf.mxu3 }
 0x576   : > { %v2481_v21 = vpack.i.bf16 %v1356_v14, %v1354_v47  ;;  %v2296_v47 = vld [vmem:[%s2685_s19 + $0x68] sm:$0xf0]  ;;  %v2286_v14 = vld [vmem:[%s2685_s19 + $0x50] sm:$0xf] }
 0x577   : > { %v2299_v13 = vor.u32 %v2423_v0, %v2296_v47 }
 0x578   : > { %2482 = vrot.lane.b32.xlu0 %v2481_v21, %s2588_s15  ;;  %v2422_v21 = vld [vmem:[%s2685_s19 + $0x54] sm:$0xf0] }
 0x579   : > { %v2287_v11 = vor.u32 %v2422_v21, %v2286_v14 }
 0x588   : > { %v2463_v23 = vpop.permute.xlu2 %2462 }
 0x589   : > { %v2465_v10 = vunpack.i.h.bf16 %v2463_v23  ;;  %v2464_v46 = vunpack.i.l.bf16 %v2463_v23  ;;  %v2280_v23 = vld [vmem:[%s2685_s19 + $0x48] sm:$0xf0] }
 0x59c   : > { %v2458_v18 = vpop.permute.xlu0 %2457 }
 0x59d   : > { %v2460_v50 = vunpack.i.h.bf16 %v2458_v18  ;;  %v2459_v43 = vunpack.i.l.bf16 %v2458_v18  ;;  %v2420_v18 = vld [vmem:[%s2685_s19 + $0x44] sm:$0xf0] }
 0x59f   : > { %v1073_v24 = vsel %vm781_vm7, %v2900_v45, %v2460_v50  ;;  %v1072_v26 = vsel %vm781_vm7, %v2879_v34, %v2459_v43  ;;  %v2419_v50 = vld [vmem:[%s2685_s19 + $0x44] sm:$0xf]  ;;  %v2279_v43 = vor.u32 %v2420_v18, %v2278_v17  ;;  %v2434_v17 = vld [vmem:[%s2690_s23 + $0x38] sm:$0xff] }
 0x5a0   : > { %v1075_v29 = vsel %vm1074_vm15, %v1072_v26, %v2464_v46  ;;  %v1076_v31 = vsel %vm1074_vm15, %v1073_v24, %v2465_v10  ;;  %v2283_v24 = vor.u32 %v2419_v50, %v2280_v23  ;;  %v2270_v26 = vld [vmem:[%s2685_s19 + $0x30] sm:$0xf]  ;;  %v2418_v10 = vld [vmem:[%s2685_s19 + $0x34] sm:$0xf0]  ;;  %v2417_v46 = vld [vmem:[%s2685_s19 + $0x34] sm:$0xf]  ;;  %1826 = vmatpush.bf16.msrb.mxu3 %v2434_v17 }
 0x5a1   : > { %v2442_v18 = vld [vmem:[%s2690_s23 + $0x78] sm:$0xff]  ;;  %v2433_v50 = vld [vmem:[%s2690_s23 + $0x30] sm:$0xff] }
 0x5a2   : > { %1845 = vmatpush.bf16.msra.mxu0 %v2442_v18 }
 0x5a4   : > { %1827 = vmatpush.bf16.msrb.mxu3 %v2433_v50 }
 0x5ac   : > { %v2468_v28 = vpop.permute.xlu1 %2467 }
 0x5ad   : > { %v2470_v27 = vunpack.i.h.bf16 %v2468_v28  ;;  %v2469_v39 = vunpack.i.l.bf16 %v2468_v28  ;;  %v2271_v28 = vor.u32 %v2418_v10, %v2270_v26 }
 0x5af   : > { %v1078_v8 = vsel %vm1077_vm0, %v1075_v29, %v2469_v39  ;;  %v1079_v32 = vsel %vm1077_vm0, %v1076_v31, %v2470_v27  ;;  %v2272_v27 = vld [vmem:[%s2685_s19 + $0x38] sm:$0xf0]  ;;  %v2262_v29 = vld [vmem:[%s2685_s19 + $0x20] sm:$0xf]  ;;  %v2416_v31 = vld [vmem:[%s2685_s19 + $0x24] sm:$0xf0] }
 0x5b0   : > { %v1389_v56 = vpack.c.bf16 %v1079_v32, %v1078_v8  ;;  %v2275_v39 = vor.u32 %v2417_v46, %v2272_v27  ;;  %v2415_v8 = vld [vmem:[%s2685_s19 + $0x24] sm:$0xf]  ;;  %v2263_v32 = vor.u32 %v2416_v31, %v2262_v29  ;;  %v2432_v46 = vld [vmem:[%s2690_s23 + $0x28] sm:$0xff] }
 0x5b1   : > { %1828 = vmatpush.bf16.msrb.mxu3 %v2432_v46  ;;  %v2431_v29 = vld [vmem:[%s2690_s23 + $0x20] sm:$0xff] }
 0x5b2   : > { %1463 = vmatmul.bf16.vlgmr.msrb.gmra.mxu0 %v1389_v56  ;;  %v2264_v56 = vld [vmem:[%s2685_s19 + $0x28] sm:$0xf0] }
 0x5b5   : > { %1829 = vmatpush.bf16.msrb.mxu3 %v2431_v29 }
 0x5da   : > { %v2478_v45 = vpop.permute.xlu0 %2477 }
 0x5db   : > { %v2480_v34 = vunpack.i.h.bf16 %v2478_v45  ;;  %v2479_v20 = vunpack.i.l.bf16 %v2478_v45  ;;  %v2267_v45 = vor.u32 %v2415_v8, %v2264_v56  ;;  %v2430_v56 = vld [vmem:[%s2690_s23 + $0x18] sm:$0xff] }
 0x5dc   : > { %1830 = vmatpush.bf16.msrb.mxu3 %v2430_v56 }
 0x5dd   : > { %v1384_v41 = vsel %vm781_vm7, %v1152_v61, %v2480_v34  ;;  %v1383_v7 = vsel %vm781_vm7, %v1150_v33, %v2479_v20  ;;  %v2414_v34 = vld [vmem:[%s2685_s19 + $0x14] sm:$0xf0]  ;;  %v2413_v20 = vld [vmem:[%s2685_s19 + $0x14] sm:$0xf] }
 0x5de   : > { %v2473_v35 = vpop.permute.xlu1 %2472 }
 0x5df   : > { %v2475_v63 = vunpack.i.h.bf16 %v2473_v35  ;;  %v2474_v57 = vunpack.i.l.bf16 %v2473_v35  ;;  %v2254_v35 = vld [vmem:[%s2685_s19 + $0x10] sm:$0xf] }
 0x5e1   : > { %v1385_v25 = vsel %vm1074_vm15, %v1383_v7, %v2474_v57  ;;  %v1386_v38 = vsel %vm1074_vm15, %v1384_v41, %v2475_v63  ;;  %v2255_v63 = vor.u32 %v2414_v34, %v2254_v35  ;;  %v2256_v57 = vld [vmem:[%s2685_s19 + $0x18] sm:$0xf0]  ;;  %v2246_v41 = vld [vmem:[%s2685_s19] sm:$0xf]  ;;  %v2412_v7 = vld [vmem:[%s2685_s19 + $0x4] sm:$0xf0] }
 0x5ea   : > { %v2483_v40 = vpop.permute.xlu0 %2482 }
 0x5eb   : > { %v2485_v16 = vunpack.i.h.bf16 %v2483_v40  ;;  %v2484_v30 = vunpack.i.l.bf16 %v2483_v40  ;;  %v2259_v40 = vor.u32 %v2413_v20, %v2256_v57 }
 0x5ed   : > { %v1387_v48 = vsel %vm1077_vm0, %v1385_v25, %v2484_v30  ;;  %v1388_v49 = vsel %vm1077_vm0, %v1386_v38, %v2485_v16  ;;  %v2411_v16 = vld [vmem:[%s2685_s19 + $0x4] sm:$0xf]  ;;  %v2247_v25 = vor.u32 %v2412_v7, %v2246_v41  ;;  %v2248_v38 = vld [vmem:[%s2685_s19 + $0x8] sm:$0xf0] }
 0x5ee   : > { %v1390_v60 = vpack.c.bf16 %v1388_v49, %v1387_v48  ;;  %v2251_v49 = vor.u32 %v2411_v16, %v2248_v38 }
 0x5f0   : > { %1468 = vmatmul.bf16.gmra.mxu0 %v1390_v60 }
 0x62f   : > { %v1464_v36 = vpop.f32.mrf.mxu0 }
 0x630   : > { %v3096_v52 = vadd.f32 %v1464_v36, %v2710_v4 }
 0x632   : > { %v1479_v42 = vmul.f32 %v3096_v52, %v3096_v52 }
 0x634   : > { %1483 = vadd.xlane.f32.xlu1 %v1479_v42 }
 0x637   : > { %v1466_v37 = vpop.f32.mrf.mxu0 }
 0x638   : > { %v3101_v54 = vadd.f32 %v1466_v37, %v2716_v6 }
 0x63a   : > { %v1480_v19 = vmul.f32 %v3101_v54, %v3101_v54 }
 0x63c   : > { %1485 = vadd.xlane.f32.xlu0 %v1480_v19 }
 0x66d   : > { %v1469_v55 = vpop.f32.mrf.mxu0 }
 0x66e   : > { %v3106_v4 = vadd.f32 %v1469_v55, %v2788_v51  ;;  %v2425_v51 = vld [vmem:[%s2685_s19 + $0x74] sm:$0xf] }
 0x66f   : > { %v2307_v5 = vor.u32 %v2425_v51, %v2304_v3 }
 0x670   : > { %v1481_v58 = vmul.f32 %v3106_v4, %v3106_v4 }
 0x671   : > { %1667 = vmatpush.bf16.msra.mxu2 %v2307_v5 }
 0x672   : > { %1487 = vadd.xlane.f32.xlu2 %v1481_v58 }
 0x675   : > { %v1471_v33 = vpop.f32.mrf.mxu0  ;;  %1668 = vmatpush.bf16.msra.mxu2 %v2299_v13 }
 0x676   : > { %v3111_v6 = vadd.f32 %v1471_v33, %v2794_v53  ;;  %v2424_v53 = vld [vmem:[%s2685_s19 + $0x64] sm:$0xf0] }
 0x677   : > { %v2295_v12 = vor.u32 %v2424_v53, %v2294_v59 }
 0x678   : > { %v1482_v61 = vmul.f32 %v3111_v6, %v3111_v6 }
 0x679   : > { %1649 = vmatpush.bf16.msrb.mxu1 %v2295_v12  ;;  %1669 = vmatpush.bf16.msra.mxu2 %v2291_v44  ;;  %v2487_v12 = vld [vmem:[%s431_s24] ss:$0 sm:$0xff] }
 0x67a   : > { %1489 = vadd.xlane.f32.xlu1 %v1482_v61 }
 0x67d   : > { %1650 = vmatpush.bf16.msrb.mxu1 %v2287_v11  ;;  %1670 = vmatpush.bf16.msra.mxu2 %v2283_v24 }
 0x681   : > { %1651 = vmatpush.bf16.msrb.mxu1 %v2279_v43  ;;  %1671 = vmatpush.bf16.msra.mxu2 %v2275_v39  ;;  %v2441_v43 = vld [vmem:[%s2690_s23 + $0x70] sm:$0xff] }
 0x682   : > { %1846 = vmatpush.bf16.msra.mxu0 %v2441_v43 }
 0x685   : > { %1652 = vmatpush.bf16.msrb.mxu1 %v2271_v28  ;;  %1672 = vmatpush.bf16.msra.mxu2 %v2267_v45  ;;  %v2440_v28 = vld [vmem:[%s2690_s23 + $0x68] sm:$0xff] }
 0x686   : > { %1847 = vmatpush.bf16.msra.mxu0 %v2440_v28 }
 0x689   : > { %1653 = vmatpush.bf16.msrb.mxu1 %v2263_v32  ;;  %1673 = vmatpush.bf16.msra.mxu2 %v2259_v40 }
 0x68d   : > { %1654 = vmatpush.bf16.msrb.mxu1 %v2255_v63  ;;  %1674 = vmatpush.bf16.msra.mxu2 %v2251_v49  ;;  %v2429_v49 = vld [vmem:[%s2690_s23 + $0x10] sm:$0xff] }
 0x68e   : > { %1831 = vmatpush.bf16.msrb.mxu3 %v2429_v49 }
 0x691   : > { %1655 = vmatpush.bf16.msrb.mxu1 %v2247_v25 }
 0x6a7   : > { %v1484_v30 = vpop.xlane.xlu1 %1483 }
 0x6a8   : > { %v1491_v48 = vmul.f32 %v1484_v30, %v2771_v15 }
 0x6aa   : > { %v1495_v60 = vadd.f32 1e-06, %v1491_v48  ;;  %v2439_v48 = vld [vmem:[%s2690_s23 + $0x60] sm:$0xff] }
 0x6ab   : > { %1848 = vmatpush.bf16.msra.mxu0 %v2439_v48 }
 0x6ac   : > { %2562 = vrsqrt.f32 %v1495_v60  ;;  %vm1505_vm2 = vweird.f32 %v1495_v60 }
 0x6af   : > { %v1486_v36 = vpop.xlane.xlu0 %1485 }
 0x6b0   : > { %v1492_v42 = vmul.f32 %v1486_v36, %v2771_v15  ;;  %v2428_v36 = vld [vmem:[%s2690_s23 + $0x8] sm:$0xff] }
 0x6b1   : > { %1832 = vmatpush.bf16.msrb.mxu3 %v2428_v36 }
 0x6b2   : > { %v2563_v37 = vpop.eup %2562  ;;  %v1496_v19 = vadd.f32 1e-06, %v1492_v42  ;;  %v2437_v42 = vld [vmem:[%s2690_s23 + $0x50] sm:$0xff] }
 0x6b3   : > { %v1500_v55 = vmul.f32 %v2563_v37, %v1495_v60  ;;  %vm1506_vm1 = vweird.f32 %v2563_v37  ;;  %v2438_v60 = vld [vmem:[%s2690_s23 + $0x58] sm:$0xff] }
 0x6b4   : > { %2564 = vrsqrt.f32 %v1496_v19  ;;  %vm1507_vm3 = vmor %vm1505_vm2, %vm1506_vm1  ;;  %vm1515_vm5 = vweird.f32 %v1496_v19  ;;  %1849 = vmatpush.bf16.msra.mxu0 %v2438_v60 }
 0x6b5   : > { %v1501_v58 = vmul.f32 %v2563_v37, %v1500_v55  ;;  %v2435_v55 = vld [vmem:[%s2690_s23 + $0x40] sm:$0xff] }
 0x6b7   : > { %v1502_v33 = vmul.f32 0.5, %v1501_v58 }
 0x6b8   : > { %1850 = vmatpush.bf16.msra.mxu0 %v2437_v42 }
 0x6b9   : > { %v1503_v61 = vsub.f32 1.5, %v1502_v33 }
 0x6ba   : > { %v2565_v62 = vpop.eup %2564 }
 0x6bb   : > { %v1510_v1 = vmul.f32 %v2565_v62, %v1496_v19  ;;  %v1504_v51 = vmul.f32 %v2563_v37, %v1503_v61  ;;  %vm1516_vm4 = vweird.f32 %v2565_v62  ;;  %v2436_v19 = vld [vmem:[%s2690_s23 + $0x48] sm:$0xff] }
 0x6bc   : > { %vm1517_vm6 = vmor %vm1515_vm5, %vm1516_vm4  ;;  %1851 = vmatpush.bf16.msra.mxu0 %v2436_v19 }
 0x6bd   : > { %v1511_v2 = vmul.f32 %v2565_v62, %v1510_v1  ;;  %v1508_v5 = vsel %vm1507_vm3, %v2563_v37, %v1504_v51  ;;  %v2427_v37 = vld [vmem:[%s2690_s23] sm:$0xff] }
 0x6be   : > { %v1539_v0 = vmul.f32 %v1508_v5, %v3096_v52  ;;  %1833 = vmatpush.bf16.msrb.mxu3 %v2427_v37 }
 0x6bf   : > { %v1512_v3 = vmul.f32 0.5, %v1511_v2 }
 0x6c0   : > { %v1546_v14 = vmul.f32 %v2487_v12, %v1539_v0  ;;  %1852 = vmatpush.bf16.msra.mxu0 %v2435_v55 }
 0x6c1   : > { %v1513_v59 = vsub.f32 1.5, %v1512_v3 }
 0x6c3   : > { %v1514_v53 = vmul.f32 %v2565_v62, %v1513_v59 }
 0x6c5   : > { %v1518_v47 = vsel %vm1517_vm6, %v2565_v62, %v1514_v53 }
 0x6c6   : > { %v1540_v13 = vmul.f32 %v1518_v47, %v3101_v54 }
 0x6c8   : > { %v1547_v21 = vmul.f32 %v2487_v12, %v1540_v13 }
 0x6ca   : > { %v1550_v9 = vpack.c.bf16 %v1547_v21, %v1546_v14 }
 0x6cc   : > { %1656 = vmatmul.bf16.vlgmr.msrb.gmra.mxu1 %v1550_v9  ;;  %1675 = vmatmul.bf16.vlgmr.msra.gmra.mxu2 %v1550_v9 }
 0x6e5   : > { %v1488_v11 = vpop.xlane.xlu2 %1487 }
 0x6e6   : > { %v1493_v22 = vmul.f32 %v1488_v11, %v2771_v15 }
 0x6e8   : > { %v1497_v44 = vadd.f32 1e-06, %v1493_v22 }
 0x6ea   : > { %2566 = vrsqrt.f32 %v1497_v44  ;;  %vm1525_vm8 = vweird.f32 %v1497_v44 }
 0x6ed   : > { %v1490_v23 = vpop.xlane.xlu1 %1489 }
 0x6ee   : > { %v1494_v24 = vmul.f32 %v1490_v23, %v2771_v15 }
 0x6f0   : > { %v2567_v26 = vpop.eup %2566  ;;  %v1498_v10 = vadd.f32 1e-06, %v1494_v24 }
 0x6f1   : > { %v1520_v27 = vmul.f32 %v2567_v26, %v1497_v44  ;;  %vm1526_vm7 = vweird.f32 %v2567_v26 }
 0x6f2   : > { %2568 = vrsqrt.f32 %v1498_v10  ;;  %vm1527_vm9 = vmor %vm1525_vm8, %vm1526_vm7  ;;  %vm1535_vm11 = vweird.f32 %v1498_v10 }
 0x6f3   : > { %v1521_v39 = vmul.f32 %v2567_v26, %v1520_v27 }
 0x6f5   : > { %v1522_v31 = vmul.f32 0.5, %v1521_v39 }
 0x6f7   : > { %v1523_v8 = vsub.f32 1.5, %v1522_v31 }
 0x6f8   : > { %v2569_v32 = vpop.eup %2568 }
 0x6f9   : > { %v1530_v45 = vmul.f32 %v2569_v32, %v1498_v10  ;;  %v1524_v35 = vmul.f32 %v2567_v26, %v1523_v8  ;;  %vm1536_vm10 = vweird.f32 %v2569_v32 }
 0x6fa   : > { %vm1537_vm12 = vmor %vm1535_vm11, %vm1536_vm10 }
 0x6fb   : > { %v1531_v34 = vmul.f32 %v2569_v32, %v1530_v45  ;;  %v1528_v57 = vsel %vm1527_vm9, %v2567_v26, %v1524_v35 }
 0x6fc   : > { %v1541_v41 = vmul.f32 %v1528_v57, %v3106_v4 }
 0x6fd   : > { %v1532_v20 = vmul.f32 0.5, %v1531_v34 }
 0x6fe   : > { %v1548_v30 = vmul.f32 %v2487_v12, %v1541_v41 }
 0x6ff   : > { %v1533_v63 = vsub.f32 1.5, %v1532_v20 }
 0x701   : > { %v1534_v40 = vmul.f32 %v2569_v32, %v1533_v63 }
 0x703   : > { %v1538_v7 = vsel %vm1537_vm12, %v2569_v32, %v1534_v40 }
 0x704   : > { %v1542_v16 = vmul.f32 %v1538_v7, %v3111_v6 }
 0x706   : > { %v1549_v25 = vmul.f32 %v2487_v12, %v1542_v16 }
 0x708   : > { %v1551_v38 = vpack.c.bf16 %v1549_v25, %v1548_v30 }
 0x70a   : > { %1661 = vmatmul.bf16.gmra.mxu1 %v1551_v38  ;;  %1680 = vmatmul.bf16.gmra.mxu2 %v1551_v38 }
 0x749   : > { %v1657_v58 = vpop.f32.mrf.mxu1 }
 0x74a   : > { %v1686_v62 = vmax.f32 %v1657_v58, 0.0 }
 0x74f   : > { %v1676_v33 = vpop.f32.mrf.mxu2 }
 0x750   : > { %v1687_v3 = vmax.f32 %v1676_v33, 0.0 }
 0x751   : > { %v1659_v61 = vpop.f32.mrf.mxu1 }
 0x752   : > { %v1688_v1 = vmax.f32 %v1659_v61, 0.0 }
 0x754   : > { %v1694_v51 = vpack.c.bf16 %v1688_v1, %v1686_v62 }
 0x756   : > { %1834 = vmatmul.bf16.vlgmr.msrb.gmra.mxu3 %v1694_v51 }
 0x757   : > { %v1678_v2 = vpop.f32.mrf.mxu2 }
 0x758   : > { %v1689_v5 = vmax.f32 %v1678_v2, 0.0 }
 0x75a   : > { %v1695_v59 = vpack.c.bf16 %v1689_v5, %v1687_v3 }
 0x75c   : > { %1853 = vmatmul.bf16.vlgmr.msra.gmra.mxu0 %v1695_v59 }
 0x787   : > { %v1662_v53 = vpop.f32.mrf.mxu1 }
 0x788   : > { %v1690_v47 = vmax.f32 %v1662_v53, 0.0 }
 0x78d   : > { %v1681_v0 = vpop.f32.mrf.mxu2 }
 0x78e   : > { %v1691_v9 = vmax.f32 %v1681_v0, 0.0 }
 0x78f   : > { %v1664_v12 = vpop.f32.mrf.mxu1 }
 0x790   : > { %v1692_v13 = vmax.f32 %v1664_v12, 0.0 }
 0x792   : > { %v1696_v14 = vpack.c.bf16 %v1692_v13, %v1690_v47 }
 0x794   : > { %1839 = vmatmul.bf16.gmra.mxu3 %v1696_v14 }
 0x795   : > { %v1683_v21 = vpop.f32.mrf.mxu2 }
 0x796   : > { %v1693_v11 = vmax.f32 %v1683_v21, 0.0 }
 0x798   : > { %v1697_v22 = vpack.c.bf16 %v1693_v11, %v1691_v9 }
 0x79a   : > { %1858 = vmatmul.bf16.gmra.mxu0 %v1697_v22 }
 0x7d9   : > { %v1835_v44 = vpop.f32.mrf.mxu3  ;;  %v1854_v17 = vpop.f32.mrf.mxu0 }
 0x7da   : > { %v1855_v18 = vadd.f32 %v1854_v17, %v1835_v44 }
 0x7dc   : > { %v3177_v50 = vadd.f32 %v1855_v18, %v3096_v52 }
 0x7de   : > { %1868 = vst [vmem:[#allocation2 + $0x10] sm:$0xff] %v3177_v50 }
 0x7e1   : > { %v1837_v43 = vpop.f32.mrf.mxu3  ;;  %v1856_v23 = vpop.f32.mrf.mxu0 }
 0x7e2   : > { %v1857_v24 = vadd.f32 %v1856_v23, %v1837_v43 }
 0x7e4   : > { %v3181_v26 = vadd.f32 %v1857_v24, %v3101_v54 }
 0x7e6   : > { %1869 = vst [vmem:[#allocation2] sm:$0xff] %v3181_v26 }
 0x817   : > { %v1840_v10 = vpop.f32.mrf.mxu3  ;;  %v1859_v46 = vpop.f32.mrf.mxu0 }
 0x818   : > { %v1860_v28 = vadd.f32 %v1859_v46, %v1840_v10 }
 0x81a   : > { %v1866_v27 = vadd.f32 %v1860_v28, %v3106_v4 }
 0x81c   : > { %1870 = vst [vmem:[#allocation2 + $0x18] sm:$0xff] %v1866_v27 }
 0x81f   : > { %v1842_v39 = vpop.f32.mrf.mxu3  ;;  %v1861_v29 = vpop.f32.mrf.mxu0 }
 0x820   : > { %v1862_v52 = vadd.f32 %v1861_v29, %v1842_v39  ;;  %1875 = sbr.rel (%p2372_p6) target bundleno = 2239 (0x8bf), region = 64 }
 0x822   : > { %v3186_v31 = vadd.f32 %v1862_v52, %v3111_v6 }
 0x824   : > { %1871 = vst [vmem:[#allocation2 + $0x8] sm:$0xff] %v3186_v31 }
 0x825   : > { %v1879_v54 = vmul.f32 %v1866_v27, %v1866_v27  ;;  %v1877_v8 = vmul.f32 %v3177_v50, %v3177_v50  ;;  %v1880_v4 = vmul.f32 %v3186_v31, %v3186_v31  ;;  %v1878_v32 = vmul.f32 %v3181_v26, %v3181_v26  ;;  %v2570_v61 = vld [vmem:[%s3229_s8] ss:$0 sm:$0xff] }
 0x827   : > { %1885 = vadd.xlane.f32.xlu1 %v1879_v54  ;;  %1881 = vadd.xlane.f32.xlu0 %v1877_v8 }
 0x82f   : > { %1887 = vadd.xlane.f32.xlu1 %v1880_v4  ;;  %1883 = vadd.xlane.f32.xlu0 %v1878_v32 }
 0x89a   : > { %v1886_v6 = vpop.xlane.xlu1 %1885  ;;  %v1882_v56 = vpop.xlane.xlu0 %1881 }
 0x89b   : > { %v1891_v45 = vmul.f32 %v1886_v6, %v2771_v15  ;;  %v1889_v35 = vmul.f32 %v1882_v56, %v2771_v15 }
 0x89d   : > { %v1895_v34 = vadd.f32 1e-06, %v1891_v45  ;;  %v1893_v20 = vadd.f32 1e-06, %v1889_v35 }
 0x89f   : > { %2571 = vrsqrt.f32 %v1895_v34  ;;  %vm1923_vm15 = vweird.f32 %v1895_v34  ;;  %vm1903_vm1 = vweird.f32 %v1893_v20 }
 0x8a0   : > { %2573 = vrsqrt.f32 %v1893_v20 }
 0x8a2   : > { %v1888_v63 = vpop.xlane.xlu1 %1887  ;;  %v1884_v57 = vpop.xlane.xlu0 %1883 }
 0x8a3   : > { %v1892_v40 = vmul.f32 %v1888_v63, %v2771_v15  ;;  %v1890_v41 = vmul.f32 %v1884_v57, %v2771_v15 }
 0x8a5   : > { %v2572_v7 = vpop.eup %2571  ;;  %v1896_v16 = vadd.f32 1e-06, %v1892_v40  ;;  %v1894_v30 = vadd.f32 1e-06, %v1890_v41 }
 0x8a6   : > { %v2574_v25 = vpop.eup %2573  ;;  %v1918_v38 = vmul.f32 %v2572_v7, %v1895_v34  ;;  %vm1924_vm13 = vweird.f32 %v2572_v7 }
 0x8a7   : > { %v1898_v48 = vmul.f32 %v2574_v25, %v1893_v20  ;;  %2575 = vrsqrt.f32 %v1896_v16  ;;  %vm1904_vm14 = vweird.f32 %v2574_v25  ;;  %vm1925_vm0 = vmor %vm1923_vm15, %vm1924_vm13  ;;  %vm1933_vm5 = vweird.f32 %v1896_v16 }
 0x8a8   : > { %v1919_v49 = vmul.f32 %v2572_v7, %v1918_v38  ;;  %2577 = vrsqrt.f32 %v1894_v30  ;;  %vm1905_vm2 = vmor %vm1903_vm1, %vm1904_vm14  ;;  %vm1913_vm7 = vweird.f32 %v1894_v30 }
 0x8a9   : > { %v1899_v60 = vmul.f32 %v2574_v25, %v1898_v48 }
 0x8aa   : > { %v1920_v36 = vmul.f32 0.5, %v1919_v49 }
 0x8ab   : > { %v1900_v42 = vmul.f32 0.5, %v1899_v60 }
 0x8ac   : > { %v1921_v37 = vsub.f32 1.5, %v1920_v36 }
 0x8ad   : > { %v2576_v19 = vpop.eup %2575  ;;  %v1901_v55 = vsub.f32 1.5, %v1900_v42 }
 0x8ae   : > { %v2578_v58 = vpop.eup %2577  ;;  %v1922_v33 = vmul.f32 %v2572_v7, %v1921_v37  ;;  %v1928_v15 = vmul.f32 %v2576_v19, %v1896_v16  ;;  %vm1934_vm3 = vweird.f32 %v2576_v19 }
 0x8af   : > { %v1902_v62 = vmul.f32 %v2574_v25, %v1901_v55  ;;  %v1908_v1 = vmul.f32 %v2578_v58, %v1894_v30  ;;  %vm1914_vm4 = vweird.f32 %v2578_v58  ;;  %vm1935_vm6 = vmor %vm1933_vm5, %vm1934_vm3 }
 0x8b0   : > { %v1926_v51 = vsel %vm1925_vm0, %v2572_v7, %v1922_v33  ;;  %v1929_v2 = vmul.f32 %v2576_v19, %v1928_v15  ;;  %vm1915_vm8 = vmor %vm1913_vm7, %vm1914_vm4 }
 0x8b1   : > { %v1939_v3 = vmul.f32 %v1926_v51, %v1866_v27  ;;  %v1906_v5 = vsel %vm1905_vm2, %v2574_v25, %v1902_v62  ;;  %v1909_v59 = vmul.f32 %v2578_v58, %v1908_v1 }
 0x8b2   : > { %v1937_v53 = vmul.f32 %v1906_v5, %v3177_v50  ;;  %v1930_v0 = vmul.f32 0.5, %v1929_v2 }
 0x8b3   : > { %v1946_v12 = vmul.f32 %v2570_v61, %v1939_v3  ;;  %v1910_v47 = vmul.f32 0.5, %v1909_v59 }
 0x8b4   : > { %v1944_v13 = vmul.f32 %v2570_v61, %v1937_v53  ;;  %v1931_v14 = vsub.f32 1.5, %v1930_v0 }
 0x8b5   : > { %1950 = vst [vmem:[%s3231_s10 + $0x10] sm:$0xff] %v1946_v12  ;;  %v1911_v21 = vsub.f32 1.5, %v1910_v47 }
 0x8b6   : > { %1948 = vst [vmem:[%s3231_s10] sm:$0xff] %v1944_v13  ;;  %v1932_v9 = vmul.f32 %v2576_v19, %v1931_v14 }
 0x8b7   : > { %v1912_v11 = vmul.f32 %v2578_v58, %v1911_v21 }
 0x8b8   : > { %v1936_v22 = vsel %vm1935_vm6, %v2576_v19, %v1932_v9 }
 0x8b9   : > { %v1940_v44 = vmul.f32 %v1936_v22, %v3186_v31  ;;  %v1916_v17 = vsel %vm1915_vm8, %v2578_v58, %v1912_v11 }
 0x8ba   : > { %v1938_v18 = vmul.f32 %v1916_v17, %v3181_v26 }
 0x8bb   : > { %v1947_v50 = vmul.f32 %v2570_v61, %v1940_v44 }
 0x8bc   : > { %v1945_v43 = vmul.f32 %v2570_v61, %v1938_v18 }
 0x8bd   : > { %1951 = vst [vmem:[%s3231_s10 + $0x18] sm:$0xff] %v1947_v50 }
 0x8be   : > { %1949 = vst [vmem:[%s3231_s10 + $0x8] sm:$0xff] %v1945_v43 }
 0x8bf PF: > { %s3235_s26 = sld [smem:[#allocation3_spill]] }
 0x8c5   : > { %s21_s13 = sadd.s32 1, %s3235_s26  }
 0x8c6   : > { %p18_p7 = scmp.ge.s32.totalorder %s21_s13, 4  }
 0x8c8   :  { %20 = sbr.rel (!%p18_p7) target bundleno = 1 (0x1), region = 124 }

// kernel: forward_with_hydra.5
= control target key start
LH: loop header
LB: loop body
LE: loop exit
PB: predicated region body
PF: predicated region fallthrough
CT: control target
= control target key end

     0   :  { %s4001_s0 = inlined_call_operand.vmem [shape: f32[2,8,128], index: 0, kind: input, shape index: {}]   ;;  %s4002_s1 = inlined_call_operand.vmem [shape: f32[2,16,128], index: 1, kind: input, shape index: {}]   ;;  %s4003_s2 = inlined_call_operand.vmem [shape: f32[8,8,8], index: 2, kind: input, shape index: {}]   ;;  %s4004_s3 = inlined_call_operand.vmem [shape: f32[2,1,16], index: 3, kind: input, shape index: {}]   ;;  %s4005_s4 = inlined_call_operand.vmem [shape: f32[1,1,128], index: 4, kind: input, shape index: {}]   ;;  %s4006_s5 = inlined_call_operand.vmem [shape: bf16[1,128,384], index: 5, kind: input, shape index: {}]   ;;  %s4007_s6 = inlined_call_operand.vmem [shape: bf16[1,128,128], index: 6, kind: input, shape index: {}]   ;;  %s4008_s7 = inlined_call_operand.vmem [shape: f32[1,1,128], index: 7, kind: input, shape index: {}]   ;;  %s4009_s8 = inlined_call_operand.vmem [shape: bf16[1,128,128], index: 8, kind: input, shape index: {}]   ;;  %s4010_s9 = inlined_call_operand.vmem [shape: bf16[1,128,256], index: 9, kind: input, shape index: {}]   ;;  %s4011_s10 = inlined_call_operand.vmem [shape: bf16[1,128,128], index: 10, kind: input, shape index: {}]   ;;  %s4012_s11 = inlined_call_operand.vmem [shape: f32[1,1,128], index: 11, kind: input, shape index: {}]   ;;  %s4013_s12 = inlined_call_operand.vmem [shape: bf16[1,128,256], index: 12, kind: input, shape index: {}]   ;;  %s4014_s13 = inlined_call_operand.vmem [shape: bf16[1,256,128], index: 13, kind: input, shape index: {}]   ;;  %s4015_s14 = inlined_call_operand.vmem [shape: f32[1,128], index: 14, kind: input, shape index: {}]   ;;  %s4016_s15 = inlined_call_operand.vmem [shape: bf16[128,256], index: 15, kind: input, shape index: {}]   ;;  %s4017_s16 = inlined_call_operand.hbm [shape: f32[2,8,128], index: 16, kind: output, shape index: {0}]   ;;  %s4018_s17 = inlined_call_operand.hbm [shape: f32[2,8,256], index: 17, kind: output, shape index: {1}]  }
   0x1   :  { %4021 = sst [smem:[#allocation9_spill]] %s4001_s0 }
   0x2   :  { %4022 = sst [smem:[#allocation10_spill]] %s4002_s1 }
   0x3   :  { %23 = vsyncpa [#allocation4], 0  ;;  %s4023_s26 = sld [smem:[#allocation9_spill]] }
   0x9   :  { %v3121_v0 = vld [vmem:[%s4023_s26] sm:$0xff]  ;;  %v3129_v2 = vld [vmem:[%s4023_s26 + $0x8] sm:$0xff] }
   0xa   :  { %v77_v1 = vmul.f32 %v3121_v0, %v3121_v0  ;;  %68 = vst [vmem:[#allocation3] sm:$0xff] %v3121_v0 }
   0xb   :  { %69 = vst [vmem:[#allocation3 + $0x8] sm:$0xff] %v3129_v2 }
   0xc   :  { %79 = vadd.xlane.f32.xlu0 %v77_v1 }
   0xd   :  { %24 = vsyncpa [#allocation6], 0  ;;  %v78_v3 = vmul.f32 %v3129_v2, %v3129_v2  ;;  %v2325_v4 = vld [vmem:[%s4006_s5 + $0xa8] sm:$0xf]  ;;  %v2748_v5 = vld [vmem:[%s4006_s5 + $0xb0] sm:$0xf0] }
   0xe   :  { %v2747_v6 = vld [vmem:[%s4006_s5 + $0xac] sm:$0xf]  ;;  %v2326_v7 = vor.u32 %v2748_v5, %v2325_v4  ;;  %v2327_v8 = vld [vmem:[%s4006_s5 + $0xb4] sm:$0xf0]  ;;  %v2333_v9 = vld [vmem:[%s4006_s5 + $0xb0] sm:$0xf] }
   0xf   :  { %v2749_v10 = vld [vmem:[%s4006_s5 + $0xb8] sm:$0xf0]  ;;  %v3018_v11 = vmov 128.0   ;;  %v2330_v12 = vor.u32 %v2747_v6, %v2327_v8  ;;  %v2313_v14 = vld [vmem:[%s4006_s5 + $0x90] sm:$0xf]  ;;  %vm333_vm7 = vcmask 261120  }
  0x10   :  { %2884 = vrcp.f32 %v3018_v11  ;;  %v2334_v13 = vor.u32 %v2749_v10, %v2333_v9  ;;  %282 = vmatpush.bf16.msra.mxu0 %v2326_v7  ;;  %v2745_v15 = vld [vmem:[%s4006_s5 + $0x98] sm:$0xf0]  ;;  %v2744_v16 = vld [vmem:[%s4006_s5 + $0x94] sm:$0xf]  ;;  %v2315_v18 = vld [vmem:[%s4006_s5 + $0x9c] sm:$0xf0] }
  0x11   :  { %296 = vmatpush.bf16.msra.mxu1 %v2330_v12  ;;  %v2314_v17 = vor.u32 %v2745_v15, %v2313_v14  ;;  %v2321_v19 = vld [vmem:[%s4006_s5 + $0x98] sm:$0xf]  ;;  %v2746_v20 = vld [vmem:[%s4006_s5 + $0xa0] sm:$0xf0]  ;;  %v2318_v21 = vor.u32 %v2744_v16, %v2315_v18  ;;  %v2741_v26 = vld [vmem:[%s4006_s5 + $0x7c] sm:$0xf] }
  0x12   :  { %310 = vmatpush.bf16.msra.mxu2 %v2334_v13  ;;  %v2322_v22 = vor.u32 %v2746_v20, %v2321_v19  ;;  %v2301_v24 = vld [vmem:[%s4006_s5 + $0x78] sm:$0xf]  ;;  %v2742_v25 = vld [vmem:[%s4006_s5 + $0x80] sm:$0xf0]  ;;  %v2303_v28 = vld [vmem:[%s4006_s5 + $0x84] sm:$0xf0] }
  0x13   :  { %v2302_v27 = vor.u32 %v2742_v25, %v2301_v24  ;;  %v2309_v29 = vld [vmem:[%s4006_s5 + $0x80] sm:$0xf]  ;;  %v2743_v30 = vld [vmem:[%s4006_s5 + $0x88] sm:$0xf0]  ;;  %v2306_v31 = vor.u32 %v2741_v26, %v2303_v28  ;;  %v2738_v36 = vld [vmem:[%s4006_s5 + $0x64] sm:$0xf] }
  0x14   :  { %81 = vadd.xlane.f32.xlu0 %v78_v3  ;;  %283 = vmatpush.bf16.msra.mxu0 %v2314_v17  ;;  %v2310_v32 = vor.u32 %v2743_v30, %v2309_v29  ;;  %v2289_v34 = vld [vmem:[%s4006_s5 + $0x60] sm:$0xf]  ;;  %v2739_v35 = vld [vmem:[%s4006_s5 + $0x68] sm:$0xf0]  ;;  %v2291_v38 = vld [vmem:[%s4006_s5 + $0x6c] sm:$0xf0] }
  0x15   :  { %297 = vmatpush.bf16.msra.mxu1 %v2318_v21  ;;  %v2290_v37 = vor.u32 %v2739_v35, %v2289_v34  ;;  %v2297_v39 = vld [vmem:[%s4006_s5 + $0x68] sm:$0xf]  ;;  %v2740_v40 = vld [vmem:[%s4006_s5 + $0x70] sm:$0xf0]  ;;  %v2294_v41 = vor.u32 %v2738_v36, %v2291_v38  ;;  %v2735_v46 = vld [vmem:[%s4006_s5 + $0x4c] sm:$0xf] }
  0x16   :  { %v3170_v23 = vpop.eup %2884  ;;  %311 = vmatpush.bf16.msra.mxu2 %v2322_v22  ;;  %v2298_v42 = vor.u32 %v2740_v40, %v2297_v39  ;;  %v2277_v44 = vld [vmem:[%s4006_s5 + $0x48] sm:$0xf]  ;;  %v2736_v45 = vld [vmem:[%s4006_s5 + $0x50] sm:$0xf0]  ;;  %v2279_v48 = vld [vmem:[%s4006_s5 + $0x54] sm:$0xf0] }
  0x17   :  { %v84_v33 = vmul.f32 128.0, %v3170_v23  ;;  %v2278_v47 = vor.u32 %v2736_v45, %v2277_v44  ;;  %v2285_v49 = vld [vmem:[%s4006_s5 + $0x50] sm:$0xf]  ;;  %v2737_v50 = vld [vmem:[%s4006_s5 + $0x58] sm:$0xf0]  ;;  %v2282_v51 = vor.u32 %v2735_v46, %v2279_v48  ;;  %vm88_vm0 = vweird.f32 %v3170_v23  ;;  %s3019_s21 = smov 64  }
  0x18   :  { %284 = vmatpush.bf16.msra.mxu0 %v2302_v27  ;;  %v2286_v52 = vor.u32 %v2737_v50, %v2285_v49  ;;  %v2265_v54 = vld [vmem:[%s4006_s5 + $0x30] sm:$0xf]  ;;  %v2733_v55 = vld [vmem:[%s4006_s5 + $0x38] sm:$0xf0]  ;;  %v2732_v56 = vld [vmem:[%s4006_s5 + $0x34] sm:$0xf] }
  0x19   :  { %298 = vmatpush.bf16.msra.mxu1 %v2306_v31  ;;  %v85_v43 = vsub.f32 1.0, %v84_v33  ;;  %v2266_v57 = vor.u32 %v2733_v55, %v2265_v54  ;;  %v2267_v58 = vld [vmem:[%s4006_s5 + $0x3c] sm:$0xf0]  ;;  %v2273_v59 = vld [vmem:[%s4006_s5 + $0x38] sm:$0xf]  ;;  %s3020_s22 = smov 96  }
  0x1a   :  { %312 = vmatpush.bf16.msra.mxu2 %v2310_v32  ;;  %v2734_v60 = vld [vmem:[%s4006_s5 + $0x40] sm:$0xf0]  ;;  %v2270_v61 = vor.u32 %v2732_v56, %v2267_v58  ;;  %v2253_v1 = vld [vmem:[%s4006_s5 + $0x18] sm:$0xf]  ;;  %v2729_v4 = vld [vmem:[%s4006_s5 + $0x1c] sm:$0xf] }
  0x1b   :  { %v86_v53 = vmul.f32 %v3170_v23, %v85_v43  ;;  %v2274_v62 = vor.u32 %v2734_v60, %v2273_v59  ;;  %v2730_v3 = vld [vmem:[%s4006_s5 + $0x20] sm:$0xf0]  ;;  %v2255_v6 = vld [vmem:[%s4006_s5 + $0x24] sm:$0xf0]  ;;  %v2261_v7 = vld [vmem:[%s4006_s5 + $0x20] sm:$0xf] }
  0x1c   :  { %285 = vmatpush.bf16.msra.mxu0 %v2290_v37  ;;  %v2254_v5 = vor.u32 %v2730_v3, %v2253_v1  ;;  %v2731_v8 = vld [vmem:[%s4006_s5 + $0x28] sm:$0xf0]  ;;  %v2258_v9 = vor.u32 %v2729_v4, %v2255_v6  ;;  %v2241_v12 = vld [vmem:[%s4006_s5] sm:$0xf]  ;;  %v2726_v14 = vld [vmem:[%s4006_s5 + $0x4] sm:$0xf] }
  0x1d   :  { %299 = vmatpush.bf16.msra.mxu1 %v2294_v41  ;;  %v87_v63 = vadd.f32 %v3170_v23, %v86_v53  ;;  %v2262_v10 = vor.u32 %v2731_v8, %v2261_v7  ;;  %v2727_v13 = vld [vmem:[%s4006_s5 + $0x8] sm:$0xf0]  ;;  %v2243_v16 = vld [vmem:[%s4006_s5 + $0xc] sm:$0xf0]  ;;  %v2249_v17 = vld [vmem:[%s4006_s5 + $0x8] sm:$0xf] }
  0x1e   :  { %313 = vmatpush.bf16.msra.mxu2 %v2298_v42  ;;  %v2242_v15 = vor.u32 %v2727_v13, %v2241_v12  ;;  %v2728_v18 = vld [vmem:[%s4006_s5 + $0x10] sm:$0xf0]  ;;  %v2246_v20 = vor.u32 %v2726_v14, %v2243_v16  ;;  %v2878_v41 = vld [vmem:[%s4005_s4] ss:$0 sm:$0xff]  ;;  %vm370_vm8 = vcmask 1043456   ;;  %s3021_s4 = smov 32  }
  0x1f   :  { %v3267_v11 = vsel %vm88_vm0, %v3170_v23, %v87_v63  ;;  %v2250_v21 = vor.u32 %v2728_v18, %v2249_v17  ;;  %v324_v8 = vld [vmem:[%s4003_s2] sm:$0xff]  ;;  %vm353_vm9 = vcmask 64512   ;;  %v2336_v16 = vld [vmem:[%s4003_s2 + $0x10] sm:$0xff]  ;;  %vm571_vm10 = vcmask 523264   ;;  %s4024_s26 = sld [smem:[#allocation10_spill]]  ;;  %s2209_s5 = sshll.u32 %s4017_s16, 4  ;;  %s2210_s5 = int_to_ptr.hbm [resolvable:$true] %s2209_s5 }
  0x20   :  { %286 = vmatpush.bf16.msra.mxu0 %v2278_v47  ;;  %vm573_vm11 = vcmask 785408   ;;  %s3024_s20 = smov 8   ;;  %s2222_s24 = sshll.u32 %s4018_s17, 4  ;;  %s2223_s24 = int_to_ptr.hbm [resolvable:$true] %s2222_s24 }
  0x21   :  { %300 = vmatpush.bf16.msra.mxu1 %v2282_v51  ;;  %s3026_s16 = smov 256  }
  0x22   :  { %314 = vmatpush.bf16.msra.mxu2 %v2286_v52 }
  0x24   :  { %287 = vmatpush.bf16.msra.mxu0 %v2266_v57 }
  0x25   :  { %301 = vmatpush.bf16.msra.mxu1 %v2270_v61 }
  0x26   :  { %315 = vmatpush.bf16.msra.mxu2 %v2274_v62 }
  0x28   :  { %288 = vmatpush.bf16.msra.mxu0 %v2254_v5 }
  0x29   :  { %302 = vmatpush.bf16.msra.mxu1 %v2258_v9 }
  0x2a   :  { %316 = vmatpush.bf16.msra.mxu2 %v2262_v10 }
  0x2c   :  { %289 = vmatpush.bf16.msra.mxu0 %v2242_v15 }
  0x2d   :  { %303 = vmatpush.bf16.msra.mxu1 %v2246_v20 }
  0x2e   :  { %317 = vmatpush.bf16.msra.mxu2 %v2250_v21 }
  0x7f   :  { %v80_v19 = vpop.xlane.xlu0 %79 }
  0x80   :  { %v90_v22 = vmul.f32 %v3267_v11, %v80_v19 }
  0x82   :  { %v92_v23 = vadd.f32 1e-06, %v90_v22 }
  0x84   :  { %2886 = vrsqrt.f32 %v92_v23  ;;  %vm100_vm2 = vweird.f32 %v92_v23 }
  0x87   :  { %v82_v24 = vpop.xlane.xlu0 %81 }
  0x88   :  { %v91_v25 = vmul.f32 %v3267_v11, %v82_v24 }
  0x8a   :  { %v2887_v26 = vpop.eup %2886  ;;  %v93_v27 = vadd.f32 1e-06, %v91_v25 }
  0x8b   :  { %v95_v28 = vmul.f32 %v2887_v26, %v92_v23  ;;  %vm101_vm1 = vweird.f32 %v2887_v26 }
  0x8c   :  { %2888 = vrsqrt.f32 %v93_v27  ;;  %vm102_vm3 = vmor %vm100_vm2, %vm101_vm1  ;;  %vm110_vm5 = vweird.f32 %v93_v27  ;;  %vm1180_vm2 = vcmask 130048  }
  0x8d   :  { %v96_v29 = vmul.f32 %v2887_v26, %v95_v28  ;;  %v2348_v28 = vld [vmem:[%s4003_s2 + $0x30] sm:$0xff] }
  0x8f   :  { %v97_v30 = vmul.f32 0.5, %v96_v29 }
  0x91   :  { %v98_v31 = vsub.f32 1.5, %v97_v30 }
  0x92   :  { %v2889_v32 = vpop.eup %2888 }
  0x93   :  { %v105_v33 = vmul.f32 %v2889_v32, %v93_v27  ;;  %v99_v34 = vmul.f32 %v2887_v26, %v98_v31  ;;  %vm111_vm4 = vweird.f32 %v2889_v32 }
  0x94   :  { %vm112_vm6 = vmor %vm110_vm5, %vm111_vm4 }
  0x95   :  { %v106_v35 = vmul.f32 %v2889_v32, %v105_v33  ;;  %v103_v37 = vsel %vm102_vm3, %v2887_v26, %v99_v34  ;;  %v2346_v33 = vld [vmem:[%s4003_s2 + $0x20] sm:$0xff] }
  0x96   :  { %v114_v40 = vmul.f32 %v103_v37, %v3121_v0 }
  0x97   :  { %v107_v36 = vmul.f32 0.5, %v106_v35 }
  0x98   :  { %v119_v44 = vmul.f32 %v2878_v41, %v114_v40 }
  0x99   :  { %v108_v38 = vsub.f32 1.5, %v107_v36 }
  0x9b   :  { %v109_v39 = vmul.f32 %v2889_v32, %v108_v38 }
  0x9d   :  { %v113_v42 = vsel %vm112_vm6, %v2889_v32, %v109_v39 }
  0x9e   :  { %v115_v43 = vmul.f32 %v113_v42, %v3129_v2 }
  0xa0   :  { %v120_v45 = vmul.f32 %v2878_v41, %v115_v43 }
  0xa2   :  { %v121_v46 = vpack.c.bf16 %v120_v45, %v119_v44 }
  0xa4   :  { %290 = vmatmul.bf16.vlgmr.msra.gmra.mxu0 %v121_v46  ;;  %304 = vmatmul.bf16.vlgmr.msra.gmra.mxu1 %v121_v46 }
  0xa5   :  { %318 = vmatmul.bf16.vlgmr.msra.gmra.mxu2 %v121_v46 }
 0x121   :  { %v291_v47 = vpop.f32.mrf.mxu0  ;;  %v305_v48 = vpop.f32.mrf.mxu1 }
 0x122   :  { %v3294_v49 = vpack.c.bf16 %v305_v48, %v305_v48  ;;  %v331_v54 = vpack.c.bf16 %v291_v47, %v291_v47 }
 0x124   :  { %448 = vrot.lane.b32.xlu0 %v3294_v49, %s3019_s21  ;;  %391 = vrot.lane.b32.xlu2 %v3294_v49, %s3020_s22  ;;  %v338_v50 = vsel %vm333_vm7, %v3294_v49, 0 }
 0x125   :  { %347 = vmatpush.bf16.xpose.msra.mxu3 %v338_v50 }
 0x128   :  { %v319_v51 = vpop.f32.mrf.mxu2 }
 0x129   :  { %v3302_v52 = vpack.c.bf16 %v319_v51, %v319_v51  ;;  %v293_v53 = vpop.f32.mrf.mxu0  ;;  %v307_v57 = vpop.f32.mrf.mxu1  ;;  %v2335_v51 = vld [vmem:[%s4003_s2 + $0x8] sm:$0xff] }
 0x12a   :  { %v583_v55 = vpack.c.bf16 %v293_v53, %v293_v53  ;;  %v584_v58 = vpack.c.bf16 %v307_v57, %v307_v57 }
 0x12b   :  { %v372_v56 = vsel %vm370_vm8, %v3302_v52, 0 }
 0x12c   :  { %388 = vrot.lane.b32.xlu2 %v331_v54, %s3020_s22  ;;  %2338 = vmatmul.msk.bf16.vlgmr.msra.gmra.mxu3 %vm333_vm7, %v331_v54  ;;  %v589_v4 = vsel %vm333_vm7, %v584_v58, 0 }
 0x12d   :  { %381 = vmatpush.bf16.msrb.mxu3 %v372_v56  ;;  %637 = vrot.lane.b32.xlu0 %v583_v55, %s3020_s22 }
 0x134   :  { %446 = vrot.lane.b32.xlu2 %v331_v54, %s3019_s21 }
 0x135   :  { %695 = vrot.lane.b32.xlu0 %v583_v55, %s3019_s21 }
 0x13c   :  { %502 = vrot.lane.b32.xlu2 %v331_v54, %s3021_s4 }
 0x144   :  { %640 = vrot.lane.b32.xlu2 %v584_v58, %s3020_s22 }
 0x14c   :  { %697 = vrot.lane.b32.xlu2 %v584_v58, %s3019_s21 }
 0x154   :  { %751 = vrot.lane.b32.xlu2 %v583_v55, %s3021_s4 }
 0x17e   :  { %v392_v59 = vpop.permute.xlu2 %391 }
 0x17f   :  { %v397_v60 = vsel %vm333_vm7, %v392_v59, 0  ;;  %v2337_v59 = vld [vmem:[%s4003_s2 + $0x18] sm:$0xff] }
 0x180   :  { %406 = vmatpush.bf16.xpose.msra.mxu3 %v397_v60 }
 0x186   :  { %v389_v61 = vpop.permute.xlu2 %388 }
 0x18e   :  { %v447_v62 = vpop.permute.xlu2 %446 }
 0x196   :  { %v449_v63 = vpop.permute.xlu0 %448  ;;  %v503_v1 = vpop.permute.xlu2 %502 }
 0x197   :  { %v454_v3 = vsel %vm333_vm7, %v449_v63, 0 }
 0x198   :  { %463 = vmatpush.bf16.xpose.msrb.mxu1 %v454_v3 }
 0x19e   :  { %v641_v5 = vpop.permute.xlu2 %640 }
 0x19f   :  { %2342 = vmatmul.msk.bf16.vlgmr.msrb.gmra.mxu1 %vm333_vm7, %v447_v62  ;;  %v638_v13 = vpop.permute.xlu0 %637  ;;  %v646_v42 = vsel %vm333_vm7, %v641_v5, 0 }
 0x1a0   :  { %598 = vmatpush.bf16.xpose.msra.mxu1 %v589_v4 }
 0x1a6   :  { %v698_v6 = vpop.permute.xlu2 %697 }
 0x1a7   :  { %v703_v7 = vsel %vm333_vm7, %v698_v6, 0  ;;  %v696_v15 = vpop.permute.xlu0 %695 }
 0x1a8   :  { %712 = vmatpush.bf16.xpose.msrb.mxu1 %v703_v7  ;;  %v2349_v7 = vld [vmem:[%s4003_s2 + $0x38] sm:$0xff] }
 0x1ae   :  { %v752_v45 = vpop.permute.xlu2 %751 }
 0x1af   :  { %2350 = vmatmul.msk.bf16.vlgmr.msra.gmra.mxu1 %vm333_vm7, %v583_v55  ;;  %v349_v9 = vpop.f32.mrf.mxu3 }
 0x1b0   :  { %v350_v10 = vadd.f32 %v349_v9, %v324_v8 }
 0x1b2   :  { %v354_v12 = vsel %vm353_vm9, %v350_v10, -inf }
 0x1b3   :  { %355 = vmax.xlane.f32.xlu1 %v354_v12 }
 0x1b7   :  { %v351_v14 = vpop.f32.mrf.mxu3 }
 0x1bf   :  { %2354 = vmatmul.msk.bf16.vlgmr.msrb.gmra.mxu1 %vm333_vm7, %v696_v15 }
 0x21c   :  { %v465_v17 = vpop.f32.mrf.mxu1 }
 0x21d   :  { %v466_v18 = vadd.f32 %v2336_v16, %v465_v17 }
 0x21f   :  { %v469_v19 = vsel %vm353_vm9, %v466_v18, -inf }
 0x220   :  { %470 = vmax.xlane.f32.xlu0 %v469_v19 }
 0x224   :  { %v467_v20 = vpop.f32.mrf.mxu1 }
 0x226   :  { %v356_v21 = vpop.xlane.xlu1 %355 }
 0x227   :  { %v357_v22 = vsub.f32 %v350_v10, %v356_v21 }
 0x229   :  { %v358_v23 = vmul.f32 1.442695, %v357_v22 }
 0x22b   :  { %2890 = vpow2.f32 %v358_v23 }
 0x22c   :  { %v600_v24 = vpop.f32.mrf.mxu1 }
 0x22d   :  { %v601_v34 = vadd.f32 %v2346_v33, %v600_v24 }
 0x22f   :  { %v604_v35 = vsel %vm353_vm9, %v601_v34, -inf }
 0x231   :  { %v2891_v25 = vpop.eup %2890 }
 0x232   :  { %v360_v26 = vsel %vm353_vm9, %v2891_v25, 0.0 }
 0x233   :  { %361 = vadd.xlane.f32.xlu1 %v360_v26 }
 0x234   :  { %v602_v27 = vpop.f32.mrf.mxu1 }
 0x23c   :  { %v714_v29 = vpop.f32.mrf.mxu1 }
 0x23d   :  { %v3334_v30 = vadd.f32 %v2348_v28, %v714_v29 }
 0x23f   :  { %v718_v31 = vsel %vm353_vm9, %v3334_v30, -inf }
 0x240   :  { %719 = vmax.xlane.f32.xlu2 %v718_v31 }
 0x244   :  { %v716_v32 = vpop.f32.mrf.mxu1 }
 0x24c   :  { %504 = vrot.lane.b32.xlu1 %v3294_v49, %s3021_s4 }
 0x254   :  { %753 = vrot.lane.b32.xlu1 %v584_v58, %s3021_s4 }
 0x27e   :  { %605 = vmax.xlane.f32.xlu1 %v604_v35 }
 0x293   :  { %v471_v47 = vpop.xlane.xlu0 %470 }
 0x294   :  { %v472_v49 = vsub.f32 %v466_v18, %v471_v47 }
 0x296   :  { %v473_v50 = vmul.f32 1.442695, %v472_v49 }
 0x2a6   :  { %v362_v36 = vpop.xlane.xlu1 %361 }
 0x2a7   :  { %2892 = vrcp.f32 %v362_v36 }
 0x2a8   :  { %2894 = vpow2.f32 %v473_v50 }
 0x2ad   :  { %v2893_v37 = vpop.eup %2892 }
 0x2ae   :  { %v364_v38 = vmul.f32 %v2893_v37, %v2891_v25  ;;  %v3359_v56 = vpop.eup %2894 }
 0x2af   :  { %v475_v58 = vsel %vm353_vm9, %v3359_v56, 0.0 }
 0x2b0   :  { %v365_v39 = vpack.c.bf16 %v364_v38, %v364_v38 }
 0x2b2   :  { %2339 = vmatmul.msk.bf16.vlgmr.msrb.gmra.mxu3 %vm353_vm9, %v365_v39 }
 0x2b3   :  { %v720_v21 = vpop.xlane.xlu2 %719 }
 0x2b4   :  { %v721_v47 = vsub.f32 %v3334_v30, %v720_v21 }
 0x2be   :  { %v505_v40 = vpop.permute.xlu1 %504 }
 0x2bf   :  { %v510_v41 = vsel %vm333_vm7, %v505_v40, 0 }
 0x2c0   :  { %519 = vmatpush.bf16.xpose.msrb.mxu3 %v510_v41 }
 0x2c2   :  { %2340 = vmatmul.msk.bf16.vlgmr.msra.gmra.mxu3 %vm333_vm7, %v389_v61 }
 0x2c6   :  { %v754_v43 = vpop.permute.xlu1 %753 }
 0x2c7   :  { %v759_v44 = vsel %vm333_vm7, %v754_v43, 0 }
 0x2c8   :  { %655 = vmatpush.bf16.xpose.msra.mxu3 %v646_v42 }
 0x2d2   :  { %2344 = vmatmul.msk.bf16.vlgmr.msrb.gmra.mxu3 %vm333_vm7, %v503_v1  ;;  %v2347_v1 = vld [vmem:[%s4003_s2 + $0x28] sm:$0xff]  ;;  %s3027_s2 = smov 16  }
 0x2d3   :  { %768 = vmatpush.bf16.xpose.msrb.mxu3 %v759_v44 }
 0x2e2   :  { %2352 = vmatmul.msk.bf16.vlgmr.msra.gmra.mxu3 %vm333_vm7, %v638_v13 }
 0x2f1   :  { %v606_v13 = vpop.xlane.xlu1 %605 }
 0x2f2   :  { %2356 = vmatmul.msk.bf16.vlgmr.msrb.gmra.mxu3 %vm333_vm7, %v752_v45  ;;  %v607_v14 = vsub.f32 %v601_v34, %v606_v13  ;;  %v321_v34 = vpop.f32.mrf.mxu2 }
 0x2f3   :  { %v616_v38 = vpack.c.bf16 %v321_v34, %v321_v34 }
 0x2f4   :  { %v608_v15 = vmul.f32 1.442695, %v607_v14 }
 0x2f5   :  { %v621_v30 = vsel %vm370_vm8, %v616_v38, 0 }
 0x2f6   :  { %2896 = vpow2.f32 %v608_v15 }
 0x2fc   :  { %v3381_v16 = vpop.eup %2896 }
 0x2fd   :  { %v610_v17 = vsel %vm353_vm9, %v3381_v16, 0.0 }
 0x335   :  { %v3353_v46 = vpop.f32.mrf.mxu3 }
 0x33d   :  { %v385_v48 = vpop.f32.mrf.mxu3 }
 0x33e   :  { %v722_v48 = vmul.f32 1.442695, %v721_v47  ;;  %v2754_v47 = vld [vmem:[%s4007_s6 + $0x20] sm:$0xff] }
 0x345   :  { %v408_v53 = vpop.f32.mrf.mxu3 }
 0x346   :  { %v409_v54 = vadd.f32 %v2335_v51, %v408_v53 }
 0x348   :  { %v412_v55 = vsel %vm353_vm9, %v409_v54, -inf }
 0x349   :  { %413 = vmax.xlane.f32.xlu1 %v412_v55 }
 0x34d   :  { %v410_v57 = vpop.f32.mrf.mxu3 }
 0x351   :  { %476 = vadd.xlane.f32.xlu1 %v475_v58 }
 0x355   :  { %v521_v60 = vpop.f32.mrf.mxu3 }
 0x356   :  { %v522_v61 = vadd.f32 %v2337_v59, %v521_v60 }
 0x358   :  { %v525_v62 = vsel %vm353_vm9, %v522_v61, -inf }
 0x359   :  { %526 = vmax.xlane.f32.xlu2 %v525_v62 }
 0x35d   :  { %v523_v63 = vpop.f32.mrf.mxu3 }
 0x365   :  { %v657_v3 = vpop.f32.mrf.mxu3 }
 0x366   :  { %v658_v4 = vadd.f32 %v2347_v1, %v657_v3 }
 0x368   :  { %v661_v5 = vsel %vm353_vm9, %v658_v4, -inf }
 0x369   :  { %662 = vmax.xlane.f32.xlu0 %v661_v5 }
 0x36a   :  { %481 = vrot.lane.b32.xlu1 %v3302_v52, %s3019_s21 }
 0x36d   :  { %v659_v6 = vpop.f32.mrf.mxu3 }
 0x371   :  { %425 = vrot.lane.b32.xlu2 %v3302_v52, %s3020_s22 }
 0x375   :  { %v770_v8 = vpop.f32.mrf.mxu3 }
 0x376   :  { %v771_v9 = vadd.f32 %v2349_v7, %v770_v8 }
 0x378   :  { %v774_v10 = vsel %vm353_vm9, %v771_v9, -inf }
 0x379   :  { %775 = vmax.xlane.f32.xlu0 %v774_v10 }
 0x37d   :  { %v772_v12 = vpop.f32.mrf.mxu3 }
 0x38d   :  { %537 = vrot.lane.b32.xlu0 %v3302_v52, %s3021_s4 }
 0x39a   :  { %611 = vadd.xlane.f32.xlu2 %v610_v17 }
 0x3bc   :  { %v414_v18 = vpop.xlane.xlu1 %413 }
 0x3bd   :  { %v415_v19 = vsub.f32 %v409_v54, %v414_v18 }
 0x3bf   :  { %v416_v20 = vmul.f32 1.442695, %v415_v19 }
 0x3c1   :  { %2898 = vpow2.f32 %v416_v20 }
 0x3c4   :  { %v477_v52 = vpop.xlane.xlu1 %476 }
 0x3c7   :  { %v2899_v22 = vpop.eup %2898 }
 0x3c8   :  { %v418_v23 = vsel %vm353_vm9, %v2899_v22, 0.0 }
 0x3c9   :  { %419 = vadd.xlane.f32.xlu1 %v418_v23 }
 0x3cc   :  { %v527_v24 = vpop.xlane.xlu2 %526 }
 0x3cd   :  { %v528_v25 = vsub.f32 %v522_v61, %v527_v24 }
 0x3cf   :  { %v529_v26 = vmul.f32 1.442695, %v528_v25 }
 0x3d1   :  { %2900 = vpow2.f32 %v529_v26 }
 0x3d4   :  { %v426_v27 = vpop.permute.xlu2 %425 }
 0x3d5   :  { %v431_v28 = vsel %vm370_vm8, %v426_v27, 0 }
 0x3d6   :  { %440 = vmatpush.bf16.msrb.mxu2 %v431_v28 }
 0x3d7   :  { %v2901_v29 = vpop.eup %2900 }
 0x3d8   :  { %v531_v31 = vsel %vm353_vm9, %v2901_v29, 0.0 }
 0x3d9   :  { %532 = vadd.xlane.f32.xlu0 %v531_v31 }
 0x3dc   :  { %v663_v32 = vpop.xlane.xlu0 %662  ;;  %v482_v33 = vpop.permute.xlu1 %481 }
 0x3dd   :  { %v664_v35 = vsub.f32 %v658_v4, %v663_v32  ;;  %v487_v36 = vsel %vm370_vm8, %v482_v33, 0 }
 0x3de   :  { %496 = vmatpush.bf16.msra.mxu2 %v487_v36 }
 0x3df   :  { %v665_v37 = vmul.f32 1.442695, %v664_v35 }
 0x3e1   :  { %2902 = vpow2.f32 %v665_v37 }
 0x3e2   :  { %674 = vrot.lane.b32.xlu1 %v616_v38, %s3020_s22 }
 0x3e7   :  { %v2903_v39 = vpop.eup %2902 }
 0x3e8   :  { %v667_v40 = vsel %vm353_vm9, %v2903_v39, 0.0 }
 0x3e9   :  { %668 = vadd.xlane.f32.xlu0 %v667_v40 }
 0x3ec   :  { %v776_v41 = vpop.xlane.xlu0 %775 }
 0x3ed   :  { %v777_v42 = vsub.f32 %v771_v9, %v776_v41 }
 0x3ef   :  { %v778_v43 = vmul.f32 1.442695, %v777_v42 }
 0x3f1   :  { %2904 = vpow2.f32 %v778_v43  ;;  %v2757_v43 = vld [vmem:[%s4007_s6 + $0x38] sm:$0xff] }
 0x3f2   :  { %2906 = vpow2.f32 %v722_v48  ;;  %887 = vmatpush.bf16.msra.mxu1 %v2757_v43  ;;  %v2753_v48 = vld [vmem:[%s4007_s6 + $0x18] sm:$0xff]  ;;  %v72_v43 = vld [vmem:[%s4024_s26 + $0x10] sm:$0xff] }
 0x3f7   :  { %v2905_v44 = vpop.eup %2904 }
 0x3f8   :  { %v780_v45 = vsel %vm353_vm9, %v2905_v44, 0.0  ;;  %v2907_v51 = vpop.eup %2906 }
 0x3f9   :  { %781 = vadd.xlane.f32.xlu2 %v780_v45  ;;  %v724_v53 = vsel %vm353_vm9, %v2907_v51, 0.0  ;;  %v2755_v45 = vld [vmem:[%s4007_s6 + $0x28] sm:$0xff] }
 0x3fd   :  { %786 = vrot.lane.b32.xlu0 %v616_v38, %s3021_s4 }
 0x3ff   :  { %v538_v49 = vpop.permute.xlu0 %537 }
 0x400   :  { %v543_v50 = vsel %vm370_vm8, %v538_v49, 0  ;;  %v2752_v49 = vld [vmem:[%s4007_s6 + $0x10] sm:$0xff] }
 0x401   :  { %552 = vmatpush.bf16.msrb.mxu0 %v543_v50  ;;  %v2751_v50 = vld [vmem:[%s4007_s6 + $0x8] sm:$0xff] }
 0x40c   :  { %725 = vadd.xlane.f32.xlu1 %v724_v53 }
 0x40d   :  { %v612_v5 = vpop.xlane.xlu2 %611 }
 0x411   :  { %730 = vrot.lane.b32.xlu2 %v616_v38, %s3019_s21 }
 0x43c   :  { %v420_v54 = vpop.xlane.xlu1 %419 }
 0x43d   :  { %2908 = vrcp.f32 %v420_v54 }
 0x43e   :  { %2910 = vrcp.f32 %v477_v52 }
 0x443   :  { %v2909_v55 = vpop.eup %2908 }
 0x444   :  { %v422_v57 = vmul.f32 %v2909_v55, %v2899_v22  ;;  %v2911_v60 = vpop.eup %2910 }
 0x445   :  { %v479_v61 = vmul.f32 %v2911_v60, %v3359_v56 }
 0x446   :  { %v423_v58 = vpack.c.bf16 %v422_v57, %v422_v57 }
 0x447   :  { %v480_v4 = vpack.c.bf16 %v479_v61, %v479_v61 }
 0x448   :  { %2341 = vmatmul.msk.bf16.vlgmr.msrb.gmra.mxu2 %vm353_vm9, %v423_v58 }
 0x449   :  { %630 = vmatpush.bf16.msrb.mxu2 %v621_v30 }
 0x44c   :  { %v533_v59 = vpop.xlane.xlu0 %532 }
 0x44d   :  { %2912 = vrcp.f32 %v533_v59 }
 0x44e   :  { %2914 = vrcp.f32 %v612_v5 }
 0x453   :  { %v2913_v62 = vpop.eup %2912 }
 0x454   :  { %v535_v63 = vmul.f32 %v2913_v62, %v2901_v29  ;;  %v675_v1 = vpop.permute.xlu1 %674  ;;  %v2915_v8 = vpop.eup %2914 }
 0x455   :  { %v680_v3 = vsel %vm370_vm8, %v675_v1, 0  ;;  %v614_v9 = vmul.f32 %v2915_v8, %v3381_v16  ;;  %v2781_v8 = vld [vmem:[%s4010_s9 + $0x74] sm:$0xf0] }
 0x456   :  { %689 = vmatpush.bf16.msra.mxu0 %v680_v3  ;;  %v536_v6 = vpack.c.bf16 %v535_v63, %v535_v63 }
 0x457   :  { %v615_v12 = vpack.c.bf16 %v614_v9, %v614_v9 }
 0x458   :  { %2343 = vmatmul.msk.bf16.vlgmr.msra.gmra.mxu2 %vm353_vm9, %v480_v4  ;;  %2345 = vmatmul.msk.bf16.vlgmr.msrb.gmra.mxu0 %vm353_vm9, %v536_v6 }
 0x45c   :  { %v669_v7 = vpop.xlane.xlu0 %668 }
 0x45d   :  { %2916 = vrcp.f32 %v669_v7  ;;  %v2480_v7 = vld [vmem:[%s4010_s9 + $0x70] sm:$0xf] }
 0x45e   :  { %v2481_v9 = vor.u32 %v2781_v8, %v2480_v7 }
 0x460   :  { %1118 = vmatpush.bf16.msra.mxu3 %v2481_v9 }
 0x463   :  { %v2917_v56 = vpop.eup %2916 }
 0x464   :  { %v671_v10 = vmul.f32 %v2917_v56, %v2903_v39  ;;  %v2779_v56 = vld [vmem:[%s4010_s9 + $0x64] sm:$0xf0] }
 0x466   :  { %v672_v13 = vpack.c.bf16 %v671_v10, %v671_v10 }
 0x468   :  { %2351 = vmatmul.msk.bf16.vlgmr.msrb.gmra.mxu2 %vm353_vm9, %v615_v12  ;;  %2353 = vmatmul.msk.bf16.vlgmr.msra.gmra.mxu0 %vm353_vm9, %v672_v13  ;;  %v2464_v12 = vld [vmem:[%s4010_s9 + $0x50] sm:$0xf]  ;;  %v2777_v13 = vld [vmem:[%s4010_s9 + $0x54] sm:$0xf0] }
 0x46c   :  { %v782_v14 = vpop.xlane.xlu2 %781 }
 0x46d   :  { %2918 = vrcp.f32 %v782_v14  ;;  %v2465_v14 = vor.u32 %v2777_v13, %v2464_v12 }
 0x46f   :  { %v787_v15 = vpop.permute.xlu0 %786 }
 0x470   :  { %v792_v17 = vsel %vm370_vm8, %v787_v15, 0  ;;  %v2456_v15 = vld [vmem:[%s4010_s9 + $0x40] sm:$0xf] }
 0x471   :  { %801 = vmatpush.bf16.msrb.mxu0 %v792_v17  ;;  %v2775_v17 = vld [vmem:[%s4010_s9 + $0x44] sm:$0xf0] }
 0x473   :  { %v2919_v18 = vpop.eup %2918 }
 0x474   :  { %v784_v19 = vmul.f32 %v2919_v18, %v2905_v44  ;;  %v731_v20 = vpop.permute.xlu2 %730  ;;  %v2756_v44 = vld [vmem:[%s4007_s6 + $0x30] sm:$0xff]  ;;  %v2457_v18 = vor.u32 %v2775_v17, %v2456_v15 }
 0x475   :  { %v736_v21 = vsel %vm370_vm8, %v731_v20, 0  ;;  %888 = vmatpush.bf16.msra.mxu1 %v2756_v44  ;;  %v2773_v20 = vld [vmem:[%s4010_s9 + $0x34] sm:$0xf0] }
 0x476   :  { %v785_v16 = vpack.c.bf16 %v784_v19, %v784_v19  ;;  %745 = vmatpush.bf16.msra.mxu2 %v736_v21  ;;  %v2448_v19 = vld [vmem:[%s4010_s9 + $0x30] sm:$0xf]  ;;  %v73_v44 = vld [vmem:[%s4024_s26 + $0x18] sm:$0xff] }
 0x477   :  { %v2449_v21 = vor.u32 %v2773_v20, %v2448_v19 }
 0x478   :  { %2357 = vmatmul.msk.bf16.vlgmr.msrb.gmra.mxu0 %vm353_vm9, %v785_v16  ;;  %v2440_v16 = vld [vmem:[%s4010_s9 + $0x20] sm:$0xf] }
 0x479   :  { %889 = vmatpush.bf16.msra.mxu1 %v2755_v45  ;;  %v3535_v45 = vpack.c.bf16 %v73_v44, %v72_v43  ;;  %v2466_v43 = vld [vmem:[%s4010_s9 + $0x58] sm:$0xf0] }
 0x47d   :  { %890 = vmatpush.bf16.msra.mxu1 %v2754_v47  ;;  %v2759_v47 = vld [vmem:[%s4009_s8 + $0x8] sm:$0xff] }
 0x47f   :  { %v726_v22 = vpop.xlane.xlu1 %725 }
 0x480   :  { %2920 = vrcp.f32 %v726_v22  ;;  %v2771_v22 = vld [vmem:[%s4010_s9 + $0x24] sm:$0xf0] }
 0x481   :  { %891 = vmatpush.bf16.msra.mxu1 %v2753_v48  ;;  %v2758_v48 = vld [vmem:[%s4009_s8] sm:$0xff] }
 0x485   :  { %892 = vmatpush.bf16.msra.mxu1 %v2752_v49 }
 0x486   :  { %v2921_v23 = vpop.eup %2920 }
 0x487   :  { %v728_v24 = vmul.f32 %v2921_v23, %v2907_v51  ;;  %v2750_v51 = vld [vmem:[%s4007_s6] sm:$0xff] }
 0x489   :  { %v729_v25 = vpack.c.bf16 %v728_v24, %v728_v24  ;;  %893 = vmatpush.bf16.msra.mxu1 %v2751_v50  ;;  %v2441_v24 = vor.u32 %v2771_v22, %v2440_v16 }
 0x48b   :  { %2355 = vmatmul.msk.bf16.vlgmr.msra.gmra.mxu2 %vm353_vm9, %v729_v25 }
 0x48d   :  { %894 = vmatpush.bf16.msra.mxu1 %v2750_v51 }
 0x4cb   :  { %v442_v26 = vpop.f32.mrf.mxu2 }
 0x4d3   :  { %v444_v52 = vpop.f32.mrf.mxu2 }
 0x4d4   :  { %v2769_v52 = vld [vmem:[%s4010_s9 + $0x14] sm:$0xf0] }
 0x4d5   :  { %v554_v27 = vpop.f32.mrf.mxu0 }
 0x4db   :  { %v498_v28 = vpop.f32.mrf.mxu2 }
 0x4dd   :  { %v556_v29 = vpop.f32.mrf.mxu0 }
 0x4de   :  { %v2424_v29 = vld [vmem:[%s4010_s9] sm:$0xf] }
 0x4e3   :  { %v500_v31 = vpop.f32.mrf.mxu2 }
 0x4e5   :  { %v691_v32 = vpop.f32.mrf.mxu0 }
 0x4e6   :  { %v2848_v33 = vpack.i.bf16 %v691_v32, %v442_v26  ;;  %v2432_v26 = vld [vmem:[%s4010_s9 + $0x10] sm:$0xf] }
 0x4e8   :  { %2849 = vrot.lane.b32.xlu1 %v2848_v33, %s3021_s4  ;;  %v70_v33 = vld [vmem:[%s4024_s26] sm:$0xff] }
 0x4eb   :  { %v632_v34 = vpop.f32.mrf.mxu2 }
 0x4ed   :  { %v693_v35 = vpop.f32.mrf.mxu0 }
 0x4f3   :  { %v634_v36 = vpop.f32.mrf.mxu2 }
 0x4f5   :  { %v803_v37 = vpop.f32.mrf.mxu0 }
 0x4f6   :  { %v2858_v38 = vpack.i.bf16 %v803_v37, %v554_v27 }
 0x4f8   :  { %2859 = vrot.lane.b32.xlu2 %v2858_v38, %s3020_s22  ;;  %v2765_v38 = vld [vmem:[%s4009_s8 + $0x38] sm:$0xff] }
 0x4f9   :  { %1006 = vmatpush.bf16.msrb.mxu2 %v2765_v38 }
 0x4fd   :  { %v805_v39 = vpop.f32.mrf.mxu0 }
 0x4fe   :  { %v2764_v39 = vld [vmem:[%s4009_s8 + $0x30] sm:$0xff] }
 0x4ff   :  { %1007 = vmatpush.bf16.msrb.mxu2 %v2764_v39 }
 0x50e   :  { %v747_v40 = vpop.f32.mrf.mxu2 }
 0x50f   :  { %v2853_v41 = vpack.i.bf16 %v747_v40, %v498_v28  ;;  %v2433_v28 = vor.u32 %v2769_v52, %v2432_v26  ;;  %v2762_v40 = vld [vmem:[%s4009_s8 + $0x20] sm:$0xff] }
 0x511   :  { %2854 = vrot.lane.b32.xlu0 %v2853_v41, %s3019_s21  ;;  %v2761_v41 = vld [vmem:[%s4009_s8 + $0x18] sm:$0xff] }
 0x516   :  { %v749_v42 = vpop.f32.mrf.mxu2 }
 0x517   :  { %v2760_v42 = vld [vmem:[%s4009_s8 + $0x10] sm:$0xff] }
 0x552   :  { %v2860_v57 = vpop.permute.xlu2 %2859 }
 0x553   :  { %v2862_v60 = vunpack.i.h.bf16 %v2860_v57  ;;  %v2861_v61 = vunpack.i.l.bf16 %v2860_v57 }
 0x55a   :  { %v2850_v53 = vpop.permute.xlu1 %2849 }
 0x55b   :  { %v2852_v54 = vunpack.i.h.bf16 %v2850_v53  ;;  %v2851_v55 = vunpack.i.l.bf16 %v2850_v53 }
 0x55d   :  { %v819_v62 = vsel %vm333_vm7, %v632_v34, %v2852_v54  ;;  %v570_v63 = vsel %vm333_vm7, %v3353_v46, %v2851_v55  ;;  %v2472_v46 = vld [vmem:[%s4010_s9 + $0x60] sm:$0xf]  ;;  %v71_v34 = vld [vmem:[%s4024_s26 + $0x8] sm:$0xff]  ;;  %s3022_s26 = smov [#allocation3]  }
 0x55e   :  { %v2473_v10 = vor.u32 %v2779_v56, %v2472_v46  ;;  %v3508_v37 = vpack.c.bf16 %v71_v34, %v70_v33  ;;  %v2879_v46 = vld [vmem:[%s4008_s7] ss:$0 sm:$0xff]  ;;  %v2474_v34 = vld [vmem:[%s4010_s9 + $0x68] sm:$0xf0]  ;;  %s2207_s7 = sshll.u32 %s3022_s26, 4  ;;  %s2208_s7 = int_to_ptr.vmem [resolvable:$true] %s2207_s7 }
 0x560   :  { %1119 = vmatpush.bf16.msra.mxu3 %v2473_v10 }
 0x564   :  { %1120 = vmatpush.bf16.msra.mxu3 %v2465_v14 }
 0x568   :  { %1121 = vmatpush.bf16.msra.mxu3 %v2457_v18 }
 0x56c   :  { %1122 = vmatpush.bf16.msra.mxu3 %v2449_v21 }
 0x570   :  { %1123 = vmatpush.bf16.msra.mxu3 %v2441_v24 }
 0x574   :  { %1124 = vmatpush.bf16.msra.mxu3 %v2433_v28 }
 0x583   :  { %v2855_v58 = vpop.permute.xlu0 %2854 }
 0x584   :  { %v2857_v30 = vunpack.i.h.bf16 %v2855_v58  ;;  %v2856_v59 = vunpack.i.l.bf16 %v2855_v58 }
 0x586   :  { %v572_v1 = vsel %vm571_vm10, %v570_v63, %v2856_v59  ;;  %v820_v3 = vsel %vm571_vm10, %v819_v62, %v2857_v30 }
 0x587   :  { %v574_v4 = vsel %vm573_vm11, %v572_v1, %v2861_v61  ;;  %v821_v5 = vsel %vm573_vm11, %v820_v3, %v2862_v60 }
 0x588   :  { %v822_v6 = vpack.c.bf16 %v821_v5, %v574_v4 }
 0x58a   :  { %895 = vmatmul.bf16.vlgmr.msra.gmra.mxu1 %v822_v6 }
 0x607   :  { %v896_v23 = vpop.f32.mrf.mxu1 }
 0x608   :  { %v3481_v25 = vadd.f32 %v896_v23, %v3121_v0  ;;  %v2767_v0 = vld [vmem:[%s4010_s9 + $0x4] sm:$0xf0] }
 0x609   :  { %v2425_v32 = vor.u32 %v2767_v0, %v2424_v29  ;;  %v2780_v0 = vld [vmem:[%s4010_s9 + $0x74] sm:$0xf] }
 0x60a   :  { %v904_v27 = vmul.f32 %v3481_v25, %v3481_v25 }
 0x60b   :  { %1125 = vmatpush.bf16.msra.mxu3 %v2425_v32  ;;  %v2778_v32 = vld [vmem:[%s4010_s9 + $0x64] sm:$0xf] }
 0x60c   :  { %906 = vadd.xlane.f32.xlu0 %v904_v27  ;;  %v2477_v38 = vor.u32 %v2778_v32, %v2474_v34 }
 0x60e   :  { %1126 = vmatmul.bf16.vlgmr.msra.gmra.mxu3 %v3508_v37 }
 0x60f   :  { %v898_v31 = vpop.f32.mrf.mxu1 }
 0x610   :  { %v3504_v35 = vadd.f32 %v898_v31, %v3129_v2  ;;  %v2763_v2 = vld [vmem:[%s4009_s8 + $0x28] sm:$0xff]  ;;  %v2482_v31 = vld [vmem:[%s4010_s9 + $0x78] sm:$0xf0] }
 0x611   :  { %1008 = vmatpush.bf16.msrb.mxu2 %v2763_v2  ;;  %v2485_v33 = vor.u32 %v2780_v0, %v2482_v31 }
 0x612   :  { %v905_v36 = vmul.f32 %v3504_v35, %v3504_v35 }
 0x613   :  { %1137 = vmatpush.bf16.msra.mxu0 %v2485_v33 }
 0x614   :  { %908 = vadd.xlane.f32.xlu2 %v905_v36 }
 0x615   :  { %1009 = vmatpush.bf16.msrb.mxu2 %v2762_v40 }
 0x617   :  { %1138 = vmatpush.bf16.msra.mxu0 %v2477_v38 }
 0x619   :  { %1010 = vmatpush.bf16.msrb.mxu2 %v2761_v41  ;;  %v3590_v41 = vld [vmem:[%s4004_s3] ss:$0 sm:$0xff] }
 0x61d   :  { %1011 = vmatpush.bf16.msrb.mxu2 %v2760_v42  ;;  %v2776_v42 = vld [vmem:[%s4010_s9 + $0x54] sm:$0xf] }
 0x61e   :  { %1131 = vmatmul.bf16.gmra.mxu3 %v3535_v45 }
 0x621   :  { %1012 = vmatpush.bf16.msrb.mxu2 %v2759_v47  ;;  %v2469_v47 = vor.u32 %v2776_v42, %v2466_v43 }
 0x623   :  { %1139 = vmatpush.bf16.msra.mxu0 %v2469_v47 }
 0x625   :  { %1013 = vmatpush.bf16.msrb.mxu2 %v2758_v48  ;;  %v2774_v48 = vld [vmem:[%s4010_s9 + $0x44] sm:$0xf] }
 0x67f   :  { %v907_v49 = vpop.xlane.xlu0 %906 }
 0x680   :  { %v910_v50 = vmul.f32 %v907_v49, %v3267_v11  ;;  %v2458_v49 = vld [vmem:[%s4010_s9 + $0x48] sm:$0xf0] }
 0x682   :  { %v912_v51 = vadd.f32 1e-06, %v910_v50 }
 0x684   :  { %2922 = vrsqrt.f32 %v912_v51  ;;  %vm920_vm13 = vweird.f32 %v912_v51 }
 0x687   :  { %v909_v53 = vpop.xlane.xlu2 %908 }
 0x688   :  { %v911_v54 = vmul.f32 %v909_v53, %v3267_v11  ;;  %v2461_v53 = vor.u32 %v2774_v48, %v2458_v49 }
 0x68a   :  { %v2923_v55 = vpop.eup %2922  ;;  %v913_v57 = vadd.f32 1e-06, %v911_v54  ;;  %1140 = vmatpush.bf16.msra.mxu0 %v2461_v53 }
 0x68b   :  { %v915_v58 = vmul.f32 %v2923_v55, %v912_v51  ;;  %vm921_vm12 = vweird.f32 %v2923_v55 }
 0x68c   :  { %2924 = vrsqrt.f32 %v913_v57  ;;  %vm922_vm14 = vmor %vm920_vm13, %vm921_vm12  ;;  %vm930_vm0 = vweird.f32 %v913_v57 }
 0x68d   :  { %v916_v30 = vmul.f32 %v2923_v55, %v915_v58 }
 0x68f   :  { %v917_v59 = vmul.f32 0.5, %v916_v30  ;;  %v2772_v30 = vld [vmem:[%s4010_s9 + $0x34] sm:$0xf] }
 0x691   :  { %v918_v60 = vsub.f32 1.5, %v917_v59  ;;  %v1127_v6 = vpop.f32.mrf.mxu3  ;;  %v2450_v59 = vld [vmem:[%s4010_s9 + $0x38] sm:$0xf0] }
 0x692   :  { %v2925_v61 = vpop.eup %2924 }
 0x693   :  { %v925_v62 = vmul.f32 %v2925_v61, %v913_v57  ;;  %v919_v63 = vmul.f32 %v2923_v55, %v918_v60  ;;  %vm931_vm15 = vweird.f32 %v2925_v61  ;;  %v2770_v60 = vld [vmem:[%s4010_s9 + $0x24] sm:$0xf] }
 0x694   :  { %vm932_vm1 = vmor %vm930_vm0, %vm931_vm15 }
 0x695   :  { %v926_v1 = vmul.f32 %v2925_v61, %v925_v62  ;;  %v923_v4 = vsel %vm922_vm14, %v2923_v55, %v919_v63  ;;  %v2442_v62 = vld [vmem:[%s4010_s9 + $0x28] sm:$0xf0] }
 0x696   :  { %v934_v8 = vmul.f32 %v923_v4, %v3481_v25  ;;  %v2434_v4 = vld [vmem:[%s4010_s9 + $0x18] sm:$0xf0] }
 0x697   :  { %v927_v3 = vmul.f32 0.5, %v926_v1  ;;  %v2445_v1 = vor.u32 %v2770_v60, %v2442_v62 }
 0x698   :  { %v939_v10 = vmul.f32 %v2879_v46, %v934_v8  ;;  %v2426_v8 = vld [vmem:[%s4010_s9 + $0x8] sm:$0xf0] }
 0x699   :  { %v928_v5 = vsub.f32 1.5, %v927_v3  ;;  %v1129_v13 = vpop.f32.mrf.mxu3  ;;  %v2768_v3 = vld [vmem:[%s4010_s9 + $0x14] sm:$0xf] }
 0x69a   :  { %v1160_v15 = vpack.c.bf16 %v1129_v13, %v1127_v6  ;;  %v2437_v6 = vor.u32 %v2768_v3, %v2434_v4 }
 0x69b   :  { %v929_v7 = vmul.f32 %v2925_v61, %v928_v5 }
 0x69c   :  { %1214 = vrot.lane.b32.xlu1 %v1160_v15, %s3020_s22  ;;  %v1165_v17 = vsel %vm333_vm7, %v1160_v15, 0 }
 0x69d   :  { %v933_v9 = vsel %vm932_vm1, %v2925_v61, %v929_v7  ;;  %1174 = vmatpush.bf16.xpose.msrb.mxu1 %v1165_v17  ;;  %v2453_v61 = vor.u32 %v2772_v30, %v2450_v59  ;;  %v2766_v7 = vld [vmem:[%s4010_s9 + $0x4] sm:$0xf] }
 0x69e   :  { %v935_v56 = vmul.f32 %v933_v9, %v3504_v35 }
 0x69f   :  { %1141 = vmatpush.bf16.msra.mxu0 %v2453_v61 }
 0x6a0   :  { %v940_v12 = vmul.f32 %v2879_v46, %v935_v56  ;;  %v2429_v46 = vor.u32 %v2766_v7, %v2426_v8 }
 0x6a1   :  { %v1132_v18 = vpop.f32.mrf.mxu3 }
 0x6a2   :  { %v941_v14 = vpack.c.bf16 %v940_v12, %v939_v10 }
 0x6a3   :  { %1142 = vmatpush.bf16.msra.mxu0 %v2445_v1 }
 0x6a4   :  { %1014 = vmatmul.bf16.vlgmr.msrb.gmra.mxu2 %v941_v14  ;;  %1269 = vrot.lane.b32.xlu1 %v1160_v15, %s3019_s21 }
 0x6a7   :  { %1143 = vmatpush.bf16.msra.mxu0 %v2437_v6 }
 0x6a9   :  { %v1134_v19 = vpop.f32.mrf.mxu3 }
 0x6aa   :  { %v1394_v20 = vpack.c.bf16 %v1134_v19, %v1132_v18 }
 0x6ab   :  { %1144 = vmatpush.bf16.msra.mxu0 %v2429_v46 }
 0x6ac   :  { %1447 = vrot.lane.b32.xlu2 %v1394_v20, %s3020_s22  ;;  %v1399_v26 = vsel %vm333_vm7, %v1394_v20, 0 }
 0x6ae   :  { %1145 = vmatmul.bf16.vlgmr.msra.gmra.mxu0 %v3508_v37 }
 0x6be   :  { %1150 = vmatmul.bf16.gmra.mxu0 %v3535_v45 }
 0x706   :  { %v1448_v39 = vpop.permute.xlu2 %1447 }
 0x707   :  { %v1453_v2 = vsel %vm333_vm7, %v1448_v39, 0 }
 0x70e   :  { %v1215_v21 = vpop.permute.xlu1 %1214 }
 0x70f   :  { %v1220_v16 = vsel %vm333_vm7, %v1215_v21, 0 }
 0x710   :  { %1229 = vmatpush.bf16.xpose.msra.mxu1 %v1220_v16 }
 0x716   :  { %v1270_v24 = vpop.permute.xlu1 %1269 }
 0x717   :  { %v1275_v52 = vsel %vm333_vm7, %v1270_v24, 0 }
 0x718   :  { %1284 = vmatpush.bf16.xpose.msrb.mxu3 %v1275_v52 }
 0x720   :  { %1408 = vmatpush.bf16.xpose.msra.mxu3 %v1399_v26 }
 0x727   :  { %v1015_v22 = vpop.f32.mrf.mxu2 }
 0x728   :  { %v1159_v23 = vpack.c.bf16 %v1015_v22, %v1015_v22 }
 0x72a   :  { %1321 = vrot.lane.b32.xlu0 %v1159_v23, %s3021_s4  ;;  %1211 = vrot.lane.b32.xlu1 %v1159_v23, %s3020_s22 }
 0x72b   :  { %2486 = vmatmul.msk.bf16.vlgmr.msrb.gmra.mxu1 %vm333_vm7, %v1159_v23  ;;  %v1146_v31 = vpop.f32.mrf.mxu0 }
 0x72f   :  { %v1017_v27 = vpop.f32.mrf.mxu2 }
 0x730   :  { %v3561_v28 = vpack.c.bf16 %v1017_v27, %v1017_v27  ;;  %v2881_v27 = vld [vmem:[%s4004_s3 + $0x1] ss:$0 sm:$0xff] }
 0x732   :  { %1323 = vrot.lane.b32.xlu1 %v1160_v15, %s3021_s4  ;;  %1554 = vrot.lane.b32.xlu2 %v3561_v28, %s3021_s4 }
 0x733   :  { %1556 = vrot.lane.b32.xlu0 %v1394_v20, %s3021_s4  ;;  %v1148_v39 = vpop.f32.mrf.mxu0 }
 0x73a   :  { %1267 = vrot.lane.b32.xlu1 %v1159_v23, %s3019_s21 }
 0x742   :  { %1444 = vrot.lane.b32.xlu1 %v3561_v28, %s3020_s22 }
 0x74a   :  { %1502 = vrot.lane.b32.xlu1 %v1394_v20, %s3019_s21 }
 0x752   :  { %1500 = vrot.lane.b32.xlu1 %v3561_v28, %s3019_s21 }
 0x78c   :  { %v1555_v10 = vpop.permute.xlu2 %1554 }
 0x79c   :  { %v1212_v29 = vpop.permute.xlu1 %1211  ;;  %v1322_v36 = vpop.permute.xlu0 %1321 }
 0x79d   :  { %2488 = vmatmul.msk.bf16.vlgmr.msra.gmra.mxu1 %vm333_vm7, %v1212_v29 }
 0x7a4   :  { %v1324_v40 = vpop.permute.xlu1 %1323 }
 0x7a5   :  { %v1329_v44 = vsel %vm333_vm7, %v1324_v40, 0  ;;  %v1557_v51 = vpop.permute.xlu0 %1556 }
 0x7a6   :  { %1338 = vmatpush.bf16.xpose.msrb.mxu1 %v1329_v44  ;;  %v1562_v57 = vsel %vm333_vm7, %v1557_v51, 0 }
 0x7a8   :  { %v1176_v50 = vpop.f32.mrf.mxu1 }
 0x7a9   :  { %v1177_v54 = vadd.f32 %v3590_v41, %v1176_v50 }
 0x7ab   :  { %v1181_v55 = vsel %vm1180_vm2, %v1177_v54, -inf }
 0x7ac   :  { %1182 = vmax.xlane.f32.xlu0 %v1181_v55  ;;  %v1268_v58 = vpop.permute.xlu1 %1267 }
 0x7ad   :  { %2490 = vmatmul.msk.bf16.vlgmr.msrb.gmra.mxu3 %vm333_vm7, %v1268_v58  ;;  %2492 = vmatmul.msk.bf16.vlgmr.msrb.gmra.mxu1 %vm333_vm7, %v1322_v36 }
 0x7ae   :  { %1462 = vmatpush.bf16.xpose.msra.mxu1 %v1453_v2  ;;  %v1193_v2 = vpack.c.bf16 %v1148_v39, %v1146_v31 }
 0x7b0   :  { %v1178_v63 = vpop.f32.mrf.mxu1  ;;  %1204 = vmatpush.bf16.msra.mxu2 %v1193_v2 }
 0x7b4   :  { %v1445_v5 = vpop.permute.xlu1 %1444 }
 0x7b6   :  { %1571 = vmatpush.bf16.xpose.msrb.mxu1 %v1562_v57 }
 0x7bc   :  { %v1503_v9 = vpop.permute.xlu1 %1502 }
 0x7bd   :  { %v1508_v56 = vsel %vm333_vm7, %v1503_v9, 0  ;;  %2494 = vmatmul.msk.bf16.vlgmr.msra.gmra.mxu3 %vm333_vm7, %v3561_v28  ;;  %2496 = vmatmul.msk.bf16.vlgmr.msra.gmra.mxu1 %vm333_vm7, %v1445_v5 }
 0x7be   :  { %1517 = vmatpush.bf16.xpose.msrb.mxu3 %v1508_v56 }
 0x7c4   :  { %v1501_v12 = vpop.permute.xlu1 %1500 }
 0x7cd   :  { %2498 = vmatmul.msk.bf16.vlgmr.msrb.gmra.mxu3 %vm333_vm7, %v1501_v12  ;;  %2500 = vmatmul.msk.bf16.vlgmr.msrb.gmra.mxu1 %vm333_vm7, %v1555_v10 }
 0x81a   :  { %v1231_v13 = vpop.f32.mrf.mxu1 }
 0x81b   :  { %v1232_v14 = vadd.f32 %v3590_v41, %v1231_v13 }
 0x81d   :  { %v1235_v15 = vsel %vm1180_vm2, %v1232_v14, -inf }
 0x81e   :  { %1236 = vmax.xlane.f32.xlu1 %v1235_v15  ;;  %v1151_v15 = vpop.f32.mrf.mxu0 }
 0x81f   :  { %v1183_v17 = vpop.xlane.xlu0 %1182 }
 0x820   :  { %v1184_v18 = vsub.f32 %v1177_v54, %v1183_v17 }
 0x822   :  { %v1185_v19 = vmul.f32 1.442695, %v1184_v18  ;;  %v1233_v20 = vpop.f32.mrf.mxu1 }
 0x824   :  { %2926 = vpow2.f32 %v1185_v19 }
 0x826   :  { %v1153_v20 = vpop.f32.mrf.mxu0 }
 0x82a   :  { %v2927_v37 = vpop.eup %2926  ;;  %v1340_v21 = vpop.f32.mrf.mxu1 }
 0x82b   :  { %v1187_v16 = vsel %vm1180_vm2, %v2927_v37, 0.0  ;;  %v1341_v22 = vadd.f32 %v3590_v41, %v1340_v21 }
 0x82c   :  { %1188 = vadd.xlane.f32.xlu2 %v1187_v16  ;;  %v1426_v16 = vpack.c.bf16 %v1153_v20, %v1151_v15 }
 0x82d   :  { %v1344_v26 = vsel %vm1180_vm2, %v1341_v22, -inf }
 0x830   :  { %v1286_v23 = vpop.f32.mrf.mxu3 }
 0x831   :  { %v1287_v45 = vadd.f32 %v3590_v41, %v1286_v23 }
 0x832   :  { %v1342_v24 = vpop.f32.mrf.mxu1 }
 0x833   :  { %v1290_v52 = vsel %vm1180_vm2, %v1287_v45, -inf }
 0x834   :  { %1345 = vmax.xlane.f32.xlu2 %v1344_v26  ;;  %1291 = vmax.xlane.f32.xlu0 %v1290_v52 }
 0x838   :  { %v1288_v28 = vpop.f32.mrf.mxu3 }
 0x83a   :  { %v1464_v29 = vpop.f32.mrf.mxu1 }
 0x83b   :  { %v1465_v0 = vadd.f32 %v2881_v27, %v1464_v29 }
 0x83d   :  { %v1468_v32 = vsel %vm1180_vm2, %v1465_v0, -inf }
 0x83e   :  { %1469 = vmax.xlane.f32.xlu1 %v1468_v32 }
 0x840   :  { %v1410_v33 = vpop.f32.mrf.mxu3 }
 0x841   :  { %v1411_v34 = vadd.f32 %v2881_v27, %v1410_v33 }
 0x842   :  { %v1466_v36 = vpop.f32.mrf.mxu1 }
 0x843   :  { %v1414_v38 = vsel %vm1180_vm2, %v1411_v34, -inf }
 0x844   :  { %1415 = vmax.xlane.f32.xlu0 %v1414_v38 }
 0x848   :  { %v1412_v40 = vpop.f32.mrf.mxu3 }
 0x84a   :  { %v1573_v41 = vpop.f32.mrf.mxu1 }
 0x84b   :  { %v3654_v42 = vadd.f32 %v2881_v27, %v1573_v41 }
 0x84c   :  { %1356 = vrot.lane.b32.xlu2 %v1193_v2, %s3021_s4 }
 0x84d   :  { %v1577_v43 = vsel %vm1180_vm2, %v3654_v42, -inf }
 0x84e   :  { %1578 = vmax.xlane.f32.xlu1 %v1577_v43 }
 0x850   :  { %v1519_v44 = vpop.f32.mrf.mxu3 }
 0x851   :  { %v1520_v47 = vadd.f32 %v2881_v27, %v1519_v44 }
 0x852   :  { %v1575_v48 = vpop.f32.mrf.mxu1 }
 0x853   :  { %v1523_v49 = vsel %vm1180_vm2, %v1520_v47, -inf }
 0x854   :  { %1524 = vmax.xlane.f32.xlu0 %v1523_v49 }
 0x858   :  { %v1521_v50 = vpop.f32.mrf.mxu3 }
 0x867   :  { %1248 = vrot.lane.b32.xlu1 %v1193_v2, %s3020_s22 }
 0x868   :  { %1302 = vrot.lane.b32.xlu0 %v1193_v2, %s3019_s21 }
 0x891   :  { %v1237_v51 = vpop.xlane.xlu1 %1236 }
 0x892   :  { %v1238_v53 = vsub.f32 %v1232_v14, %v1237_v51 }
 0x894   :  { %v1239_v54 = vmul.f32 1.442695, %v1238_v53 }
 0x896   :  { %2928 = vpow2.f32 %v1239_v54 }
 0x89c   :  { %v3662_v55 = vpop.eup %2928 }
 0x89d   :  { %v1241_v57 = vsel %vm1180_vm2, %v3662_v55, 0.0 }
 0x89e   :  { %1242 = vadd.xlane.f32.xlu2 %v1241_v57 }
 0x89f   :  { %v1189_v58 = vpop.xlane.xlu2 %1188 }
 0x8a0   :  { %2930 = vrcp.f32 %v1189_v58 }
 0x8a6   :  { %v2931_v30 = vpop.eup %2930 }
 0x8a7   :  { %v1191_v59 = vmul.f32 %v2931_v30, %v2927_v37  ;;  %v1346_v60 = vpop.xlane.xlu2 %1345  ;;  %v1292_v61 = vpop.xlane.xlu0 %1291 }
 0x8a8   :  { %v1347_v62 = vsub.f32 %v1341_v22, %v1346_v60  ;;  %v1293_v63 = vsub.f32 %v1287_v45, %v1292_v61 }
 0x8a9   :  { %v1192_v1 = vpack.c.bf16 %v1191_v59, %v1191_v59 }
 0x8aa   :  { %v1348_v3 = vmul.f32 1.442695, %v1347_v62  ;;  %v1294_v4 = vmul.f32 1.442695, %v1293_v63 }
 0x8ab   :  { %2487 = vmatmul.msk.bf16.vlgmr.msra.gmra.mxu2 %vm1180_vm2, %v1192_v1 }
 0x8ac   :  { %2932 = vpow2.f32 %v1348_v3 }
 0x8ad   :  { %2934 = vpow2.f32 %v1294_v4 }
 0x8af   :  { %v1357_v52 = vpop.permute.xlu2 %1356 }
 0x8b1   :  { %v1470_v5 = vpop.xlane.xlu1 %1469 }
 0x8b2   :  { %v2933_v6 = vpop.eup %2932  ;;  %v1471_v7 = vsub.f32 %v1465_v0, %v1470_v5 }
 0x8b3   :  { %v2935_v8 = vpop.eup %2934  ;;  %v1350_v46 = vsel %vm1180_vm2, %v2933_v6, 0.0 }
 0x8b4   :  { %v1472_v9 = vmul.f32 1.442695, %v1471_v7  ;;  %1351 = vadd.xlane.f32.xlu2 %v1350_v46  ;;  %v1296_v56 = vsel %vm1180_vm2, %v2935_v8, 0.0 }
 0x8b5   :  { %1297 = vadd.xlane.f32.xlu0 %v1296_v56 }
 0x8b6   :  { %2936 = vpow2.f32 %v1472_v9 }
 0x8b7   :  { %v1416_v10 = vpop.xlane.xlu0 %1415 }
 0x8b8   :  { %v1417_v12 = vsub.f32 %v1411_v34, %v1416_v10 }
 0x8ba   :  { %v1418_v13 = vmul.f32 1.442695, %v1417_v12 }
 0x8bc   :  { %v2937_v14 = vpop.eup %2936  ;;  %2938 = vpow2.f32 %v1418_v13 }
 0x8bd   :  { %v1474_v17 = vsel %vm1180_vm2, %v2937_v14, 0.0 }
 0x8be   :  { %1475 = vadd.xlane.f32.xlu1 %v1474_v17 }
 0x8c1   :  { %v1579_v23 = vpop.xlane.xlu1 %1578 }
 0x8c2   :  { %v2939_v18 = vpop.eup %2938  ;;  %v1580_v28 = vsub.f32 %v3654_v42, %v1579_v23  ;;  %v2788_v23 = vld [vmem:[%s4011_s10 + $0x30] sm:$0xff] }
 0x8c3   :  { %v1420_v19 = vsel %vm1180_vm2, %v2939_v18, 0.0 }
 0x8c4   :  { %1421 = vadd.xlane.f32.xlu0 %v1420_v19  ;;  %v1581_v29 = vmul.f32 1.442695, %v1580_v28  ;;  %v2782_v28 = vld [vmem:[%s4011_s10] sm:$0xff] }
 0x8c7   :  { %v1525_v37 = vpop.xlane.xlu0 %1524 }
 0x8c8   :  { %v1526_v21 = vsub.f32 %v1520_v47, %v1525_v37 }
 0x8ca   :  { %v1527_v22 = vmul.f32 1.442695, %v1526_v21 }
 0x8cc   :  { %2940 = vpow2.f32 %v1527_v22  ;;  %1481 = vrot.lane.b32.xlu2 %v1426_v16, %s3020_s22  ;;  %v2789_v22 = vld [vmem:[%s4011_s10 + $0x38] sm:$0xff] }
 0x8cd   :  { %2942 = vpow2.f32 %v1581_v29  ;;  %1688 = vmatpush.bf16.msra.mxu3 %v2789_v22 }
 0x8d1   :  { %1689 = vmatpush.bf16.msra.mxu3 %v2788_v23  ;;  %v2554_v23 = vld [vmem:[%s4013_s12 + $0x28] sm:$0xf0] }
 0x8d2   :  { %v2941_v45 = vpop.eup %2940 }
 0x8d3   :  { %v1529_v24 = vsel %vm1180_vm2, %v2941_v45, 0.0  ;;  %v2943_v0 = vpop.eup %2942 }
 0x8d4   :  { %1530 = vadd.xlane.f32.xlu1 %v1529_v24  ;;  %v1583_v31 = vsel %vm1180_vm2, %v2943_v0, 0.0  ;;  %v2786_v24 = vld [vmem:[%s4011_s10 + $0x20] sm:$0xff] }
 0x8d8   :  { %1535 = vrot.lane.b32.xlu0 %v1426_v16, %s3019_s21 }
 0x8d9   :  { %v1249_v26 = vpop.permute.xlu1 %1248 }
 0x8da   :  { %v1303_v27 = vpop.permute.xlu0 %1302  ;;  %1261 = vmatpush.bf16.msrb.mxu2 %v1249_v26  ;;  %v2785_v26 = vld [vmem:[%s4011_s10 + $0x18] sm:$0xff] }
 0x8db   :  { %1315 = vmatpush.bf16.msrb.mxu0 %v1303_v27  ;;  %v2783_v27 = vld [vmem:[%s4011_s10 + $0x8] sm:$0xff] }
 0x8de   :  { %1369 = vmatpush.bf16.msra.mxu2 %v1357_v52  ;;  %v2784_v52 = vld [vmem:[%s4011_s10 + $0x10] sm:$0xff] }
 0x8df   :  { %1437 = vmatpush.bf16.msra.mxu0 %v1426_v16 }
 0x8ed   :  { %1589 = vrot.lane.b32.xlu1 %v1426_v16, %s3021_s4 }
 0x8f5   :  { %1584 = vadd.xlane.f32.xlu2 %v1583_v31 }
 0x911   :  { %v1243_v32 = vpop.xlane.xlu2 %1242 }
 0x912   :  { %2944 = vrcp.f32 %v1243_v32 }
 0x918   :  { %v2945_v33 = vpop.eup %2944 }
 0x919   :  { %v1245_v34 = vmul.f32 %v2945_v33, %v3662_v55 }
 0x91b   :  { %v1246_v36 = vpack.c.bf16 %v1245_v34, %v1245_v34 }
 0x91d   :  { %2489 = vmatmul.msk.bf16.vlgmr.msrb.gmra.mxu2 %vm1180_vm2, %v1246_v36 }
 0x927   :  { %v1352_v38 = vpop.xlane.xlu2 %1351 }
 0x928   :  { %2946 = vrcp.f32 %v1352_v38  ;;  %v1298_v39 = vpop.xlane.xlu0 %1297 }
 0x929   :  { %2948 = vrcp.f32 %v1298_v39 }
 0x92e   :  { %v2947_v2 = vpop.eup %2946  ;;  %v3679_v40 = vpop.f32.mrf.mxu2 }
 0x92f   :  { %v2949_v41 = vpop.eup %2948  ;;  %v1354_v42 = vmul.f32 %v2947_v2, %v2933_v6  ;;  %v1482_v43 = vpop.permute.xlu2 %1481 }
 0x930   :  { %v1300_v44 = vmul.f32 %v2949_v41, %v2935_v8  ;;  %1494 = vmatpush.bf16.msrb.mxu2 %v1482_v43 }
 0x931   :  { %v1355_v47 = vpack.c.bf16 %v1354_v42, %v1354_v42  ;;  %v1476_v48 = vpop.xlane.xlu1 %1475 }
 0x932   :  { %v1301_v49 = vpack.c.bf16 %v1300_v44, %v1300_v44  ;;  %2950 = vrcp.f32 %v1476_v48 }
 0x933   :  { %2493 = vmatmul.msk.bf16.vlgmr.msra.gmra.mxu2 %vm1180_vm2, %v1355_v47 }
 0x934   :  { %2491 = vmatmul.msk.bf16.vlgmr.msrb.gmra.mxu0 %vm1180_vm2, %v1301_v49 }
 0x936   :  { %v1208_v50 = vpop.f32.mrf.mxu2 }
 0x937   :  { %v1422_v51 = vpop.xlane.xlu0 %1421 }
 0x938   :  { %2952 = vrcp.f32 %v1422_v51  ;;  %v2951_v53 = vpop.eup %2950 }
 0x939   :  { %v1478_v54 = vmul.f32 %v2951_v53, %v2937_v14 }
 0x93b   :  { %v1479_v58 = vpack.c.bf16 %v1478_v54, %v1478_v54 }
 0x93e   :  { %v2953_v55 = vpop.eup %2952 }
 0x93f   :  { %v1424_v57 = vmul.f32 %v2953_v55, %v2939_v18  ;;  %v2592_v55 = vld [vmem:[%s4013_s12 + $0x70] sm:$0xf] }
 0x941   :  { %v1425_v30 = vpack.c.bf16 %v1424_v57, %v1424_v57  ;;  %v2804_v57 = vld [vmem:[%s4013_s12 + $0x74] sm:$0xf] }
 0x943   :  { %2497 = vmatmul.msk.bf16.vlgmr.msrb.gmra.mxu2 %vm1180_vm2, %v1479_v58 }
 0x944   :  { %2495 = vmatmul.msk.bf16.vlgmr.msra.gmra.mxu0 %vm1180_vm2, %v1425_v30 }
 0x947   :  { %v1531_v59 = vpop.xlane.xlu1 %1530 }
 0x948   :  { %2954 = vrcp.f32 %v1531_v59  ;;  %v2584_v59 = vld [vmem:[%s4013_s12 + $0x60] sm:$0xf] }
 0x94a   :  { %v1536_v60 = vpop.permute.xlu0 %1535 }
 0x94b   :  { %1548 = vmatpush.bf16.msrb.mxu0 %v1536_v60  ;;  %v2803_v60 = vld [vmem:[%s4013_s12 + $0x64] sm:$0xf0] }
 0x94e   :  { %v2955_v61 = vpop.eup %2954 }
 0x94f   :  { %v1533_v62 = vmul.f32 %v2955_v61, %v2941_v45  ;;  %v2787_v45 = vld [vmem:[%s4011_s10 + $0x28] sm:$0xff]  ;;  %v2802_v61 = vld [vmem:[%s4013_s12 + $0x64] sm:$0xf] }
 0x950   :  { %1690 = vmatpush.bf16.msra.mxu3 %v2787_v45 }
 0x951   :  { %v1534_v63 = vpack.c.bf16 %v1533_v62, %v1533_v62  ;;  %v2585_v62 = vor.u32 %v2803_v60, %v2584_v59  ;;  %v2809_v60 = vld [vmem:[%s4014_s13 + $0x18] sm:$0xff] }
 0x954   :  { %2499 = vmatmul.msk.bf16.vlgmr.msrb.gmra.mxu0 %vm1180_vm2, %v1534_v63  ;;  %1691 = vmatpush.bf16.msra.mxu3 %v2786_v24  ;;  %v2586_v63 = vld [vmem:[%s4013_s12 + $0x68] sm:$0xf0]  ;;  %v2544_v24 = vld [vmem:[%s4013_s12 + $0x10] sm:$0xf] }
 0x958   :  { %1692 = vmatpush.bf16.msra.mxu3 %v2785_v26  ;;  %v2793_v26 = vld [vmem:[%s4013_s12 + $0x14] sm:$0xf0] }
 0x95c   :  { %1693 = vmatpush.bf16.msra.mxu3 %v2784_v52  ;;  %v2792_v52 = vld [vmem:[%s4013_s12 + $0x14] sm:$0xf] }
 0x95f   :  { %v1590_v1 = vpop.permute.xlu1 %1589 }
 0x960   :  { %1602 = vmatpush.bf16.msra.mxu2 %v1590_v1  ;;  %1694 = vmatpush.bf16.msra.mxu3 %v2783_v27  ;;  %v2589_v1 = vor.u32 %v2802_v61, %v2586_v63  ;;  %v2545_v27 = vor.u32 %v2793_v26, %v2544_v24  ;;  %v2817_v61 = vld [vmem:[%s4014_s13 + $0x58] sm:$0xff] }
 0x964   :  { %1695 = vmatpush.bf16.msra.mxu3 %v2782_v28  ;;  %v2546_v28 = vld [vmem:[%s4013_s12 + $0x18] sm:$0xf0] }
 0x968   :  { %v1585_v3 = vpop.xlane.xlu2 %1584 }
 0x969   :  { %2956 = vrcp.f32 %v1585_v3  ;;  %v2576_v3 = vld [vmem:[%s4013_s12 + $0x50] sm:$0xf] }
 0x96f   :  { %v2957_v4 = vpop.eup %2956 }
 0x970   :  { %v1587_v5 = vmul.f32 %v2957_v4, %v2943_v0  ;;  %v2801_v4 = vld [vmem:[%s4013_s12 + $0x54] sm:$0xf0] }
 0x972   :  { %v1588_v6 = vpack.c.bf16 %v1587_v5, %v1587_v5  ;;  %v2800_v5 = vld [vmem:[%s4013_s12 + $0x54] sm:$0xf] }
 0x974   :  { %2501 = vmatmul.msk.bf16.vlgmr.msra.gmra.mxu2 %vm1180_vm2, %v1588_v6  ;;  %v2577_v6 = vor.u32 %v2801_v4, %v2576_v3 }
 0x9a0   :  { %v1263_v7 = vpop.f32.mrf.mxu2 }
 0x9a8   :  { %v1265_v8 = vpop.f32.mrf.mxu2 }
 0x9b1   :  { %v1317_v46 = vpop.f32.mrf.mxu0 }
 0x9b6   :  { %v1371_v9 = vpop.f32.mrf.mxu2 }
 0x9b9   :  { %v1319_v56 = vpop.f32.mrf.mxu0 }
 0x9ba   :  { %v2798_v56 = vld [vmem:[%s4013_s12 + $0x44] sm:$0xf] }
 0x9be   :  { %v1373_v10 = vpop.f32.mrf.mxu2 }
 0x9c1   :  { %v1439_v12 = vpop.f32.mrf.mxu0 }
 0x9c6   :  { %v1496_v13 = vpop.f32.mrf.mxu2 }
 0x9c7   :  { %v2863_v14 = vpack.i.bf16 %v1496_v13, %v1263_v7  ;;  %v2578_v7 = vld [vmem:[%s4013_s12 + $0x58] sm:$0xf0] }
 0x9c8   :  { %v2581_v8 = vor.u32 %v2800_v5, %v2578_v7 }
 0x9c9   :  { %v1441_v15 = vpop.f32.mrf.mxu0  ;;  %2864 = vrot.lane.b32.xlu2 %v2863_v14, %s3021_s4  ;;  %v2560_v14 = vld [vmem:[%s4013_s12 + $0x30] sm:$0xf] }
 0x9ca   :  { %v2797_v15 = vld [vmem:[%s4013_s12 + $0x34] sm:$0xf0] }
 0x9ce   :  { %v1498_v17 = vpop.f32.mrf.mxu2 }
 0x9cf   :  { %v2796_v17 = vld [vmem:[%s4013_s12 + $0x34] sm:$0xf] }
 0x9d1   :  { %v1550_v18 = vpop.f32.mrf.mxu0 }
 0x9d2   :  { %v2868_v19 = vpack.i.bf16 %v1550_v18, %v1317_v46  ;;  %v2568_v46 = vld [vmem:[%s4013_s12 + $0x40] sm:$0xf]  ;;  %v2561_v18 = vor.u32 %v2797_v15, %v2560_v14  ;;  %v2816_v14 = vld [vmem:[%s4014_s13 + $0x50] sm:$0xff]  ;;  %v2807_v15 = vld [vmem:[%s4014_s13 + $0x8] sm:$0xff] }
 0x9d4   :  { %2869 = vrot.lane.b32.xlu0 %v2868_v19, %s3019_s21  ;;  %v2562_v19 = vld [vmem:[%s4013_s12 + $0x38] sm:$0xf0]  ;;  %s3023_s21 = smov 128  }
 0x9d5   :  { %2215 = dma.vmem_to_hbm [thread:$0]  %s2208_s7, 256, %s2210_s5, [#allocation4], %s3023_s21, %s3023_s21, %s3024_s20  }
 0x9d9   :  { %v1552_v20 = vpop.f32.mrf.mxu0 }
 0x9da   :  { %v2565_v20 = vor.u32 %v2796_v17, %v2562_v19  ;;  %v2815_v17 = vld [vmem:[%s4014_s13 + $0x48] sm:$0xff]  ;;  %v2814_v19 = vld [vmem:[%s4014_s13 + $0x40] sm:$0xff] }
 0x9f7   :  { %v1604_v37 = vpop.f32.mrf.mxu2 }
 0x9f8   :  { %v2873_v21 = vpack.i.bf16 %v1604_v37, %v1371_v9  ;;  %v2799_v9 = vld [vmem:[%s4013_s12 + $0x44] sm:$0xf0]  ;;  %v2552_v37 = vld [vmem:[%s4013_s12 + $0x20] sm:$0xf] }
 0x9f9   :  { %v2569_v10 = vor.u32 %v2799_v9, %v2568_v46 }
 0x9fa   :  { %2874 = vrot.lane.b32.xlu1 %v2873_v21, %s3020_s22  ;;  %v2795_v21 = vld [vmem:[%s4013_s12 + $0x24] sm:$0xf0] }
 0x9fb   :  { %v2553_v22 = vor.u32 %v2795_v21, %v2552_v37 }
 0x9ff   :  { %v1606_v16 = vpop.f32.mrf.mxu2 }
 0xa00   :  { %v2794_v16 = vld [vmem:[%s4013_s12 + $0x24] sm:$0xf] }
 0xa01   :  { %v2557_v45 = vor.u32 %v2794_v16, %v2554_v23 }
 0xa23   :  { %v2865_v29 = vpop.permute.xlu2 %2864 }
 0xa24   :  { %v2867_v31 = vunpack.i.h.bf16 %v2865_v29  ;;  %v2866_v32 = vunpack.i.l.bf16 %v2865_v29  ;;  %v2549_v29 = vor.u32 %v2792_v52, %v2546_v28 }
 0xa26   :  { %v1620_v38 = vsel %vm333_vm7, %v1439_v12, %v2867_v31  ;;  %v1387_v39 = vsel %vm333_vm7, %v3679_v40, %v2866_v32  ;;  %v2570_v12 = vld [vmem:[%s4013_s12 + $0x48] sm:$0xf0]  ;;  %v2791_v31 = vld [vmem:[%s4013_s12 + $0x4] sm:$0xf0]  ;;  %v2790_v32 = vld [vmem:[%s4013_s12 + $0x4] sm:$0xf] }
 0xa27   :  { %v2573_v13 = vor.u32 %v2798_v56, %v2570_v12 }
 0xa46   :  { %v2870_v0 = vpop.permute.xlu0 %2869 }
 0xa47   :  { %v2872_v33 = vunpack.i.h.bf16 %v2870_v0  ;;  %v2871_v34 = vunpack.i.l.bf16 %v2870_v0  ;;  %v2536_v0 = vld [vmem:[%s4013_s12] sm:$0xf] }
 0xa49   :  { %v1388_v42 = vsel %vm571_vm10, %v1387_v39, %v2871_v34  ;;  %v1621_v43 = vsel %vm571_vm10, %v1620_v38, %v2872_v33  ;;  %v2537_v34 = vor.u32 %v2791_v31, %v2536_v0 }
 0xa6c   :  { %v2875_v36 = vpop.permute.xlu1 %2874 }
 0xa6d   :  { %v2877_v2 = vunpack.i.h.bf16 %v2875_v36  ;;  %v2876_v41 = vunpack.i.l.bf16 %v2875_v36  ;;  %v2538_v36 = vld [vmem:[%s4013_s12 + $0x8] sm:$0xf0] }
 0xa6e   :  { %v2541_v39 = vor.u32 %v2790_v32, %v2538_v36 }
 0xa6f   :  { %v1389_v44 = vsel %vm573_vm11, %v1388_v42, %v2876_v41  ;;  %v1622_v47 = vsel %vm573_vm11, %v1621_v43, %v2877_v2  ;;  %v2813_v41 = vld [vmem:[%s4014_s13 + $0x38] sm:$0xff]  ;;  %v2812_v43 = vld [vmem:[%s4014_s13 + $0x30] sm:$0xff] }
 0xa70   :  { %v1623_v48 = vpack.c.bf16 %v1622_v47, %v1389_v44  ;;  %v2821_v42 = vld [vmem:[%s4014_s13 + $0x78] sm:$0xff]  ;;  %2001 = vmatpush.bf16.msrb.mxu2 %v2813_v41  ;;  %v2820_v44 = vld [vmem:[%s4014_s13 + $0x70] sm:$0xff] }
 0xa71   :  { %2015 = vmatpush.bf16.msrb.mxu3 %v2821_v42 }
 0xa72   :  { %1696 = vmatmul.bf16.vlgmr.msra.gmra.mxu3 %v1623_v48 }
 0xa74   :  { %2002 = vmatpush.bf16.msrb.mxu2 %v2812_v43  ;;  %v2712_v43 = vld [vmem:[%s4016_s15 + $0x60] sm:$0xf] }
 0xa75   :  { %2016 = vmatpush.bf16.msrb.mxu3 %v2820_v44  ;;  %v2835_v44 = vld [vmem:[%s4016_s15 + $0x64] sm:$0xf0] }
 0xaf5   :  { %v1697_v49 = vpop.f32.mrf.mxu3 }
 0xaf6   :  { %v3722_v50 = vadd.f32 %v1697_v49, %v3481_v25  ;;  %v2805_v25 = vld [vmem:[%s4013_s12 + $0x74] sm:$0xf0] }
 0xaf7   :  { %v2593_v58 = vor.u32 %v2805_v25, %v2592_v55 }
 0xaf8   :  { %v1705_v51 = vmul.f32 %v3722_v50, %v3722_v50 }
 0xaf9   :  { %1839 = vmatpush.bf16.msra.mxu0 %v2593_v58  ;;  %v2818_v58 = vld [vmem:[%s4014_s13 + $0x60] sm:$0xff] }
 0xafa   :  { %1707 = vadd.xlane.f32.xlu0 %v1705_v51 }
 0xafd   :  { %v1699_v40 = vpop.f32.mrf.mxu3  ;;  %1840 = vmatpush.bf16.msra.mxu0 %v2585_v62 }
 0xafe   :  { %v3727_v53 = vadd.f32 %v1699_v40, %v3504_v35  ;;  %v2594_v35 = vld [vmem:[%s4013_s12 + $0x78] sm:$0xf0]  ;;  %v2811_v40 = vld [vmem:[%s4014_s13 + $0x28] sm:$0xff] }
 0xaff   :  { %v2597_v30 = vor.u32 %v2804_v57, %v2594_v35  ;;  %2003 = vmatpush.bf16.msrb.mxu2 %v2811_v40  ;;  %v2810_v57 = vld [vmem:[%s4014_s13 + $0x20] sm:$0xff]  ;;  %v2704_v40 = vld [vmem:[%s4016_s15 + $0x50] sm:$0xf] }
 0xb00   :  { %v1706_v54 = vmul.f32 %v3727_v53, %v3727_v53 }
 0xb01   :  { %1853 = vmatpush.bf16.msra.mxu1 %v2597_v30  ;;  %1841 = vmatpush.bf16.msra.mxu0 %v2577_v6 }
 0xb02   :  { %1709 = vadd.xlane.f32.xlu1 %v1706_v54  ;;  %v2819_v54 = vld [vmem:[%s4014_s13 + $0x68] sm:$0xff] }
 0xb03   :  { %2017 = vmatpush.bf16.msrb.mxu3 %v2819_v54  ;;  %2004 = vmatpush.bf16.msrb.mxu2 %v2810_v57  ;;  %v2833_v54 = vld [vmem:[%s4016_s15 + $0x54] sm:$0xf0]  ;;  %v2706_v57 = vld [vmem:[%s4016_s15 + $0x58] sm:$0xf0] }
 0xb05   :  { %1854 = vmatpush.bf16.msra.mxu1 %v2589_v1  ;;  %1842 = vmatpush.bf16.msra.mxu0 %v2569_v10 }
 0xb07   :  { %2018 = vmatpush.bf16.msrb.mxu3 %v2818_v58  ;;  %2005 = vmatpush.bf16.msrb.mxu2 %v2809_v60 }
 0xb09   :  { %1855 = vmatpush.bf16.msra.mxu1 %v2581_v8  ;;  %1843 = vmatpush.bf16.msra.mxu0 %v2561_v18  ;;  %v2882_v8 = vld [vmem:[%s4012_s11] ss:$0 sm:$0xff] }
 0xb0a   :  { %v2806_v18 = vld [vmem:[%s4014_s13] sm:$0xff] }
 0xb0b   :  { %2019 = vmatpush.bf16.msrb.mxu3 %v2817_v61  ;;  %v2698_v61 = vld [vmem:[%s4016_s15 + $0x48] sm:$0xf0] }
 0xb0d   :  { %1856 = vmatpush.bf16.msra.mxu1 %v2573_v13  ;;  %1844 = vmatpush.bf16.msra.mxu0 %v2553_v22  ;;  %v2808_v13 = vld [vmem:[%s4014_s13 + $0x10] sm:$0xff] }
 0xb0e   :  { %2006 = vmatpush.bf16.msrb.mxu2 %v2808_v13  ;;  %v2825_v13 = vld [vmem:[%s4016_s15 + $0x14] sm:$0xf0] }
 0xb0f   :  { %2020 = vmatpush.bf16.msrb.mxu3 %v2816_v14  ;;  %v2824_v14 = vld [vmem:[%s4016_s15 + $0x14] sm:$0xf] }
 0xb11   :  { %1857 = vmatpush.bf16.msra.mxu1 %v2565_v20  ;;  %1845 = vmatpush.bf16.msra.mxu0 %v2545_v27 }
 0xb12   :  { %2007 = vmatpush.bf16.msrb.mxu2 %v2807_v15 }
 0xb13   :  { %2021 = vmatpush.bf16.msrb.mxu3 %v2815_v17  ;;  %v2674_v17 = vld [vmem:[%s4016_s15 + $0x18] sm:$0xf0] }
 0xb15   :  { %1858 = vmatpush.bf16.msra.mxu1 %v2557_v45  ;;  %1846 = vmatpush.bf16.msra.mxu0 %v2537_v34 }
 0xb16   :  { %2008 = vmatpush.bf16.msrb.mxu2 %v2806_v18  ;;  %v2677_v18 = vor.u32 %v2824_v14, %v2674_v17 }
 0xb17   :  { %2022 = vmatpush.bf16.msrb.mxu3 %v2814_v19  ;;  %v2664_v19 = vld [vmem:[%s4016_s15] sm:$0xf] }
 0xb19   :  { %1859 = vmatpush.bf16.msra.mxu1 %v2549_v29 }
 0xb1d   :  { %1860 = vmatpush.bf16.msra.mxu1 %v2541_v39  ;;  %v2720_v39 = vld [vmem:[%s4016_s15 + $0x70] sm:$0xf] }
 0xb6d   :  { %v1708_v33 = vpop.xlane.xlu0 %1707 }
 0xb6e   :  { %v1711_v38 = vmul.f32 %v1708_v33, %v3267_v11 }
 0xb70   :  { %v1713_v2 = vadd.f32 1e-06, %v1711_v38 }
 0xb72   :  { %2958 = vrsqrt.f32 %v1713_v2  ;;  %vm1721_vm4 = vweird.f32 %v1713_v2 }
 0xb75   :  { %v1710_v47 = vpop.xlane.xlu1 %1709 }
 0xb76   :  { %v1712_v48 = vmul.f32 %v1710_v47, %v3267_v11  ;;  %v2834_v47 = vld [vmem:[%s4016_s15 + $0x64] sm:$0xf] }
 0xb78   :  { %v2959_v49 = vpop.eup %2958  ;;  %v1714_v51 = vadd.f32 1e-06, %v1712_v48  ;;  %v2713_v48 = vor.u32 %v2835_v44, %v2712_v43  ;;  %v2883_v43 = vld [vmem:[%s4015_s14] ss:$0 sm:$0xff]  ;;  %s3025_s14 = smov [#allocation5]  }
 0xb79   :  { %v1716_v55 = vmul.f32 %v2959_v49, %v1713_v2  ;;  %vm1722_vm3 = vweird.f32 %v2959_v49  ;;  %v2836_v2 = vld [vmem:[%s4016_s15 + $0x74] sm:$0xf]  ;;  %s2220_s22 = sshll.u32 %s3025_s14, 4  ;;  %s2221_s22 = int_to_ptr.vmem [resolvable:$true] %s2220_s22 }
 0xb7a   :  { %2960 = vrsqrt.f32 %v1714_v51  ;;  %vm1723_vm5 = vmor %vm1721_vm4, %vm1722_vm3  ;;  %vm1731_vm7 = vweird.f32 %v1714_v51 }
 0xb7b   :  { %v1717_v25 = vmul.f32 %v2959_v49, %v1716_v55  ;;  %v2832_v55 = vld [vmem:[%s4016_s15 + $0x54] sm:$0xf] }
 0xb7c   :  { %v2709_v58 = vor.u32 %v2832_v55, %v2706_v57 }
 0xb7d   :  { %v1718_v35 = vmul.f32 0.5, %v1717_v25  ;;  %v2705_v25 = vor.u32 %v2833_v54, %v2704_v40 }
 0xb7f   :  { %v1719_v30 = vsub.f32 1.5, %v1718_v35  ;;  %v2696_v35 = vld [vmem:[%s4016_s15 + $0x40] sm:$0xf] }
 0xb80   :  { %v2961_v59 = vpop.eup %2960 }
 0xb81   :  { %v1726_v62 = vmul.f32 %v2961_v59, %v1714_v51  ;;  %v1720_v63 = vmul.f32 %v2959_v49, %v1719_v30  ;;  %vm1732_vm6 = vweird.f32 %v2961_v59  ;;  %v2831_v30 = vld [vmem:[%s4016_s15 + $0x44] sm:$0xf0] }
 0xb82   :  { %vm1733_vm8 = vmor %vm1731_vm7, %vm1732_vm6  ;;  %v2697_v60 = vor.u32 %v2831_v30, %v2696_v35 }
 0xb83   :  { %v1727_v1 = vmul.f32 %v2961_v59, %v1726_v62  ;;  %v1724_v4 = vsel %vm1723_vm5, %v2959_v49, %v1720_v63  ;;  %v2714_v49 = vld [vmem:[%s4016_s15 + $0x68] sm:$0xf0]  ;;  %v2688_v63 = vld [vmem:[%s4016_s15 + $0x30] sm:$0xf] }
 0xb84   :  { %v1735_v7 = vmul.f32 %v1724_v4, %v3722_v50  ;;  %v2717_v51 = vor.u32 %v2834_v47, %v2714_v49 }
 0xb85   :  { %v1728_v3 = vmul.f32 0.5, %v1727_v1  ;;  %v2829_v1 = vld [vmem:[%s4016_s15 + $0x34] sm:$0xf0] }
 0xb86   :  { %v1740_v56 = vmul.f32 %v2882_v8, %v1735_v7  ;;  %v2689_v4 = vor.u32 %v2829_v1, %v2688_v63  ;;  %v2680_v7 = vld [vmem:[%s4016_s15 + $0x20] sm:$0xf] }
 0xb87   :  { %v1729_v5 = vsub.f32 1.5, %v1728_v3  ;;  %v2828_v3 = vld [vmem:[%s4016_s15 + $0x34] sm:$0xf] }
 0xb89   :  { %v1730_v6 = vmul.f32 %v2961_v59, %v1729_v5  ;;  %v2690_v5 = vld [vmem:[%s4016_s15 + $0x38] sm:$0xf0] }
 0xb8b   :  { %v1734_v46 = vsel %vm1733_vm8, %v2961_v59, %v1730_v6  ;;  %v2830_v59 = vld [vmem:[%s4016_s15 + $0x44] sm:$0xf]  ;;  %v2693_v6 = vor.u32 %v2828_v3, %v2690_v5 }
 0xb8c   :  { %v1736_v9 = vmul.f32 %v1734_v46, %v3727_v53  ;;  %v2701_v62 = vor.u32 %v2830_v59, %v2698_v61  ;;  %v2826_v46 = vld [vmem:[%s4016_s15 + $0x24] sm:$0xf] }
 0xb8e   :  { %v1741_v10 = vmul.f32 %v2882_v8, %v1736_v9  ;;  %v2827_v8 = vld [vmem:[%s4016_s15 + $0x24] sm:$0xf0] }
 0xb8f   :  { %v2681_v9 = vor.u32 %v2827_v8, %v2680_v7 }
 0xb90   :  { %v1742_v12 = vpack.c.bf16 %v1741_v10, %v1740_v56  ;;  %v2682_v56 = vld [vmem:[%s4016_s15 + $0x28] sm:$0xf0] }
 0xb91   :  { %v2685_v10 = vor.u32 %v2826_v46, %v2682_v56 }
 0xb92   :  { %1847 = vmatmul.bf16.vlgmr.msra.gmra.mxu0 %v1742_v12  ;;  %1861 = vmatmul.bf16.vlgmr.msra.gmra.mxu1 %v1742_v12  ;;  %v2672_v12 = vld [vmem:[%s4016_s15 + $0x10] sm:$0xf] }
 0xb93   :  { %v2673_v15 = vor.u32 %v2825_v13, %v2672_v12 }
 0xc0f   :  { %v1848_v20 = vpop.f32.mrf.mxu0  ;;  %v1862_v37 = vpop.f32.mrf.mxu1 }
 0xc10   :  { %v1867_v22 = vmax.f32 %v1848_v20, 0.0  ;;  %v1868_v23 = vmax.f32 %v1862_v37, 0.0  ;;  %v2823_v20 = vld [vmem:[%s4016_s15 + $0x4] sm:$0xf0]  ;;  %v2822_v37 = vld [vmem:[%s4016_s15 + $0x4] sm:$0xf] }
 0xc17   :  { %v1850_v21 = vpop.f32.mrf.mxu0  ;;  %v1864_v16 = vpop.f32.mrf.mxu1 }
 0xc18   :  { %v1869_v45 = vmax.f32 %v1850_v21, 0.0  ;;  %v1870_v24 = vmax.f32 %v1864_v16, 0.0  ;;  %v2665_v16 = vor.u32 %v2823_v20, %v2664_v19 }
 0xc1a   :  { %v1871_v26 = vpack.c.bf16 %v1869_v45, %v1867_v22  ;;  %v1872_v52 = vpack.c.bf16 %v1870_v24, %v1868_v23  ;;  %v2666_v22 = vld [vmem:[%s4016_s15 + $0x8] sm:$0xf0] }
 0xc1b   :  { %v2669_v45 = vor.u32 %v2822_v37, %v2666_v22 }
 0xc1c   :  { %2009 = vmatmul.bf16.vlgmr.msrb.gmra.mxu2 %v1871_v26  ;;  %2023 = vmatmul.bf16.vlgmr.msrb.gmra.mxu3 %v1872_v52 }
 0xc9f   :  { %v2010_v27 = vpop.f32.mrf.mxu2  ;;  %v2024_v28 = vpop.f32.mrf.mxu3 }
 0xca0   :  { %v2025_v29 = vadd.f32 %v2024_v28, %v2010_v27 }
 0xca2   :  { %v3883_v0 = vadd.f32 %v2025_v29, %v3722_v50  ;;  %v2837_v50 = vld [vmem:[%s4016_s15 + $0x74] sm:$0xf0] }
 0xca3   :  { %v2721_v41 = vor.u32 %v2837_v50, %v2720_v39 }
 0xca4   :  { %v2037_v31 = vmul.f32 %v3883_v0, %v3883_v0 }
 0xca5   :  { %2171 = vmatpush.bf16.msrb.mxu0 %v2721_v41 }
 0xca6   :  { %2039 = vadd.xlane.f32.xlu2 %v2037_v31 }
 0xca7   :  { %v2012_v32 = vpop.f32.mrf.mxu2  ;;  %v2026_v33 = vpop.f32.mrf.mxu3 }
 0xca8   :  { %v2027_v34 = vadd.f32 %v2026_v33, %v2012_v32 }
 0xca9   :  { %2172 = vmatpush.bf16.msrb.mxu0 %v2713_v48 }
 0xcaa   :  { %v3888_v36 = vadd.f32 %v2027_v34, %v3727_v53  ;;  %v2722_v53 = vld [vmem:[%s4016_s15 + $0x78] sm:$0xf0] }
 0xcab   :  { %v2725_v42 = vor.u32 %v2836_v2, %v2722_v53 }
 0xcac   :  { %v2038_v38 = vmul.f32 %v3888_v36, %v3888_v36 }
 0xcad   :  { %2185 = vmatpush.bf16.msrb.mxu1 %v2725_v42  ;;  %2173 = vmatpush.bf16.msrb.mxu0 %v2705_v25 }
 0xcae   :  { %2041 = vadd.xlane.f32.xlu0 %v2038_v38 }
 0xcb1   :  { %2186 = vmatpush.bf16.msrb.mxu1 %v2717_v51  ;;  %2174 = vmatpush.bf16.msrb.mxu0 %v2697_v60 }
 0xcb5   :  { %2187 = vmatpush.bf16.msrb.mxu1 %v2709_v58  ;;  %2175 = vmatpush.bf16.msrb.mxu0 %v2689_v4 }
 0xcb9   :  { %2188 = vmatpush.bf16.msrb.mxu1 %v2701_v62  ;;  %2176 = vmatpush.bf16.msrb.mxu0 %v2681_v9 }
 0xcbd   :  { %2189 = vmatpush.bf16.msrb.mxu1 %v2693_v6  ;;  %2177 = vmatpush.bf16.msrb.mxu0 %v2673_v15 }
 0xcc1   :  { %2190 = vmatpush.bf16.msrb.mxu1 %v2685_v10  ;;  %2178 = vmatpush.bf16.msrb.mxu0 %v2665_v16 }
 0xcc5   :  { %2191 = vmatpush.bf16.msrb.mxu1 %v2677_v18 }
 0xcc9   :  { %2192 = vmatpush.bf16.msrb.mxu1 %v2669_v45 }
 0xd19   :  { %v2040_v21 = vpop.xlane.xlu2 %2039 }
 0xd1a   :  { %v2043_v23 = vmul.f32 %v2040_v21, %v3267_v11 }
 0xd1c   :  { %v2045_v24 = vadd.f32 1e-06, %v2043_v23 }
 0xd1e   :  { %2962 = vrsqrt.f32 %v2045_v24  ;;  %vm2053_vm10 = vweird.f32 %v2045_v24 }
 0xd21   :  { %v2042_v26 = vpop.xlane.xlu0 %2041 }
 0xd22   :  { %v2044_v52 = vmul.f32 %v2042_v26, %v3267_v11 }
 0xd24   :  { %v2963_v27 = vpop.eup %2962  ;;  %v2046_v28 = vadd.f32 1e-06, %v2044_v52 }
 0xd25   :  { %v2048_v29 = vmul.f32 %v2963_v27, %v2045_v24  ;;  %vm2054_vm9 = vweird.f32 %v2963_v27 }
 0xd26   :  { %2964 = vrsqrt.f32 %v2046_v28  ;;  %vm2055_vm11 = vmor %vm2053_vm10, %vm2054_vm9  ;;  %vm2063_vm13 = vweird.f32 %v2046_v28 }
 0xd27   :  { %v2049_v31 = vmul.f32 %v2963_v27, %v2048_v29 }
 0xd29   :  { %v2050_v32 = vmul.f32 0.5, %v2049_v31 }
 0xd2b   :  { %v2051_v33 = vsub.f32 1.5, %v2050_v32 }
 0xd2c   :  { %v2965_v34 = vpop.eup %2964 }
 0xd2d   :  { %v2058_v38 = vmul.f32 %v2965_v34, %v2046_v28  ;;  %v2052_v39 = vmul.f32 %v2963_v27, %v2051_v33  ;;  %vm2064_vm12 = vweird.f32 %v2965_v34 }
 0xd2e   :  { %vm2065_vm14 = vmor %vm2063_vm13, %vm2064_vm12 }
 0xd2f   :  { %v2059_v50 = vmul.f32 %v2965_v34, %v2058_v38  ;;  %v2056_v41 = vsel %vm2055_vm11, %v2963_v27, %v2052_v39 }
 0xd30   :  { %v2067_v11 = vmul.f32 %v2056_v41, %v3883_v0 }
 0xd31   :  { %v2060_v2 = vmul.f32 0.5, %v2059_v50 }
 0xd32   :  { %v2072_v48 = vmul.f32 %v2883_v43, %v2067_v11 }
 0xd33   :  { %v2061_v53 = vsub.f32 1.5, %v2060_v2 }
 0xd35   :  { %v2062_v42 = vmul.f32 %v2965_v34, %v2061_v53 }
 0xd37   :  { %v2066_v44 = vsel %vm2065_vm14, %v2965_v34, %v2062_v42 }
 0xd38   :  { %v2068_v47 = vmul.f32 %v2066_v44, %v3888_v36 }
 0xd3a   :  { %v2073_v49 = vmul.f32 %v2883_v43, %v2068_v47 }
 0xd3c   :  { %v2074_v51 = vpack.c.bf16 %v2073_v49, %v2072_v48 }
 0xd3e   :  { %2179 = vmatmul.bf16.vlgmr.msrb.gmra.mxu0 %v2074_v51  ;;  %2193 = vmatmul.bf16.vlgmr.msrb.gmra.mxu1 %v2074_v51 }
 0xdbb   :  { %v2180_v0 = vpop.f32.mrf.mxu0  ;;  %v2194_v40 = vpop.f32.mrf.mxu1 }
 0xdbc   :  { %2199 = vst [vmem:[#allocation5] sm:$0xff] %v2180_v0 }
 0xdbd   :  { %2200 = vst [vmem:[#allocation5 + $0x8] sm:$0xff] %v2194_v40 }
 0xdc3   :  { %v2182_v36 = vpop.f32.mrf.mxu0  ;;  %v2196_v54 = vpop.f32.mrf.mxu1 }
 0xdc4   :  { %2201 = vst [vmem:[#allocation5 + $0x10] sm:$0xff] %v2182_v36 }
 0xdc5   :  { %2202 = vst [vmem:[#allocation5 + $0x18] sm:$0xff] %v2196_v54 }
 0xdc6   :  { %2228 = dma.vmem_to_hbm [thread:$0]  %s2221_s22, 512, %s2223_s24, [#allocation6], %s3026_s16, %s3026_s16, %s3027_s2  }
 0xdc7   :  { %3014 = dma.done.wait [#allocation4], 256  }
 0xdc8   :  { %3015 = vsyncadd [#allocation4], 4294967040 }
 0xdc9   :  { %3016 = dma.done.wait [#allocation6], 512  }
 0xdca   :  { %3017 = vsyncadd [#allocation6], 4294966784 }
 0xdcb   :  { %2237 = vsyncpa [#allocation4], 1 }
 0xdcc   :  { %2238 = vsyncpa [#allocation6], 1 }

// kernel: forward_with_hydra.4
= control target key start
LH: loop header
LB: loop body
LE: loop exit
PB: predicated region body
PF: predicated region fallthrough
CT: control target
= control target key end

     0   :  { %s5500_s0 = inlined_call_operand.vmem [shape: f32[2,8,128], index: 0, kind: input, shape index: {}]   ;;  %s5501_s1 = inlined_call_operand.vmem [shape: f32[2,16,128], index: 1, kind: input, shape index: {}]   ;;  %s5502_s2 = inlined_call_operand.vmem [shape: f32[8,8,8], index: 2, kind: input, shape index: {}]   ;;  %s5503_s3 = inlined_call_operand.vmem [shape: f32[2,1,16], index: 3, kind: input, shape index: {}]   ;;  %s5504_s4 = inlined_call_operand.vmem [shape: f32[2,1,128], index: 4, kind: input, shape index: {}]   ;;  %s5505_s5 = inlined_call_operand.vmem [shape: bf16[2,128,384], index: 5, kind: input, shape index: {}]   ;;  %s5506_s6 = inlined_call_operand.vmem [shape: bf16[2,128,128], index: 6, kind: input, shape index: {}]   ;;  %s5507_s7 = inlined_call_operand.vmem [shape: f32[2,1,128], index: 7, kind: input, shape index: {}]   ;;  %s5508_s8 = inlined_call_operand.vmem [shape: bf16[2,128,128], index: 8, kind: input, shape index: {}]   ;;  %s5509_s9 = inlined_call_operand.vmem [shape: bf16[2,128,256], index: 9, kind: input, shape index: {}]   ;;  %s5510_s10 = inlined_call_operand.vmem [shape: bf16[2,128,128], index: 10, kind: input, shape index: {}]   ;;  %s5511_s11 = inlined_call_operand.vmem [shape: f32[2,1,128], index: 11, kind: input, shape index: {}]   ;;  %s5512_s12 = inlined_call_operand.vmem [shape: bf16[2,128,256], index: 12, kind: input, shape index: {}]   ;;  %s5513_s13 = inlined_call_operand.vmem [shape: bf16[2,256,128], index: 13, kind: input, shape index: {}]   ;;  %s5514_s14 = inlined_call_operand.vmem [shape: f32[1,128], index: 14, kind: input, shape index: {}]   ;;  %s5515_s15 = inlined_call_operand.vmem [shape: bf16[128,256], index: 15, kind: input, shape index: {}]   ;;  %s5516_s16 = inlined_call_operand.vmem [shape: bf16[128,256], index: 16, kind: input, shape index: {}]   ;;  %s5517_s17 = inlined_call_operand.vmem [shape: f32[1,256], index: 17, kind: input, shape index: {}]   ;;  %s5518_s18 = inlined_call_operand.vmem [shape: bf16[256,128], index: 18, kind: input, shape index: {}]   ;;  %s5519_s19 = inlined_call_operand.vmem [shape: f32[1,128], index: 19, kind: input, shape index: {}]   ;;  %s5520_s20 = inlined_call_operand.vmem [shape: f32[4,8,128], index: 20, kind: output, shape index: {0}]   ;;  %s5521_s21 = inlined_call_operand.hbm [shape: f32[2,8,128], index: 21, kind: output, shape index: {1}]   ;;  %s5522_s22 = inlined_call_operand.hbm [shape: f32[2,8,256], index: 22, kind: output, shape index: {2}]   ;;  %s5523_s23 = inlined_call_operand.vmem [shape: f32[2,8,128], index: 23, kind: output, shape index: {3}]  }
   0x1   :  { %5532 = sst [smem:[#allocation10_spill]] %s5500_s0 }
   0x2   :  { %5533 = sst [smem:[#allocation11_spill]] %s5501_s1 }
   0x3   :  { %5534 = sst [smem:[#allocation12_spill]] %s5502_s2 }
   0x4   :  { %5535 = sst [smem:[#allocation13_spill]] %s5503_s3 }
   0x5   :  { %5536 = sst [smem:[#allocation14_spill]] %s5504_s4 }
   0x6   :  { %5537 = sst [smem:[#allocation15_spill]] %s5505_s5 }
   0x7   :  { %5538 = sst [smem:[#allocation16_spill]] %s5506_s6 }
   0x8   :  { %5539 = sst [smem:[#allocation17_spill]] %s5507_s7 }
   0x9   :  { %5540 = sst [smem:[#allocation18_spill]] %s5508_s8 }
   0xa   :  { %5541 = sst [smem:[#allocation19_spill]] %s5514_s14 }
   0xb   :  { %5542 = sst [smem:[#allocation20_spill]] %s5516_s16 }
   0xc   :  { %5543 = sst [smem:[#allocation21_spill]] %s5517_s17 }
   0xd   :  { %5544 = sst [smem:[#allocation22_spill]] %s5518_s18 }
   0xe   :  { %5545 = sst [smem:[#allocation23_spill]] %s5519_s19 }
   0xf   :  { %5546 = sst [smem:[#allocation24_spill]] %s5521_s21 }
  0x10   :  { %5547 = sst [smem:[#allocation25_spill]] %s5522_s22 }
  0x11   :  { %5548 = sst [smem:[#allocation26_spill]] %s5523_s23 }
  0x12   :  { %29 = vsyncpa [#allocation4], 0 }
  0x13   :  { %30 = vsyncpa [#allocation6], 0  ;;  %s4675_s4 = smov 0  }
  0x14 LB: > { %5549 = sst [smem:[#allocation9_spill]] %s4543_s4  ;;  %s4681_s30 = sadd.s32 4294967295, %s4543_s4   ;;  %s4543_s4 = sphi %s4675_s4, %s36_s4  }
  0x15   : > { %p3534_p0 = scmp.ge.s32.totalorder %s4543_s4, 1  ;;  %p715_p1 = scmp.lt.s32.totalorder %s4543_s4, 3 }
  0x17   : > { %p716_p2 = pnand %p3534_p0, %p715_p1 }
  0x18   : > { %p818_p3 = scmp.lt.s32.totalorder (!%p716_p2), %s4681_s30, 1  ;;  %s3548_s24 = sshll.u32 (!%p716_p2), %s4681_s30, 1 }
  0x19   : > { %719 = sbr.rel (%p716_p2) target bundleno = 3748 (0xea4), region = 100  ;;  %p863_p4 = scmp.lt.s32.totalorder (!%p716_p2), %s3548_s24, 3 }
  0x1a   : > { %s5552_s22 = sld [smem:[#allocation15_spill]] (!%p716_p2)  ;;  %p3550_p5 = scmp.ne.s32.totalorder (!%p716_p2), %s4681_s30, 0 }
  0x1b   : > { %s5553_s17 = sld [smem:[#allocation16_spill]] (!%p716_p2) }
  0x1c   : > { %s5554_s8 = sld [smem:[#allocation18_spill]] (!%p716_p2) }
  0x1e   : > { %s4688_s25 = scalar_select %p818_p3, %s4681_s30, 1 }
  0x1f   : > { %s5573_s24 = smov (!%p863_p4, %s3548_s24), 3 }
  0x20   : > { %s4323_s6 = smul.u32 192, %s4688_s25  ;;  %s4173_s27 = sshll.u32 %s4688_s25, 6 }
  0x21   : > { %s4708_s14 = scalar_lea.vmem %s5553_s17, %s4173_s27  ;;  %s4175_s1 = sshll.u32 %s4688_s25, 7 }
  0x22   : > { %s4703_s21 = scalar_lea.vmem %s5552_s22, %s4323_s6  ;;  %s4713_s5 = scalar_lea.vmem %s5554_s8, %s4173_s27 }
  0x23   : > { %s4719_s7 = scalar_lea.vmem %s5509_s9, %s4175_s1  ;;  %s4724_s22 = scalar_lea.vmem %s5510_s10, %s4173_s27 }
  0x24   : > { %s851_s17 = scalar_lea.vmem %s5511_s11, %s4688_s25  ;;  %s4733_s16 = scalar_lea.vmem %s5512_s12, %s4175_s1 }
  0x25   : > { %s4738_s2 = scalar_lea.vmem %s5513_s13, %s4175_s1  ;;  %s3549_s26 = sshll.u32 %s5573_s24, 3 }
  0x26   : > { %s866_s27 = scalar_lea.vmem %s5520_s20, %s3549_s26  ;;  %872 = sbr.rel (%p3550_p5) target bundleno = 48 (0x30), region = 104 }
  0x27   : > { %s5555_s6 = sld [smem:[#allocation10_spill]] (!%p3550_p5) }
  0x2d   : > { %v873_v0 = vld [vmem:[%s5555_s6] sm:$0xff]  ;;  %v874_v1 = vld [vmem:[%s5555_s6 + $0x8] sm:$0xff] }
  0x2e   : > { %875 = vst [vmem:[#allocation2] sm:$0xff] %v873_v0 }
  0x2f   : > { %876 = vst [vmem:[#allocation2 + $0x8] sm:$0xff] %v874_v1 }
  0x30 PF: > { %v3637_v6 = vld [vmem:[%s4703_s21 + $0xa8] sm:$0xf]  ;;  %v4201_v7 = vld [vmem:[%s4703_s21 + $0xb0] sm:$0xf0]  ;;  %v4200_v8 = vld [vmem:[%s4703_s21 + $0xac] sm:$0xf] }
  0x31   : > { %v3638_v9 = vor.u32 %v4201_v7, %v3637_v6  ;;  %v3639_v10 = vld [vmem:[%s4703_s21 + $0xb4] sm:$0xf0]  ;;  %v3645_v11 = vld [vmem:[%s4703_s21 + $0xb0] sm:$0xf]  ;;  %v4202_v12 = vld [vmem:[%s4703_s21 + $0xb8] sm:$0xf0] }
  0x32   : > { %v4545_v13 = vmov 128.0   ;;  %v3642_v14 = vor.u32 %v4200_v8, %v3639_v10  ;;  %v3646_v15 = vor.u32 %v4202_v12, %v3645_v11  ;;  %v3625_v16 = vld [vmem:[%s4703_s21 + $0x90] sm:$0xf]  ;;  %v4198_v17 = vld [vmem:[%s4703_s21 + $0x98] sm:$0xf0]  ;;  %s5556_s24 = sld [smem:[#allocation14_spill]] }
  0x33   : > { %4389 = vrcp.f32 %v4545_v13  ;;  %1093 = vmatpush.bf16.msra.mxu0 %v3638_v9  ;;  %v4197_v18 = vld [vmem:[%s4703_s21 + $0x94] sm:$0xf]  ;;  %v3626_v19 = vor.u32 %v4198_v17, %v3625_v16  ;;  %v3627_v20 = vld [vmem:[%s4703_s21 + $0x9c] sm:$0xf0]  ;;  %v3633_v21 = vld [vmem:[%s4703_s21 + $0x98] sm:$0xf] }
  0x34   : > { %1107 = vmatpush.bf16.msra.mxu1 %v3642_v14  ;;  %1121 = vmatpush.bf16.msra.mxu2 %v3646_v15  ;;  %v4199_v22 = vld [vmem:[%s4703_s21 + $0xa0] sm:$0xf0]  ;;  %v3630_v23 = vor.u32 %v4197_v18, %v3627_v20  ;;  %v3613_v26 = vld [vmem:[%s4703_s21 + $0x78] sm:$0xf]  ;;  %v4194_v28 = vld [vmem:[%s4703_s21 + $0x7c] sm:$0xf] }
  0x35   : > { %v4750_v2 = vld [vmem:[#allocation2] sm:$0xff]  ;;  %v3634_v24 = vor.u32 %v4199_v22, %v3633_v21  ;;  %v3615_v30 = vld [vmem:[%s4703_s21 + $0x84] sm:$0xf0]  ;;  %v4196_v32 = vld [vmem:[%s4703_s21 + $0x88] sm:$0xf0]  ;;  %vm1144_vm7 = vcmask 261120  }
  0x36   : > { %v4752_v3 = vld [vmem:[#allocation2 + $0x8] sm:$0xff]  ;;  %v888_v4 = vmul.f32 %v4750_v2, %v4750_v2  ;;  %879 = vst [vmem:[%s866_s27] sm:$0xff] %v4750_v2  ;;  %v4195_v27 = vld [vmem:[%s4703_s21 + $0x80] sm:$0xf0]  ;;  %v3621_v31 = vld [vmem:[%s4703_s21 + $0x80] sm:$0xf]  ;;  %v3618_v33 = vor.u32 %v4194_v28, %v3615_v30  ;;  %s4546_s1 = smov 64  }
  0x37   : > { %880 = vst [vmem:[%s866_s27 + $0x8] sm:$0xff] %v4752_v3  ;;  %v889_v5 = vmul.f32 %v4752_v3, %v4752_v3  ;;  %1094 = vmatpush.bf16.msra.mxu0 %v3626_v19  ;;  %v3614_v29 = vor.u32 %v4195_v27, %v3613_v26  ;;  %v3622_v34 = vor.u32 %v4196_v32, %v3621_v31  ;;  %v3601_v36 = vld [vmem:[%s4703_s21 + $0x60] sm:$0xf]  ;;  %v4192_v37 = vld [vmem:[%s4703_s21 + $0x68] sm:$0xf0]  ;;  %s4547_s29 = smov 96  }
  0x38   : > { %890 = vadd.xlane.f32.xlu0 %v888_v4  ;;  %1108 = vmatpush.bf16.msra.mxu1 %v3630_v23  ;;  %v4191_v38 = vld [vmem:[%s4703_s21 + $0x64] sm:$0xf]  ;;  %v3602_v39 = vor.u32 %v4192_v37, %v3601_v36  ;;  %v3603_v40 = vld [vmem:[%s4703_s21 + $0x6c] sm:$0xf0]  ;;  %v3609_v41 = vld [vmem:[%s4703_s21 + $0x68] sm:$0xf]  ;;  %s5557_s3 = scalar_lea.vmem %s5556_s24, %s4688_s25 }
  0x39   : > { %v4772_v25 = vpop.eup %4389  ;;  %1122 = vmatpush.bf16.msra.mxu2 %v3634_v24  ;;  %v4193_v42 = vld [vmem:[%s4703_s21 + $0x70] sm:$0xf0]  ;;  %v3606_v43 = vor.u32 %v4191_v38, %v3603_v40  ;;  %v3589_v46 = vld [vmem:[%s4703_s21 + $0x48] sm:$0xf]  ;;  %v4188_v48 = vld [vmem:[%s4703_s21 + $0x4c] sm:$0xf] }
  0x3a   : > { %v895_v35 = vmul.f32 128.0, %v4772_v25  ;;  %v3610_v44 = vor.u32 %v4193_v42, %v3609_v41  ;;  %v4189_v47 = vld [vmem:[%s4703_s21 + $0x50] sm:$0xf0]  ;;  %v3591_v50 = vld [vmem:[%s4703_s21 + $0x54] sm:$0xf0]  ;;  %vm899_vm0 = vweird.f32 %v4772_v25  ;;  %vm1181_vm8 = vcmask 1043456  }
  0x3b   : > { %1095 = vmatpush.bf16.msra.mxu0 %v3614_v29  ;;  %v3590_v49 = vor.u32 %v4189_v47, %v3589_v46  ;;  %v3597_v51 = vld [vmem:[%s4703_s21 + $0x50] sm:$0xf]  ;;  %v4190_v52 = vld [vmem:[%s4703_s21 + $0x58] sm:$0xf0]  ;;  %v3594_v53 = vor.u32 %v4188_v48, %v3591_v50  ;;  %v4185_v58 = vld [vmem:[%s4703_s21 + $0x34] sm:$0xf] }
  0x3c   : > { %1109 = vmatpush.bf16.msra.mxu1 %v3618_v33  ;;  %v896_v45 = vsub.f32 1.0, %v895_v35  ;;  %v3598_v54 = vor.u32 %v4190_v52, %v3597_v51  ;;  %v3577_v56 = vld [vmem:[%s4703_s21 + $0x30] sm:$0xf]  ;;  %v4186_v57 = vld [vmem:[%s4703_s21 + $0x38] sm:$0xf0]  ;;  %s4548_s18 = smov 32  }
  0x3d   : > { %1123 = vmatpush.bf16.msra.mxu2 %v3622_v34  ;;  %v3578_v59 = vor.u32 %v4186_v57, %v3577_v56  ;;  %v3579_v60 = vld [vmem:[%s4703_s21 + $0x3c] sm:$0xf0]  ;;  %v3585_v61 = vld [vmem:[%s4703_s21 + $0x38] sm:$0xf]  ;;  %v4187_v62 = vld [vmem:[%s4703_s21 + $0x40] sm:$0xf0] }
  0x3e   : > { %v897_v55 = vmul.f32 %v4772_v25, %v896_v45  ;;  %v3582_v63 = vor.u32 %v4185_v58, %v3579_v60  ;;  %v3586_v0 = vor.u32 %v4187_v62, %v3585_v61  ;;  %v3565_v4 = vld [vmem:[%s4703_s21 + $0x18] sm:$0xf]  ;;  %v4182_v6 = vld [vmem:[%s4703_s21 + $0x1c] sm:$0xf]  ;;  %v3567_v8 = vld [vmem:[%s4703_s21 + $0x24] sm:$0xf0] }
  0x3f   : > { %1096 = vmatpush.bf16.msra.mxu0 %v3602_v39  ;;  %v3573_v9 = vld [vmem:[%s4703_s21 + $0x20] sm:$0xf]  ;;  %v4184_v10 = vld [vmem:[%s4703_s21 + $0x28] sm:$0xf0]  ;;  %v3570_v11 = vor.u32 %v4182_v6, %v3567_v8  ;;  %v4179_v16 = vld [vmem:[%s4703_s21 + $0x4] sm:$0xf] }
  0x40   : > { %892 = vadd.xlane.f32.xlu0 %v889_v5  ;;  %1110 = vmatpush.bf16.msra.mxu1 %v3606_v43  ;;  %v898_v1 = vadd.f32 %v4772_v25, %v897_v55  ;;  %v4183_v5 = vld [vmem:[%s4703_s21 + $0x20] sm:$0xf0]  ;;  %v3574_v12 = vor.u32 %v4184_v10, %v3573_v9  ;;  %v3553_v14 = vld [vmem:[%s4703_s21] sm:$0xf]  ;;  %v4180_v15 = vld [vmem:[%s4703_s21 + $0x8] sm:$0xf0] }
  0x41   : > { %1124 = vmatpush.bf16.msra.mxu2 %v3610_v44  ;;  %v3566_v7 = vor.u32 %v4183_v5, %v3565_v4  ;;  %v3554_v17 = vor.u32 %v4180_v15, %v3553_v14  ;;  %v3555_v18 = vld [vmem:[%s4703_s21 + $0xc] sm:$0xf0]  ;;  %v3561_v19 = vld [vmem:[%s4703_s21 + $0x8] sm:$0xf]  ;;  %v4181_v20 = vld [vmem:[%s4703_s21 + $0x10] sm:$0xf0] }
  0x42   : > { %v4809_v13 = vsel %vm899_vm0, %v4772_v25, %v898_v1  ;;  %v3558_v22 = vor.u32 %v4179_v16, %v3555_v18  ;;  %v3562_v23 = vor.u32 %v4181_v20, %v3561_v19  ;;  %v4384_v43 = vld [vmem:[%s5557_s3] ss:$0 sm:$0xff]  ;;  %s5558_s27 = sld [smem:[#allocation12_spill]]  ;;  %vm1164_vm9 = vcmask 64512   ;;  %p3974_p6 = scmp.ne.s32.totalorder %s4681_s30, 1 }
  0x43   : > { %1097 = vmatpush.bf16.msra.mxu0 %v3590_v49  ;;  %vm1382_vm10 = vcmask 523264   ;;  %vm1384_vm11 = vcmask 785408   ;;  %s5559_s21 = sld [smem:[#allocation11_spill]] }
  0x44   : > { %1111 = vmatpush.bf16.msra.mxu1 %v3594_v53  ;;  %s5560_s23 = sld [smem:[#allocation17_spill]] }
  0x45   : > { %1125 = vmatpush.bf16.msra.mxu2 %v3598_v54  ;;  %s5562_s3 = sld [smem:[#allocation13_spill]] }
  0x46   : > { %s5563_s19 = sld [smem:[#allocation20_spill]] (!%p3974_p6) }
  0x47   : > { %1098 = vmatpush.bf16.msra.mxu0 %v3578_v59  ;;  %s5566_s26 = sld [smem:[#allocation21_spill]] (!%p3974_p6) }
  0x48   : > { %1112 = vmatpush.bf16.msra.mxu1 %v3582_v63  ;;  %v1135_v10 = vld [vmem:[%s5558_s27] sm:$0xff]  ;;  %v3648_v18 = vld [vmem:[%s5558_s27 + $0x10] sm:$0xff]  ;;  %s5568_s8 = sld [smem:[#allocation26_spill]] (!%p3974_p6) }
  0x49   : > { %1126 = vmatpush.bf16.msra.mxu2 %v3586_v0 }
  0x4b   : > { %1099 = vmatpush.bf16.msra.mxu0 %v3566_v7 }
  0x4c   : > { %1113 = vmatpush.bf16.msra.mxu1 %v3570_v11 }
  0x4d   : > { %1127 = vmatpush.bf16.msra.mxu2 %v3574_v12 }
  0x4f   : > { %1100 = vmatpush.bf16.msra.mxu0 %v3554_v17 }
  0x50   : > { %1114 = vmatpush.bf16.msra.mxu1 %v3558_v22 }
  0x51   : > { %1128 = vmatpush.bf16.msra.mxu2 %v3562_v23 }
  0xab   : > { %v891_v21 = vpop.xlane.xlu0 %890 }
  0xac   : > { %v901_v24 = vmul.f32 %v4809_v13, %v891_v21 }
  0xae   : > { %v903_v26 = vadd.f32 1e-06, %v901_v24 }
  0xb0   : > { %4391 = vrsqrt.f32 %v903_v26  ;;  %vm911_vm2 = vweird.f32 %v903_v26 }
  0xb3   : > { %v893_v25 = vpop.xlane.xlu0 %892 }
  0xb4   : > { %v902_v27 = vmul.f32 %v4809_v13, %v893_v25 }
  0xb6   : > { %v4392_v28 = vpop.eup %4391  ;;  %v904_v29 = vadd.f32 1e-06, %v902_v27 }
  0xb7   : > { %v906_v30 = vmul.f32 %v4392_v28, %v903_v26  ;;  %vm912_vm1 = vweird.f32 %v4392_v28 }
  0xb8   : > { %4393 = vrsqrt.f32 %v904_v29  ;;  %vm913_vm3 = vmor %vm911_vm2, %vm912_vm1  ;;  %vm921_vm5 = vweird.f32 %v904_v29  ;;  %vm1991_vm2 = vcmask 130048  }
  0xb9   : > { %v907_v31 = vmul.f32 %v4392_v28, %v906_v30  ;;  %v3660_v30 = vld [vmem:[%s5558_s27 + $0x30] sm:$0xff] }
  0xbb   : > { %v908_v32 = vmul.f32 0.5, %v907_v31 }
  0xbd   : > { %v909_v33 = vsub.f32 1.5, %v908_v32 }
  0xbe   : > { %v4394_v34 = vpop.eup %4393 }
  0xbf   : > { %v916_v35 = vmul.f32 %v4394_v34, %v904_v29  ;;  %v910_v36 = vmul.f32 %v4392_v28, %v909_v33  ;;  %vm922_vm4 = vweird.f32 %v4394_v34 }
  0xc0   : > { %vm923_vm6 = vmor %vm921_vm5, %vm922_vm4 }
  0xc1   : > { %v917_v37 = vmul.f32 %v4394_v34, %v916_v35  ;;  %v914_v39 = vsel %vm913_vm3, %v4392_v28, %v910_v36  ;;  %v3658_v35 = vld [vmem:[%s5558_s27 + $0x20] sm:$0xff] }
  0xc2   : > { %v925_v42 = vmul.f32 %v914_v39, %v4750_v2 }
  0xc3   : > { %v918_v38 = vmul.f32 0.5, %v917_v37 }
  0xc4   : > { %v930_v46 = vmul.f32 %v4384_v43, %v925_v42 }
  0xc5   : > { %v919_v40 = vsub.f32 1.5, %v918_v38 }
  0xc7   : > { %v920_v41 = vmul.f32 %v4394_v34, %v919_v40 }
  0xc9   : > { %v924_v44 = vsel %vm923_vm6, %v4394_v34, %v920_v41 }
  0xca   : > { %v926_v45 = vmul.f32 %v924_v44, %v4752_v3 }
  0xcc   : > { %v931_v47 = vmul.f32 %v4384_v43, %v926_v45 }
  0xce   : > { %v932_v48 = vpack.c.bf16 %v931_v47, %v930_v46 }
  0xd0   : > { %1101 = vmatmul.bf16.vlgmr.msra.gmra.mxu0 %v932_v48  ;;  %1115 = vmatmul.bf16.vlgmr.msra.gmra.mxu1 %v932_v48 }
  0xd1   : > { %1129 = vmatmul.bf16.vlgmr.msra.gmra.mxu2 %v932_v48 }
 0x14d   : > { %v1102_v49 = vpop.f32.mrf.mxu0  ;;  %v1116_v50 = vpop.f32.mrf.mxu1 }
 0x14e   : > { %v4826_v51 = vpack.c.bf16 %v1116_v50, %v1116_v50  ;;  %v1142_v56 = vpack.c.bf16 %v1102_v49, %v1102_v49 }
 0x150   : > { %1259 = vrot.lane.b32.xlu0 %v4826_v51, %s4546_s1  ;;  %1202 = vrot.lane.b32.xlu2 %v4826_v51, %s4547_s29  ;;  %v1149_v52 = vsel %vm1144_vm7, %v4826_v51, 0 }
 0x151   : > { %1158 = vmatpush.bf16.xpose.msrb.mxu0 %v1149_v52 }
 0x154   : > { %v1130_v53 = vpop.f32.mrf.mxu2 }
 0x155   : > { %v4834_v54 = vpack.c.bf16 %v1130_v53, %v1130_v53  ;;  %v1104_v55 = vpop.f32.mrf.mxu0  ;;  %v1118_v59 = vpop.f32.mrf.mxu1  ;;  %v3647_v53 = vld [vmem:[%s5558_s27 + $0x8] sm:$0xff] }
 0x156   : > { %v1394_v57 = vpack.c.bf16 %v1104_v55, %v1104_v55  ;;  %v1395_v60 = vpack.c.bf16 %v1118_v59, %v1118_v59 }
 0x157   : > { %v1183_v58 = vsel %vm1181_vm8, %v4834_v54, 0 }
 0x158   : > { %1192 = vmatpush.bf16.msra.mxu3 %v1183_v58  ;;  %1199 = vrot.lane.b32.xlu2 %v1142_v56, %s4547_s29  ;;  %v1400_v6 = vsel %vm1144_vm7, %v1395_v60, 0 }
 0x159   : > { %3650 = vmatmul.msk.bf16.vlgmr.msrb.gmra.mxu0 %vm1144_vm7, %v1142_v56  ;;  %1448 = vrot.lane.b32.xlu0 %v1394_v57, %s4547_s29 }
 0x160   : > { %1257 = vrot.lane.b32.xlu2 %v1142_v56, %s4546_s1 }
 0x161   : > { %1506 = vrot.lane.b32.xlu0 %v1394_v57, %s4546_s1 }
 0x168   : > { %1313 = vrot.lane.b32.xlu2 %v1142_v56, %s4548_s18 }
 0x170   : > { %1451 = vrot.lane.b32.xlu2 %v1395_v60, %s4547_s29 }
 0x178   : > { %1508 = vrot.lane.b32.xlu2 %v1395_v60, %s4546_s1 }
 0x180   : > { %1562 = vrot.lane.b32.xlu2 %v1394_v57, %s4548_s18 }
 0x1aa   : > { %v1203_v61 = vpop.permute.xlu2 %1202 }
 0x1ab   : > { %v1208_v62 = vsel %vm1144_vm7, %v1203_v61, 0  ;;  %v3649_v61 = vld [vmem:[%s5558_s27 + $0x18] sm:$0xff] }
 0x1ac   : > { %1217 = vmatpush.bf16.xpose.msrb.mxu3 %v1208_v62 }
 0x1b2   : > { %v1200_v63 = vpop.permute.xlu2 %1199 }
 0x1ba   : > { %v1258_v0 = vpop.permute.xlu2 %1257 }
 0x1c2   : > { %v1260_v1 = vpop.permute.xlu0 %1259  ;;  %v1314_v4 = vpop.permute.xlu2 %1313 }
 0x1c3   : > { %v1265_v5 = vsel %vm1144_vm7, %v1260_v1, 0 }
 0x1c4   : > { %1274 = vmatpush.bf16.xpose.msrb.mxu1 %v1265_v5 }
 0x1ca   : > { %v1452_v7 = vpop.permute.xlu2 %1451 }
 0x1cb   : > { %3654 = vmatmul.msk.bf16.vlgmr.msrb.gmra.mxu1 %vm1144_vm7, %v1258_v0  ;;  %v1449_v16 = vpop.permute.xlu0 %1448  ;;  %v1457_v44 = vsel %vm1144_vm7, %v1452_v7, 0 }
 0x1cc   : > { %1409 = vmatpush.bf16.xpose.msra.mxu1 %v1400_v6 }
 0x1d2   : > { %v1509_v8 = vpop.permute.xlu2 %1508 }
 0x1d3   : > { %v1514_v9 = vsel %vm1144_vm7, %v1509_v8, 0  ;;  %v1507_v17 = vpop.permute.xlu0 %1506 }
 0x1d4   : > { %1523 = vmatpush.bf16.xpose.msrb.mxu1 %v1514_v9 }
 0x1d6   : > { %v1160_v11 = vpop.f32.mrf.mxu0 }
 0x1d7   : > { %v1161_v12 = vadd.f32 %v1160_v11, %v1135_v10 }
 0x1d9   : > { %v1165_v14 = vsel %vm1164_vm9, %v1161_v12, -inf }
 0x1da   : > { %1166 = vmax.xlane.f32.xlu1 %v1165_v14  ;;  %v1563_v47 = vpop.permute.xlu2 %1562 }
 0x1db   : > { %3662 = vmatmul.msk.bf16.vlgmr.msra.gmra.mxu1 %vm1144_vm7, %v1394_v57 }
 0x1de   : > { %v1162_v15 = vpop.f32.mrf.mxu0 }
 0x1df   : > { %v3661_v15 = vld [vmem:[%s5558_s27 + $0x38] sm:$0xff] }
 0x1eb   : > { %3666 = vmatmul.msk.bf16.vlgmr.msrb.gmra.mxu1 %vm1144_vm7, %v1507_v17 }
 0x248   : > { %v1276_v19 = vpop.f32.mrf.mxu1 }
 0x249   : > { %v1277_v20 = vadd.f32 %v3648_v18, %v1276_v19 }
 0x24b   : > { %v1280_v21 = vsel %vm1164_vm9, %v1277_v20, -inf }
 0x24c   : > { %1281 = vmax.xlane.f32.xlu0 %v1280_v21 }
 0x24d   : > { %v1167_v22 = vpop.xlane.xlu1 %1166 }
 0x24e   : > { %v1168_v23 = vsub.f32 %v1161_v12, %v1167_v22 }
 0x250   : > { %v1169_v24 = vmul.f32 1.442695, %v1168_v23  ;;  %v1278_v26 = vpop.f32.mrf.mxu1 }
 0x252   : > { %4395 = vpow2.f32 %v1169_v24 }
 0x258   : > { %v4396_v25 = vpop.eup %4395  ;;  %v1411_v27 = vpop.f32.mrf.mxu1 }
 0x259   : > { %v1171_v28 = vsel %vm1164_vm9, %v4396_v25, 0.0  ;;  %v1412_v36 = vadd.f32 %v3658_v35, %v1411_v27 }
 0x25a   : > { %1172 = vadd.xlane.f32.xlu1 %v1171_v28 }
 0x25b   : > { %v1415_v37 = vsel %vm1164_vm9, %v1412_v36, -inf }
 0x260   : > { %v1413_v29 = vpop.f32.mrf.mxu1 }
 0x268   : > { %v1525_v31 = vpop.f32.mrf.mxu1 }
 0x269   : > { %v4866_v32 = vadd.f32 %v3660_v30, %v1525_v31 }
 0x26b   : > { %v1529_v33 = vsel %vm1164_vm9, %v4866_v32, -inf }
 0x26c   : > { %1530 = vmax.xlane.f32.xlu2 %v1529_v33 }
 0x270   : > { %v1527_v34 = vpop.f32.mrf.mxu1 }
 0x273   : > { %1315 = vrot.lane.b32.xlu1 %v4826_v51, %s4548_s18 }
 0x27b   : > { %1564 = vrot.lane.b32.xlu1 %v1395_v60, %s4548_s18 }
 0x2a5   : > { %1416 = vmax.xlane.f32.xlu1 %v1415_v37 }
 0x2bf   : > { %v1282_v49 = vpop.xlane.xlu0 %1281 }
 0x2c0   : > { %v1283_v51 = vsub.f32 %v1277_v20, %v1282_v49  ;;  %v1132_v20 = vpop.f32.mrf.mxu2 }
 0x2c1   : > { %v1427_v21 = vpack.c.bf16 %v1132_v20, %v1132_v20 }
 0x2c2   : > { %v1284_v52 = vmul.f32 1.442695, %v1283_v51 }
 0x2cd   : > { %v1173_v38 = vpop.xlane.xlu1 %1172 }
 0x2ce   : > { %4397 = vrcp.f32 %v1173_v38 }
 0x2cf   : > { %4399 = vpow2.f32 %v1284_v52 }
 0x2d4   : > { %v4398_v39 = vpop.eup %4397 }
 0x2d5   : > { %v1175_v40 = vmul.f32 %v4398_v39, %v4396_v25  ;;  %v4400_v58 = vpop.eup %4399 }
 0x2d6   : > { %v1286_v60 = vsel %vm1164_vm9, %v4400_v58, 0.0 }
 0x2d7   : > { %v1176_v41 = vpack.c.bf16 %v1175_v40, %v1175_v40 }
 0x2d9   : > { %3651 = vmatmul.msk.bf16.vlgmr.msra.gmra.mxu3 %vm1164_vm9, %v1176_v41 }
 0x2df   : > { %v1531_v24 = vpop.xlane.xlu2 %1530 }
 0x2e0   : > { %v1532_v26 = vsub.f32 %v4866_v32, %v1531_v24 }
 0x2e2   : > { %v1533_v28 = vmul.f32 1.442695, %v1532_v26 }
 0x2e5   : > { %v1316_v42 = vpop.permute.xlu1 %1315 }
 0x2e6   : > { %v1321_v43 = vsel %vm1144_vm7, %v1316_v42, 0 }
 0x2e7   : > { %1330 = vmatpush.bf16.xpose.msra.mxu3 %v1321_v43 }
 0x2e9   : > { %3652 = vmatmul.msk.bf16.vlgmr.msrb.gmra.mxu3 %vm1144_vm7, %v1200_v63 }
 0x2ed   : > { %v1565_v45 = vpop.permute.xlu1 %1564 }
 0x2ee   : > { %v1570_v46 = vsel %vm1144_vm7, %v1565_v45, 0  ;;  %v1432_v45 = vsel %vm1181_vm8, %v1427_v21, 0 }
 0x2ef   : > { %1466 = vmatpush.bf16.xpose.msrb.mxu3 %v1457_v44 }
 0x2f9   : > { %3656 = vmatmul.msk.bf16.vlgmr.msra.gmra.mxu3 %vm1144_vm7, %v1314_v4  ;;  %v3659_v4 = vld [vmem:[%s5558_s27 + $0x28] sm:$0xff] }
 0x2fa   : > { %1579 = vmatpush.bf16.xpose.msra.mxu3 %v1570_v46 }
 0x309   : > { %3664 = vmatmul.msk.bf16.vlgmr.msrb.gmra.mxu3 %vm1144_vm7, %v1449_v16 }
 0x318   : > { %v1417_v11 = vpop.xlane.xlu1 %1416 }
 0x319   : > { %3668 = vmatmul.msk.bf16.vlgmr.msra.gmra.mxu3 %vm1144_vm7, %v1563_v47  ;;  %v1418_v12 = vsub.f32 %v1412_v36, %v1417_v11 }
 0x31b   : > { %v1419_v14 = vmul.f32 1.442695, %v1418_v12 }
 0x31d   : > { %4401 = vpow2.f32 %v1419_v14 }
 0x323   : > { %v4402_v18 = vpop.eup %4401 }
 0x324   : > { %v1421_v19 = vsel %vm1164_vm9, %v4402_v18, 0.0 }
 0x35c   : > { %v4885_v48 = vpop.f32.mrf.mxu3 }
 0x364   : > { %v1196_v50 = vpop.f32.mrf.mxu3 }
 0x36c   : > { %v1219_v55 = vpop.f32.mrf.mxu3 }
 0x36d   : > { %v1220_v56 = vadd.f32 %v3647_v53, %v1219_v55 }
 0x36f   : > { %v1223_v57 = vsel %vm1164_vm9, %v1220_v56, -inf }
 0x370   : > { %1224 = vmax.xlane.f32.xlu1 %v1223_v57 }
 0x374   : > { %v1221_v59 = vpop.f32.mrf.mxu3 }
 0x378   : > { %1287 = vadd.xlane.f32.xlu1 %v1286_v60 }
 0x37c   : > { %v1332_v62 = vpop.f32.mrf.mxu3 }
 0x37d   : > { %v1333_v63 = vadd.f32 %v3649_v61, %v1332_v62 }
 0x37f   : > { %v1336_v0 = vsel %vm1164_vm9, %v1333_v63, -inf }
 0x380   : > { %1337 = vmax.xlane.f32.xlu2 %v1336_v0 }
 0x384   : > { %v1334_v1 = vpop.f32.mrf.mxu3 }
 0x38c   : > { %v1468_v5 = vpop.f32.mrf.mxu3 }
 0x38d   : > { %v1469_v6 = vadd.f32 %v3659_v4, %v1468_v5 }
 0x38f   : > { %v1472_v7 = vsel %vm1164_vm9, %v1469_v6, -inf }
 0x390   : > { %1473 = vmax.xlane.f32.xlu0 %v1472_v7 }
 0x391   : > { %1292 = vrot.lane.b32.xlu1 %v4834_v54, %s4546_s1 }
 0x394   : > { %v1470_v8 = vpop.f32.mrf.mxu3 }
 0x398   : > { %1236 = vrot.lane.b32.xlu2 %v4834_v54, %s4547_s29 }
 0x39c   : > { %v1581_v9 = vpop.f32.mrf.mxu3 }
 0x39d   : > { %v1582_v16 = vadd.f32 %v3661_v15, %v1581_v9 }
 0x39f   : > { %v1585_v17 = vsel %vm1164_vm9, %v1582_v16, -inf }
 0x3a4   : > { %1348 = vrot.lane.b32.xlu0 %v4834_v54, %s4548_s18  ;;  %v1583_v10 = vpop.f32.mrf.mxu3 }
 0x3bb   : > { %1586 = vmax.xlane.f32.xlu1 %v1585_v17 }
 0x3c1   : > { %1422 = vadd.xlane.f32.xlu2 %v1421_v19 }
 0x3d4   : > { %1485 = vrot.lane.b32.xlu1 %v1427_v21, %s4547_s29 }
 0x3e3   : > { %v1225_v54 = vpop.xlane.xlu1 %1224 }
 0x3e4   : > { %v1226_v22 = vsub.f32 %v1220_v56, %v1225_v54 }
 0x3e6   : > { %v1227_v23 = vmul.f32 1.442695, %v1226_v22 }
 0x3e8   : > { %4403 = vpow2.f32 %v1227_v23 }
 0x3e9   : > { %4405 = vpow2.f32 %v1533_v28 }
 0x3eb   : > { %v1288_v31 = vpop.xlane.xlu1 %1287 }
 0x3ee   : > { %v4404_v25 = vpop.eup %4403 }
 0x3ef   : > { %v1229_v27 = vsel %vm1164_vm9, %v4404_v25, 0.0  ;;  %v4914_v34 = vpop.eup %4405 }
 0x3f0   : > { %1230 = vadd.xlane.f32.xlu0 %v1229_v27  ;;  %v1535_v32 = vsel %vm1164_vm9, %v4914_v34, 0.0 }
 0x3f3   : > { %v1338_v29 = vpop.xlane.xlu2 %1337 }
 0x3f4   : > { %v1339_v30 = vsub.f32 %v1333_v63, %v1338_v29 }
 0x3f6   : > { %v1340_v33 = vmul.f32 1.442695, %v1339_v30 }
 0x3f8   : > { %4407 = vpow2.f32 %v1340_v33 }
 0x3f9   : > { %4409 = vrcp.f32 %v1288_v31 }
 0x3fb   : > { %v1237_v35 = vpop.permute.xlu2 %1236 }
 0x3fc   : > { %v1242_v36 = vsel %vm1181_vm8, %v1237_v35, 0 }
 0x3fd   : > { %1251 = vmatpush.bf16.msra.mxu0 %v1242_v36 }
 0x3fe   : > { %v4408_v37 = vpop.eup %4407  ;;  %1536 = vadd.xlane.f32.xlu1 %v1535_v32 }
 0x3ff   : > { %v4410_v38 = vpop.eup %4409  ;;  %v1342_v39 = vsel %vm1164_vm9, %v4408_v37, 0.0 }
 0x400   : > { %1343 = vadd.xlane.f32.xlu0 %v1342_v39  ;;  %v1290_v40 = vmul.f32 %v4410_v38, %v4400_v58 }
 0x402   : > { %v1291_v47 = vpack.c.bf16 %v1290_v40, %v1290_v40 }
 0x403   : > { %v1474_v41 = vpop.xlane.xlu0 %1473  ;;  %v1293_v42 = vpop.permute.xlu1 %1292 }
 0x404   : > { %v1475_v43 = vsub.f32 %v1469_v6, %v1474_v41  ;;  %v1298_v44 = vsel %vm1181_vm8, %v1293_v42, 0 }
 0x405   : > { %1307 = vmatpush.bf16.msrb.mxu2 %v1298_v44  ;;  %v4210_v44 = vld [vmem:[%s4708_s14 + $0x38] sm:$0xff] }
 0x406   : > { %v1476_v46 = vmul.f32 1.442695, %v1475_v43  ;;  %1698 = vmatpush.bf16.msra.mxu1 %v4210_v44  ;;  %v883_v44 = vld [vmem:[%s5559_s21 + $0x10] sm:$0xff] }
 0x408   : > { %4411 = vpow2.f32 %v1476_v46  ;;  %3655 = vmatmul.msk.bf16.vlgmr.msrb.gmra.mxu2 %vm1164_vm9, %v1291_v47  ;;  %v4208_v46 = vld [vmem:[%s4708_s14 + $0x28] sm:$0xff]  ;;  %v4207_v47 = vld [vmem:[%s4708_s14 + $0x20] sm:$0xff] }
 0x409   : > { %1441 = vmatpush.bf16.msra.mxu2 %v1432_v45  ;;  %v4209_v45 = vld [vmem:[%s4708_s14 + $0x30] sm:$0xff] }
 0x40a   : > { %1699 = vmatpush.bf16.msra.mxu1 %v4209_v45  ;;  %v884_v45 = vld [vmem:[%s5559_s21 + $0x18] sm:$0xff] }
 0x40e   : > { %v4412_v49 = vpop.eup %4411  ;;  %1700 = vmatpush.bf16.msra.mxu1 %v4208_v46  ;;  %v5003_v46 = vpack.c.bf16 %v884_v45, %v883_v44  ;;  %v5051_v45 = vld [vmem:[%s5562_s3] ss:$0 sm:$0xff] }
 0x40f   : > { %v1478_v50 = vsel %vm1164_vm9, %v4412_v49, 0.0 }
 0x410   : > { %1479 = vadd.xlane.f32.xlu0 %v1478_v50  ;;  %v4205_v50 = vld [vmem:[%s4708_s14 + $0x10] sm:$0xff] }
 0x412   : > { %1701 = vmatpush.bf16.msra.mxu1 %v4207_v47  ;;  %v4212_v47 = vld [vmem:[%s4713_s5 + $0x8] sm:$0xff] }
 0x416   : > { %v1349_v51 = vpop.permute.xlu0 %1348 }
 0x417   : > { %v1354_v52 = vsel %vm1181_vm8, %v1349_v51, 0  ;;  %v4204_v51 = vld [vmem:[%s4708_s14 + $0x8] sm:$0xff] }
 0x418   : > { %1363 = vmatpush.bf16.msrb.mxu0 %v1354_v52  ;;  %v4203_v52 = vld [vmem:[%s4708_s14] sm:$0xff] }
 0x424   : > { %1597 = vrot.lane.b32.xlu0 %v1427_v21, %s4548_s18 }
 0x42e   : > { %v1587_v53 = vpop.xlane.xlu1 %1586 }
 0x42f   : > { %v1588_v55 = vsub.f32 %v1582_v16, %v1587_v53 }
 0x431   : > { %v1589_v56 = vmul.f32 1.442695, %v1588_v55 }
 0x433   : > { %4413 = vpow2.f32 %v1589_v56 }
 0x434   : > { %v1423_v57 = vpop.xlane.xlu2 %1422 }
 0x435   : > { %4415 = vrcp.f32 %v1423_v57 }
 0x439   : > { %v4414_v58 = vpop.eup %4413 }
 0x43a   : > { %v1591_v59 = vsel %vm1164_vm9, %v4414_v58, 0.0 }
 0x43b   : > { %v4416_v60 = vpop.eup %4415  ;;  %1592 = vadd.xlane.f32.xlu2 %v1591_v59 }
 0x43c   : > { %v1425_v61 = vmul.f32 %v4416_v60, %v4402_v18 }
 0x43e   : > { %v1426_v62 = vpack.c.bf16 %v1425_v61, %v1425_v61 }
 0x440   : > { %3663 = vmatmul.msk.bf16.vlgmr.msra.gmra.mxu2 %vm1164_vm9, %v1426_v62 }
 0x446   : > { %v1486_v4 = vpop.permute.xlu1 %1485 }
 0x447   : > { %v1491_v6 = vsel %vm1181_vm8, %v1486_v4, 0 }
 0x453   : > { %1541 = vrot.lane.b32.xlu2 %v1427_v21, %s4546_s1 }
 0x463   : > { %v1231_v63 = vpop.xlane.xlu0 %1230 }
 0x464   : > { %4417 = vrcp.f32 %v1231_v63 }
 0x46a   : > { %v4418_v0 = vpop.eup %4417 }
 0x46b   : > { %v1233_v1 = vmul.f32 %v4418_v0, %v4404_v25 }
 0x46d   : > { %v1234_v5 = vpack.c.bf16 %v1233_v1, %v1233_v1 }
 0x46f   : > { %3653 = vmatmul.msk.bf16.vlgmr.msra.gmra.mxu0 %vm1164_vm9, %v1234_v5 }
 0x470   : > { %1500 = vmatpush.bf16.msra.mxu0 %v1491_v6 }
 0x471   : > { %v1537_v20 = vpop.xlane.xlu1 %1536 }
 0x473   : > { %v1344_v7 = vpop.xlane.xlu0 %1343 }
 0x474   : > { %4419 = vrcp.f32 %v1344_v7 }
 0x47a   : > { %v4420_v8 = vpop.eup %4419 }
 0x47b   : > { %v1346_v9 = vmul.f32 %v4420_v8, %v4408_v37  ;;  %v3792_v8 = vld [vmem:[%s4719_s7 + $0x70] sm:$0xf] }
 0x47d   : > { %v1347_v10 = vpack.c.bf16 %v1346_v9, %v1346_v9  ;;  %v3784_v9 = vld [vmem:[%s4719_s7 + $0x60] sm:$0xf] }
 0x47f   : > { %3657 = vmatmul.msk.bf16.vlgmr.msrb.gmra.mxu0 %vm1164_vm9, %v1347_v10 }
 0x483   : > { %v1480_v11 = vpop.xlane.xlu0 %1479 }
 0x484   : > { %4421 = vrcp.f32 %v1480_v11  ;;  %v4232_v11 = vld [vmem:[%s4719_s7 + $0x64] sm:$0xf0] }
 0x485   : > { %4423 = vrcp.f32 %v1537_v20  ;;  %v3760_v20 = vld [vmem:[%s4719_s7 + $0x30] sm:$0xf] }
 0x48a   : > { %v4422_v12 = vpop.eup %4421 }
 0x48b   : > { %v1482_v14 = vmul.f32 %v4422_v12, %v4412_v49  ;;  %v1309_v15 = vpop.f32.mrf.mxu2  ;;  %v4424_v54 = vpop.eup %4423  ;;  %v4206_v49 = vld [vmem:[%s4708_s14 + $0x18] sm:$0xff]  ;;  %v3785_v12 = vor.u32 %v4232_v11, %v3784_v9  ;;  %s5561_s14 = scalar_lea.vmem %s5560_s23, %s4688_s25 }
 0x48c   : > { %v1539_v23 = vmul.f32 %v4424_v54, %v4914_v34  ;;  %1702 = vmatpush.bf16.msra.mxu1 %v4206_v49  ;;  %v4211_v49 = vld [vmem:[%s4713_s5] sm:$0xff] }
 0x48d   : > { %v1483_v16 = vpack.c.bf16 %v1482_v14, %v1482_v14  ;;  %v3776_v14 = vld [vmem:[%s4719_s7 + $0x50] sm:$0xf]  ;;  %v4385_v9 = vld [vmem:[%s5561_s14] ss:$0 sm:$0xff] }
 0x48e   : > { %v1540_v28 = vpack.c.bf16 %v1539_v23, %v1539_v23  ;;  %v4224_v23 = vld [vmem:[%s4719_s7 + $0x24] sm:$0xf0] }
 0x48f   : > { %3665 = vmatmul.msk.bf16.vlgmr.msra.gmra.mxu0 %vm1164_vm9, %v1483_v16 }
 0x490   : > { %1703 = vmatpush.bf16.msra.mxu1 %v4205_v50 }
 0x493   : > { %v1311_v17 = vpop.f32.mrf.mxu2 }
 0x494   : > { %1704 = vmatpush.bf16.msra.mxu1 %v4204_v51  ;;  %v3768_v17 = vld [vmem:[%s4719_s7 + $0x40] sm:$0xf] }
 0x496   : > { %v1598_v18 = vpop.permute.xlu0 %1597 }
 0x497   : > { %v1603_v19 = vsel %vm1181_vm8, %v1598_v18, 0  ;;  %v4228_v18 = vld [vmem:[%s4719_s7 + $0x44] sm:$0xf0] }
 0x498   : > { %1612 = vmatpush.bf16.msrb.mxu0 %v1603_v19  ;;  %1705 = vmatpush.bf16.msra.mxu1 %v4203_v52  ;;  %v3769_v19 = vor.u32 %v4228_v18, %v3768_v17 }
 0x4ae   : > { %v1593_v21 = vpop.xlane.xlu2 %1592 }
 0x4af   : > { %4425 = vrcp.f32 %v1593_v21  ;;  %v4226_v21 = vld [vmem:[%s4719_s7 + $0x34] sm:$0xf0] }
 0x4b0   : > { %v3761_v54 = vor.u32 %v4226_v21, %v3760_v20 }
 0x4b5   : > { %v4426_v22 = vpop.eup %4425 }
 0x4b6   : > { %v1595_v24 = vmul.f32 %v4426_v22, %v4414_v58  ;;  %v1542_v26 = vpop.permute.xlu2 %1541  ;;  %v3752_v22 = vld [vmem:[%s4719_s7 + $0x20] sm:$0xf] }
 0x4b7   : > { %v1547_v25 = vsel %vm1181_vm8, %v1542_v26, 0  ;;  %v3753_v26 = vor.u32 %v4224_v23, %v3752_v22 }
 0x4b8   : > { %v1596_v27 = vpack.c.bf16 %v1595_v24, %v1595_v24  ;;  %1556 = vmatpush.bf16.msrb.mxu2 %v1547_v25 }
 0x4ba   : > { %3669 = vmatmul.msk.bf16.vlgmr.msrb.gmra.mxu0 %vm1164_vm9, %v1596_v27  ;;  %v3744_v27 = vld [vmem:[%s4719_s7 + $0x10] sm:$0xf] }
 0x4bb   : > { %3667 = vmatmul.msk.bf16.vlgmr.msrb.gmra.mxu2 %vm1164_vm9, %v1540_v28  ;;  %v4222_v28 = vld [vmem:[%s4719_s7 + $0x14] sm:$0xf0] }
 0x4c3   : > { %v1443_v29 = vpop.f32.mrf.mxu2 }
 0x4cb   : > { %v1445_v30 = vpop.f32.mrf.mxu2 }
 0x4cc   : > { %v3745_v30 = vor.u32 %v4222_v28, %v3744_v27 }
 0x4ec   : > { %v1253_v31 = vpop.f32.mrf.mxu0 }
 0x4f4   : > { %v1255_v33 = vpop.f32.mrf.mxu0 }
 0x4f5   : > { %v4220_v33 = vld [vmem:[%s4719_s7 + $0x4] sm:$0xf0] }
 0x4fc   : > { %v1365_v35 = vpop.f32.mrf.mxu0 }
 0x504   : > { %v1367_v36 = vpop.f32.mrf.mxu0 }
 0x50c   : > { %v1502_v34 = vpop.f32.mrf.mxu0 }
 0x50d   : > { %v4354_v32 = vpack.i.bf16 %v1502_v34, %v1253_v31  ;;  %v3736_v31 = vld [vmem:[%s4719_s7] sm:$0xf]  ;;  %v882_v34 = vld [vmem:[%s5559_s21 + $0x8] sm:$0xff] }
 0x50e   : > { %v3737_v36 = vor.u32 %v4220_v33, %v3736_v31  ;;  %v4233_v33 = vld [vmem:[%s4719_s7 + $0x74] sm:$0xf] }
 0x50f   : > { %4355 = vrot.lane.b32.xlu1 %v4354_v32, %s4548_s18 }
 0x514   : > { %v1504_v37 = vpop.f32.mrf.mxu0 }
 0x537   : > { %v1614_v38 = vpop.f32.mrf.mxu0 }
 0x538   : > { %v4364_v39 = vpack.i.bf16 %v1614_v38, %v1365_v35 }
 0x53a   : > { %4365 = vrot.lane.b32.xlu2 %v4364_v39, %s4547_s29  ;;  %v4218_v39 = vld [vmem:[%s4713_s5 + $0x38] sm:$0xff] }
 0x53b   : > { %1817 = vmatpush.bf16.msra.mxu2 %v4218_v39 }
 0x53e   : > { %v1558_v40 = vpop.f32.mrf.mxu2 }
 0x53f   : > { %v4359_v41 = vpack.i.bf16 %v1558_v40, %v1309_v15  ;;  %v1616_v42 = vpop.f32.mrf.mxu0  ;;  %v4230_v15 = vld [vmem:[%s4719_s7 + $0x54] sm:$0xf0]  ;;  %v4217_v40 = vld [vmem:[%s4713_s5 + $0x30] sm:$0xff] }
 0x540   : > { %v3777_v16 = vor.u32 %v4230_v15, %v3776_v14  ;;  %1818 = vmatpush.bf16.msra.mxu2 %v4217_v40  ;;  %v4214_v42 = vld [vmem:[%s4713_s5 + $0x18] sm:$0xff] }
 0x541   : > { %4360 = vrot.lane.b32.xlu0 %v4359_v41, %s4546_s1  ;;  %v4216_v41 = vld [vmem:[%s4713_s5 + $0x28] sm:$0xff] }
 0x544   : > { %1819 = vmatpush.bf16.msra.mxu2 %v4216_v41 }
 0x546   : > { %v1560_v43 = vpop.f32.mrf.mxu2 }
 0x547   : > { %v4213_v43 = vld [vmem:[%s4713_s5 + $0x10] sm:$0xff] }
 0x581   : > { %v4356_v53 = vpop.permute.xlu1 %4355 }
 0x582   : > { %v4358_v55 = vunpack.i.h.bf16 %v4356_v53  ;;  %v4357_v56 = vunpack.i.l.bf16 %v4356_v53 }
 0x584   : > { %v1630_v61 = vsel %vm1144_vm7, %v1443_v29, %v4358_v55  ;;  %v1381_v62 = vsel %vm1144_vm7, %v4885_v48, %v4357_v56  ;;  %v4234_v48 = vld [vmem:[%s4719_s7 + $0x74] sm:$0xf0] }
 0x585   : > { %v3793_v10 = vor.u32 %v4234_v48, %v3792_v8 }
 0x587   : > { %1929 = vmatpush.bf16.msrb.mxu3 %v3793_v10 }
 0x58b   : > { %1930 = vmatpush.bf16.msrb.mxu3 %v3785_v12 }
 0x58f   : > { %1931 = vmatpush.bf16.msrb.mxu3 %v3777_v16 }
 0x593   : > { %1932 = vmatpush.bf16.msrb.mxu3 %v3769_v19 }
 0x594   : > { %v4366_v57 = vpop.permute.xlu2 %4365 }
 0x595   : > { %v4368_v63 = vunpack.i.h.bf16 %v4366_v57  ;;  %v4367_v0 = vunpack.i.l.bf16 %v4366_v57 }
 0x597   : > { %1933 = vmatpush.bf16.msrb.mxu3 %v3761_v54 }
 0x59b   : > { %1934 = vmatpush.bf16.msrb.mxu3 %v3753_v26 }
 0x59f   : > { %1935 = vmatpush.bf16.msrb.mxu3 %v3745_v30 }
 0x5a3   : > { %1936 = vmatpush.bf16.msrb.mxu3 %v3737_v36 }
 0x5b3   : > { %v4361_v58 = vpop.permute.xlu0 %4360 }
 0x5b4   : > { %v4363_v59 = vunpack.i.h.bf16 %v4361_v58  ;;  %v4362_v60 = vunpack.i.l.bf16 %v4361_v58 }
 0x5b6   : > { %v1383_v1 = vsel %vm1382_vm10, %v1381_v62, %v4362_v60  ;;  %v1631_v4 = vsel %vm1382_vm10, %v1630_v61, %v4363_v59 }
 0x5b7   : > { %v1385_v5 = vsel %vm1384_vm11, %v1383_v1, %v4367_v0  ;;  %v1632_v6 = vsel %vm1384_vm11, %v1631_v4, %v4368_v63 }
 0x5b8   : > { %v1633_v7 = vpack.c.bf16 %v1632_v6, %v1385_v5 }
 0x5ba   : > { %1706 = vmatmul.bf16.vlgmr.msra.gmra.mxu1 %v1633_v7 }
 0x637   : > { %v1707_v24 = vpop.f32.mrf.mxu1 }
 0x638   : > { %v4969_v25 = vadd.f32 %v1707_v24, %v4750_v2  ;;  %v881_v2 = vld [vmem:[%s5559_s21] sm:$0xff] }
 0x639   : > { %v4988_v38 = vpack.c.bf16 %v882_v34, %v881_v2  ;;  %v4231_v34 = vld [vmem:[%s4719_s7 + $0x64] sm:$0xf] }
 0x63a   : > { %v1715_v29 = vmul.f32 %v4969_v25, %v4969_v25 }
 0x63b   : > { %1937 = vmatmul.bf16.vlgmr.msrb.gmra.mxu3 %v4988_v38 }
 0x63c   : > { %1717 = vadd.xlane.f32.xlu0 %v1715_v29 }
 0x63f   : > { %v1709_v35 = vpop.f32.mrf.mxu1 }
 0x640   : > { %v4984_v32 = vadd.f32 %v1709_v35, %v4752_v3  ;;  %v4215_v3 = vld [vmem:[%s4713_s5 + $0x20] sm:$0xff]  ;;  %v3794_v35 = vld [vmem:[%s4719_s7 + $0x78] sm:$0xf0]  ;;  %s5567_s5 = sld [smem:[#allocation23_spill]] (!%p3974_p6) }
 0x641   : > { %1820 = vmatpush.bf16.msra.mxu2 %v4215_v3  ;;  %v3797_v36 = vor.u32 %v4233_v33, %v3794_v35 }
 0x642   : > { %v1716_v37 = vmul.f32 %v4984_v32, %v4984_v32 }
 0x643   : > { %1948 = vmatpush.bf16.msra.mxu0 %v3797_v36 }
 0x644   : > { %1719 = vadd.xlane.f32.xlu2 %v1716_v37  ;;  %v3786_v37 = vld [vmem:[%s4719_s7 + $0x68] sm:$0xf0] }
 0x645   : > { %1821 = vmatpush.bf16.msra.mxu2 %v4214_v42  ;;  %v3789_v40 = vor.u32 %v4231_v34, %v3786_v37  ;;  %v4229_v42 = vld [vmem:[%s4719_s7 + $0x54] sm:$0xf] }
 0x647   : > { %1949 = vmatpush.bf16.msra.mxu0 %v3789_v40 }
 0x649   : > { %1822 = vmatpush.bf16.msra.mxu2 %v4213_v43  ;;  %v3778_v43 = vld [vmem:[%s4719_s7 + $0x58] sm:$0xf0] }
 0x64b   : > { %1942 = vmatmul.bf16.gmra.mxu3 %v5003_v46 }
 0x64d   : > { %1823 = vmatpush.bf16.msra.mxu2 %v4212_v47  ;;  %v3781_v47 = vor.u32 %v4229_v42, %v3778_v43 }
 0x64f   : > { %1950 = vmatpush.bf16.msra.mxu0 %v3781_v47 }
 0x651   : > { %1824 = vmatpush.bf16.msra.mxu2 %v4211_v49  ;;  %v4227_v49 = vld [vmem:[%s4719_s7 + $0x44] sm:$0xf] }
 0x6af   : > { %v1718_v50 = vpop.xlane.xlu0 %1717 }
 0x6b0   : > { %v1721_v51 = vmul.f32 %v1718_v50, %v4809_v13  ;;  %v3770_v50 = vld [vmem:[%s4719_s7 + $0x48] sm:$0xf0] }
 0x6b2   : > { %v1723_v52 = vadd.f32 1e-06, %v1721_v51 }
 0x6b4   : > { %4427 = vrsqrt.f32 %v1723_v52  ;;  %vm1731_vm13 = vweird.f32 %v1723_v52 }
 0x6b7   : > { %v1720_v53 = vpop.xlane.xlu2 %1719 }
 0x6b8   : > { %v1722_v55 = vmul.f32 %v1720_v53, %v4809_v13 }
 0x6ba   : > { %v4428_v56 = vpop.eup %4427  ;;  %v1724_v57 = vadd.f32 1e-06, %v1722_v55  ;;  %v3773_v55 = vor.u32 %v4227_v49, %v3770_v50 }
 0x6bb   : > { %v1726_v58 = vmul.f32 %v4428_v56, %v1723_v52  ;;  %vm1732_vm12 = vweird.f32 %v4428_v56 }
 0x6bc   : > { %4429 = vrsqrt.f32 %v1724_v57  ;;  %vm1733_vm14 = vmor %vm1731_vm13, %vm1732_vm12  ;;  %vm1741_vm0 = vweird.f32 %v1724_v57  ;;  %1951 = vmatpush.bf16.msra.mxu0 %v3773_v55 }
 0x6bd   : > { %v1727_v59 = vmul.f32 %v4428_v56, %v1726_v58 }
 0x6be   : > { %v1938_v7 = vpop.f32.mrf.mxu3 }
 0x6bf   : > { %v1728_v60 = vmul.f32 0.5, %v1727_v59  ;;  %v4225_v59 = vld [vmem:[%s4719_s7 + $0x34] sm:$0xf] }
 0x6c1   : > { %v1729_v61 = vsub.f32 1.5, %v1728_v60  ;;  %v3762_v60 = vld [vmem:[%s4719_s7 + $0x38] sm:$0xf0] }
 0x6c2   : > { %v4430_v62 = vpop.eup %4429 }
 0x6c3   : > { %v1736_v63 = vmul.f32 %v4430_v62, %v1724_v57  ;;  %v1730_v0 = vmul.f32 %v4428_v56, %v1729_v61  ;;  %vm1742_vm15 = vweird.f32 %v4430_v62  ;;  %v3765_v61 = vor.u32 %v4225_v59, %v3762_v60 }
 0x6c4   : > { %vm1743_vm1 = vmor %vm1741_vm0, %vm1742_vm15 }
 0x6c5   : > { %v1737_v1 = vmul.f32 %v4430_v62, %v1736_v63  ;;  %v1734_v5 = vsel %vm1733_vm14, %v4428_v56, %v1730_v0  ;;  %v3754_v63 = vld [vmem:[%s4719_s7 + $0x28] sm:$0xf0]  ;;  %1952 = vmatpush.bf16.msra.mxu0 %v3765_v61 }
 0x6c6   : > { %v1745_v48 = vmul.f32 %v1734_v5, %v4969_v25  ;;  %v1940_v15 = vpop.f32.mrf.mxu3  ;;  %v3746_v5 = vld [vmem:[%s4719_s7 + $0x18] sm:$0xf0] }
 0x6c7   : > { %v1738_v4 = vmul.f32 0.5, %v1737_v1  ;;  %v1971_v17 = vpack.c.bf16 %v1940_v15, %v1938_v7 }
 0x6c8   : > { %v1750_v12 = vmul.f32 %v4385_v9, %v1745_v48  ;;  %v3738_v48 = vld [vmem:[%s4719_s7 + $0x8] sm:$0xf0] }
 0x6c9   : > { %v1739_v6 = vsub.f32 1.5, %v1738_v4  ;;  %2025 = vrot.lane.b32.xlu1 %v1971_v17, %s4547_s29  ;;  %v1976_v18 = vsel %vm1144_vm7, %v1971_v17, 0  ;;  %v4221_v4 = vld [vmem:[%s4719_s7 + $0x14] sm:$0xf] }
 0x6ca   : > { %1985 = vmatpush.bf16.xpose.msrb.mxu1 %v1976_v18  ;;  %v3749_v7 = vor.u32 %v4221_v4, %v3746_v5 }
 0x6cb   : > { %v1740_v8 = vmul.f32 %v4430_v62, %v1739_v6 }
 0x6cd   : > { %v1744_v10 = vsel %vm1743_vm1, %v4430_v62, %v1740_v8  ;;  %v4223_v62 = vld [vmem:[%s4719_s7 + $0x24] sm:$0xf] }
 0x6ce   : > { %v1746_v11 = vmul.f32 %v1744_v10, %v4984_v32  ;;  %v1943_v19 = vpop.f32.mrf.mxu3  ;;  %v3757_v1 = vor.u32 %v4223_v62, %v3754_v63  ;;  %v4219_v8 = vld [vmem:[%s4719_s7 + $0x4] sm:$0xf] }
 0x6d0   : > { %v1751_v14 = vmul.f32 %v4385_v9, %v1746_v11  ;;  %1953 = vmatpush.bf16.msra.mxu0 %v3757_v1  ;;  %v3741_v9 = vor.u32 %v4219_v8, %v3738_v48 }
 0x6d1   : > { %2080 = vrot.lane.b32.xlu1 %v1971_v17, %s4546_s1 }
 0x6d2   : > { %v1752_v16 = vpack.c.bf16 %v1751_v14, %v1750_v12 }
 0x6d4   : > { %1825 = vmatmul.bf16.vlgmr.msra.gmra.mxu2 %v1752_v16  ;;  %1954 = vmatpush.bf16.msra.mxu0 %v3749_v7 }
 0x6d6   : > { %v1945_v20 = vpop.f32.mrf.mxu3 }
 0x6d7   : > { %v2205_v21 = vpack.c.bf16 %v1945_v20, %v1943_v19 }
 0x6d8   : > { %1955 = vmatpush.bf16.msra.mxu0 %v3741_v9 }
 0x6d9   : > { %2258 = vrot.lane.b32.xlu2 %v2205_v21, %s4547_s29  ;;  %v2210_v29 = vsel %vm1144_vm7, %v2205_v21, 0 }
 0x6db   : > { %1956 = vmatmul.bf16.vlgmr.msra.gmra.mxu0 %v4988_v38 }
 0x6eb   : > { %1961 = vmatmul.bf16.gmra.mxu0 %v5003_v46 }
 0x733   : > { %v2259_v39 = vpop.permute.xlu2 %2258 }
 0x734   : > { %v2264_v41 = vsel %vm1144_vm7, %v2259_v39, 0 }
 0x73b   : > { %v2026_v23 = vpop.permute.xlu1 %2025 }
 0x73c   : > { %v2031_v24 = vsel %vm1144_vm7, %v2026_v23, 0 }
 0x73d   : > { %2040 = vmatpush.bf16.xpose.msra.mxu1 %v2031_v24 }
 0x743   : > { %v2081_v28 = vpop.permute.xlu1 %2080 }
 0x744   : > { %v2086_v30 = vsel %vm1144_vm7, %v2081_v28, 0 }
 0x745   : > { %2095 = vmatpush.bf16.xpose.msra.mxu3 %v2086_v30 }
 0x74d   : > { %2219 = vmatpush.bf16.xpose.msrb.mxu3 %v2210_v29  ;;  %v4387_v29 = vld [vmem:[%s5562_s3 + $0x1] ss:$0 sm:$0xff] }
 0x757   : > { %v1826_v54 = vpop.f32.mrf.mxu2 }
 0x758   : > { %v1970_v22 = vpack.c.bf16 %v1826_v54, %v1826_v54  ;;  %v1957_v36 = vpop.f32.mrf.mxu0 }
 0x75a   : > { %2132 = vrot.lane.b32.xlu0 %v1970_v22, %s4548_s18  ;;  %2022 = vrot.lane.b32.xlu1 %v1970_v22, %s4547_s29 }
 0x75b   : > { %3798 = vmatmul.msk.bf16.vlgmr.msrb.gmra.mxu1 %vm1144_vm7, %v1970_v22 }
 0x75f   : > { %v1828_v26 = vpop.f32.mrf.mxu2 }
 0x760   : > { %v5025_v27 = vpack.c.bf16 %v1828_v26, %v1828_v26  ;;  %v1959_v40 = vpop.f32.mrf.mxu0 }
 0x762   : > { %2134 = vrot.lane.b32.xlu1 %v1971_v17, %s4548_s18  ;;  %2365 = vrot.lane.b32.xlu2 %v5025_v27, %s4548_s18 }
 0x763   : > { %2367 = vrot.lane.b32.xlu0 %v2205_v21, %s4548_s18 }
 0x76a   : > { %2078 = vrot.lane.b32.xlu1 %v1970_v22, %s4546_s1 }
 0x772   : > { %2255 = vrot.lane.b32.xlu1 %v5025_v27, %s4547_s29 }
 0x77a   : > { %2313 = vrot.lane.b32.xlu1 %v2205_v21, %s4546_s1 }
 0x782   : > { %2311 = vrot.lane.b32.xlu1 %v5025_v27, %s4546_s1 }
 0x7bc   : > { %v2366_v12 = vpop.permute.xlu2 %2365 }
 0x7cc   : > { %v2023_v31 = vpop.permute.xlu1 %2022  ;;  %v2133_v2 = vpop.permute.xlu0 %2132 }
 0x7cd   : > { %3800 = vmatmul.msk.bf16.vlgmr.msra.gmra.mxu1 %vm1144_vm7, %v2023_v31 }
 0x7d4   : > { %v2135_v3 = vpop.permute.xlu1 %2134 }
 0x7d5   : > { %v2140_v44 = vsel %vm1144_vm7, %v2135_v3, 0  ;;  %v2368_v52 = vpop.permute.xlu0 %2367 }
 0x7d6   : > { %2149 = vmatpush.bf16.xpose.msrb.mxu1 %v2140_v44  ;;  %v2373_v57 = vsel %vm1144_vm7, %v2368_v52, 0 }
 0x7d8   : > { %v1987_v51 = vpop.f32.mrf.mxu1 }
 0x7d9   : > { %v1988_v53 = vadd.f32 %v5051_v45, %v1987_v51 }
 0x7db   : > { %v1992_v56 = vsel %vm1991_vm2, %v1988_v53, -inf }
 0x7dc   : > { %1993 = vmax.xlane.f32.xlu0 %v1992_v56  ;;  %v2079_v58 = vpop.permute.xlu1 %2078 }
 0x7dd   : > { %3802 = vmatmul.msk.bf16.vlgmr.msra.gmra.mxu3 %vm1144_vm7, %v2079_v58  ;;  %3804 = vmatmul.msk.bf16.vlgmr.msrb.gmra.mxu1 %vm1144_vm7, %v2133_v2 }
 0x7de   : > { %2273 = vmatpush.bf16.xpose.msra.mxu1 %v2264_v41  ;;  %v2004_v41 = vpack.c.bf16 %v1959_v40, %v1957_v36 }
 0x7e0   : > { %v1989_v0 = vpop.f32.mrf.mxu1  ;;  %2015 = vmatpush.bf16.msrb.mxu2 %v2004_v41 }
 0x7e4   : > { %v2256_v6 = vpop.permute.xlu1 %2255 }
 0x7e6   : > { %2382 = vmatpush.bf16.xpose.msrb.mxu1 %v2373_v57 }
 0x7ec   : > { %v2314_v10 = vpop.permute.xlu1 %2313 }
 0x7ed   : > { %v2319_v11 = vsel %vm1144_vm7, %v2314_v10, 0  ;;  %3806 = vmatmul.msk.bf16.vlgmr.msrb.gmra.mxu3 %vm1144_vm7, %v5025_v27  ;;  %3808 = vmatmul.msk.bf16.vlgmr.msra.gmra.mxu1 %vm1144_vm7, %v2256_v6 }
 0x7ee   : > { %2328 = vmatpush.bf16.xpose.msra.mxu3 %v2319_v11 }
 0x7f4   : > { %v2312_v14 = vpop.permute.xlu1 %2311 }
 0x7fd   : > { %3810 = vmatmul.msk.bf16.vlgmr.msra.gmra.mxu3 %vm1144_vm7, %v2312_v14  ;;  %3812 = vmatmul.msk.bf16.vlgmr.msrb.gmra.mxu1 %vm1144_vm7, %v2366_v12 }
 0x84a   : > { %v2042_v15 = vpop.f32.mrf.mxu1 }
 0x84b   : > { %v2043_v16 = vadd.f32 %v5051_v45, %v2042_v15 }
 0x84d   : > { %v2046_v17 = vsel %vm1991_vm2, %v2043_v16, -inf }
 0x84e   : > { %2047 = vmax.xlane.f32.xlu1 %v2046_v17 }
 0x84f   : > { %v1994_v18 = vpop.xlane.xlu0 %1993 }
 0x850   : > { %v1995_v19 = vsub.f32 %v1988_v53, %v1994_v18  ;;  %v1962_v18 = vpop.f32.mrf.mxu0 }
 0x852   : > { %v1996_v20 = vmul.f32 1.442695, %v1995_v19  ;;  %v2044_v21 = vpop.f32.mrf.mxu1 }
 0x854   : > { %4431 = vpow2.f32 %v1996_v20 }
 0x85a   : > { %v4432_v38 = vpop.eup %4431  ;;  %v2151_v54 = vpop.f32.mrf.mxu1 }
 0x85b   : > { %v1998_v22 = vsel %vm1991_vm2, %v4432_v38, 0.0  ;;  %v2152_v23 = vadd.f32 %v5051_v45, %v2151_v54 }
 0x85c   : > { %1999 = vadd.xlane.f32.xlu2 %v1998_v22 }
 0x85d   : > { %v2155_v27 = vsel %vm1991_vm2, %v2152_v23, -inf }
 0x860   : > { %v2097_v24 = vpop.f32.mrf.mxu3 }
 0x861   : > { %v2098_v46 = vadd.f32 %v5051_v45, %v2097_v24 }
 0x862   : > { %v2153_v26 = vpop.f32.mrf.mxu1 }
 0x863   : > { %v2101_v28 = vsel %vm1991_vm2, %v2098_v46, -inf }
 0x864   : > { %2156 = vmax.xlane.f32.xlu2 %v2155_v27  ;;  %2102 = vmax.xlane.f32.xlu0 %v2101_v28 }
 0x868   : > { %v2099_v30 = vpop.f32.mrf.mxu3 }
 0x86a   : > { %v2275_v31 = vpop.f32.mrf.mxu1 }
 0x86b   : > { %v2276_v33 = vadd.f32 %v4387_v29, %v2275_v31 }
 0x86d   : > { %v2279_v35 = vsel %vm1991_vm2, %v2276_v33, -inf }
 0x86e   : > { %2280 = vmax.xlane.f32.xlu1 %v2279_v35 }
 0x870   : > { %v2221_v2 = vpop.f32.mrf.mxu3 }
 0x871   : > { %v2222_v34 = vadd.f32 %v4387_v29, %v2221_v2 }
 0x872   : > { %v2277_v37 = vpop.f32.mrf.mxu1 }
 0x873   : > { %v2225_v39 = vsel %vm1991_vm2, %v2222_v34, -inf }
 0x874   : > { %2226 = vmax.xlane.f32.xlu0 %v2225_v39 }
 0x878   : > { %v2223_v3 = vpop.f32.mrf.mxu3 }
 0x87a   : > { %v2384_v42 = vpop.f32.mrf.mxu1 }
 0x87b   : > { %v5088_v43 = vadd.f32 %v4387_v29, %v2384_v42 }
 0x87c   : > { %2167 = vrot.lane.b32.xlu2 %v2004_v41, %s4548_s18 }
 0x87d   : > { %v2388_v44 = vsel %vm1991_vm2, %v5088_v43, -inf }
 0x87e   : > { %2389 = vmax.xlane.f32.xlu1 %v2388_v44 }
 0x880   : > { %v2330_v45 = vpop.f32.mrf.mxu3 }
 0x881   : > { %v2331_v47 = vadd.f32 %v4387_v29, %v2330_v45 }
 0x882   : > { %v2386_v49 = vpop.f32.mrf.mxu1 }
 0x883   : > { %v2334_v50 = vsel %vm1991_vm2, %v2331_v47, -inf }
 0x884   : > { %2335 = vmax.xlane.f32.xlu0 %v2334_v50 }
 0x888   : > { %v2332_v51 = vpop.f32.mrf.mxu3 }
 0x897   : > { %2059 = vrot.lane.b32.xlu1 %v2004_v41, %s4547_s29 }
 0x898   : > { %2113 = vrot.lane.b32.xlu0 %v2004_v41, %s4546_s1 }
 0x8c1   : > { %v2048_v52 = vpop.xlane.xlu1 %2047 }
 0x8c2   : > { %v2049_v53 = vsub.f32 %v2043_v16, %v2048_v52 }
 0x8c4   : > { %v2050_v55 = vmul.f32 1.442695, %v2049_v53 }
 0x8c6   : > { %4433 = vpow2.f32 %v2050_v55 }
 0x8cc   : > { %v5096_v56 = vpop.eup %4433 }
 0x8cd   : > { %v2052_v57 = vsel %vm1991_vm2, %v5096_v56, 0.0 }
 0x8ce   : > { %2053 = vadd.xlane.f32.xlu2 %v2052_v57 }
 0x8cf   : > { %v2000_v58 = vpop.xlane.xlu2 %1999 }
 0x8d0   : > { %4435 = vrcp.f32 %v2000_v58 }
 0x8d6   : > { %v4436_v59 = vpop.eup %4435 }
 0x8d7   : > { %v2002_v60 = vmul.f32 %v4436_v59, %v4432_v38  ;;  %v2157_v61 = vpop.xlane.xlu2 %2156  ;;  %v2103_v62 = vpop.xlane.xlu0 %2102 }
 0x8d8   : > { %v2158_v63 = vsub.f32 %v2152_v23, %v2157_v61  ;;  %v2104_v0 = vsub.f32 %v2098_v46, %v2103_v62  ;;  %v1964_v38 = vpop.f32.mrf.mxu0 }
 0x8d9   : > { %v2003_v1 = vpack.c.bf16 %v2002_v60, %v2002_v60  ;;  %v2237_v23 = vpack.c.bf16 %v1964_v38, %v1962_v18 }
 0x8da   : > { %v2159_v4 = vmul.f32 1.442695, %v2158_v63  ;;  %v2105_v5 = vmul.f32 1.442695, %v2104_v0 }
 0x8db   : > { %3799 = vmatmul.msk.bf16.vlgmr.msrb.gmra.mxu2 %vm1991_vm2, %v2003_v1 }
 0x8dc   : > { %4437 = vpow2.f32 %v2159_v4 }
 0x8dd   : > { %4439 = vpow2.f32 %v2105_v5 }
 0x8df   : > { %v2168_v29 = vpop.permute.xlu2 %2167 }
 0x8e1   : > { %v2281_v6 = vpop.xlane.xlu1 %2280 }
 0x8e2   : > { %v4438_v7 = vpop.eup %4437  ;;  %v2282_v8 = vsub.f32 %v2276_v33, %v2281_v6 }
 0x8e3   : > { %v4440_v48 = vpop.eup %4439  ;;  %v2161_v9 = vsel %vm1991_vm2, %v4438_v7, 0.0 }
 0x8e4   : > { %v2283_v10 = vmul.f32 1.442695, %v2282_v8  ;;  %2162 = vadd.xlane.f32.xlu2 %v2161_v9  ;;  %v2107_v11 = vsel %vm1991_vm2, %v4440_v48, 0.0 }
 0x8e5   : > { %2108 = vadd.xlane.f32.xlu0 %v2107_v11 }
 0x8e6   : > { %4441 = vpow2.f32 %v2283_v10 }
 0x8e7   : > { %v2227_v12 = vpop.xlane.xlu0 %2226 }
 0x8e8   : > { %v2228_v14 = vsub.f32 %v2222_v34, %v2227_v12 }
 0x8ea   : > { %v2229_v15 = vmul.f32 1.442695, %v2228_v14 }
 0x8ec   : > { %v4442_v16 = vpop.eup %4441  ;;  %4443 = vpow2.f32 %v2229_v15 }
 0x8ed   : > { %v2285_v17 = vsel %vm1991_vm2, %v4442_v16, 0.0 }
 0x8ee   : > { %2286 = vadd.xlane.f32.xlu1 %v2285_v17 }
 0x8f1   : > { %v2390_v24 = vpop.xlane.xlu1 %2389 }
 0x8f2   : > { %v4444_v19 = vpop.eup %4443  ;;  %v2391_v30 = vsub.f32 %v5088_v43, %v2390_v24  ;;  %v4241_v24 = vld [vmem:[%s4724_s22 + $0x30] sm:$0xff] }
 0x8f3   : > { %v2231_v20 = vsel %vm1991_vm2, %v4444_v19, 0.0 }
 0x8f4   : > { %2232 = vadd.xlane.f32.xlu0 %v2231_v20  ;;  %v2392_v31 = vmul.f32 1.442695, %v2391_v30  ;;  %v4235_v30 = vld [vmem:[%s4724_s22] sm:$0xff] }
 0x8f7   : > { %v2336_v21 = vpop.xlane.xlu0 %2335 }
 0x8f8   : > { %v2337_v54 = vsub.f32 %v2331_v47, %v2336_v21 }
 0x8fa   : > { %v2338_v22 = vmul.f32 1.442695, %v2337_v54 }
 0x8fc   : > { %4445 = vpow2.f32 %v2338_v22  ;;  %2292 = vrot.lane.b32.xlu2 %v2237_v23, %s4547_s29 }
 0x8fd   : > { %4447 = vpow2.f32 %v2392_v31 }
 0x902   : > { %v4446_v46 = vpop.eup %4445 }
 0x903   : > { %v2340_v26 = vsel %vm1991_vm2, %v4446_v46, 0.0  ;;  %v4448_v33 = vpop.eup %4447 }
 0x904   : > { %2341 = vadd.xlane.f32.xlu1 %v2340_v26  ;;  %v2394_v35 = vsel %vm1991_vm2, %v4448_v33, 0.0  ;;  %v4239_v26 = vld [vmem:[%s4724_s22 + $0x20] sm:$0xff] }
 0x908   : > { %2346 = vrot.lane.b32.xlu0 %v2237_v23, %s4546_s1 }
 0x909   : > { %v2060_v27 = vpop.permute.xlu1 %2059 }
 0x90a   : > { %v2114_v28 = vpop.permute.xlu0 %2113  ;;  %2072 = vmatpush.bf16.msra.mxu2 %v2060_v27  ;;  %v4238_v27 = vld [vmem:[%s4724_s22 + $0x18] sm:$0xff] }
 0x90b   : > { %2126 = vmatpush.bf16.msrb.mxu0 %v2114_v28  ;;  %v4237_v28 = vld [vmem:[%s4724_s22 + $0x10] sm:$0xff] }
 0x90e   : > { %2180 = vmatpush.bf16.msrb.mxu2 %v2168_v29  ;;  %v4236_v29 = vld [vmem:[%s4724_s22 + $0x8] sm:$0xff] }
 0x90f   : > { %2248 = vmatpush.bf16.msra.mxu0 %v2237_v23 }
 0x91d   : > { %2400 = vrot.lane.b32.xlu1 %v2237_v23, %s4548_s18  ;;  %v4242_v23 = vld [vmem:[%s4724_s22 + $0x38] sm:$0xff] }
 0x91e   : > { %2499 = vmatpush.bf16.msrb.mxu3 %v4242_v23 }
 0x922   : > { %2500 = vmatpush.bf16.msrb.mxu3 %v4241_v24  ;;  %v3866_v24 = vld [vmem:[%s4733_s16 + $0x28] sm:$0xf0] }
 0x925   : > { %2395 = vadd.xlane.f32.xlu2 %v2394_v35 }
 0x941   : > { %v2054_v36 = vpop.xlane.xlu2 %2053 }
 0x942   : > { %4449 = vrcp.f32 %v2054_v36 }
 0x948   : > { %v4450_v2 = vpop.eup %4449 }
 0x949   : > { %v2056_v34 = vmul.f32 %v4450_v2, %v5096_v56 }
 0x94b   : > { %v2057_v37 = vpack.c.bf16 %v2056_v34, %v2056_v34 }
 0x94d   : > { %3801 = vmatmul.msk.bf16.vlgmr.msra.gmra.mxu2 %vm1991_vm2, %v2057_v37 }
 0x957   : > { %v2163_v39 = vpop.xlane.xlu2 %2162 }
 0x958   : > { %4451 = vrcp.f32 %v2163_v39  ;;  %v2109_v40 = vpop.xlane.xlu0 %2108 }
 0x959   : > { %4453 = vrcp.f32 %v2109_v40 }
 0x95e   : > { %v4452_v41 = vpop.eup %4451  ;;  %v5113_v3 = vpop.f32.mrf.mxu2 }
 0x95f   : > { %v4454_v42 = vpop.eup %4453  ;;  %v2165_v43 = vmul.f32 %v4452_v41, %v4438_v7  ;;  %v2293_v44 = vpop.permute.xlu2 %2292 }
 0x960   : > { %v2111_v45 = vmul.f32 %v4454_v42, %v4440_v48  ;;  %2305 = vmatpush.bf16.msra.mxu2 %v2293_v44 }
 0x961   : > { %v2166_v47 = vpack.c.bf16 %v2165_v43, %v2165_v43  ;;  %v2287_v49 = vpop.xlane.xlu1 %2286 }
 0x962   : > { %v2112_v50 = vpack.c.bf16 %v2111_v45, %v2111_v45  ;;  %4455 = vrcp.f32 %v2287_v49 }
 0x963   : > { %3805 = vmatmul.msk.bf16.vlgmr.msrb.gmra.mxu2 %vm1991_vm2, %v2166_v47 }
 0x964   : > { %3803 = vmatmul.msk.bf16.vlgmr.msrb.gmra.mxu0 %vm1991_vm2, %v2112_v50 }
 0x966   : > { %v2019_v51 = vpop.f32.mrf.mxu2 }
 0x967   : > { %v2233_v52 = vpop.xlane.xlu0 %2232 }
 0x968   : > { %4457 = vrcp.f32 %v2233_v52  ;;  %v4456_v53 = vpop.eup %4455 }
 0x969   : > { %v2289_v55 = vmul.f32 %v4456_v53, %v4442_v16 }
 0x96b   : > { %v2290_v58 = vpack.c.bf16 %v2289_v55, %v2289_v55 }
 0x96e   : > { %v4458_v56 = vpop.eup %4457 }
 0x96f   : > { %v2235_v57 = vmul.f32 %v4458_v56, %v4444_v19  ;;  %v3904_v56 = vld [vmem:[%s4733_s16 + $0x70] sm:$0xf] }
 0x971   : > { %v2236_v59 = vpack.c.bf16 %v2235_v57, %v2235_v57  ;;  %v4258_v57 = vld [vmem:[%s4733_s16 + $0x74] sm:$0xf0] }
 0x973   : > { %3809 = vmatmul.msk.bf16.vlgmr.msra.gmra.mxu2 %vm1991_vm2, %v2290_v58  ;;  %v3905_v58 = vor.u32 %v4258_v57, %v3904_v56 }
 0x974   : > { %3807 = vmatmul.msk.bf16.vlgmr.msra.gmra.mxu0 %vm1991_vm2, %v2236_v59  ;;  %v3906_v59 = vld [vmem:[%s4733_s16 + $0x78] sm:$0xf0] }
 0x977   : > { %v2342_v60 = vpop.xlane.xlu1 %2341 }
 0x978   : > { %4459 = vrcp.f32 %v2342_v60 }
 0x97a   : > { %v2347_v61 = vpop.permute.xlu0 %2346 }
 0x97b   : > { %2359 = vmatpush.bf16.msrb.mxu0 %v2347_v61  ;;  %v3896_v61 = vld [vmem:[%s4733_s16 + $0x60] sm:$0xf] }
 0x97e   : > { %v4460_v62 = vpop.eup %4459 }
 0x97f   : > { %v2344_v63 = vmul.f32 %v4460_v62, %v4446_v46  ;;  %v4240_v46 = vld [vmem:[%s4724_s22 + $0x28] sm:$0xff]  ;;  %2650 = vmatpush.bf16.msra.mxu0 %v3905_v58  ;;  %v4255_v62 = vld [vmem:[%s4733_s16 + $0x64] sm:$0xf] }
 0x980   : > { %2501 = vmatpush.bf16.msrb.mxu3 %v4240_v46  ;;  %v4271_v58 = vld [vmem:[%s4738_s2 + $0x60] sm:$0xff] }
 0x981   : > { %v2345_v0 = vpack.c.bf16 %v2344_v63, %v2344_v63 }
 0x984   : > { %3811 = vmatmul.msk.bf16.vlgmr.msrb.gmra.mxu0 %vm1991_vm2, %v2345_v0  ;;  %2502 = vmatpush.bf16.msrb.mxu3 %v4239_v26  ;;  %v3898_v0 = vld [vmem:[%s4733_s16 + $0x68] sm:$0xf0]  ;;  %v3856_v26 = vld [vmem:[%s4733_s16 + $0x10] sm:$0xf] }
 0x988   : > { %2503 = vmatpush.bf16.msrb.mxu3 %v4238_v27  ;;  %v4246_v27 = vld [vmem:[%s4733_s16 + $0x14] sm:$0xf0] }
 0x98c   : > { %2504 = vmatpush.bf16.msrb.mxu3 %v4237_v28  ;;  %v4245_v28 = vld [vmem:[%s4733_s16 + $0x14] sm:$0xf] }
 0x98f   : > { %v2401_v1 = vpop.permute.xlu1 %2400 }
 0x990   : > { %2413 = vmatpush.bf16.msrb.mxu2 %v2401_v1  ;;  %2505 = vmatpush.bf16.msrb.mxu3 %v4236_v29  ;;  %v3901_v1 = vor.u32 %v4255_v62, %v3898_v0  ;;  %v3857_v29 = vor.u32 %v4246_v27, %v3856_v26  ;;  %v4270_v62 = vld [vmem:[%s4738_s2 + $0x58] sm:$0xff] }
 0x994   : > { %2506 = vmatpush.bf16.msrb.mxu3 %v4235_v30  ;;  %v3858_v30 = vld [vmem:[%s4733_s16 + $0x18] sm:$0xf0] }
 0x998   : > { %v2396_v4 = vpop.xlane.xlu2 %2395 }
 0x999   : > { %4461 = vrcp.f32 %v2396_v4  ;;  %v3888_v4 = vld [vmem:[%s4733_s16 + $0x50] sm:$0xf] }
 0x99f   : > { %v4462_v5 = vpop.eup %4461 }
 0x9a0   : > { %v2398_v6 = vmul.f32 %v4462_v5, %v4448_v33  ;;  %v4254_v5 = vld [vmem:[%s4733_s16 + $0x54] sm:$0xf0] }
 0x9a2   : > { %v2399_v7 = vpack.c.bf16 %v2398_v6, %v2398_v6  ;;  %v4253_v6 = vld [vmem:[%s4733_s16 + $0x54] sm:$0xf] }
 0x9a4   : > { %3813 = vmatmul.msk.bf16.vlgmr.msrb.gmra.mxu2 %vm1991_vm2, %v2399_v7  ;;  %v3889_v7 = vor.u32 %v4254_v5, %v3888_v4 }
 0x9d0   : > { %v2074_v8 = vpop.f32.mrf.mxu2 }
 0x9d8   : > { %v2076_v48 = vpop.f32.mrf.mxu2 }
 0x9e1   : > { %v2128_v9 = vpop.f32.mrf.mxu0 }
 0x9e6   : > { %v2182_v10 = vpop.f32.mrf.mxu2 }
 0x9e9   : > { %v2130_v11 = vpop.f32.mrf.mxu0 }
 0x9ea   : > { %v4251_v11 = vld [vmem:[%s4733_s16 + $0x44] sm:$0xf] }
 0x9ee   : > { %v2184_v12 = vpop.f32.mrf.mxu2 }
 0x9f1   : > { %v2250_v14 = vpop.f32.mrf.mxu0 }
 0x9f6   : > { %v2307_v15 = vpop.f32.mrf.mxu2 }
 0x9f7   : > { %v4369_v16 = vpack.i.bf16 %v2307_v15, %v2074_v8  ;;  %v3890_v8 = vld [vmem:[%s4733_s16 + $0x58] sm:$0xf0] }
 0x9f8   : > { %v3893_v48 = vor.u32 %v4253_v6, %v3890_v8 }
 0x9f9   : > { %v2252_v17 = vpop.f32.mrf.mxu0  ;;  %4370 = vrot.lane.b32.xlu2 %v4369_v16, %s4548_s18  ;;  %v3872_v16 = vld [vmem:[%s4733_s16 + $0x30] sm:$0xf] }
 0x9fa   : > { %v4250_v17 = vld [vmem:[%s4733_s16 + $0x34] sm:$0xf0] }
 0x9fe   : > { %v2309_v18 = vpop.f32.mrf.mxu2 }
 0x9ff   : > { %v4249_v18 = vld [vmem:[%s4733_s16 + $0x34] sm:$0xf] }
 0xa01   : > { %v2361_v19 = vpop.f32.mrf.mxu0 }
 0xa02   : > { %v4374_v20 = vpack.i.bf16 %v2361_v19, %v2128_v9  ;;  %v3880_v9 = vld [vmem:[%s4733_s16 + $0x40] sm:$0xf]  ;;  %v3873_v19 = vor.u32 %v4250_v17, %v3872_v16  ;;  %v4269_v16 = vld [vmem:[%s4738_s2 + $0x50] sm:$0xff]  ;;  %v4260_v17 = vld [vmem:[%s4738_s2 + $0x8] sm:$0xff] }
 0xa04   : > { %4375 = vrot.lane.b32.xlu0 %v4374_v20, %s4546_s1  ;;  %v3874_v20 = vld [vmem:[%s4733_s16 + $0x38] sm:$0xf0] }
 0xa09   : > { %v2363_v21 = vpop.f32.mrf.mxu0 }
 0xa0a   : > { %v3877_v21 = vor.u32 %v4249_v18, %v3874_v20  ;;  %v4268_v18 = vld [vmem:[%s4738_s2 + $0x48] sm:$0xff]  ;;  %v4267_v20 = vld [vmem:[%s4738_s2 + $0x40] sm:$0xff] }
 0xa27   : > { %v2415_v38 = vpop.f32.mrf.mxu2 }
 0xa28   : > { %v4379_v54 = vpack.i.bf16 %v2415_v38, %v2182_v10  ;;  %v4252_v10 = vld [vmem:[%s4733_s16 + $0x44] sm:$0xf0]  ;;  %v3864_v38 = vld [vmem:[%s4733_s16 + $0x20] sm:$0xf] }
 0xa29   : > { %v3881_v12 = vor.u32 %v4252_v10, %v3880_v9 }
 0xa2a   : > { %4380 = vrot.lane.b32.xlu1 %v4379_v54, %s4547_s29  ;;  %v4248_v54 = vld [vmem:[%s4733_s16 + $0x24] sm:$0xf0]  ;;  %s5564_s29 = sld [smem:[#allocation22_spill]] (!%p3974_p6) }
 0xa2b   : > { %v3865_v23 = vor.u32 %v4248_v54, %v3864_v38 }
 0xa2f   : > { %v2417_v22 = vpop.f32.mrf.mxu2 }
 0xa30   : > { %v4247_v22 = vld [vmem:[%s4733_s16 + $0x24] sm:$0xf] }
 0xa31   : > { %v3869_v46 = vor.u32 %v4247_v22, %v3866_v24 }
 0xa53   : > { %v4371_v31 = vpop.permute.xlu2 %4370 }
 0xa54   : > { %v4373_v35 = vunpack.i.h.bf16 %v4371_v31  ;;  %v4372_v36 = vunpack.i.l.bf16 %v4371_v31  ;;  %v3861_v31 = vor.u32 %v4245_v28, %v3858_v30 }
 0xa56   : > { %v2431_v39 = vsel %vm1144_vm7, %v2250_v14, %v4373_v35  ;;  %v2198_v40 = vsel %vm1144_vm7, %v5113_v3, %v4372_v36  ;;  %v3882_v14 = vld [vmem:[%s4733_s16 + $0x48] sm:$0xf0]  ;;  %v4244_v35 = vld [vmem:[%s4733_s16 + $0x4] sm:$0xf0]  ;;  %v4243_v36 = vld [vmem:[%s4733_s16 + $0x4] sm:$0xf] }
 0xa57   : > { %v3885_v15 = vor.u32 %v4251_v11, %v3882_v14 }
 0xa76   : > { %v4376_v33 = vpop.permute.xlu0 %4375 }
 0xa77   : > { %v4378_v2 = vunpack.i.h.bf16 %v4376_v33  ;;  %v4377_v34 = vunpack.i.l.bf16 %v4376_v33  ;;  %v3848_v33 = vld [vmem:[%s4733_s16] sm:$0xf] }
 0xa79   : > { %v2199_v43 = vsel %vm1382_vm10, %v2198_v40, %v4377_v34  ;;  %v2432_v44 = vsel %vm1382_vm10, %v2431_v39, %v4378_v2  ;;  %v3849_v34 = vor.u32 %v4244_v35, %v3848_v33 }
 0xa9c   : > { %v4381_v37 = vpop.permute.xlu1 %4380 }
 0xa9d   : > { %v4383_v41 = vunpack.i.h.bf16 %v4381_v37  ;;  %v4382_v42 = vunpack.i.l.bf16 %v4381_v37  ;;  %v3850_v37 = vld [vmem:[%s4733_s16 + $0x8] sm:$0xf0] }
 0xa9e   : > { %v3853_v40 = vor.u32 %v4243_v36, %v3850_v37 }
 0xa9f   : > { %v2200_v45 = vsel %vm1384_vm11, %v2199_v43, %v4382_v42  ;;  %v2433_v47 = vsel %vm1384_vm11, %v2432_v44, %v4383_v41  ;;  %v4266_v42 = vld [vmem:[%s4738_s2 + $0x38] sm:$0xff]  ;;  %v4265_v44 = vld [vmem:[%s4738_s2 + $0x30] sm:$0xff] }
 0xaa0   : > { %v2434_v49 = vpack.c.bf16 %v2433_v47, %v2200_v45  ;;  %v4274_v43 = vld [vmem:[%s4738_s2 + $0x78] sm:$0xff]  ;;  %2812 = vmatpush.bf16.msra.mxu2 %v4266_v42  ;;  %v4273_v45 = vld [vmem:[%s4738_s2 + $0x70] sm:$0xff] }
 0xaa1   : > { %2826 = vmatpush.bf16.msra.mxu3 %v4274_v43 }
 0xaa2   : > { %2507 = vmatmul.bf16.vlgmr.msrb.gmra.mxu3 %v2434_v49 }
 0xaa4   : > { %2813 = vmatpush.bf16.msra.mxu2 %v4265_v44 }
 0xaa5   : > { %2827 = vmatpush.bf16.msra.mxu3 %v4273_v45 }
 0xb25   : > { %v2508_v50 = vpop.f32.mrf.mxu3 }
 0xb26   : > { %v5140_v3 = vadd.f32 %v2508_v50, %v4969_v25  ;;  %v4257_v25 = vld [vmem:[%s4733_s16 + $0x74] sm:$0xf] }
 0xb27   : > { %v3909_v60 = vor.u32 %v4257_v25, %v3906_v59  ;;  %v4263_v25 = vld [vmem:[%s4738_s2 + $0x20] sm:$0xff] }
 0xb28   : > { %v2516_v51 = vmul.f32 %v5140_v3, %v5140_v3 }
 0xb29   : > { %2664 = vmatpush.bf16.msra.mxu1 %v3909_v60 }
 0xb2a   : > { %2518 = vadd.xlane.f32.xlu0 %v2516_v51 }
 0xb2d   : > { %v2510_v52 = vpop.f32.mrf.mxu3  ;;  %2665 = vmatpush.bf16.msra.mxu1 %v3901_v1 }
 0xb2e   : > { %v5145_v53 = vadd.f32 %v2510_v52, %v4984_v32  ;;  %v4256_v32 = vld [vmem:[%s4733_s16 + $0x64] sm:$0xf0]  ;;  %s5565_s16 = sld [smem:[#allocation19_spill]] (!%p3974_p6) }
 0xb2f   : > { %v3897_v63 = vor.u32 %v4256_v32, %v3896_v61  ;;  %v4264_v52 = vld [vmem:[%s4738_s2 + $0x28] sm:$0xff]  ;;  %v4262_v32 = vld [vmem:[%s4738_s2 + $0x18] sm:$0xff] }
 0xb30   : > { %v2517_v55 = vmul.f32 %v5145_v53, %v5145_v53  ;;  %2814 = vmatpush.bf16.msra.mxu2 %v4264_v52 }
 0xb31   : > { %2651 = vmatpush.bf16.msra.mxu0 %v3897_v63  ;;  %2666 = vmatpush.bf16.msra.mxu1 %v3893_v48  ;;  %v4388_v48 = vld [vmem:[%s851_s17] ss:$0 sm:$0xff] }
 0xb32   : > { %2520 = vadd.xlane.f32.xlu1 %v2517_v55  ;;  %v4272_v55 = vld [vmem:[%s4738_s2 + $0x68] sm:$0xff] }
 0xb33   : > { %2828 = vmatpush.bf16.msra.mxu3 %v4272_v55 }
 0xb34   : > { %2815 = vmatpush.bf16.msra.mxu2 %v4263_v25 }
 0xb35   : > { %2652 = vmatpush.bf16.msra.mxu0 %v3889_v7  ;;  %2667 = vmatpush.bf16.msra.mxu1 %v3885_v15  ;;  %v4261_v15 = vld [vmem:[%s4738_s2 + $0x10] sm:$0xff] }
 0xb37   : > { %2829 = vmatpush.bf16.msra.mxu3 %v4271_v58 }
 0xb38   : > { %2816 = vmatpush.bf16.msra.mxu2 %v4262_v32 }
 0xb39   : > { %2653 = vmatpush.bf16.msra.mxu0 %v3881_v12  ;;  %2668 = vmatpush.bf16.msra.mxu1 %v3877_v21 }
 0xb3b   : > { %2830 = vmatpush.bf16.msra.mxu3 %v4270_v62 }
 0xb3c   : > { %2817 = vmatpush.bf16.msra.mxu2 %v4261_v15 }
 0xb3d   : > { %2654 = vmatpush.bf16.msra.mxu0 %v3873_v19  ;;  %2669 = vmatpush.bf16.msra.mxu1 %v3869_v46  ;;  %v4259_v19 = vld [vmem:[%s4738_s2] sm:$0xff] }
 0xb3f   : > { %2831 = vmatpush.bf16.msra.mxu3 %v4269_v16 }
 0xb40   : > { %2818 = vmatpush.bf16.msra.mxu2 %v4260_v17 }
 0xb41   : > { %2655 = vmatpush.bf16.msra.mxu0 %v3865_v23  ;;  %2670 = vmatpush.bf16.msra.mxu1 %v3861_v31 }
 0xb43   : > { %2832 = vmatpush.bf16.msra.mxu3 %v4268_v18 }
 0xb44   : > { %2819 = vmatpush.bf16.msra.mxu2 %v4259_v19 }
 0xb45   : > { %2656 = vmatpush.bf16.msra.mxu0 %v3857_v29  ;;  %2671 = vmatpush.bf16.msra.mxu1 %v3853_v40 }
 0xb47   : > { %2833 = vmatpush.bf16.msra.mxu3 %v4267_v20 }
 0xb49   : > { %2657 = vmatpush.bf16.msra.mxu0 %v3849_v34 }
 0xb9d   : > { %v2519_v2 = vpop.xlane.xlu0 %2518 }
 0xb9e   : > { %v2522_v39 = vmul.f32 %v2519_v2, %v4809_v13 }
 0xba0   : > { %v2524_v41 = vadd.f32 1e-06, %v2522_v39 }
 0xba2   : > { %4463 = vrsqrt.f32 %v2524_v41  ;;  %vm2532_vm4 = vweird.f32 %v2524_v41 }
 0xba5   : > { %v2521_v47 = vpop.xlane.xlu1 %2520 }
 0xba6   : > { %v2523_v49 = vmul.f32 %v2521_v47, %v4809_v13 }
 0xba8   : > { %v4464_v50 = vpop.eup %4463  ;;  %v2525_v51 = vadd.f32 1e-06, %v2523_v49 }
 0xba9   : > { %v2527_v56 = vmul.f32 %v4464_v50, %v2524_v41  ;;  %vm2533_vm3 = vweird.f32 %v4464_v50 }
 0xbaa   : > { %4465 = vrsqrt.f32 %v2525_v51  ;;  %vm2534_vm5 = vmor %vm2532_vm4, %vm2533_vm3  ;;  %vm2542_vm7 = vweird.f32 %v2525_v51 }
 0xbab   : > { %v2528_v57 = vmul.f32 %v4464_v50, %v2527_v56 }
 0xbad   : > { %v2529_v59 = vmul.f32 0.5, %v2528_v57 }
 0xbaf   : > { %v2530_v60 = vsub.f32 1.5, %v2529_v59 }
 0xbb0   : > { %v4466_v61 = vpop.eup %4465 }
 0xbb1   : > { %v2537_v63 = vmul.f32 %v4466_v61, %v2525_v51  ;;  %v2531_v0 = vmul.f32 %v4464_v50, %v2530_v60  ;;  %vm2543_vm6 = vweird.f32 %v4466_v61 }
 0xbb2   : > { %vm2544_vm8 = vmor %vm2542_vm7, %vm2543_vm6 }
 0xbb3   : > { %v2538_v1 = vmul.f32 %v4466_v61, %v2537_v63  ;;  %v2535_v5 = vsel %vm2534_vm5, %v4464_v50, %v2531_v0 }
 0xbb4   : > { %v2546_v8 = vmul.f32 %v2535_v5, %v5140_v3 }
 0xbb5   : > { %v2539_v4 = vmul.f32 0.5, %v2538_v1 }
 0xbb6   : > { %v2551_v11 = vmul.f32 %v4388_v48, %v2546_v8 }
 0xbb7   : > { %v2540_v6 = vsub.f32 1.5, %v2539_v4 }
 0xbb9   : > { %v2541_v7 = vmul.f32 %v4466_v61, %v2540_v6 }
 0xbbb   : > { %v2545_v9 = vsel %vm2544_vm8, %v4466_v61, %v2541_v7 }
 0xbbc   : > { %v2547_v10 = vmul.f32 %v2545_v9, %v5145_v53 }
 0xbbe   : > { %v2552_v12 = vmul.f32 %v4388_v48, %v2547_v10 }
 0xbc0   : > { %v2553_v14 = vpack.c.bf16 %v2552_v12, %v2551_v11 }
 0xbc2   : > { %2658 = vmatmul.bf16.vlgmr.msra.gmra.mxu0 %v2553_v14  ;;  %2672 = vmatmul.bf16.vlgmr.msra.gmra.mxu1 %v2553_v14 }
 0xc3f   : > { %v2659_v21 = vpop.f32.mrf.mxu0  ;;  %v2673_v38 = vpop.f32.mrf.mxu1 }
 0xc40   : > { %v2678_v23 = vmax.f32 %v2659_v21, 0.0  ;;  %v2679_v24 = vmax.f32 %v2673_v38, 0.0 }
 0xc47   : > { %v2661_v54 = vpop.f32.mrf.mxu0  ;;  %v2675_v22 = vpop.f32.mrf.mxu1 }
 0xc48   : > { %v2680_v46 = vmax.f32 %v2661_v54, 0.0  ;;  %v2681_v26 = vmax.f32 %v2675_v22, 0.0 }
 0xc4a   : > { %v2682_v27 = vpack.c.bf16 %v2680_v46, %v2678_v23  ;;  %v2683_v28 = vpack.c.bf16 %v2681_v26, %v2679_v24 }
 0xc4c   : > { %2820 = vmatmul.bf16.vlgmr.msra.gmra.mxu2 %v2682_v27  ;;  %2834 = vmatmul.bf16.vlgmr.msra.gmra.mxu3 %v2683_v28 }
 0xccf   : > { %v2821_v29 = vpop.f32.mrf.mxu2  ;;  %v2835_v30 = vpop.f32.mrf.mxu3 }
 0xcd0   : > { %v2836_v31 = vadd.f32 %v2835_v30, %v2821_v29 }
 0xcd2   : > { %v5207_v33 = vadd.f32 %v2836_v31, %v5140_v3 }
 0xcd4   : > { %2842 = vst [vmem:[#allocation2] sm:$0xff] %v5207_v33 }
 0xcd7   : > { %v2823_v35 = vpop.f32.mrf.mxu2  ;;  %v2837_v36 = vpop.f32.mrf.mxu3 }
 0xcd8   : > { %v2838_v2 = vadd.f32 %v2837_v36, %v2823_v35  ;;  %2847 = sbr.rel (%p3974_p6) target bundleno = 3733 (0xe95), region = 108 }
 0xcda   : > { %v5211_v34 = vadd.f32 %v2838_v2, %v5145_v53 }
 0xcdc   : > { %2843 = vst [vmem:[#allocation2 + $0x8] sm:$0xff] %v5211_v34 }
 0xcdd   : > { %v2849_v37 = vmul.f32 %v5207_v33, %v5207_v33  ;;  %v2850_v3 = vmul.f32 %v5211_v34, %v5211_v34  ;;  %v4033_v39 = vld [vmem:[%s5515_s15 + $0x70] sm:$0xf]  ;;  %v4290_v53 = vld [vmem:[%s5515_s15 + $0x74] sm:$0xf0]  ;;  %v4289_v40 = vld [vmem:[%s5515_s15 + $0x74] sm:$0xf] }
 0xcde   : > { %v4034_v41 = vor.u32 %v4290_v53, %v4033_v39  ;;  %v4035_v42 = vld [vmem:[%s5515_s15 + $0x78] sm:$0xf0]  ;;  %v4097_v43 = vld [vmem:[%s5563_s19 + $0x70] sm:$0xf]  ;;  %v4306_v44 = vld [vmem:[%s5563_s19 + $0x74] sm:$0xf0] }
 0xcdf   : > { %2851 = vadd.xlane.f32.xlu0 %v2849_v37  ;;  %v4038_v45 = vor.u32 %v4289_v40, %v4035_v42  ;;  %v4098_v47 = vor.u32 %v4306_v44, %v4097_v43  ;;  %v4305_v49 = vld [vmem:[%s5563_s19 + $0x74] sm:$0xf]  ;;  %v4099_v50 = vld [vmem:[%s5563_s19 + $0x78] sm:$0xf0]  ;;  %v4025_v52 = vld [vmem:[%s5515_s15 + $0x60] sm:$0xf] }
 0xce0   : > { %2983 = vmatpush.bf16.msra.mxu0 %v4034_v41  ;;  %v4102_v51 = vor.u32 %v4305_v49, %v4099_v50  ;;  %v4288_v55 = vld [vmem:[%s5515_s15 + $0x64] sm:$0xf0]  ;;  %v4287_v56 = vld [vmem:[%s5515_s15 + $0x64] sm:$0xf]  ;;  %v4027_v25 = vld [vmem:[%s5515_s15 + $0x68] sm:$0xf0] }
 0xce1   : > { %2997 = vmatpush.bf16.msra.mxu1 %v4038_v45  ;;  %3119 = vmatpush.bf16.msra.mxu2 %v4098_v47  ;;  %v4026_v57 = vor.u32 %v4288_v55, %v4025_v52  ;;  %v4089_v58 = vld [vmem:[%s5563_s19 + $0x60] sm:$0xf]  ;;  %v4304_v59 = vld [vmem:[%s5563_s19 + $0x64] sm:$0xf0]  ;;  %v4030_v60 = vor.u32 %v4287_v56, %v4027_v25  ;;  %v4303_v32 = vld [vmem:[%s5563_s19 + $0x64] sm:$0xf] }
 0xce2   : > { %3133 = vmatpush.bf16.msra.mxu3 %v4102_v51  ;;  %v4090_v61 = vor.u32 %v4304_v59, %v4089_v58  ;;  %v4091_v62 = vld [vmem:[%s5563_s19 + $0x68] sm:$0xf0]  ;;  %v4017_v0 = vld [vmem:[%s5515_s15 + $0x50] sm:$0xf]  ;;  %v4286_v1 = vld [vmem:[%s5515_s15 + $0x54] sm:$0xf0] }
 0xce3   : > { %v4094_v63 = vor.u32 %v4303_v32, %v4091_v62  ;;  %v4285_v4 = vld [vmem:[%s5515_s15 + $0x54] sm:$0xf]  ;;  %v4018_v5 = vor.u32 %v4286_v1, %v4017_v0  ;;  %v4019_v6 = vld [vmem:[%s5515_s15 + $0x58] sm:$0xf0]  ;;  %v4081_v7 = vld [vmem:[%s5563_s19 + $0x50] sm:$0xf] }
 0xce4   : > { %2984 = vmatpush.bf16.msra.mxu0 %v4026_v57  ;;  %v4302_v8 = vld [vmem:[%s5563_s19 + $0x54] sm:$0xf0]  ;;  %v4022_v48 = vor.u32 %v4285_v4, %v4019_v6  ;;  %v4301_v10 = vld [vmem:[%s5563_s19 + $0x54] sm:$0xf]  ;;  %v4083_v11 = vld [vmem:[%s5563_s19 + $0x58] sm:$0xf0] }
 0xce5   : > { %2998 = vmatpush.bf16.msra.mxu1 %v4030_v60  ;;  %3120 = vmatpush.bf16.msra.mxu2 %v4090_v61  ;;  %v4082_v9 = vor.u32 %v4302_v8, %v4081_v7  ;;  %v4086_v12 = vor.u32 %v4301_v10, %v4083_v11  ;;  %v4009_v14 = vld [vmem:[%s5515_s15 + $0x40] sm:$0xf]  ;;  %v4284_v15 = vld [vmem:[%s5515_s15 + $0x44] sm:$0xf0]  ;;  %v4283_v16 = vld [vmem:[%s5515_s15 + $0x44] sm:$0xf] }
 0xce6   : > { %3134 = vmatpush.bf16.msra.mxu3 %v4094_v63  ;;  %v4010_v17 = vor.u32 %v4284_v15, %v4009_v14  ;;  %v4011_v18 = vld [vmem:[%s5515_s15 + $0x48] sm:$0xf0]  ;;  %v4073_v19 = vld [vmem:[%s5563_s19 + $0x40] sm:$0xf]  ;;  %v4300_v20 = vld [vmem:[%s5563_s19 + $0x44] sm:$0xf0] }
 0xce7   : > { %2853 = vadd.xlane.f32.xlu0 %v2850_v3  ;;  %v4014_v21 = vor.u32 %v4283_v16, %v4011_v18  ;;  %v4074_v38 = vor.u32 %v4300_v20, %v4073_v19  ;;  %v4299_v54 = vld [vmem:[%s5563_s19 + $0x44] sm:$0xf]  ;;  %v4075_v22 = vld [vmem:[%s5563_s19 + $0x48] sm:$0xf0]  ;;  %v4001_v24 = vld [vmem:[%s5515_s15 + $0x30] sm:$0xf] }
 0xce8   : > { %2985 = vmatpush.bf16.msra.mxu0 %v4018_v5  ;;  %v4078_v23 = vor.u32 %v4299_v54, %v4075_v22  ;;  %v4282_v46 = vld [vmem:[%s5515_s15 + $0x34] sm:$0xf0]  ;;  %v4281_v26 = vld [vmem:[%s5515_s15 + $0x34] sm:$0xf]  ;;  %v4003_v28 = vld [vmem:[%s5515_s15 + $0x38] sm:$0xf0] }
 0xce9   : > { %2999 = vmatpush.bf16.msra.mxu1 %v4022_v48  ;;  %3121 = vmatpush.bf16.msra.mxu2 %v4082_v9  ;;  %v4002_v27 = vor.u32 %v4282_v46, %v4001_v24  ;;  %v4065_v29 = vld [vmem:[%s5563_s19 + $0x30] sm:$0xf]  ;;  %v4298_v30 = vld [vmem:[%s5563_s19 + $0x34] sm:$0xf0]  ;;  %v4006_v31 = vor.u32 %v4281_v26, %v4003_v28  ;;  %v4297_v36 = vld [vmem:[%s5563_s19 + $0x34] sm:$0xf] }
 0xcea   : > { %3135 = vmatpush.bf16.msra.mxu3 %v4086_v12  ;;  %v4066_v35 = vor.u32 %v4298_v30, %v4065_v29  ;;  %v4067_v2 = vld [vmem:[%s5563_s19 + $0x38] sm:$0xf0]  ;;  %v3993_v3 = vld [vmem:[%s5515_s15 + $0x20] sm:$0xf]  ;;  %v4280_v39 = vld [vmem:[%s5515_s15 + $0x24] sm:$0xf0] }
 0xceb   : > { %v4070_v37 = vor.u32 %v4297_v36, %v4067_v2  ;;  %v4279_v53 = vld [vmem:[%s5515_s15 + $0x24] sm:$0xf]  ;;  %v3994_v40 = vor.u32 %v4280_v39, %v3993_v3  ;;  %v3995_v41 = vld [vmem:[%s5515_s15 + $0x28] sm:$0xf0]  ;;  %v4057_v42 = vld [vmem:[%s5563_s19 + $0x20] sm:$0xf] }
 0xcec   : > { %2986 = vmatpush.bf16.msra.mxu0 %v4010_v17  ;;  %v4296_v43 = vld [vmem:[%s5563_s19 + $0x24] sm:$0xf0]  ;;  %v3998_v44 = vor.u32 %v4279_v53, %v3995_v41  ;;  %v4295_v47 = vld [vmem:[%s5563_s19 + $0x24] sm:$0xf]  ;;  %v4059_v49 = vld [vmem:[%s5563_s19 + $0x28] sm:$0xf0] }
 0xced   : > { %3000 = vmatpush.bf16.msra.mxu1 %v4014_v21  ;;  %3122 = vmatpush.bf16.msra.mxu2 %v4074_v38  ;;  %v4058_v45 = vor.u32 %v4296_v43, %v4057_v42  ;;  %v4062_v50 = vor.u32 %v4295_v47, %v4059_v49  ;;  %v3985_v51 = vld [vmem:[%s5515_s15 + $0x10] sm:$0xf]  ;;  %v4278_v52 = vld [vmem:[%s5515_s15 + $0x14] sm:$0xf0]  ;;  %v4277_v55 = vld [vmem:[%s5515_s15 + $0x14] sm:$0xf] }
 0xcee   : > { %3136 = vmatpush.bf16.msra.mxu3 %v4078_v23  ;;  %v3986_v56 = vor.u32 %v4278_v52, %v3985_v51  ;;  %v3987_v57 = vld [vmem:[%s5515_s15 + $0x18] sm:$0xf0]  ;;  %v4049_v25 = vld [vmem:[%s5563_s19 + $0x10] sm:$0xf]  ;;  %v4294_v58 = vld [vmem:[%s5563_s19 + $0x14] sm:$0xf0] }
 0xcef   : > { %v3990_v59 = vor.u32 %v4277_v55, %v3987_v57  ;;  %v4050_v60 = vor.u32 %v4294_v58, %v4049_v25  ;;  %v4293_v61 = vld [vmem:[%s5563_s19 + $0x14] sm:$0xf]  ;;  %v4051_v32 = vld [vmem:[%s5563_s19 + $0x18] sm:$0xf0]  ;;  %v3977_v63 = vld [vmem:[%s5515_s15] sm:$0xf] }
 0xcf0   : > { %2987 = vmatpush.bf16.msra.mxu0 %v4002_v27  ;;  %v4054_v62 = vor.u32 %v4293_v61, %v4051_v32  ;;  %v4276_v0 = vld [vmem:[%s5515_s15 + $0x4] sm:$0xf0]  ;;  %v4275_v1 = vld [vmem:[%s5515_s15 + $0x4] sm:$0xf]  ;;  %v3979_v6 = vld [vmem:[%s5515_s15 + $0x8] sm:$0xf0] }
 0xcf1   : > { %3001 = vmatpush.bf16.msra.mxu1 %v4006_v31  ;;  %3123 = vmatpush.bf16.msra.mxu2 %v4066_v35  ;;  %v3978_v5 = vor.u32 %v4276_v0, %v3977_v63  ;;  %v4041_v7 = vld [vmem:[%s5563_s19] sm:$0xf]  ;;  %v4292_v8 = vld [vmem:[%s5563_s19 + $0x4] sm:$0xf0]  ;;  %v3982_v9 = vor.u32 %v4275_v1, %v3979_v6  ;;  %v4291_v11 = vld [vmem:[%s5563_s19 + $0x4] sm:$0xf] }
 0xcf2   : > { %3137 = vmatpush.bf16.msra.mxu3 %v4070_v37  ;;  %v4042_v10 = vor.u32 %v4292_v8, %v4041_v7  ;;  %v4043_v12 = vld [vmem:[%s5563_s19 + $0x8] sm:$0xf0]  ;;  %v4314_v16 = vld [vmem:[%s5564_s29 + $0x38] sm:$0xff]  ;;  %v4313_v19 = vld [vmem:[%s5564_s29 + $0x30] sm:$0xff] }
 0xcf3   : > { %v4046_v14 = vor.u32 %v4291_v11, %v4043_v12  ;;  %v4322_v17 = vld [vmem:[%s5564_s29 + $0x78] sm:$0xff]  ;;  %v4321_v20 = vld [vmem:[%s5564_s29 + $0x70] sm:$0xff]  ;;  %v4312_v23 = vld [vmem:[%s5564_s29 + $0x28] sm:$0xff] }
 0xcf4   : > { %2988 = vmatpush.bf16.msra.mxu0 %v3994_v40  ;;  %v4320_v24 = vld [vmem:[%s5564_s29 + $0x68] sm:$0xff]  ;;  %v4467_v30 = vld [vmem:[%s5565_s16] ss:$0 sm:$0xff]  ;;  %v4317_v47 = vld [vmem:[%s5564_s29 + $0x50] sm:$0xff] }
 0xcf5   : > { %3002 = vmatpush.bf16.msra.mxu1 %v3998_v44  ;;  %3124 = vmatpush.bf16.msra.mxu2 %v4058_v45  ;;  %v4319_v43 = vld [vmem:[%s5564_s29 + $0x60] sm:$0xff]  ;;  %v4318_v44 = vld [vmem:[%s5564_s29 + $0x58] sm:$0xff]  ;;  %v4309_v45 = vld [vmem:[%s5564_s29 + $0x10] sm:$0xff] }
 0xcf6   : > { %3138 = vmatpush.bf16.msra.mxu3 %v4062_v50  ;;  %v4308_v49 = vld [vmem:[%s5564_s29 + $0x8] sm:$0xff]  ;;  %v4307_v51 = vld [vmem:[%s5564_s29] sm:$0xff] }
 0xcf7   : > { %v4316_v50 = vld [vmem:[%s5564_s29 + $0x48] sm:$0xff]  ;;  %v4315_v52 = vld [vmem:[%s5564_s29 + $0x40] sm:$0xff] }
 0xcf8   : > { %2989 = vmatpush.bf16.msra.mxu0 %v3986_v56  ;;  %v3033_v57 = vld [vmem:[%s5566_s26] sm:$0x3] }
 0xcf9   : > { %3003 = vmatpush.bf16.msra.mxu1 %v3990_v59  ;;  %3125 = vmatpush.bf16.msra.mxu2 %v4050_v60  ;;  %v3035_v61 = vperm.slane %v3033_v57, 0  ;;  %v3036_v32 = vperm.slane %v3033_v57, 1  ;;  %v4468_v11 = vld [vmem:[%s5567_s5] ss:$0 sm:$0xff] }
 0xcfa   : > { %3139 = vmatpush.bf16.msra.mxu3 %v4054_v62 }
 0xcfc   : > { %2990 = vmatpush.bf16.msra.mxu0 %v3978_v5 }
 0xcfd   : > { %3004 = vmatpush.bf16.msra.mxu1 %v3982_v9  ;;  %3126 = vmatpush.bf16.msra.mxu2 %v4042_v10 }
 0xcfe   : > { %3140 = vmatpush.bf16.msra.mxu3 %v4046_v14 }
 0xd00   : > { %3285 = vmatpush.bf16.msrb.mxu0 %v4314_v16 }
 0xd01   : > { %3299 = vmatpush.bf16.msrb.mxu1 %v4322_v17 }
 0xd04   : > { %3286 = vmatpush.bf16.msrb.mxu0 %v4313_v19 }
 0xd05   : > { %3300 = vmatpush.bf16.msrb.mxu1 %v4321_v20 }
 0xd08   : > { %3287 = vmatpush.bf16.msrb.mxu0 %v4312_v23 }
 0xd09   : > { %3301 = vmatpush.bf16.msrb.mxu1 %v4320_v24 }
 0xd0d   : > { %3302 = vmatpush.bf16.msrb.mxu1 %v4319_v43 }
 0xd11   : > { %3303 = vmatpush.bf16.msrb.mxu1 %v4318_v44 }
 0xd15   : > { %3304 = vmatpush.bf16.msrb.mxu1 %v4317_v47 }
 0xd19   : > { %3305 = vmatpush.bf16.msrb.mxu1 %v4316_v50 }
 0xd1d   : > { %3306 = vmatpush.bf16.msrb.mxu1 %v4315_v52 }
 0xd52   : > { %v2852_v4 = vpop.xlane.xlu0 %2851 }
 0xd53   : > { %v2855_v48 = vmul.f32 %v2852_v4, %v4809_v13 }
 0xd55   : > { %v2857_v15 = vadd.f32 1e-06, %v2855_v48 }
 0xd57   : > { %4469 = vrsqrt.f32 %v2857_v15  ;;  %vm2865_vm10 = vweird.f32 %v2857_v15 }
 0xd5a   : > { %v2854_v18 = vpop.xlane.xlu0 %2853 }
 0xd5b   : > { %v2856_v21 = vmul.f32 %v2854_v18, %v4809_v13 }
 0xd5d   : > { %v4470_v38 = vpop.eup %4469  ;;  %v2858_v54 = vadd.f32 1e-06, %v2856_v21 }
 0xd5e   : > { %v2860_v22 = vmul.f32 %v4470_v38, %v2857_v15  ;;  %vm2866_vm9 = vweird.f32 %v4470_v38 }
 0xd5f   : > { %4471 = vrsqrt.f32 %v2858_v54  ;;  %vm2867_vm11 = vmor %vm2865_vm10, %vm2866_vm9  ;;  %vm2875_vm13 = vweird.f32 %v2858_v54 }
 0xd60   : > { %v2861_v46 = vmul.f32 %v4470_v38, %v2860_v22 }
 0xd62   : > { %v2862_v26 = vmul.f32 0.5, %v2861_v46 }
 0xd64   : > { %v2863_v27 = vsub.f32 1.5, %v2862_v26 }
 0xd65   : > { %v4472_v13 = vpop.eup %4471 }
 0xd66   : > { %v2864_v28 = vmul.f32 %v4470_v38, %v2863_v27  ;;  %v2870_v29 = vmul.f32 %v4472_v13, %v2858_v54  ;;  %vm2876_vm12 = vweird.f32 %v4472_v13 }
 0xd67   : > { %vm2877_vm14 = vmor %vm2875_vm13, %vm2876_vm12 }
 0xd68   : > { %v2868_v31 = vsel %vm2867_vm11, %v4470_v38, %v2864_v28  ;;  %v2871_v35 = vmul.f32 %v4472_v13, %v2870_v29 }
 0xd69   : > { %v2879_v36 = vmul.f32 %v2868_v31, %v5207_v33  ;;  %v4311_v33 = vld [vmem:[%s5564_s29 + $0x20] sm:$0xff] }
 0xd6a   : > { %v2872_v2 = vmul.f32 0.5, %v2871_v35  ;;  %3288 = vmatpush.bf16.msrb.mxu0 %v4311_v33 }
 0xd6b   : > { %v2884_v37 = vmul.f32 %v4467_v30, %v2879_v36 }
 0xd6c   : > { %v2873_v3 = vsub.f32 1.5, %v2872_v2 }
 0xd6d   : > { %3015 = vst [vmem:[#allocation3] sm:$0xff] %v2884_v37 }
 0xd6e   : > { %v2874_v39 = vmul.f32 %v4472_v13, %v2873_v3 }
 0xd70   : > { %v2878_v53 = vsel %vm2877_vm14, %v4472_v13, %v2874_v39 }
 0xd71   : > { %v2880_v40 = vmul.f32 %v2878_v53, %v5211_v34  ;;  %v4310_v34 = vld [vmem:[%s5564_s29 + $0x18] sm:$0xff] }
 0xd72   : > { %3289 = vmatpush.bf16.msrb.mxu0 %v4310_v34 }
 0xd73   : > { %v2885_v41 = vmul.f32 %v4467_v30, %v2880_v40 }
 0xd75   : > { %v2886_v42 = vpack.c.bf16 %v2885_v41, %v2884_v37  ;;  %3016 = vst [vmem:[#allocation3 + $0x8] sm:$0xff] %v2885_v41 }
 0xd76   : > { %3290 = vmatpush.bf16.msrb.mxu0 %v4309_v45 }
 0xd77   : > { %2991 = vmatmul.bf16.vlgmr.msra.gmra.mxu0 %v2886_v42  ;;  %3005 = vmatmul.bf16.vlgmr.msra.gmra.mxu1 %v2886_v42 }
 0xd78   : > { %3127 = vmatmul.bf16.vlgmr.msra.gmra.mxu2 %v2886_v42  ;;  %3141 = vmatmul.bf16.vlgmr.msra.gmra.mxu3 %v2886_v42 }
 0xd7a   : > { %3291 = vmatpush.bf16.msrb.mxu0 %v4308_v49 }
 0xd7e   : > { %3292 = vmatpush.bf16.msrb.mxu0 %v4307_v51 }
 0xdf4   : > { %v2992_v55 = vpop.f32.mrf.mxu0  ;;  %v3006_v56 = vpop.f32.mrf.mxu1 }
 0xdf5   : > { %3011 = vst [vmem:[#allocation5] sm:$0xff] %v2992_v55 }
 0xdf6   : > { %3012 = vst [vmem:[#allocation5 + $0x8] sm:$0xff] %v3006_v56 }
 0xdfb   : > { %v3128_v25 = vpop.f32.mrf.mxu2  ;;  %v3142_v58 = vpop.f32.mrf.mxu3 }
 0xdfc   : > { %v2994_v59 = vpop.f32.mrf.mxu0  ;;  %v3008_v60 = vpop.f32.mrf.mxu1  ;;  %v3129_v62 = vadd.f32 %v3128_v25, %v3035_v61  ;;  %v3143_v63 = vadd.f32 %v3142_v58, %v3036_v32 }
 0xdfd   : > { %3013 = vst [vmem:[#allocation5 + $0x10] sm:$0xff] %v2994_v59 }
 0xdfe   : > { %3014 = vst [vmem:[#allocation5 + $0x18] sm:$0xff] %v3008_v60  ;;  %v3147_v6 = vmax.f32 %v3129_v62, 0.0  ;;  %v3148_v7 = vmax.f32 %v3143_v63, 0.0 }
 0xe03   : > { %v3130_v0 = vpop.f32.mrf.mxu2  ;;  %v3144_v1 = vpop.f32.mrf.mxu3 }
 0xe04   : > { %v3131_v4 = vadd.f32 %v3130_v0, %v3035_v61  ;;  %v3145_v5 = vadd.f32 %v3144_v1, %v3036_v32 }
 0xe06   : > { %v3149_v8 = vmax.f32 %v3131_v4, 0.0  ;;  %v3150_v48 = vmax.f32 %v3145_v5, 0.0 }
 0xe08   : > { %v3151_v9 = vpack.c.bf16 %v3149_v8, %v3147_v6  ;;  %v3152_v10 = vpack.c.bf16 %v3150_v48, %v3148_v7 }
 0xe0a   : > { %3293 = vmatmul.bf16.vlgmr.msrb.gmra.mxu0 %v3151_v9  ;;  %3307 = vmatmul.bf16.vlgmr.msrb.gmra.mxu1 %v3152_v10 }
 0xe87   : > { %v3294_v12 = vpop.f32.mrf.mxu0  ;;  %v3308_v14 = vpop.f32.mrf.mxu1 }
 0xe88   : > { %v3295_v15 = vadd.f32 %v4468_v11, %v3294_v12 }
 0xe8a   : > { %v3309_v16 = vadd.f32 %v3308_v14, %v3295_v15 }
 0xe8c   : > { %3313 = vst [vmem:[%s5568_s8] sm:$0xff] %v3309_v16 }
 0xe8f   : > { %v3296_v17 = vpop.f32.mrf.mxu0  ;;  %v3310_v19 = vpop.f32.mrf.mxu1 }
 0xe90   : > { %v3297_v18 = vadd.f32 %v4468_v11, %v3296_v17 }
 0xe92   : > { %v3311_v20 = vadd.f32 %v3310_v19, %v3297_v18 }
 0xe94   : > { %3314 = vst [vmem:[%s5568_s8 + $0x8] sm:$0xff] %v3311_v20 }
 0xe95 PF: > { %p4332_p7 = scmp.eq.s32.totalorder %s4681_s30, 1  ;;  %s4549_s0 = smov [#allocation3]  }
 0xe96   : > { %s3329_s22 = sshll.u32 %s4549_s0, 4  ;;  %s5569_s17 = sld [smem:[#allocation24_spill]]  ;;  %s3330_s22 = int_to_ptr.vmem [resolvable:$true] %s3329_s22 }
 0xe97   : > { %s4550_s1 = smov 128   ;;  %s4551_s18 = smov 8  }
 0xe98   : > { %s5570_s4 = sld [smem:[#allocation25_spill]]  ;;  %s4552_s23 = smov [#allocation5]  }
 0xe99   : > { %s3343_s14 = sshll.u32 %s4552_s23, 4  ;;  %s4553_s24 = smov 256   ;;  %s3344_s14 = int_to_ptr.vmem [resolvable:$true] %s3343_s14 }
 0xe9a   : > { %s4554_s7 = smov 16  }
 0xe9c   : > { %s3331_s2 = sshll.u32 %s5569_s17, 4  ;;  %s3332_s2 = int_to_ptr.hbm [resolvable:$true] %s3331_s2 }
 0xe9d   : > { %4325 = dma.vmem_to_hbm [thread:$0]  (%p4332_p7), %s3330_s22, 256, %s3332_s2, [#allocation4], %s4550_s1, %s4550_s1, %s4551_s18  }
 0xe9e   : > { %s3345_s5 = sshll.u32 %s5570_s4, 4  ;;  %s3346_s5 = int_to_ptr.hbm [resolvable:$true] %s3345_s5 }
 0xe9f   : > { %4327 = dma.vmem_to_hbm [thread:$0]  (%p4332_p7), %s3344_s14, 512, %s3346_s5, [#allocation6], %s4553_s24, %s4553_s24, %s4554_s7  }
 0xea0   : > { %4534 = dma.done.wait (%p4332_p7), [#allocation4], 256  }
 0xea1   : > { %4536 = vsyncadd (%p4332_p7), [#allocation4], 4294967040 }
 0xea2   : > { %4538 = dma.done.wait (%p4332_p7), [#allocation6], 512  }
 0xea3   : > { %4540 = vsyncadd (%p4332_p7), [#allocation6], 4294966784 }
 0xea4 PF: > { %s5571_s0 = sld [smem:[#allocation9_spill]] }
 0xeaa   : > { %s36_s4 = sadd.s32 1, %s5571_s0  }
 0xeab   : > { %p33_p8 = scmp.ge.s32.totalorder %s36_s4, 4  }
 0xead   :  { %35 = sbr.rel (!%p33_p8) target bundleno = 20 (0x14), region = 197 }
 0xeb2   :  { %3381 = vsyncpa [#allocation4], 1 }
 0xeb3   :  { %3383 = vsyncpa [#allocation4 + $0x1], 1 }
 0xeb4   :  { %3384 = vsyncpa [#allocation6], 1 }

</bundles_post_ra>
